<compile_context>
chip_gen: v7x
topology: tpu7x:2x2x1
jax: 0.10.0
libtpu: 0.0.40
codegen_flags: <defaults>
</compile_context>

<pallas_src>
import jax
import jax.numpy as jnp
from jax import lax
from jax.experimental import pallas as pl
from jax.experimental.pallas import tpu as pltpu
import numpy as np


_VMEM_LIMIT = 64 * 1024 * 1024


def _round_up(x, m):
    return (x + m - 1) // m * m


def _relu6(x):
    return jnp.clip(x, 0.0, 6.0)


def _compiler_params(n_axes):
    return pltpu.CompilerParams(
        dimension_semantics=("parallel",) * n_axes,
        vmem_limit_bytes=_VMEM_LIMIT)


# ---------------------------------------------------------------------------
# Pallas kernels
# ---------------------------------------------------------------------------

def _pointwise_kernel(x_ref, w_ref, o_ref):
    # x: (TM, Cp) bf16, w: (Cp, Ctot) bf16 -> o: (TM, Ctot) bf16
    y = jnp.dot(x_ref[...], w_ref[...], preferred_element_type=jnp.float32)
    o_ref[...] = _relu6(y).astype(o_ref.dtype)


def _make_tap_conv_kernel(H, W):
    """3x3, stride 1, pad 1 conv + ReLU6 on a padded & flattened image."""
    Wp = W + 2
    M = H * Wp                       # "wide" output rows (cols >= W are garbage)

    def kernel(x_ref, w_ref, o_ref):
        # x: (1, L, Cin) bf16 zero-padded flat; w: (9, Cin, Cout) bf16
        cout = w_ref.shape[-1]
        acc = jnp.zeros((M, cout), jnp.float32)
        for dy in range(3):
            for dx in range(3):
                off = dy * Wp + dx
                tap = x_ref[0, pl.ds(off, M), :]          # contiguous slice
                acc = acc + jnp.dot(tap, w_ref[dy * 3 + dx],
                                    preferred_element_type=jnp.float32)
        o_ref[0] = _relu6(acc).astype(o_ref.dtype)

    return kernel


def _make_avgpool_conv_kernel(H, W):
    """AvgPool2d(3,1,1, count_include_pad=True) + 1x1 conv + ReLU6, fused."""
    Wp = W + 2
    M = H * Wp

    def kernel(x_ref, w_ref, o_ref):
        # x: (1, L, Cp) bf16 zero-padded flat; w: (Cp, Cout) bf16
        cin = x_ref.shape[-1]
        pooled = jnp.zeros((M, cin), jnp.float32)
        for dy in range(3):
            for dx in range(3):
                off = dy * Wp + dx
                pooled = pooled + x_ref[0, pl.ds(off, M), :].astype(jnp.float32)
        pooled = (pooled * (1.0 / 9.0)).astype(jnp.bfloat16)
        y = jnp.dot(pooled, w_ref[...], preferred_element_type=jnp.float32)
        o_ref[0] = _relu6(y).astype(o_ref.dtype)

    return kernel


# ---------------------------------------------------------------------------
# pallas_call wrappers
# ---------------------------------------------------------------------------

def fused_pointwise(x2d, w, out_dtype=jnp.bfloat16, tm_max=1024):
    """relu6(x2d @ w), tiled over rows.  x2d: (M, Cp) bf16, w: (Cp, Ctot) bf16."""
    m, cp = x2d.shape
    ctot = w.shape[1]
    tm = min(tm_max, _round_up(m, 8))
    mp = _round_up(m, tm)
    if mp != m:
        x2d = jnp.pad(x2d, ((0, mp - m), (0, 0)))
    out = pl.pallas_call(
        _pointwise_kernel,
        out_shape=jax.ShapeDtypeStruct((mp, ctot), out_dtype),
        grid=(mp // tm,),
        in_specs=[pl.BlockSpec((tm, cp), lambda i: (i, 0)),
                  pl.BlockSpec((cp, ctot), lambda i: (0, 0))],
        out_specs=pl.BlockSpec((tm, ctot), lambda i: (i, 0)),
        compiler_params=_compiler_params(1),
    )(x2d, w)
    return out[:m] if mp != m else out


def tap_conv3x3(x_padflat, w_hwio, H, W, out_dtype):
    """3x3/stride1/pad1 conv + ReLU6.  Input is zero-padded & flattened:
    (N, (H+3)*(W+2), Cin).  Returns the "wide" output (N, H*(W+2), Cout);
    only columns [0, W) of each row are valid."""
    n, l, cin = x_padflat.shape
    cout = w_hwio.shape[-1]
    m_out = H * (W + 2)
    w9 = w_hwio.reshape(9, cin, cout).astype(jnp.bfloat16)
    return pl.pallas_call(
        _make_tap_conv_kernel(H, W),
        out_shape=jax.ShapeDtypeStruct((n, m_out, cout), out_dtype),
        grid=(n,),
        in_specs=[pl.BlockSpec((1, l, cin), lambda b: (b, 0, 0)),
                  pl.BlockSpec((9, cin, cout), lambda b: (0, 0, 0))],
        out_specs=pl.BlockSpec((1, m_out, cout), lambda b: (b, 0, 0)),
        compiler_params=_compiler_params(1),
    )(x_padflat, w9)


def avgpool_conv1x1(x_padflat, w, H, W, out_dtype=jnp.float32):
    """AvgPool2d(3,1,1) + 1x1 conv + ReLU6, fused.  Same layouts as tap_conv3x3."""
    n, l, cin = x_padflat.shape
    cout = w.shape[-1]
    m_out = H * (W + 2)
    return pl.pallas_call(
        _make_avgpool_conv_kernel(H, W),
        out_shape=jax.ShapeDtypeStruct((n, m_out, cout), out_dtype),
        grid=(n,),
        in_specs=[pl.BlockSpec((1, l, cin), lambda b: (b, 0, 0)),
                  pl.BlockSpec((cin, cout), lambda b: (0, 0))],
        out_specs=pl.BlockSpec((1, m_out, cout), lambda b: (b, 0, 0)),
        compiler_params=_compiler_params(1),
    )(x_padflat, w.astype(jnp.bfloat16))


# ---------------------------------------------------------------------------
# Layout helpers (XLA glue: pure views / tiny pad & crop passes)
# ---------------------------------------------------------------------------

def _pad_flatten(x_nhwc):
    """Zero-pad spatially (top 1, bottom 2, left 1, right 1) and flatten HxW.
    The extra bottom row gives the in-kernel tap slices OOB slack."""
    n, h, w, c = x_nhwc.shape
    xp = jnp.pad(x_nhwc, ((0, 0), (1, 2), (1, 1), (0, 0)))
    return xp.reshape(n, (h + 3) * (w + 2), c)


def _crop_wide(y_wide, H, W):
    n, _, c = y_wide.shape
    return y_wide.reshape(n, H, W + 2, c)[:, :, :W, :]


def _crop_padflat(y_pf, H, W):
    n, _, c = y_pf.shape
    return y_pf.reshape(n, H + 3, W + 2, c)[:, 1:H + 1, 1:W + 1, :]


# ---------------------------------------------------------------------------
# InceptionV2_base forward
# ---------------------------------------------------------------------------

def init_params(key, in_channel, layers=(64, 64, 64, 64, 96, 96, 32)):
    """Kaiming-like init.  1x1 convs stored as (Cin, Cout), 3x3 as (3,3,Cin,Cout)."""
    keys = jax.random.split(key, 7)

    def he(k, shape, fan_in):
        return jax.random.normal(k, shape, jnp.float32) * (2.0 / fan_in) ** 0.5

    return {
        "b1":  he(keys[0], (in_channel, layers[0]), in_channel),
        "b2a": he(keys[1], (in_channel, layers[1]), in_channel),
        "b2b": he(keys[2], (3, 3, layers[1], layers[2]), 9 * layers[1]),
        "b3a": he(keys[3], (in_channel, layers[3]), in_channel),
        "b3b": he(keys[4], (3, 3, layers[3], layers[4]), 9 * layers[3]),
        "b3c": he(keys[5], (3, 3, layers[4], layers[5]), 9 * layers[4]),
        "b4":  he(keys[6], (in_channel, layers[6]), in_channel),
    }


@jax.jit
def inception_v2_base(x_nchw, params):
    x = jnp.transpose(x_nchw, (0, 2, 3, 1)).astype(jnp.float32)   # NCHW -> NHWC
    n, h, w, cin = x.shape

    # Pad the tiny input channel dim to a multiple of 8 sublanes.
    cp = max(8, _round_up(cin, 8))
    if cp != cin:
        x = jnp.pad(x, ((0, 0), (0, 0), (0, 0), (0, cp - cin)))

    x_pf = _pad_flatten(x).astype(jnp.bfloat16)                   # (N, L, Cp)
    l = x_pf.shape[1]

    c1 = params["b1"].shape[1]
    c2a = params["b2a"].shape[1]
    c3a = params["b3a"].shape[1]

    # Fused 1x1 stage: [branch_1 | branch_2 1x1 | branch_3 1x1] in one matmul.
    # Computing on the zero-padded domain means t2/t3 come out already padded
    # for the following 3x3 convs (no bias, relu6(0) == 0).
    w_cat = jnp.concatenate([params["b1"], params["b2a"], params["b3a"]], axis=1)
    w_cat = jnp.pad(w_cat, ((0, cp - cin), (0, 0))).astype(jnp.bfloat16)
    pw = fused_pointwise(x_pf.reshape(n * l, cp), w_cat)          # (N*L, 192) bf16
    pw = pw.reshape(n, l, c1 + c2a + c3a)
    b1_pf = pw[..., :c1]
    t2_pf = pw[..., c1:c1 + c2a]
    t3_pf = pw[..., c1 + c2a:]

    # branch 2: 3x3 conv.
    b2_wide = tap_conv3x3(t2_pf, params["b2b"], h, w, jnp.float32)

    # branch 3: two chained 3x3 convs (intermediate kept bf16 in HBM).
    t3b_wide = tap_conv3x3(t3_pf, params["b3b"], h, w, jnp.bfloat16)
    t3b_pf = _pad_flatten(_crop_wide(t3b_wide, h, w))
    b3_wide = tap_conv3x3(t3b_pf, params["b3c"], h, w, jnp.float32)

    # branch 4: fused avg-pool(3x3) + 1x1 conv + ReLU6.
    w4 = jnp.pad(params["b4"], ((0, cp - cin), (0, 0)))
    b4_wide = avgpool_conv1x1(x_pf, w4, h, w, jnp.float32)

    y = jnp.concatenate([
        _crop_padflat(b1_pf, h, w).astype(jnp.float32),
        _crop_wide(b2_wide, h, w),
        _crop_wide(b3_wide, h, w),
        _crop_wide(b4_wide, h, w),
    ], axis=-1)
    return jnp.transpose(y, (0, 3, 1, 2))                         # NHWC -> NCHW


# ---------------------------------------------------------------------------
# Pure-JAX reference (matches the PyTorch forward semantics)
# ---------------------------------------------------------------------------

def ref_forward(x_nchw, params):
    x = jnp.transpose(x_nchw, (0, 2, 3, 1))

    def conv(inp, w, pad):
        return lax.conv_general_dilated(
            inp, w, (1, 1), [(pad, pad), (pad, pad)],
            dimension_numbers=("NHWC", "HWIO", "NHWC"),
            precision=lax.Precision.HIGHEST)

    r6 = lambda t: jnp.clip(t, 0.0, 6.0)
    b1 = r6(conv(x, params["b1"][None, None], 0))
    b2 = r6(conv(r6(conv(x, params["b2a"][None, None], 0)), params["b2b"], 1))
    t3 = r6(conv(x, params["b3a"][None, None], 0))
    t3 = r6(conv(t3, params["b3b"], 1))
    b3 = r6(conv(t3, params["b3c"], 1))
    # AvgPool2d(3,1,1) default count_include_pad=True -> window sum / 9.
    pooled = lax.reduce_window(x, 0.0, lax.add, (1, 3, 3, 1), (1, 1, 1, 1),
                               [(0, 0), (1, 1), (1, 1), (0, 0)]) / 9.0
    b4 = r6(conv(pooled, params["b4"][None, None], 0))
    y = jnp.concatenate([b1, b2, b3, b4], axis=-1)
    return jnp.transpose(y, (0, 3, 1, 2))


if __name__ == "__main__":
    key = jax.random.PRNGKey(0)
    kx, kp = jax.random.split(key)
    in_channel = 4
    x = jax.random.normal(kx, (2, in_channel, 16, 16), jnp.float32)
    params = init_params(kp, in_channel)

    y = inception_v2_base(x, params)
    y = jax.block_until_ready(y)

    assert y.shape == (2, 64 + 64 + 96 + 32, 16, 16), y.shape

    y_ref = ref_forward(x, params)
    # Kernels use single-pass bf16 MXU matmuls vs. the f32 HIGHEST reference,
    # so the comparison tolerance is loose on purpose.
    np.testing.assert_allclose(np.asarray(y), np.asarray(y_ref),
                               atol=1e-1, rtol=5e-2)
    print("KERNEL_OK")
</pallas_src>

<mosaic_0001>
module attributes {stable_mosaic.version = 11 : i64} {
  func.func @kernel(%arg0: i32, %arg1: memref<1x342x8xbf16, #tpu.memory_space<vmem>>, %arg2: memref<8x32xbf16, #tpu.memory_space<vmem>>, %arg3: memref<1x288x32xf32, #tpu.memory_space<vmem>>) attributes {dimension_semantics = [#tpu.dimension_semantics<parallel>], iteration_bounds = array<i64: 2>, scalar_prefetch = 0 : i64, scratch_operands = 0 : i64, tpu.core_type = #tpu.core_type<tc>, window_params = [{transform_indices = @transform_0, window_bounds = array<i64: 1, 342, 8>}, {pipeline_mode = #tpu.pipeline_mode<synchronous>, transform_indices = @transform_1, window_bounds = array<i64: 8, 32>}, {transform_indices = @transform_2, window_bounds = array<i64: 1, 288, 32>}]} {
    %cst = arith.constant 0.000000e+00 : f32
    %0 = vector.broadcast %cst : f32 to vector<288x8xf32>
    %c0 = arith.constant 0 : index
    %c0_0 = arith.constant 0 : index
    %c0_1 = arith.constant 0 : index
    %1 = vector.load %arg1[%c0, %c0_0, %c0_1] : memref<1x342x8xbf16, #tpu.memory_space<vmem>>, vector<1x288x8xbf16>
    %2 = vector.shape_cast %1 : vector<1x288x8xbf16> to vector<288x8xbf16>
    %3 = arith.extf %2 : vector<288x8xbf16> to vector<288x8xf32>
    %4 = arith.addf %0, %3 : vector<288x8xf32>
    %c0_2 = arith.constant 0 : index
    %c1 = arith.constant 1 : index
    %c0_3 = arith.constant 0 : index
    %5 = vector.load %arg1[%c0_2, %c1, %c0_3] : memref<1x342x8xbf16, #tpu.memory_space<vmem>>, vector<1x288x8xbf16>
    %6 = vector.shape_cast %5 : vector<1x288x8xbf16> to vector<288x8xbf16>
    %7 = arith.extf %6 : vector<288x8xbf16> to vector<288x8xf32>
    %8 = arith.addf %4, %7 : vector<288x8xf32>
    %c0_4 = arith.constant 0 : index
    %c2 = arith.constant 2 : index
    %c0_5 = arith.constant 0 : index
    %9 = vector.load %arg1[%c0_4, %c2, %c0_5] : memref<1x342x8xbf16, #tpu.memory_space<vmem>>, vector<1x288x8xbf16>
    %10 = vector.shape_cast %9 : vector<1x288x8xbf16> to vector<288x8xbf16>
    %11 = arith.extf %10 : vector<288x8xbf16> to vector<288x8xf32>
    %12 = arith.addf %8, %11 : vector<288x8xf32>
    %c0_6 = arith.constant 0 : index
    %c18 = arith.constant 18 : index
    %c0_7 = arith.constant 0 : index
    %13 = vector.load %arg1[%c0_6, %c18, %c0_7] : memref<1x342x8xbf16, #tpu.memory_space<vmem>>, vector<1x288x8xbf16>
    %14 = vector.shape_cast %13 : vector<1x288x8xbf16> to vector<288x8xbf16>
    %15 = arith.extf %14 : vector<288x8xbf16> to vector<288x8xf32>
    %16 = arith.addf %12, %15 : vector<288x8xf32>
    %c0_8 = arith.constant 0 : index
    %c19 = arith.constant 19 : index
    %c0_9 = arith.constant 0 : index
    %17 = vector.load %arg1[%c0_8, %c19, %c0_9] : memref<1x342x8xbf16, #tpu.memory_space<vmem>>, vector<1x288x8xbf16>
    %18 = vector.shape_cast %17 : vector<1x288x8xbf16> to vector<288x8xbf16>
    %19 = arith.extf %18 : vector<288x8xbf16> to vector<288x8xf32>
    %20 = arith.addf %16, %19 : vector<288x8xf32>
    %c0_10 = arith.constant 0 : index
    %c20 = arith.constant 20 : index
    %c0_11 = arith.constant 0 : index
    %21 = vector.load %arg1[%c0_10, %c20, %c0_11] : memref<1x342x8xbf16, #tpu.memory_space<vmem>>, vector<1x288x8xbf16>
    %22 = vector.shape_cast %21 : vector<1x288x8xbf16> to vector<288x8xbf16>
    %23 = arith.extf %22 : vector<288x8xbf16> to vector<288x8xf32>
    %24 = arith.addf %20, %23 : vector<288x8xf32>
    %c0_12 = arith.constant 0 : index
    %c36 = arith.constant 36 : index
    %c0_13 = arith.constant 0 : index
    %25 = vector.load %arg1[%c0_12, %c36, %c0_13] : memref<1x342x8xbf16, #tpu.memory_space<vmem>>, vector<1x288x8xbf16>
    %26 = vector.shape_cast %25 : vector<1x288x8xbf16> to vector<288x8xbf16>
    %27 = arith.extf %26 : vector<288x8xbf16> to vector<288x8xf32>
    %28 = arith.addf %24, %27 : vector<288x8xf32>
    %c0_14 = arith.constant 0 : index
    %c37 = arith.constant 37 : index
    %c0_15 = arith.constant 0 : index
    %29 = vector.load %arg1[%c0_14, %c37, %c0_15] : memref<1x342x8xbf16, #tpu.memory_space<vmem>>, vector<1x288x8xbf16>
    %30 = vector.shape_cast %29 : vector<1x288x8xbf16> to vector<288x8xbf16>
    %31 = arith.extf %30 : vector<288x8xbf16> to vector<288x8xf32>
    %32 = arith.addf %28, %31 : vector<288x8xf32>
    %c0_16 = arith.constant 0 : index
    %c38 = arith.constant 38 : index
    %c0_17 = arith.constant 0 : index
    %33 = vector.load %arg1[%c0_16, %c38, %c0_17] : memref<1x342x8xbf16, #tpu.memory_space<vmem>>, vector<1x288x8xbf16>
    %34 = vector.shape_cast %33 : vector<1x288x8xbf16> to vector<288x8xbf16>
    %35 = arith.extf %34 : vector<288x8xbf16> to vector<288x8xf32>
    %36 = arith.addf %32, %35 : vector<288x8xf32>
    %cst_18 = arith.constant 0.111111112 : f32
    %37 = vector.broadcast %cst_18 : f32 to vector<288x8xf32>
    %38 = arith.mulf %36, %37 : vector<288x8xf32>
    %39 = arith.truncf %38 : vector<288x8xf32> to vector<288x8xbf16>
    %c0_19 = arith.constant 0 : index
    %c0_20 = arith.constant 0 : index
    %40 = vector.load %arg2[%c0_19, %c0_20] : memref<8x32xbf16, #tpu.memory_space<vmem>>, vector<8x32xbf16>
    %cst_21 = arith.constant dense<0.000000e+00> : vector<288x32xf32>
    %41 = tpu.matmul %39, %40, %cst_21 {dimension_numbers = #tpu.dot_dimension_numbers<[1], [0], [0], [1], [0, 0, 1, 1], [], []>} : vector<288x8xbf16>, vector<8x32xbf16>, vector<288x32xf32> -> vector<288x32xf32>
    %cst_22 = arith.constant 0.000000e+00 : f32
    %cst_23 = arith.constant 6.000000e+00 : f32
    %42 = vector.broadcast %cst_22 : f32 to vector<288x32xf32>
    %43 = arith.maximumf %42, %41 : vector<288x32xf32>
    %44 = vector.broadcast %cst_23 : f32 to vector<288x32xf32>
    %45 = arith.minimumf %44, %43 : vector<288x32xf32>
    %c0_24 = arith.constant 0 : index
    %c0_25 = arith.constant 0 : index
    %c0_26 = arith.constant 0 : index
    %46 = vector.load %arg3[%c0_24, %c0_25, %c0_26] : memref<1x288x32xf32, #tpu.memory_space<vmem>>, vector<1x288x32xf32>
    %47 = vector.shape_cast %46 : vector<1x288x32xf32> to vector<288x32xf32>
    %48 = vector.shape_cast %45 : vector<288x32xf32> to vector<1x288x32xf32>
    tpu.vector_store %arg3[%c0_24, %c0_25, %c0_26], %48 {strides = array<i32>} : memref<1x288x32xf32, #tpu.memory_space<vmem>>, vector<1x288x32xf32>,
    return
  }
  func.func @transform_0(%arg0: i32) -> (i32, i32, i32) {
    %c0_i32 = arith.constant 0 : i32
    %c0_i32_0 = arith.constant 0 : i32
    %c0_i32_1 = arith.constant 0 : i32
    return %arg0, %c0_i32, %c0_i32_0 : i32, i32, i32
  }
  func.func @transform_1(%arg0: i32) -> (i32, i32) {
    %c0_i32 = arith.constant 0 : i32
    %c0_i32_0 = arith.constant 0 : i32
    %c0_i32_1 = arith.constant 0 : i32
    return %c0_i32, %c0_i32_0 : i32, i32
  }
  func.func @transform_2(%arg0: i32) -> (i32, i32, i32) {
    %c0_i32 = arith.constant 0 : i32
    %c0_i32_0 = arith.constant 0 : i32
    %c0_i32_1 = arith.constant 0 : i32
    return %arg0, %c0_i32, %c0_i32_0 : i32, i32, i32
  }
}

module attributes {stable_mosaic.version = 11 : i64} {
  func.func @_pointwise_kernel(%arg0: i32, %arg1: memref<688x8xbf16, #tpu.memory_space<vmem>>, %arg2: memref<8x192xbf16, #tpu.memory_space<vmem>>, %arg3: memref<688x192xbf16, #tpu.memory_space<vmem>>) attributes {dimension_semantics = [#tpu.dimension_semantics<parallel>], iteration_bounds = array<i64: 1>, scalar_prefetch = 0 : i64, scratch_operands = 0 : i64, tpu.core_type = #tpu.core_type<tc>, window_params = [{transform_indices = @transform_0, window_bounds = array<i64: 688, 8>}, {pipeline_mode = #tpu.pipeline_mode<synchronous>, transform_indices = @transform_1, window_bounds = array<i64: 8, 192>}, {transform_indices = @transform_2, window_bounds = array<i64: 688, 192>}]} {
    %c0 = arith.constant 0 : index
    %c0_0 = arith.constant 0 : index
    %0 = vector.load %arg1[%c0, %c0_0] : memref<688x8xbf16, #tpu.memory_space<vmem>>, vector<688x8xbf16>
    %c0_1 = arith.constant 0 : index
    %c0_2 = arith.constant 0 : index
    %1 = vector.load %arg2[%c0_1, %c0_2] : memref<8x192xbf16, #tpu.memory_space<vmem>>, vector<8x192xbf16>
    %cst = arith.constant dense<0.000000e+00> : vector<688x192xf32>
    %2 = tpu.matmul %0, %1, %cst {dimension_numbers = #tpu.dot_dimension_numbers<[1], [0], [0], [1], [0, 0, 1, 1], [], []>} : vector<688x8xbf16>, vector<8x192xbf16>, vector<688x192xf32> -> vector<688x192xf32>
    %cst_3 = arith.constant 0.000000e+00 : f32
    %cst_4 = arith.constant 6.000000e+00 : f32
    %3 = vector.broadcast %cst_3 : f32 to vector<688x192xf32>
    %4 = arith.maximumf %3, %2 : vector<688x192xf32>
    %5 = vector.broadcast %cst_4 : f32 to vector<688x192xf32>
    %6 = arith.minimumf %5, %4 : vector<688x192xf32>
    %7 = arith.truncf %6 : vector<688x192xf32> to vector<688x192xbf16>
    %c0_5 = arith.constant 0 : index
    %c0_6 = arith.constant 0 : index
    %8 = vector.load %arg3[%c0_5, %c0_6] : memref<688x192xbf16, #tpu.memory_space<vmem>>, vector<688x192xbf16>
    tpu.vector_store %arg3[%c0_5, %c0_6], %7 {strides = array<i32>} : memref<688x192xbf16, #tpu.memory_space<vmem>>, vector<688x192xbf16>,
    return
  }
  func.func @transform_0(%arg0: i32) -> (i32, i32) {
    %c0_i32 = arith.constant 0 : i32
    %c0_i32_0 = arith.constant 0 : i32
    return %arg0, %c0_i32 : i32, i32
  }
  func.func @transform_1(%arg0: i32) -> (i32, i32) {
    %c0_i32 = arith.constant 0 : i32
    %c0_i32_0 = arith.constant 0 : i32
    %c0_i32_1 = arith.constant 0 : i32
    return %c0_i32, %c0_i32_0 : i32, i32
  }
  func.func @transform_2(%arg0: i32) -> (i32, i32) {
    %c0_i32 = arith.constant 0 : i32
    %c0_i32_0 = arith.constant 0 : i32
    return %arg0, %c0_i32 : i32, i32
  }
}

module attributes {stable_mosaic.version = 11 : i64} {
  func.func @kernel(%arg0: i32, %arg1: memref<1x342x64xbf16, #tpu.memory_space<vmem>>, %arg2: memref<9x64x96xbf16, #tpu.memory_space<vmem>>, %arg3: memref<1x288x96xbf16, #tpu.memory_space<vmem>>) attributes {dimension_semantics = [#tpu.dimension_semantics<parallel>], iteration_bounds = array<i64: 2>, scalar_prefetch = 0 : i64, scratch_operands = 0 : i64, tpu.core_type = #tpu.core_type<tc>, window_params = [{transform_indices = @transform_0, window_bounds = array<i64: 1, 342, 64>}, {pipeline_mode = #tpu.pipeline_mode<synchronous>, transform_indices = @transform_1, window_bounds = array<i64: 9, 64, 96>}, {transform_indices = @transform_2, window_bounds = array<i64: 1, 288, 96>}]} {
    %cst = arith.constant 0.000000e+00 : f32
    %0 = vector.broadcast %cst : f32 to vector<288x96xf32>
    %c0 = arith.constant 0 : index
    %c0_0 = arith.constant 0 : index
    %c0_1 = arith.constant 0 : index
    %1 = vector.load %arg1[%c0, %c0_0, %c0_1] : memref<1x342x64xbf16, #tpu.memory_space<vmem>>, vector<1x288x64xbf16>
    %2 = vector.shape_cast %1 : vector<1x288x64xbf16> to vector<288x64xbf16>
    %c0_2 = arith.constant 0 : index
    %c0_3 = arith.constant 0 : index
    %c0_4 = arith.constant 0 : index
    %3 = vector.load %arg2[%c0_2, %c0_3, %c0_4] : memref<9x64x96xbf16, #tpu.memory_space<vmem>>, vector<1x64x96xbf16>
    %4 = vector.shape_cast %3 : vector<1x64x96xbf16> to vector<64x96xbf16>
    %cst_5 = arith.constant dense<0.000000e+00> : vector<288x96xf32>
    %5 = tpu.matmul %2, %4, %cst_5 {dimension_numbers = #tpu.dot_dimension_numbers<[1], [0], [0], [1], [0, 0, 1, 1], [], []>} : vector<288x64xbf16>, vector<64x96xbf16>, vector<288x96xf32> -> vector<288x96xf32>
    %6 = arith.addf %0, %5 : vector<288x96xf32>
    %c0_6 = arith.constant 0 : index
    %c1 = arith.constant 1 : index
    %c0_7 = arith.constant 0 : index
    %7 = vector.load %arg1[%c0_6, %c1, %c0_7] : memref<1x342x64xbf16, #tpu.memory_space<vmem>>, vector<1x288x64xbf16>
    %8 = vector.shape_cast %7 : vector<1x288x64xbf16> to vector<288x64xbf16>
    %c1_8 = arith.constant 1 : index
    %c0_9 = arith.constant 0 : index
    %c0_10 = arith.constant 0 : index
    %9 = vector.load %arg2[%c1_8, %c0_9, %c0_10] : memref<9x64x96xbf16, #tpu.memory_space<vmem>>, vector<1x64x96xbf16>
    %10 = vector.shape_cast %9 : vector<1x64x96xbf16> to vector<64x96xbf16>
    %cst_11 = arith.constant dense<0.000000e+00> : vector<288x96xf32>
    %11 = tpu.matmul %8, %10, %cst_11 {dimension_numbers = #tpu.dot_dimension_numbers<[1], [0], [0], [1], [0, 0, 1, 1], [], []>} : vector<288x64xbf16>, vector<64x96xbf16>, vector<288x96xf32> -> vector<288x96xf32>
    %12 = arith.addf %6, %11 : vector<288x96xf32>
    %c0_12 = arith.constant 0 : index
    %c2 = arith.constant 2 : index
    %c0_13 = arith.constant 0 : index
    %13 = vector.load %arg1[%c0_12, %c2, %c0_13] : memref<1x342x64xbf16, #tpu.memory_space<vmem>>, vector<1x288x64xbf16>
    %14 = vector.shape_cast %13 : vector<1x288x64xbf16> to vector<288x64xbf16>
    %c2_14 = arith.constant 2 : index
    %c0_15 = arith.constant 0 : index
    %c0_16 = arith.constant 0 : index
    %15 = vector.load %arg2[%c2_14, %c0_15, %c0_16] : memref<9x64x96xbf16, #tpu.memory_space<vmem>>, vector<1x64x96xbf16>
    %16 = vector.shape_cast %15 : vector<1x64x96xbf16> to vector<64x96xbf16>
    %cst_17 = arith.constant dense<0.000000e+00> : vector<288x96xf32>
    %17 = tpu.matmul %14, %16, %cst_17 {dimension_numbers = #tpu.dot_dimension_numbers<[1], [0], [0], [1], [0, 0, 1, 1], [], []>} : vector<288x64xbf16>, vector<64x96xbf16>, vector<288x96xf32> -> vector<288x96xf32>
    %18 = arith.addf %12, %17 : vector<288x96xf32>
    %c0_18 = arith.constant 0 : index
    %c18 = arith.constant 18 : index
    %c0_19 = arith.constant 0 : index
    %19 = vector.load %arg1[%c0_18, %c18, %c0_19] : memref<1x342x64xbf16, #tpu.memory_space<vmem>>, vector<1x288x64xbf16>
    %20 = vector.shape_cast %19 : vector<1x288x64xbf16> to vector<288x64xbf16>
    %c3 = arith.constant 3 : index
    %c0_20 = arith.constant 0 : index
    %c0_21 = arith.constant 0 : index
    %21 = vector.load %arg2[%c3, %c0_20, %c0_21] : memref<9x64x96xbf16, #tpu.memory_space<vmem>>, vector<1x64x96xbf16>
    %22 = vector.shape_cast %21 : vector<1x64x96xbf16> to vector<64x96xbf16>
    %cst_22 = arith.constant dense<0.000000e+00> : vector<288x96xf32>
    %23 = tpu.matmul %20, %22, %cst_22 {dimension_numbers = #tpu.dot_dimension_numbers<[1], [0], [0], [1], [0, 0, 1, 1], [], []>} : vector<288x64xbf16>, vector<64x96xbf16>, vector<288x96xf32> -> vector<288x96xf32>
    %24 = arith.addf %18, %23 : vector<288x96xf32>
    %c0_23 = arith.constant 0 : index
    %c19 = arith.constant 19 : index
    %c0_24 = arith.constant 0 : index
    %25 = vector.load %arg1[%c0_23, %c19, %c0_24] : memref<1x342x64xbf16, #tpu.memory_space<vmem>>, vector<1x288x64xbf16>
    %26 = vector.shape_cast %25 : vector<1x288x64xbf16> to vector<288x64xbf16>
    %c4 = arith.constant 4 : index
    %c0_25 = arith.constant 0 : index
    %c0_26 = arith.constant 0 : index
    %27 = vector.load %arg2[%c4, %c0_25, %c0_26] : memref<9x64x96xbf16, #tpu.memory_space<vmem>>, vector<1x64x96xbf16>
    %28 = vector.shape_cast %27 : vector<1x64x96xbf16> to vector<64x96xbf16>
    %cst_27 = arith.constant dense<0.000000e+00> : vector<288x96xf32>
    %29 = tpu.matmul %26, %28, %cst_27 {dimension_numbers = #tpu.dot_dimension_numbers<[1], [0], [0], [1], [0, 0, 1, 1], [], []>} : vector<288x64xbf16>, vector<64x96xbf16>, vector<288x96xf32> -> vector<288x96xf32>
    %30 = arith.addf %24, %29 : vector<288x96xf32>
    %c0_28 = arith.constant 0 : index
    %c20 = arith.constant 20 : index
    %c0_29 = arith.constant 0 : index
    %31 = vector.load %arg1[%c0_28, %c20, %c0_29] : memref<1x342x64xbf16, #tpu.memory_space<vmem>>, vector<1x288x64xbf16>
    %32 = vector.shape_cast %31 : vector<1x288x64xbf16> to vector<288x64xbf16>
    %c5 = arith.constant 5 : index
    %c0_30 = arith.constant 0 : index
    %c0_31 = arith.constant 0 : index
    %33 = vector.load %arg2[%c5, %c0_30, %c0_31] : memref<9x64x96xbf16, #tpu.memory_space<vmem>>, vector<1x64x96xbf16>
    %34 = vector.shape_cast %33 : vector<1x64x96xbf16> to vector<64x96xbf16>
    %cst_32 = arith.constant dense<0.000000e+00> : vector<288x96xf32>
    %35 = tpu.matmul %32, %34, %cst_32 {dimension_numbers = #tpu.dot_dimension_numbers<[1], [0], [0], [1], [0, 0, 1, 1], [], []>} : vector<288x64xbf16>, vector<64x96xbf16>, vector<288x96xf32> -> vector<288x96xf32>
    %36 = arith.addf %30, %35 : vector<288x96xf32>
    %c0_33 = arith.constant 0 : index
    %c36 = arith.constant 36 : index
    %c0_34 = arith.constant 0 : index
    %37 = vector.load %arg1[%c0_33, %c36, %c0_34] : memref<1x342x64xbf16, #tpu.memory_space<vmem>>, vector<1x288x64xbf16>
    %38 = vector.shape_cast %37 : vector<1x288x64xbf16> to vector<288x64xbf16>
    %c6 = arith.constant 6 : index
    %c0_35 = arith.constant 0 : index
    %c0_36 = arith.constant 0 : index
    %39 = vector.load %arg2[%c6, %c0_35, %c0_36] : memref<9x64x96xbf16, #tpu.memory_space<vmem>>, vector<1x64x96xbf16>
    %40 = vector.shape_cast %39 : vector<1x64x96xbf16> to vector<64x96xbf16>
    %cst_37 = arith.constant dense<0.000000e+00> : vector<288x96xf32>
    %41 = tpu.matmul %38, %40, %cst_37 {dimension_numbers = #tpu.dot_dimension_numbers<[1], [0], [0], [1], [0, 0, 1, 1], [], []>} : vector<288x64xbf16>, vector<64x96xbf16>, vector<288x96xf32> -> vector<288x96xf32>
    %42 = arith.addf %36, %41 : vector<288x96xf32>
    %c0_38 = arith.constant 0 : index
    %c37 = arith.constant 37 : index
    %c0_39 = arith.constant 0 : index
    %43 = vector.load %arg1[%c0_38, %c37, %c0_39] : memref<1x342x64xbf16, #tpu.memory_space<vmem>>, vector<1x288x64xbf16>
    %44 = vector.shape_cast %43 : vector<1x288x64xbf16> to vector<288x64xbf16>
    %c7 = arith.constant 7 : index
    %c0_40 = arith.constant 0 : index
    %c0_41 = arith.constant 0 : index
    %45 = vector.load %arg2[%c7, %c0_40, %c0_41] : memref<9x64x96xbf16, #tpu.memory_space<vmem>>, vector<1x64x96xbf16>
    %46 = vector.shape_cast %45 : vector<1x64x96xbf16> to vector<64x96xbf16>
    %cst_42 = arith.constant dense<0.000000e+00> : vector<288x96xf32>
    %47 = tpu.matmul %44, %46, %cst_42 {dimension_numbers = #tpu.dot_dimension_numbers<[1], [0], [0], [1], [0, 0, 1, 1], [], []>} : vector<288x64xbf16>, vector<64x96xbf16>, vector<288x96xf32> -> vector<288x96xf32>
    %48 = arith.addf %42, %47 : vector<288x96xf32>
    %c0_43 = arith.constant 0 : index
    %c38 = arith.constant 38 : index
    %c0_44 = arith.constant 0 : index
    %49 = vector.load %arg1[%c0_43, %c38, %c0_44] : memref<1x342x64xbf16, #tpu.memory_space<vmem>>, vector<1x288x64xbf16>
    %50 = vector.shape_cast %49 : vector<1x288x64xbf16> to vector<288x64xbf16>
    %c8 = arith.constant 8 : index
    %c0_45 = arith.constant 0 : index
    %c0_46 = arith.constant 0 : index
    %51 = vector.load %arg2[%c8, %c0_45, %c0_46] : memref<9x64x96xbf16, #tpu.memory_space<vmem>>, vector<1x64x96xbf16>
    %52 = vector.shape_cast %51 : vector<1x64x96xbf16> to vector<64x96xbf16>
    %cst_47 = arith.constant dense<0.000000e+00> : vector<288x96xf32>
    %53 = tpu.matmul %50, %52, %cst_47 {dimension_numbers = #tpu.dot_dimension_numbers<[1], [0], [0], [1], [0, 0, 1, 1], [], []>} : vector<288x64xbf16>, vector<64x96xbf16>, vector<288x96xf32> -> vector<288x96xf32>
    %54 = arith.addf %48, %53 : vector<288x96xf32>
    %cst_48 = arith.constant 0.000000e+00 : f32
    %cst_49 = arith.constant 6.000000e+00 : f32
    %55 = vector.broadcast %cst_48 : f32 to vector<288x96xf32>
    %56 = arith.maximumf %55, %54 : vector<288x96xf32>
    %57 = vector.broadcast %cst_49 : f32 to vector<288x96xf32>
    %58 = arith.minimumf %57, %56 : vector<288x96xf32>
    %59 = arith.truncf %58 : vector<288x96xf32> to vector<288x96xbf16>
    %c0_50 = arith.constant 0 : index
    %c0_51 = arith.constant 0 : index
    %c0_52 = arith.constant 0 : index
    %60 = vector.load %arg3[%c0_50, %c0_51, %c0_52] : memref<1x288x96xbf16, #tpu.memory_space<vmem>>, vector<1x288x96xbf16>
    %61 = vector.shape_cast %60 : vector<1x288x96xbf16> to vector<288x96xbf16>
    %62 = vector.shape_cast %59 : vector<288x96xbf16> to vector<1x288x96xbf16>
    tpu.vector_store %arg3[%c0_50, %c0_51, %c0_52], %62 {strides = array<i32>} : memref<1x288x96xbf16, #tpu.memory_space<vmem>>, vector<1x288x96xbf16>,
    return
  }
  func.func @transform_0(%arg0: i32) -> (i32, i32, i32) {
    %c0_i32 = arith.constant 0 : i32
    %c0_i32_0 = arith.constant 0 : i32
    %c0_i32_1 = arith.constant 0 : i32
    return %arg0, %c0_i32, %c0_i32_0 : i32, i32, i32
  }
  func.func @transform_1(%arg0: i32) -> (i32, i32, i32) {
    %c0_i32 = arith.constant 0 : i32
    %c0_i32_0 = arith.constant 0 : i32
    %c0_i32_1 = arith.constant 0 : i32
    %c0_i32_2 = arith.constant 0 : i32
    return %c0_i32, %c0_i32_0, %c0_i32_1 : i32, i32, i32
  }
  func.func @transform_2(%arg0: i32) -> (i32, i32, i32) {
    %c0_i32 = arith.constant 0 : i32
    %c0_i32_0 = arith.constant 0 : i32
    %c0_i32_1 = arith.constant 0 : i32
    return %arg0, %c0_i32, %c0_i32_0 : i32, i32, i32
  }
}

module attributes {stable_mosaic.version = 11 : i64} {
  func.func @kernel(%arg0: i32, %arg1: memref<1x342x64xbf16, #tpu.memory_space<vmem>>, %arg2: memref<9x64x64xbf16, #tpu.memory_space<vmem>>, %arg3: memref<1x288x64xf32, #tpu.memory_space<vmem>>) attributes {dimension_semantics = [#tpu.dimension_semantics<parallel>], iteration_bounds = array<i64: 2>, scalar_prefetch = 0 : i64, scratch_operands = 0 : i64, tpu.core_type = #tpu.core_type<tc>, window_params = [{transform_indices = @transform_0, window_bounds = array<i64: 1, 342, 64>}, {pipeline_mode = #tpu.pipeline_mode<synchronous>, transform_indices = @transform_1, window_bounds = array<i64: 9, 64, 64>}, {transform_indices = @transform_2, window_bounds = array<i64: 1, 288, 64>}]} {
    %cst = arith.constant 0.000000e+00 : f32
    %0 = vector.broadcast %cst : f32 to vector<288x64xf32>
    %c0 = arith.constant 0 : index
    %c0_0 = arith.constant 0 : index
    %c0_1 = arith.constant 0 : index
    %1 = vector.load %arg1[%c0, %c0_0, %c0_1] : memref<1x342x64xbf16, #tpu.memory_space<vmem>>, vector<1x288x64xbf16>
    %2 = vector.shape_cast %1 : vector<1x288x64xbf16> to vector<288x64xbf16>
    %c0_2 = arith.constant 0 : index
    %c0_3 = arith.constant 0 : index
    %c0_4 = arith.constant 0 : index
    %3 = vector.load %arg2[%c0_2, %c0_3, %c0_4] : memref<9x64x64xbf16, #tpu.memory_space<vmem>>, vector<1x64x64xbf16>
    %4 = vector.shape_cast %3 : vector<1x64x64xbf16> to vector<64x64xbf16>
    %cst_5 = arith.constant dense<0.000000e+00> : vector<288x64xf32>
    %5 = tpu.matmul %2, %4, %cst_5 {dimension_numbers = #tpu.dot_dimension_numbers<[1], [0], [0], [1], [0, 0, 1, 1], [], []>} : vector<288x64xbf16>, vector<64x64xbf16>, vector<288x64xf32> -> vector<288x64xf32>
    %6 = arith.addf %0, %5 : vector<288x64xf32>
    %c0_6 = arith.constant 0 : index
    %c1 = arith.constant 1 : index
    %c0_7 = arith.constant 0 : index
    %7 = vector.load %arg1[%c0_6, %c1, %c0_7] : memref<1x342x64xbf16, #tpu.memory_space<vmem>>, vector<1x288x64xbf16>
    %8 = vector.shape_cast %7 : vector<1x288x64xbf16> to vector<288x64xbf16>
    %c1_8 = arith.constant 1 : index
    %c0_9 = arith.constant 0 : index
    %c0_10 = arith.constant 0 : index
    %9 = vector.load %arg2[%c1_8, %c0_9, %c0_10] : memref<9x64x64xbf16, #tpu.memory_space<vmem>>, vector<1x64x64xbf16>
    %10 = vector.shape_cast %9 : vector<1x64x64xbf16> to vector<64x64xbf16>
    %cst_11 = arith.constant dense<0.000000e+00> : vector<288x64xf32>
    %11 = tpu.matmul %8, %10, %cst_11 {dimension_numbers = #tpu.dot_dimension_numbers<[1], [0], [0], [1], [0, 0, 1, 1], [], []>} : vector<288x64xbf16>, vector<64x64xbf16>, vector<288x64xf32> -> vector<288x64xf32>
    %12 = arith.addf %6, %11 : vector<288x64xf32>
    %c0_12 = arith.constant 0 : index
    %c2 = arith.constant 2 : index
    %c0_13 = arith.constant 0 : index
    %13 = vector.load %arg1[%c0_12, %c2, %c0_13] : memref<1x342x64xbf16, #tpu.memory_space<vmem>>, vector<1x288x64xbf16>
    %14 = vector.shape_cast %13 : vector<1x288x64xbf16> to vector<288x64xbf16>
    %c2_14 = arith.constant 2 : index
    %c0_15 = arith.constant 0 : index
    %c0_16 = arith.constant 0 : index
    %15 = vector.load %arg2[%c2_14, %c0_15, %c0_16] : memref<9x64x64xbf16, #tpu.memory_space<vmem>>, vector<1x64x64xbf16>
    %16 = vector.shape_cast %15 : vector<1x64x64xbf16> to vector<64x64xbf16>
    %cst_17 = arith.constant dense<0.000000e+00> : vector<288x64xf32>
    %17 = tpu.matmul %14, %16, %cst_17 {dimension_numbers = #tpu.dot_dimension_numbers<[1], [0], [0], [1], [0, 0, 1, 1], [], []>} : vector<288x64xbf16>, vector<64x64xbf16>, vector<288x64xf32> -> vector<288x64xf32>
    %18 = arith.addf %12, %17 : vector<288x64xf32>
    %c0_18 = arith.constant 0 : index
    %c18 = arith.constant 18 : index
    %c0_19 = arith.constant 0 : index
    %19 = vector.load %arg1[%c0_18, %c18, %c0_19] : memref<1x342x64xbf16, #tpu.memory_space<vmem>>, vector<1x288x64xbf16>
    %20 = vector.shape_cast %19 : vector<1x288x64xbf16> to vector<288x64xbf16>
    %c3 = arith.constant 3 : index
    %c0_20 = arith.constant 0 : index
    %c0_21 = arith.constant 0 : index
    %21 = vector.load %arg2[%c3, %c0_20, %c0_21] : memref<9x64x64xbf16, #tpu.memory_space<vmem>>, vector<1x64x64xbf16>
    %22 = vector.shape_cast %21 : vector<1x64x64xbf16> to vector<64x64xbf16>
    %cst_22 = arith.constant dense<0.000000e+00> : vector<288x64xf32>
    %23 = tpu.matmul %20, %22, %cst_22 {dimension_numbers = #tpu.dot_dimension_numbers<[1], [0], [0], [1], [0, 0, 1, 1], [], []>} : vector<288x64xbf16>, vector<64x64xbf16>, vector<288x64xf32> -> vector<288x64xf32>
    %24 = arith.addf %18, %23 : vector<288x64xf32>
    %c0_23 = arith.constant 0 : index
    %c19 = arith.constant 19 : index
    %c0_24 = arith.constant 0 : index
    %25 = vector.load %arg1[%c0_23, %c19, %c0_24] : memref<1x342x64xbf16, #tpu.memory_space<vmem>>, vector<1x288x64xbf16>
    %26 = vector.shape_cast %25 : vector<1x288x64xbf16> to vector<288x64xbf16>
    %c4 = arith.constant 4 : index
    %c0_25 = arith.constant 0 : index
    %c0_26 = arith.constant 0 : index
    %27 = vector.load %arg2[%c4, %c0_25, %c0_26] : memref<9x64x64xbf16, #tpu.memory_space<vmem>>, vector<1x64x64xbf16>
    %28 = vector.shape_cast %27 : vector<1x64x64xbf16> to vector<64x64xbf16>
    %cst_27 = arith.constant dense<0.000000e+00> : vector<288x64xf32>
    %29 = tpu.matmul %26, %28, %cst_27 {dimension_numbers = #tpu.dot_dimension_numbers<[1], [0], [0], [1], [0, 0, 1, 1], [], []>} : vector<288x64xbf16>, vector<64x64xbf16>, vector<288x64xf32> -> vector<288x64xf32>
    %30 = arith.addf %24, %29 : vector<288x64xf32>
    %c0_28 = arith.constant 0 : index
    %c20 = arith.constant 20 : index
    %c0_29 = arith.constant 0 : index
    %31 = vector.load %arg1[%c0_28, %c20, %c0_29] : memref<1x342x64xbf16, #tpu.memory_space<vmem>>, vector<1x288x64xbf16>
    %32 = vector.shape_cast %31 : vector<1x288x64xbf16> to vector<288x64xbf16>
    %c5 = arith.constant 5 : index
    %c0_30 = arith.constant 0 : index
    %c0_31 = arith.constant 0 : index
    %33 = vector.load %arg2[%c5, %c0_30, %c0_31] : memref<9x64x64xbf16, #tpu.memory_space<vmem>>, vector<1x64x64xbf16>
    %34 = vector.shape_cast %33 : vector<1x64x64xbf16> to vector<64x64xbf16>
    %cst_32 = arith.constant dense<0.000000e+00> : vector<288x64xf32>
    %35 = tpu.matmul %32, %34, %cst_32 {dimension_numbers = #tpu.dot_dimension_numbers<[1], [0], [0], [1], [0, 0, 1, 1], [], []>} : vector<288x64xbf16>, vector<64x64xbf16>, vector<288x64xf32> -> vector<288x64xf32>
    %36 = arith.addf %30, %35 : vector<288x64xf32>
    %c0_33 = arith.constant 0 : index
    %c36 = arith.constant 36 : index
    %c0_34 = arith.constant 0 : index
    %37 = vector.load %arg1[%c0_33, %c36, %c0_34] : memref<1x342x64xbf16, #tpu.memory_space<vmem>>, vector<1x288x64xbf16>
    %38 = vector.shape_cast %37 : vector<1x288x64xbf16> to vector<288x64xbf16>
    %c6 = arith.constant 6 : index
    %c0_35 = arith.constant 0 : index
    %c0_36 = arith.constant 0 : index
    %39 = vector.load %arg2[%c6, %c0_35, %c0_36] : memref<9x64x64xbf16, #tpu.memory_space<vmem>>, vector<1x64x64xbf16>
    %40 = vector.shape_cast %39 : vector<1x64x64xbf16> to vector<64x64xbf16>
    %cst_37 = arith.constant dense<0.000000e+00> : vector<288x64xf32>
    %41 = tpu.matmul %38, %40, %cst_37 {dimension_numbers = #tpu.dot_dimension_numbers<[1], [0], [0], [1], [0, 0, 1, 1], [], []>} : vector<288x64xbf16>, vector<64x64xbf16>, vector<288x64xf32> -> vector<288x64xf32>
    %42 = arith.addf %36, %41 : vector<288x64xf32>
    %c0_38 = arith.constant 0 : index
    %c37 = arith.constant 37 : index
    %c0_39 = arith.constant 0 : index
    %43 = vector.load %arg1[%c0_38, %c37, %c0_39] : memref<1x342x64xbf16, #tpu.memory_space<vmem>>, vector<1x288x64xbf16>
    %44 = vector.shape_cast %43 : vector<1x288x64xbf16> to vector<288x64xbf16>
    %c7 = arith.constant 7 : index
    %c0_40 = arith.constant 0 : index
    %c0_41 = arith.constant 0 : index
    %45 = vector.load %arg2[%c7, %c0_40, %c0_41] : memref<9x64x64xbf16, #tpu.memory_space<vmem>>, vector<1x64x64xbf16>
    %46 = vector.shape_cast %45 : vector<1x64x64xbf16> to vector<64x64xbf16>
    %cst_42 = arith.constant dense<0.000000e+00> : vector<288x64xf32>
    %47 = tpu.matmul %44, %46, %cst_42 {dimension_numbers = #tpu.dot_dimension_numbers<[1], [0], [0], [1], [0, 0, 1, 1], [], []>} : vector<288x64xbf16>, vector<64x64xbf16>, vector<288x64xf32> -> vector<288x64xf32>
    %48 = arith.addf %42, %47 : vector<288x64xf32>
    %c0_43 = arith.constant 0 : index
    %c38 = arith.constant 38 : index
    %c0_44 = arith.constant 0 : index
    %49 = vector.load %arg1[%c0_43, %c38, %c0_44] : memref<1x342x64xbf16, #tpu.memory_space<vmem>>, vector<1x288x64xbf16>
    %50 = vector.shape_cast %49 : vector<1x288x64xbf16> to vector<288x64xbf16>
    %c8 = arith.constant 8 : index
    %c0_45 = arith.constant 0 : index
    %c0_46 = arith.constant 0 : index
    %51 = vector.load %arg2[%c8, %c0_45, %c0_46] : memref<9x64x64xbf16, #tpu.memory_space<vmem>>, vector<1x64x64xbf16>
    %52 = vector.shape_cast %51 : vector<1x64x64xbf16> to vector<64x64xbf16>
    %cst_47 = arith.constant dense<0.000000e+00> : vector<288x64xf32>
    %53 = tpu.matmul %50, %52, %cst_47 {dimension_numbers = #tpu.dot_dimension_numbers<[1], [0], [0], [1], [0, 0, 1, 1], [], []>} : vector<288x64xbf16>, vector<64x64xbf16>, vector<288x64xf32> -> vector<288x64xf32>
    %54 = arith.addf %48, %53 : vector<288x64xf32>
    %cst_48 = arith.constant 0.000000e+00 : f32
    %cst_49 = arith.constant 6.000000e+00 : f32
    %55 = vector.broadcast %cst_48 : f32 to vector<288x64xf32>
    %56 = arith.maximumf %55, %54 : vector<288x64xf32>
    %57 = vector.broadcast %cst_49 : f32 to vector<288x64xf32>
    %58 = arith.minimumf %57, %56 : vector<288x64xf32>
    %c0_50 = arith.constant 0 : index
    %c0_51 = arith.constant 0 : index
    %c0_52 = arith.constant 0 : index
    %59 = vector.load %arg3[%c0_50, %c0_51, %c0_52] : memref<1x288x64xf32, #tpu.memory_space<vmem>>, vector<1x288x64xf32>
    %60 = vector.shape_cast %59 : vector<1x288x64xf32> to vector<288x64xf32>
    %61 = vector.shape_cast %58 : vector<288x64xf32> to vector<1x288x64xf32>
    tpu.vector_store %arg3[%c0_50, %c0_51, %c0_52], %61 {strides = array<i32>} : memref<1x288x64xf32, #tpu.memory_space<vmem>>, vector<1x288x64xf32>,
    return
  }
  func.func @transform_0(%arg0: i32) -> (i32, i32, i32) {
    %c0_i32 = arith.constant 0 : i32
    %c0_i32_0 = arith.constant 0 : i32
    %c0_i32_1 = arith.constant 0 : i32
    return %arg0, %c0_i32, %c0_i32_0 : i32, i32, i32
  }
  func.func @transform_1(%arg0: i32) -> (i32, i32, i32) {
    %c0_i32 = arith.constant 0 : i32
    %c0_i32_0 = arith.constant 0 : i32
    %c0_i32_1 = arith.constant 0 : i32
    %c0_i32_2 = arith.constant 0 : i32
    return %c0_i32, %c0_i32_0, %c0_i32_1 : i32, i32, i32
  }
  func.func @transform_2(%arg0: i32) -> (i32, i32, i32) {
    %c0_i32 = arith.constant 0 : i32
    %c0_i32_0 = arith.constant 0 : i32
    %c0_i32_1 = arith.constant 0 : i32
    return %arg0, %c0_i32, %c0_i32_0 : i32, i32, i32
  }
}

module attributes {stable_mosaic.version = 11 : i64} {
  func.func @kernel(%arg0: i32, %arg1: memref<1x342x96xbf16, #tpu.memory_space<vmem>>, %arg2: memref<9x96x96xbf16, #tpu.memory_space<vmem>>, %arg3: memref<1x288x96xf32, #tpu.memory_space<vmem>>) attributes {dimension_semantics = [#tpu.dimension_semantics<parallel>], iteration_bounds = array<i64: 2>, scalar_prefetch = 0 : i64, scratch_operands = 0 : i64, tpu.core_type = #tpu.core_type<tc>, window_params = [{transform_indices = @transform_0, window_bounds = array<i64: 1, 342, 96>}, {pipeline_mode = #tpu.pipeline_mode<synchronous>, transform_indices = @transform_1, window_bounds = array<i64: 9, 96, 96>}, {transform_indices = @transform_2, window_bounds = array<i64: 1, 288, 96>}]} {
    %cst = arith.constant 0.000000e+00 : f32
    %0 = vector.broadcast %cst : f32 to vector<288x96xf32>
    %c0 = arith.constant 0 : index
    %c0_0 = arith.constant 0 : index
    %c0_1 = arith.constant 0 : index
    %1 = vector.load %arg1[%c0, %c0_0, %c0_1] : memref<1x342x96xbf16, #tpu.memory_space<vmem>>, vector<1x288x96xbf16>
    %2 = vector.shape_cast %1 : vector<1x288x96xbf16> to vector<288x96xbf16>
    %c0_2 = arith.constant 0 : index
    %c0_3 = arith.constant 0 : index
    %c0_4 = arith.constant 0 : index
    %3 = vector.load %arg2[%c0_2, %c0_3, %c0_4] : memref<9x96x96xbf16, #tpu.memory_space<vmem>>, vector<1x96x96xbf16>
    %4 = vector.shape_cast %3 : vector<1x96x96xbf16> to vector<96x96xbf16>
    %cst_5 = arith.constant dense<0.000000e+00> : vector<288x96xf32>
    %5 = tpu.matmul %2, %4, %cst_5 {dimension_numbers = #tpu.dot_dimension_numbers<[1], [0], [0], [1], [0, 0, 1, 1], [], []>} : vector<288x96xbf16>, vector<96x96xbf16>, vector<288x96xf32> -> vector<288x96xf32>
    %6 = arith.addf %0, %5 : vector<288x96xf32>
    %c0_6 = arith.constant 0 : index
    %c1 = arith.constant 1 : index
    %c0_7 = arith.constant 0 : index
    %7 = vector.load %arg1[%c0_6, %c1, %c0_7] : memref<1x342x96xbf16, #tpu.memory_space<vmem>>, vector<1x288x96xbf16>
    %8 = vector.shape_cast %7 : vector<1x288x96xbf16> to vector<288x96xbf16>
    %c1_8 = arith.constant 1 : index
    %c0_9 = arith.constant 0 : index
    %c0_10 = arith.constant 0 : index
    %9 = vector.load %arg2[%c1_8, %c0_9, %c0_10] : memref<9x96x96xbf16, #tpu.memory_space<vmem>>, vector<1x96x96xbf16>
    %10 = vector.shape_cast %9 : vector<1x96x96xbf16> to vector<96x96xbf16>
    %cst_11 = arith.constant dense<0.000000e+00> : vector<288x96xf32>
    %11 = tpu.matmul %8, %10, %cst_11 {dimension_numbers = #tpu.dot_dimension_numbers<[1], [0], [0], [1], [0, 0, 1, 1], [], []>} : vector<288x96xbf16>, vector<96x96xbf16>, vector<288x96xf32> -> vector<288x96xf32>
    %12 = arith.addf %6, %11 : vector<288x96xf32>
    %c0_12 = arith.constant 0 : index
    %c2 = arith.constant 2 : index
    %c0_13 = arith.constant 0 : index
    %13 = vector.load %arg1[%c0_12, %c2, %c0_13] : memref<1x342x96xbf16, #tpu.memory_space<vmem>>, vector<1x288x96xbf16>
    %14 = vector.shape_cast %13 : vector<1x288x96xbf16> to vector<288x96xbf16>
    %c2_14 = arith.constant 2 : index
    %c0_15 = arith.constant 0 : index
    %c0_16 = arith.constant 0 : index
    %15 = vector.load %arg2[%c2_14, %c0_15, %c0_16] : memref<9x96x96xbf16, #tpu.memory_space<vmem>>, vector<1x96x96xbf16>
    %16 = vector.shape_cast %15 : vector<1x96x96xbf16> to vector<96x96xbf16>
    %cst_17 = arith.constant dense<0.000000e+00> : vector<288x96xf32>
    %17 = tpu.matmul %14, %16, %cst_17 {dimension_numbers = #tpu.dot_dimension_numbers<[1], [0], [0], [1], [0, 0, 1, 1], [], []>} : vector<288x96xbf16>, vector<96x96xbf16>, vector<288x96xf32> -> vector<288x96xf32>
    %18 = arith.addf %12, %17 : vector<288x96xf32>
    %c0_18 = arith.constant 0 : index
    %c18 = arith.constant 18 : index
    %c0_19 = arith.constant 0 : index
    %19 = vector.load %arg1[%c0_18, %c18, %c0_19] : memref<1x342x96xbf16, #tpu.memory_space<vmem>>, vector<1x288x96xbf16>
    %20 = vector.shape_cast %19 : vector<1x288x96xbf16> to vector<288x96xbf16>
    %c3 = arith.constant 3 : index
    %c0_20 = arith.constant 0 : index
    %c0_21 = arith.constant 0 : index
    %21 = vector.load %arg2[%c3, %c0_20, %c0_21] : memref<9x96x96xbf16, #tpu.memory_space<vmem>>, vector<1x96x96xbf16>
    %22 = vector.shape_cast %21 : vector<1x96x96xbf16> to vector<96x96xbf16>
    %cst_22 = arith.constant dense<0.000000e+00> : vector<288x96xf32>
    %23 = tpu.matmul %20, %22, %cst_22 {dimension_numbers = #tpu.dot_dimension_numbers<[1], [0], [0], [1], [0, 0, 1, 1], [], []>} : vector<288x96xbf16>, vector<96x96xbf16>, vector<288x96xf32> -> vector<288x96xf32>
    %24 = arith.addf %18, %23 : vector<288x96xf32>
    %c0_23 = arith.constant 0 : index
    %c19 = arith.constant 19 : index
    %c0_24 = arith.constant 0 : index
    %25 = vector.load %arg1[%c0_23, %c19, %c0_24] : memref<1x342x96xbf16, #tpu.memory_space<vmem>>, vector<1x288x96xbf16>
    %26 = vector.shape_cast %25 : vector<1x288x96xbf16> to vector<288x96xbf16>
    %c4 = arith.constant 4 : index
    %c0_25 = arith.constant 0 : index
    %c0_26 = arith.constant 0 : index
    %27 = vector.load %arg2[%c4, %c0_25, %c0_26] : memref<9x96x96xbf16, #tpu.memory_space<vmem>>, vector<1x96x96xbf16>
    %28 = vector.shape_cast %27 : vector<1x96x96xbf16> to vector<96x96xbf16>
    %cst_27 = arith.constant dense<0.000000e+00> : vector<288x96xf32>
    %29 = tpu.matmul %26, %28, %cst_27 {dimension_numbers = #tpu.dot_dimension_numbers<[1], [0], [0], [1], [0, 0, 1, 1], [], []>} : vector<288x96xbf16>, vector<96x96xbf16>, vector<288x96xf32> -> vector<288x96xf32>
    %30 = arith.addf %24, %29 : vector<288x96xf32>
    %c0_28 = arith.constant 0 : index
    %c20 = arith.constant 20 : index
    %c0_29 = arith.constant 0 : index
    %31 = vector.load %arg1[%c0_28, %c20, %c0_29] : memref<1x342x96xbf16, #tpu.memory_space<vmem>>, vector<1x288x96xbf16>
    %32 = vector.shape_cast %31 : vector<1x288x96xbf16> to vector<288x96xbf16>
    %c5 = arith.constant 5 : index
    %c0_30 = arith.constant 0 : index
    %c0_31 = arith.constant 0 : index
    %33 = vector.load %arg2[%c5, %c0_30, %c0_31] : memref<9x96x96xbf16, #tpu.memory_space<vmem>>, vector<1x96x96xbf16>
    %34 = vector.shape_cast %33 : vector<1x96x96xbf16> to vector<96x96xbf16>
    %cst_32 = arith.constant dense<0.000000e+00> : vector<288x96xf32>
    %35 = tpu.matmul %32, %34, %cst_32 {dimension_numbers = #tpu.dot_dimension_numbers<[1], [0], [0], [1], [0, 0, 1, 1], [], []>} : vector<288x96xbf16>, vector<96x96xbf16>, vector<288x96xf32> -> vector<288x96xf32>
    %36 = arith.addf %30, %35 : vector<288x96xf32>
    %c0_33 = arith.constant 0 : index
    %c36 = arith.constant 36 : index
    %c0_34 = arith.constant 0 : index
    %37 = vector.load %arg1[%c0_33, %c36, %c0_34] : memref<1x342x96xbf16, #tpu.memory_space<vmem>>, vector<1x288x96xbf16>
    %38 = vector.shape_cast %37 : vector<1x288x96xbf16> to vector<288x96xbf16>
    %c6 = arith.constant 6 : index
    %c0_35 = arith.constant 0 : index
    %c0_36 = arith.constant 0 : index
    %39 = vector.load %arg2[%c6, %c0_35, %c0_36] : memref<9x96x96xbf16, #tpu.memory_space<vmem>>, vector<1x96x96xbf16>
    %40 = vector.shape_cast %39 : vector<1x96x96xbf16> to vector<96x96xbf16>
    %cst_37 = arith.constant dense<0.000000e+00> : vector<288x96xf32>
    %41 = tpu.matmul %38, %40, %cst_37 {dimension_numbers = #tpu.dot_dimension_numbers<[1], [0], [0], [1], [0, 0, 1, 1], [], []>} : vector<288x96xbf16>, vector<96x96xbf16>, vector<288x96xf32> -> vector<288x96xf32>
    %42 = arith.addf %36, %41 : vector<288x96xf32>
    %c0_38 = arith.constant 0 : index
    %c37 = arith.constant 37 : index
    %c0_39 = arith.constant 0 : index
    %43 = vector.load %arg1[%c0_38, %c37, %c0_39] : memref<1x342x96xbf16, #tpu.memory_space<vmem>>, vector<1x288x96xbf16>
    %44 = vector.shape_cast %43 : vector<1x288x96xbf16> to vector<288x96xbf16>
    %c7 = arith.constant 7 : index
    %c0_40 = arith.constant 0 : index
    %c0_41 = arith.constant 0 : index
    %45 = vector.load %arg2[%c7, %c0_40, %c0_41] : memref<9x96x96xbf16, #tpu.memory_space<vmem>>, vector<1x96x96xbf16>
    %46 = vector.shape_cast %45 : vector<1x96x96xbf16> to vector<96x96xbf16>
    %cst_42 = arith.constant dense<0.000000e+00> : vector<288x96xf32>
    %47 = tpu.matmul %44, %46, %cst_42 {dimension_numbers = #tpu.dot_dimension_numbers<[1], [0], [0], [1], [0, 0, 1, 1], [], []>} : vector<288x96xbf16>, vector<96x96xbf16>, vector<288x96xf32> -> vector<288x96xf32>
    %48 = arith.addf %42, %47 : vector<288x96xf32>
    %c0_43 = arith.constant 0 : index
    %c38 = arith.constant 38 : index
    %c0_44 = arith.constant 0 : index
    %49 = vector.load %arg1[%c0_43, %c38, %c0_44] : memref<1x342x96xbf16, #tpu.memory_space<vmem>>, vector<1x288x96xbf16>
    %50 = vector.shape_cast %49 : vector<1x288x96xbf16> to vector<288x96xbf16>
    %c8 = arith.constant 8 : index
    %c0_45 = arith.constant 0 : index
    %c0_46 = arith.constant 0 : index
    %51 = vector.load %arg2[%c8, %c0_45, %c0_46] : memref<9x96x96xbf16, #tpu.memory_space<vmem>>, vector<1x96x96xbf16>
    %52 = vector.shape_cast %51 : vector<1x96x96xbf16> to vector<96x96xbf16>
    %cst_47 = arith.constant dense<0.000000e+00> : vector<288x96xf32>
    %53 = tpu.matmul %50, %52, %cst_47 {dimension_numbers = #tpu.dot_dimension_numbers<[1], [0], [0], [1], [0, 0, 1, 1], [], []>} : vector<288x96xbf16>, vector<96x96xbf16>, vector<288x96xf32> -> vector<288x96xf32>
    %54 = arith.addf %48, %53 : vector<288x96xf32>
    %cst_48 = arith.constant 0.000000e+00 : f32
    %cst_49 = arith.constant 6.000000e+00 : f32
    %55 = vector.broadcast %cst_48 : f32 to vector<288x96xf32>
    %56 = arith.maximumf %55, %54 : vector<288x96xf32>
    %57 = vector.broadcast %cst_49 : f32 to vector<288x96xf32>
    %58 = arith.minimumf %57, %56 : vector<288x96xf32>
    %c0_50 = arith.constant 0 : index
    %c0_51 = arith.constant 0 : index
    %c0_52 = arith.constant 0 : index
    %59 = vector.load %arg3[%c0_50, %c0_51, %c0_52] : memref<1x288x96xf32, #tpu.memory_space<vmem>>, vector<1x288x96xf32>
    %60 = vector.shape_cast %59 : vector<1x288x96xf32> to vector<288x96xf32>
    %61 = vector.shape_cast %58 : vector<288x96xf32> to vector<1x288x96xf32>
    tpu.vector_store %arg3[%c0_50, %c0_51, %c0_52], %61 {strides = array<i32>} : memref<1x288x96xf32, #tpu.memory_space<vmem>>, vector<1x288x96xf32>,
    return
  }
  func.func @transform_0(%arg0: i32) -> (i32, i32, i32) {
    %c0_i32 = arith.constant 0 : i32
    %c0_i32_0 = arith.constant 0 : i32
    %c0_i32_1 = arith.constant 0 : i32
    return %arg0, %c0_i32, %c0_i32_0 : i32, i32, i32
  }
  func.func @transform_1(%arg0: i32) -> (i32, i32, i32) {
    %c0_i32 = arith.constant 0 : i32
    %c0_i32_0 = arith.constant 0 : i32
    %c0_i32_1 = arith.constant 0 : i32
    %c0_i32_2 = arith.constant 0 : i32
    return %c0_i32, %c0_i32_0, %c0_i32_1 : i32, i32, i32
  }
  func.func @transform_2(%arg0: i32) -> (i32, i32, i32) {
    %c0_i32 = arith.constant 0 : i32
    %c0_i32_0 = arith.constant 0 : i32
    %c0_i32_1 = arith.constant 0 : i32
    return %arg0, %c0_i32, %c0_i32_0 : i32, i32, i32
  }
}

</mosaic_0001>

<bundles_post_ra>
// kernel: inception_v2_base.5
= control target key start
LH: loop header
LB: loop body
LE: loop exit
PB: predicated region body
PF: predicated region fallthrough
CT: control target
= control target key end

     0   :  { %7 = vsyncpa [#allocation3], 0  ;;  %s2626_s0 = inlined_call_operand.hbm [shape: bf16[688,8], index: 0, kind: input, shape index: {}]   ;;  %s2627_s1 = inlined_call_operand.hbm [shape: bf16[8,192], index: 1, kind: input, shape index: {}]   ;;  %s2628_s2 = inlined_call_operand.hbm [shape: bf16[688,192], index: 2, kind: output, shape index: {}]  }
   0x1   :  { %8 = vsyncpa [#allocation6], 0 }
   0x2   :  { %9 = vsyncpa [#allocation4], 0  ;;  %s2300_s9 = smov [#allocation2]   ;;  %s2228_s13 = scalar_lea.hbm %s2626_s0, 5504 }
   0x3   :  { %s15_s10 = sshll.u32 %s2300_s9, 4  ;;  %p2229_p0 = scmp.ne.s32.totalorder %s2626_s0, %s2228_s13  ;;  %s16_s10 = int_to_ptr.vmem [resolvable:$true] %s15_s10 }
   0x4   :  { %p2232_p1 = scmp.lt.u32.totalorder %s2228_s13, %s2626_s0 }
   0x6   :  { %p2234_p2 = pnand %p2232_p1, %p2229_p0 }
   0x8   :  { %2237 = shalt.err (!%p2234_p2)
}
   0x9   :  { %s2238_s18 = scalar_lea.vmem %s16_s10, 5504  ;;  %p2243_p4 = scmp.lt.s32.totalorder %s16_s10, %s16_s10 }
   0xa   :  { %p2239_p3 = scmp.ne.s32.totalorder %s16_s10, %s2238_s18  ;;  %p2244_p5 = scmp.lt.s32.totalorder %s2238_s18, %s2238_s18 }
   0xc   :  { %p2245_p6 = por %p2244_p5, %p2243_p4 }
   0xe   :  { %p2246_p7 = pnand %p2245_p6, %p2239_p3 }
  0x10   :  { %2249 = shalt.err (!%p2246_p7)
}
  0x11   :  { %s2301_s19 = smov 64   ;;  %s2302_s20 = smov 4  }
  0x12   :  { %21 = dma.hbm_to_vmem [thread:$0]  %s2626_s0, 5504, %s16_s10, [#allocation3], %s2301_s19, %s2301_s19, %s2302_s20  }
  0x13   :  { %s2303_s23 = smov [#allocation5]   ;;  %s2250_s27 = scalar_lea.hbm %s2627_s1, 128 }
  0x14   :  { %s28_s24 = sshll.u32 %s2303_s23, 4  ;;  %p2251_p8 = scmp.ne.s32.totalorder %s2627_s1, %s2250_s27  ;;  %s29_s24 = int_to_ptr.vmem [resolvable:$true] %s28_s24 }
  0x15   :  { %p2254_p9 = scmp.lt.u32.totalorder %s2250_s27, %s2627_s1 }
  0x17   :  { %p2256_p10 = pnand %p2254_p9, %p2251_p8 }
  0x19   :  { %2259 = shalt.err (!%p2256_p10)
}
  0x1a   :  { %s2260_s4 = scalar_lea.vmem %s29_s24, 128  ;;  %p2265_p12 = scmp.lt.s32.totalorder %s29_s24, %s29_s24 }
  0x1b   :  { %p2261_p11 = scmp.ne.s32.totalorder %s29_s24, %s2260_s4  ;;  %p2266_p13 = scmp.lt.s32.totalorder %s2260_s4, %s2260_s4 }
  0x1d   :  { %p2267_p0 = por %p2266_p13, %p2265_p12 }
  0x1f   :  { %p2268_p1 = pnand %p2267_p0, %p2261_p11 }
  0x21   :  { %2271 = shalt.err (!%p2268_p1)
}
  0x22   :  { %31 = dma.hbm_to_vmem [thread:$0]  %s2627_s1, 128, %s29_s24, [#allocation6]  }
  0x23   :  { %2294 = dma.done.wait [#allocation3], 5504  }
  0x24   :  { %2295 = vsyncadd [#allocation3], 4294961792 }
  0x25   :  { %2296 = dma.done.wait [#allocation6], 128  }
  0x26   :  { %2297 = vsyncadd [#allocation6], 4294967168  ;;  %v2304_v0 = vmov 0   ;;  %v125_v1 = vld [vmem:[#allocation5] sm:$0xff]  ;;  %vm476_vm0 = vcmask 1043456   ;;  %v2185_v4 = vld [vmem:[#allocation2] sm:$0xff]  }
  0x27   :  { %515 = vmatprep.mubr.bf16.mxu0 %v2304_v0  ;;  %735 = vmatprep.mubr.bf16.mxu1 %v2304_v0  ;;  %v1956_v2 = vcombine.high %v125_v1, %v125_v1  ;;  %v1955_v3 = vcombine.low %v125_v1, %v125_v1  ;;  %v2186_v6 = vld [vmem:[#allocation2 + $0xb0] sm:$0xff]   ;;  %vm346_vm1 = vcmask 64512   ;;  %v2187_v7 = vld [vmem:[#allocation2 + $0x8] sm:$0xff]   ;;  %v2188_v8 = vld [vmem:[#allocation2 + $0xb8] sm:$0xff]   ;;  %vm1806_vm2 = vcmask 523268   ;;  %s2305_s1 = smov [#allocation7]  }
  0x28   :  { %v2189_v9 = vld [vmem:[#allocation2 + $0x10] sm:$0xff]   ;;  %v2190_v10 = vld [vmem:[#allocation2 + $0xc0] sm:$0xff]   ;;  %v2191_v11 = vld [vmem:[#allocation2 + $0x18] sm:$0xff]   ;;  %s1899_s6 = sshll.u32 %s2305_s1, 4  ;;  %s1900_s6 = int_to_ptr.vmem [resolvable:$true] %s1899_s6 }
  0x29   :  { %1957 = vmatprep.subr.msk.bf16.mxu0 %vm476_vm0, %v1956_v2  ;;  %v478_v5 = vsel %vm476_vm0, %v1955_v3, 0  ;;  %2173 = vmatprep.subr.msk.bf16.mxu1 %vm476_vm0, %v1956_v2  ;;  %v2192_v12 = vld [vmem:[#allocation2 + $0xc8] sm:$0xff]   ;;  %v2193_v13 = vld [vmem:[#allocation2 + $0x20] sm:$0xff]   ;;  %v2194_v14 = vld [vmem:[#allocation2 + $0xd0] sm:$0xff]   ;;  %s2272_s7 = scalar_lea.vmem %s1900_s6, 11008  ;;  %p2277_p3 = scmp.lt.s32.totalorder %s1900_s6, %s1900_s6 }
  0x2a   :  { %484 = vmatpush1.bf16.msra.mxu0 %v478_v5  ;;  %2174 = vmatpush1.bf16.msra.mxu1 %v478_v5  ;;  %v2195_v15 = vld [vmem:[#allocation2 + $0x28] sm:$0xff]   ;;  %v2196_v16 = vld [vmem:[#allocation2 + $0xd8] sm:$0xff]   ;;  %v2197_v17 = vld [vmem:[#allocation2 + $0x30] sm:$0xff]   ;;  %p2273_p2 = scmp.ne.s32.totalorder %s1900_s6, %s2272_s7  ;;  %p2278_p4 = scmp.lt.s32.totalorder %s2272_s7, %s2272_s7 }
  0x2b   :  { %v2198_v18 = vld [vmem:[#allocation2 + $0xe0] sm:$0xff]   ;;  %v2199_v19 = vld [vmem:[#allocation2 + $0x38] sm:$0xff]   ;;  %v2200_v20 = vld [vmem:[#allocation2 + $0xe8] sm:$0xff]  }
  0x2c   :  { %v2201_v21 = vld [vmem:[#allocation2 + $0x40] sm:$0xff]   ;;  %v2202_v22 = vld [vmem:[#allocation2 + $0xf0] sm:$0xff]   ;;  %v2203_v23 = vld [vmem:[#allocation2 + $0x48] sm:$0xff]   ;;  %p2279_p5 = por %p2278_p4, %p2277_p3 }
  0x2d   :  { %1958 = vmatmul.mubr.msk.bf16.vlgmr.msra.gmra.mrb[0].mxu0 %vm346_vm1, %v2185_v4  ;;  %1980 = vmatmul.mubr.msk.bf16.vlgmr.msra.gmra.mrb[0].mxu1 %vm346_vm1, %v2186_v6  ;;  %v2204_v24 = vld [vmem:[#allocation2 + $0xf8] sm:$0xff]   ;;  %v2205_v25 = vld [vmem:[#allocation2 + $0x50] sm:$0xff]   ;;  %v2206_v26 = vld [vmem:[#allocation2 + $0x100] sm:$0xff]  }
  0x2e   :  { %525 = vmatprep.mubr.bf16.mxu0 %v2304_v0  ;;  %745 = vmatprep.mubr.bf16.mxu1 %v2304_v0  ;;  %v2207_v27 = vld [vmem:[#allocation2 + $0x58] sm:$0xff]   ;;  %v2208_v28 = vld [vmem:[#allocation2 + $0x108] sm:$0xff]   ;;  %v2209_v29 = vld [vmem:[#allocation2 + $0x60] sm:$0xff]   ;;  %p2280_p6 = pnand %p2279_p5, %p2273_p2 }
  0x2f   :  { %v2210_v30 = vld [vmem:[#allocation2 + $0x110] sm:$0xff]   ;;  %v2211_v31 = vld [vmem:[#allocation2 + $0x68] sm:$0xff]   ;;  %v2212_v32 = vld [vmem:[#allocation2 + $0x118] sm:$0xff]  }
  0x30   :  { %v2213_v33 = vld [vmem:[#allocation2 + $0x70] sm:$0xff]   ;;  %v2214_v34 = vld [vmem:[#allocation2 + $0x120] sm:$0xff]   ;;  %v2215_v35 = vld [vmem:[#allocation2 + $0x78] sm:$0xff]  }
  0x31   :  { %v2216_v36 = vld [vmem:[#allocation2 + $0x128] sm:$0xff]   ;;  %v2217_v37 = vld [vmem:[#allocation2 + $0x80] sm:$0xff]   ;;  %v2218_v38 = vld [vmem:[#allocation2 + $0x130] sm:$0xff]  }
  0x32   :  { %v2219_v39 = vld [vmem:[#allocation2 + $0x88] sm:$0xff]   ;;  %v2220_v40 = vld [vmem:[#allocation2 + $0x138] sm:$0xff]   ;;  %v2221_v41 = vld [vmem:[#allocation2 + $0x90] sm:$0xff]  }
  0x33   :  { %v2222_v42 = vld [vmem:[#allocation2 + $0x140] sm:$0xff]   ;;  %v2223_v43 = vld [vmem:[#allocation2 + $0x98] sm:$0xff]   ;;  %v2224_v44 = vld [vmem:[#allocation2 + $0x148] sm:$0xff]  }
  0x34   :  { %v2225_v45 = vld [vmem:[#allocation2 + $0xa0] sm:$0xff]   ;;  %v2226_v46 = vld [vmem:[#allocation2 + $0x150] sm:$0xff]   ;;  %v2227_v47 = vld [vmem:[#allocation2 + $0xa8] sm:$0xff]  }
  0x35   :  { %1959 = vmatmul.mubr.msk.bf16.gmra.mrb[4].mxu0 %vm346_vm1, %v2187_v7  ;;  %1981 = vmatmul.mubr.msk.bf16.gmra.mrb[4].mxu1 %vm346_vm1, %v2188_v8  ;;  %vm2438_vm3 = vmor %vm1806_vm2, %vm476_vm0 }
  0x36   :  { %535 = vmatprep.mubr.bf16.mxu0 %v2304_v0  ;;  %755 = vmatprep.mubr.bf16.mxu1 %v2304_v0 }
  0x3d   :  { %1960 = vmatmul.mubr.msk.bf16.gmra.mrb[8].mxu0 %vm346_vm1, %v2189_v9  ;;  %1982 = vmatmul.mubr.msk.bf16.gmra.mrb[8].mxu1 %vm346_vm1, %v2190_v10 }
  0x3e   :  { %545 = vmatprep.mubr.bf16.mxu0 %v2304_v0  ;;  %765 = vmatprep.mubr.bf16.mxu1 %v2304_v0 }
  0x45   :  { %1961 = vmatmul.mubr.msk.bf16.gmra.mrb[12].mxu0 %vm346_vm1, %v2191_v11  ;;  %1983 = vmatmul.mubr.msk.bf16.gmra.mrb[12].mxu1 %vm346_vm1, %v2192_v12 }
  0x46   :  { %555 = vmatprep.mubr.bf16.mxu0 %v2304_v0  ;;  %775 = vmatprep.mubr.bf16.mxu1 %v2304_v0 }
  0x4d   :  { %1962 = vmatmul.mubr.msk.bf16.gmra.mrb[16].mxu0 %vm346_vm1, %v2193_v13  ;;  %1984 = vmatmul.mubr.msk.bf16.gmra.mrb[16].mxu1 %vm346_vm1, %v2194_v14 }
  0x4e   :  { %565 = vmatprep.mubr.bf16.mxu0 %v2304_v0  ;;  %785 = vmatprep.mubr.bf16.mxu1 %v2304_v0 }
  0x55   :  { %1963 = vmatmul.mubr.msk.bf16.gmra.mrb[20].mxu0 %vm346_vm1, %v2195_v15  ;;  %1985 = vmatmul.mubr.msk.bf16.gmra.mrb[20].mxu1 %vm346_vm1, %v2196_v16 }
  0x56   :  { %575 = vmatprep.mubr.bf16.mxu0 %v2304_v0  ;;  %795 = vmatprep.mubr.bf16.mxu1 %v2304_v0 }
  0x5d   :  { %1964 = vmatmul.mubr.msk.bf16.gmra.mrb[24].mxu0 %vm346_vm1, %v2197_v17  ;;  %1986 = vmatmul.mubr.msk.bf16.gmra.mrb[24].mxu1 %vm346_vm1, %v2198_v18 }
  0x5e   :  { %585 = vmatprep.mubr.bf16.mxu0 %v2304_v0  ;;  %805 = vmatprep.mubr.bf16.mxu1 %v2304_v0 }
  0x65   :  { %1965 = vmatmul.mubr.msk.bf16.gmra.mrb[28].mxu0 %vm346_vm1, %v2199_v19  ;;  %1987 = vmatmul.mubr.msk.bf16.gmra.mrb[28].mxu1 %vm346_vm1, %v2200_v20 }
  0x66   :  { %595 = vmatprep.mubr.bf16.mxu0 %v2304_v0  ;;  %815 = vmatprep.mubr.bf16.mxu1 %v2304_v0 }
  0x6d   :  { %1966 = vmatmul.mubr.msk.bf16.gmra.mrb[32].mxu0 %vm346_vm1, %v2201_v21  ;;  %1988 = vmatmul.mubr.msk.bf16.gmra.mrb[32].mxu1 %vm346_vm1, %v2202_v22 }
  0x6e   :  { %605 = vmatprep.mubr.bf16.mxu0 %v2304_v0  ;;  %825 = vmatprep.mubr.bf16.mxu1 %v2304_v0 }
  0x75   :  { %1967 = vmatmul.mubr.msk.bf16.gmra.mrb[36].mxu0 %vm346_vm1, %v2203_v23  ;;  %1989 = vmatmul.mubr.msk.bf16.gmra.mrb[36].mxu1 %vm346_vm1, %v2204_v24 }
  0x76   :  { %615 = vmatprep.mubr.bf16.mxu0 %v2304_v0  ;;  %835 = vmatprep.mubr.bf16.mxu1 %v2304_v0 }
  0x7d   :  { %1968 = vmatmul.mubr.msk.bf16.gmra.mrb[40].mxu0 %vm346_vm1, %v2205_v25  ;;  %1990 = vmatmul.mubr.msk.bf16.gmra.mrb[40].mxu1 %vm346_vm1, %v2206_v26 }
  0x7e   :  { %625 = vmatprep.mubr.bf16.mxu0 %v2304_v0  ;;  %845 = vmatprep.mubr.bf16.mxu1 %v2304_v0 }
  0x85   :  { %1969 = vmatmul.mubr.msk.bf16.gmra.mrb[44].mxu0 %vm346_vm1, %v2207_v27  ;;  %1991 = vmatmul.mubr.msk.bf16.gmra.mrb[44].mxu1 %vm346_vm1, %v2208_v28 }
  0x86   :  { %635 = vmatprep.mubr.bf16.mxu0 %v2304_v0  ;;  %855 = vmatprep.mubr.bf16.mxu1 %v2304_v0 }
  0x8d   :  { %1970 = vmatmul.mubr.msk.bf16.gmra.mrb[48].mxu0 %vm346_vm1, %v2209_v29  ;;  %1992 = vmatmul.mubr.msk.bf16.gmra.mrb[48].mxu1 %vm346_vm1, %v2210_v30 }
  0x8e   :  { %645 = vmatprep.mubr.bf16.mxu0 %v2304_v0  ;;  %865 = vmatprep.mubr.bf16.mxu1 %v2304_v0 }
  0x95   :  { %1971 = vmatmul.mubr.msk.bf16.gmra.mrb[52].mxu0 %vm346_vm1, %v2211_v31  ;;  %1993 = vmatmul.mubr.msk.bf16.gmra.mrb[52].mxu1 %vm346_vm1, %v2212_v32 }
  0x96   :  { %655 = vmatprep.mubr.bf16.mxu0 %v2304_v0  ;;  %875 = vmatprep.mubr.bf16.mxu1 %v2304_v0 }
  0x9d   :  { %1972 = vmatmul.mubr.msk.bf16.gmra.mrb[56].mxu0 %vm346_vm1, %v2213_v33  ;;  %1994 = vmatmul.mubr.msk.bf16.gmra.mrb[56].mxu1 %vm346_vm1, %v2214_v34 }
  0x9e   :  { %665 = vmatprep.mubr.bf16.mxu0 %v2304_v0  ;;  %885 = vmatprep.mubr.bf16.mxu1 %v2304_v0 }
  0xa5   :  { %1973 = vmatmul.mubr.msk.bf16.gmra.mrb[60].mxu0 %vm346_vm1, %v2215_v35  ;;  %1995 = vmatmul.mubr.msk.bf16.gmra.mrb[60].mxu1 %vm346_vm1, %v2216_v36 }
  0xa6   :  { %675 = vmatprep.mubr.bf16.mxu0 %v2304_v0  ;;  %895 = vmatprep.mubr.bf16.mxu1 %v2304_v0 }
  0xad   :  { %1974 = vmatmul.mubr.msk.bf16.gmra.mrb[64].mxu0 %vm346_vm1, %v2217_v37  ;;  %1996 = vmatmul.mubr.msk.bf16.gmra.mrb[64].mxu1 %vm346_vm1, %v2218_v38 }
  0xae   :  { %685 = vmatprep.mubr.bf16.mxu0 %v2304_v0  ;;  %905 = vmatprep.mubr.bf16.mxu1 %v2304_v0 }
  0xb5   :  { %1975 = vmatmul.mubr.msk.bf16.gmra.mrb[68].mxu0 %vm346_vm1, %v2219_v39  ;;  %1997 = vmatmul.mubr.msk.bf16.gmra.mrb[68].mxu1 %vm346_vm1, %v2220_v40 }
  0xb6   :  { %695 = vmatprep.mubr.bf16.mxu0 %v2304_v0  ;;  %915 = vmatprep.mubr.bf16.mxu1 %v2304_v0 }
  0xbd   :  { %1976 = vmatmul.mubr.msk.bf16.gmra.mrb[72].mxu0 %vm346_vm1, %v2221_v41  ;;  %1998 = vmatmul.mubr.msk.bf16.gmra.mrb[72].mxu1 %vm346_vm1, %v2222_v42 }
  0xbe   :  { %705 = vmatprep.mubr.bf16.mxu0 %v2304_v0  ;;  %925 = vmatprep.mubr.bf16.mxu1 %v2304_v0 }
  0xc5   :  { %1977 = vmatmul.mubr.msk.bf16.gmra.mrb[76].mxu0 %vm346_vm1, %v2223_v43  ;;  %1999 = vmatmul.mubr.msk.bf16.gmra.mrb[76].mxu1 %vm346_vm1, %v2224_v44 }
  0xc6   :  { %715 = vmatprep.mubr.bf16.mxu0 %v2304_v0  ;;  %935 = vmatprep.mubr.bf16.mxu1 %v2304_v0 }
  0xcd   :  { %1978 = vmatmul.mubr.msk.bf16.gmra.mrb[80].mxu0 %vm346_vm1, %v2225_v45  ;;  %2000 = vmatmul.mubr.msk.bf16.gmra.mrb[80].mxu1 %vm346_vm1, %v2226_v46 }
  0xce   :  { %725 = vmatprep.mubr.bf16.mxu0 %v2304_v0 }
  0xd5   :  { %1979 = vmatmul.mubr.msk.bf16.gmra.mrb[84].mxu0 %vm346_vm1, %v2227_v47 }
 0x100   :  { %v517_v48 = vpop.f32.mrb[0].mxu0  ;;  %v737_v49 = vpop.f32.mrb[0].mxu1 }
 0x101   :  { %v946_v50 = vmax.f32 %v517_v48, 0.0  ;;  %v519_v51 = vpop.f32.mrb[1].mxu0  ;;  %v1034_v52 = vmax.f32 %v737_v49, 0.0  ;;  %v739_v53 = vpop.f32.mrb[1].mxu1 }
 0x102   :  { %v947_v54 = vmax.f32 %v519_v51, 0.0  ;;  %v521_v55 = vpop.f32.mrb[2].mxu0  ;;  %v1035_v56 = vmax.f32 %v739_v53, 0.0  ;;  %v741_v57 = vpop.f32.mrb[2].mxu1 }
 0x103   :  { %v1118_v58 = vmin.f32 %v946_v50, 6.0  ;;  %v948_v59 = vmax.f32 %v521_v55, 0.0  ;;  %v523_v60 = vpop.f32.mrb[3].mxu0  ;;  %v1206_v61 = vmin.f32 %v1034_v52, 6.0  ;;  %v1036_v62 = vmax.f32 %v741_v57, 0.0  ;;  %v743_v63 = vpop.f32.mrb[3].mxu1 }
 0x104   :  { %v1119_v0 = vmin.f32 %v947_v54, 6.0  ;;  %v949_v1 = vmax.f32 %v523_v60, 0.0  ;;  %v1207_v2 = vmin.f32 %v1035_v56, 6.0  ;;  %v1037_v3 = vmax.f32 %v743_v63, 0.0 }
 0x105   :  { %v1120_v5 = vmin.f32 %v948_v59, 6.0  ;;  %v1208_v6 = vmin.f32 %v1036_v62, 6.0 }
 0x106   :  { %v2087_v7 = vpack.c.bf16 %v1119_v0, %v1118_v58  ;;  %v1121_v8 = vmin.f32 %v949_v1, 6.0  ;;  %v2131_v9 = vpack.c.bf16 %v1207_v2, %v1206_v61  ;;  %v1209_v10 = vmin.f32 %v1037_v3, 6.0 }
 0x108   :  { %1808 = vst.msk [vmem:[#allocation7] sm:$0xff] %vm2438_vm3, %v2087_v7  ;;  %v2088_v11 = vpack.c.bf16 %v1121_v8, %v1120_v5  ;;  %1852 = vst.msk [vmem:[#allocation7 + $0x160] sm:$0xff] %vm2438_vm3, %v2131_v9  ;;  %v527_v12 = vpop.f32.mrb[4].mxu0  ;;  %v2132_v13 = vpack.c.bf16 %v1209_v10, %v1208_v6  ;;  %v747_v14 = vpop.f32.mrb[4].mxu1 }
 0x109   :  { %v950_v15 = vmax.f32 %v527_v12, 0.0  ;;  %v529_v16 = vpop.f32.mrb[5].mxu0  ;;  %v1038_v17 = vmax.f32 %v747_v14, 0.0  ;;  %v749_v18 = vpop.f32.mrb[5].mxu1 }
 0x10a   :  { %1809 = vst.msk [vmem:[#allocation7 + $0x8] sm:$0xff] %vm2438_vm3, %v2088_v11  ;;  %1853 = vst.msk [vmem:[#allocation7 + $0x168] sm:$0xff] %vm2438_vm3, %v2132_v13  ;;  %v951_v19 = vmax.f32 %v529_v16, 0.0  ;;  %v531_v20 = vpop.f32.mrb[6].mxu0  ;;  %v1039_v21 = vmax.f32 %v749_v18, 0.0  ;;  %v751_v22 = vpop.f32.mrb[6].mxu1 }
 0x10b   :  { %v1122_v23 = vmin.f32 %v950_v15, 6.0  ;;  %v952_v24 = vmax.f32 %v531_v20, 0.0  ;;  %v533_v25 = vpop.f32.mrb[7].mxu0  ;;  %v1210_v26 = vmin.f32 %v1038_v17, 6.0  ;;  %v1040_v27 = vmax.f32 %v751_v22, 0.0  ;;  %v753_v28 = vpop.f32.mrb[7].mxu1 }
 0x10c   :  { %v1123_v29 = vmin.f32 %v951_v19, 6.0  ;;  %v953_v30 = vmax.f32 %v533_v25, 0.0  ;;  %v1211_v31 = vmin.f32 %v1039_v21, 6.0  ;;  %v1041_v32 = vmax.f32 %v753_v28, 0.0 }
 0x10d   :  { %v1124_v33 = vmin.f32 %v952_v24, 6.0  ;;  %v1212_v34 = vmin.f32 %v1040_v27, 6.0 }
 0x10e   :  { %v2089_v35 = vpack.c.bf16 %v1123_v29, %v1122_v23  ;;  %v1125_v36 = vmin.f32 %v953_v30, 6.0  ;;  %v2133_v37 = vpack.c.bf16 %v1211_v31, %v1210_v26  ;;  %v1213_v38 = vmin.f32 %v1041_v32, 6.0 }
 0x110   :  { %1810 = vst.msk [vmem:[#allocation7 + $0x10] sm:$0xff] %vm2438_vm3, %v2089_v35  ;;  %v2090_v39 = vpack.c.bf16 %v1125_v36, %v1124_v33  ;;  %1854 = vst.msk [vmem:[#allocation7 + $0x170] sm:$0xff] %vm2438_vm3, %v2133_v37  ;;  %v537_v40 = vpop.f32.mrb[8].mxu0  ;;  %v2134_v41 = vpack.c.bf16 %v1213_v38, %v1212_v34  ;;  %v757_v42 = vpop.f32.mrb[8].mxu1 }
 0x111   :  { %v954_v43 = vmax.f32 %v537_v40, 0.0  ;;  %v539_v44 = vpop.f32.mrb[9].mxu0  ;;  %v1042_v45 = vmax.f32 %v757_v42, 0.0  ;;  %v759_v46 = vpop.f32.mrb[9].mxu1 }
 0x112   :  { %1811 = vst.msk [vmem:[#allocation7 + $0x18] sm:$0xff] %vm2438_vm3, %v2090_v39  ;;  %1855 = vst.msk [vmem:[#allocation7 + $0x178] sm:$0xff] %vm2438_vm3, %v2134_v41  ;;  %v955_v47 = vmax.f32 %v539_v44, 0.0  ;;  %v541_v48 = vpop.f32.mrb[10].mxu0  ;;  %v1043_v49 = vmax.f32 %v759_v46, 0.0  ;;  %v761_v50 = vpop.f32.mrb[10].mxu1 }
 0x113   :  { %v1126_v51 = vmin.f32 %v954_v43, 6.0  ;;  %v956_v52 = vmax.f32 %v541_v48, 0.0  ;;  %v543_v53 = vpop.f32.mrb[11].mxu0  ;;  %v1214_v54 = vmin.f32 %v1042_v45, 6.0  ;;  %v1044_v55 = vmax.f32 %v761_v50, 0.0  ;;  %v763_v56 = vpop.f32.mrb[11].mxu1 }
 0x114   :  { %v1127_v57 = vmin.f32 %v955_v47, 6.0  ;;  %v957_v58 = vmax.f32 %v543_v53, 0.0  ;;  %v1215_v59 = vmin.f32 %v1043_v49, 6.0  ;;  %v1045_v60 = vmax.f32 %v763_v56, 0.0 }
 0x115   :  { %v1128_v61 = vmin.f32 %v956_v52, 6.0  ;;  %v1216_v62 = vmin.f32 %v1044_v55, 6.0 }
 0x116   :  { %v2091_v63 = vpack.c.bf16 %v1127_v57, %v1126_v51  ;;  %v1129_v0 = vmin.f32 %v957_v58, 6.0  ;;  %v2135_v1 = vpack.c.bf16 %v1215_v59, %v1214_v54  ;;  %v1217_v2 = vmin.f32 %v1045_v60, 6.0 }
 0x118   :  { %1812 = vst.msk [vmem:[#allocation7 + $0x20] sm:$0xff] %vm2438_vm3, %v2091_v63  ;;  %v2092_v3 = vpack.c.bf16 %v1129_v0, %v1128_v61  ;;  %1856 = vst.msk [vmem:[#allocation7 + $0x180] sm:$0xff] %vm2438_vm3, %v2135_v1  ;;  %v547_v5 = vpop.f32.mrb[12].mxu0  ;;  %v2136_v6 = vpack.c.bf16 %v1217_v2, %v1216_v62  ;;  %v767_v7 = vpop.f32.mrb[12].mxu1 }
 0x119   :  { %v958_v8 = vmax.f32 %v547_v5, 0.0  ;;  %v549_v9 = vpop.f32.mrb[13].mxu0  ;;  %v1046_v10 = vmax.f32 %v767_v7, 0.0  ;;  %v769_v11 = vpop.f32.mrb[13].mxu1 }
 0x11a   :  { %1813 = vst.msk [vmem:[#allocation7 + $0x28] sm:$0xff] %vm2438_vm3, %v2092_v3  ;;  %1857 = vst.msk [vmem:[#allocation7 + $0x188] sm:$0xff] %vm2438_vm3, %v2136_v6  ;;  %v959_v12 = vmax.f32 %v549_v9, 0.0  ;;  %v551_v13 = vpop.f32.mrb[14].mxu0  ;;  %v1047_v14 = vmax.f32 %v769_v11, 0.0  ;;  %v771_v15 = vpop.f32.mrb[14].mxu1 }
 0x11b   :  { %v1130_v16 = vmin.f32 %v958_v8, 6.0  ;;  %v960_v17 = vmax.f32 %v551_v13, 0.0  ;;  %v553_v18 = vpop.f32.mrb[15].mxu0  ;;  %v1218_v19 = vmin.f32 %v1046_v10, 6.0  ;;  %v1048_v20 = vmax.f32 %v771_v15, 0.0  ;;  %v773_v21 = vpop.f32.mrb[15].mxu1 }
 0x11c   :  { %v1131_v22 = vmin.f32 %v959_v12, 6.0  ;;  %v961_v23 = vmax.f32 %v553_v18, 0.0  ;;  %v1219_v24 = vmin.f32 %v1047_v14, 6.0  ;;  %v1049_v25 = vmax.f32 %v773_v21, 0.0 }
 0x11d   :  { %v1132_v26 = vmin.f32 %v960_v17, 6.0  ;;  %v1220_v27 = vmin.f32 %v1048_v20, 6.0 }
 0x11e   :  { %v2093_v28 = vpack.c.bf16 %v1131_v22, %v1130_v16  ;;  %v1133_v29 = vmin.f32 %v961_v23, 6.0  ;;  %v2137_v30 = vpack.c.bf16 %v1219_v24, %v1218_v19  ;;  %v1221_v31 = vmin.f32 %v1049_v25, 6.0 }
 0x120   :  { %1814 = vst.msk [vmem:[#allocation7 + $0x30] sm:$0xff] %vm2438_vm3, %v2093_v28  ;;  %v2094_v32 = vpack.c.bf16 %v1133_v29, %v1132_v26  ;;  %1858 = vst.msk [vmem:[#allocation7 + $0x190] sm:$0xff] %vm2438_vm3, %v2137_v30  ;;  %v557_v33 = vpop.f32.mrb[16].mxu0  ;;  %v2138_v34 = vpack.c.bf16 %v1221_v31, %v1220_v27  ;;  %v777_v35 = vpop.f32.mrb[16].mxu1 }
 0x121   :  { %v962_v36 = vmax.f32 %v557_v33, 0.0  ;;  %v559_v37 = vpop.f32.mrb[17].mxu0  ;;  %v1050_v38 = vmax.f32 %v777_v35, 0.0  ;;  %v779_v39 = vpop.f32.mrb[17].mxu1 }
 0x122   :  { %1815 = vst.msk [vmem:[#allocation7 + $0x38] sm:$0xff] %vm2438_vm3, %v2094_v32  ;;  %1859 = vst.msk [vmem:[#allocation7 + $0x198] sm:$0xff] %vm2438_vm3, %v2138_v34  ;;  %v963_v40 = vmax.f32 %v559_v37, 0.0  ;;  %v561_v41 = vpop.f32.mrb[18].mxu0  ;;  %v1051_v42 = vmax.f32 %v779_v39, 0.0  ;;  %v781_v43 = vpop.f32.mrb[18].mxu1 }
 0x123   :  { %v1134_v44 = vmin.f32 %v962_v36, 6.0  ;;  %v964_v45 = vmax.f32 %v561_v41, 0.0  ;;  %v563_v46 = vpop.f32.mrb[19].mxu0  ;;  %v1222_v47 = vmin.f32 %v1050_v38, 6.0  ;;  %v1052_v48 = vmax.f32 %v781_v43, 0.0  ;;  %v783_v49 = vpop.f32.mrb[19].mxu1 }
 0x124   :  { %v1135_v50 = vmin.f32 %v963_v40, 6.0  ;;  %v965_v51 = vmax.f32 %v563_v46, 0.0  ;;  %v1223_v52 = vmin.f32 %v1051_v42, 6.0  ;;  %v1053_v53 = vmax.f32 %v783_v49, 0.0 }
 0x125   :  { %v1136_v54 = vmin.f32 %v964_v45, 6.0  ;;  %v1224_v55 = vmin.f32 %v1052_v48, 6.0 }
 0x126   :  { %v2095_v56 = vpack.c.bf16 %v1135_v50, %v1134_v44  ;;  %v1137_v57 = vmin.f32 %v965_v51, 6.0  ;;  %v2139_v58 = vpack.c.bf16 %v1223_v52, %v1222_v47  ;;  %v1225_v59 = vmin.f32 %v1053_v53, 6.0 }
 0x128   :  { %1816 = vst.msk [vmem:[#allocation7 + $0x40] sm:$0xff] %vm2438_vm3, %v2095_v56  ;;  %v2096_v60 = vpack.c.bf16 %v1137_v57, %v1136_v54  ;;  %1860 = vst.msk [vmem:[#allocation7 + $0x1a0] sm:$0xff] %vm2438_vm3, %v2139_v58  ;;  %v567_v61 = vpop.f32.mrb[20].mxu0  ;;  %v2140_v62 = vpack.c.bf16 %v1225_v59, %v1224_v55  ;;  %v787_v63 = vpop.f32.mrb[20].mxu1 }
 0x129   :  { %v966_v0 = vmax.f32 %v567_v61, 0.0  ;;  %v569_v1 = vpop.f32.mrb[21].mxu0  ;;  %v1054_v2 = vmax.f32 %v787_v63, 0.0  ;;  %v789_v3 = vpop.f32.mrb[21].mxu1 }
 0x12a   :  { %1817 = vst.msk [vmem:[#allocation7 + $0x48] sm:$0xff] %vm2438_vm3, %v2096_v60  ;;  %1861 = vst.msk [vmem:[#allocation7 + $0x1a8] sm:$0xff] %vm2438_vm3, %v2140_v62  ;;  %v967_v5 = vmax.f32 %v569_v1, 0.0  ;;  %v571_v6 = vpop.f32.mrb[22].mxu0  ;;  %v1055_v7 = vmax.f32 %v789_v3, 0.0  ;;  %v791_v8 = vpop.f32.mrb[22].mxu1 }
 0x12b   :  { %v1138_v9 = vmin.f32 %v966_v0, 6.0  ;;  %v968_v10 = vmax.f32 %v571_v6, 0.0  ;;  %v573_v11 = vpop.f32.mrb[23].mxu0  ;;  %v1226_v12 = vmin.f32 %v1054_v2, 6.0  ;;  %v1056_v13 = vmax.f32 %v791_v8, 0.0  ;;  %v793_v14 = vpop.f32.mrb[23].mxu1 }
 0x12c   :  { %v1139_v15 = vmin.f32 %v967_v5, 6.0  ;;  %v969_v16 = vmax.f32 %v573_v11, 0.0  ;;  %v1227_v17 = vmin.f32 %v1055_v7, 6.0  ;;  %v1057_v18 = vmax.f32 %v793_v14, 0.0 }
 0x12d   :  { %v1140_v19 = vmin.f32 %v968_v10, 6.0  ;;  %v1228_v20 = vmin.f32 %v1056_v13, 6.0 }
 0x12e   :  { %v2097_v21 = vpack.c.bf16 %v1139_v15, %v1138_v9  ;;  %v1141_v22 = vmin.f32 %v969_v16, 6.0  ;;  %v2141_v23 = vpack.c.bf16 %v1227_v17, %v1226_v12  ;;  %v1229_v24 = vmin.f32 %v1057_v18, 6.0 }
 0x130   :  { %1818 = vst.msk [vmem:[#allocation7 + $0x50] sm:$0xff] %vm2438_vm3, %v2097_v21  ;;  %v2098_v25 = vpack.c.bf16 %v1141_v22, %v1140_v19  ;;  %1862 = vst.msk [vmem:[#allocation7 + $0x1b0] sm:$0xff] %vm2438_vm3, %v2141_v23  ;;  %v577_v26 = vpop.f32.mrb[24].mxu0  ;;  %v2142_v27 = vpack.c.bf16 %v1229_v24, %v1228_v20  ;;  %v797_v28 = vpop.f32.mrb[24].mxu1 }
 0x131   :  { %v970_v29 = vmax.f32 %v577_v26, 0.0  ;;  %v579_v30 = vpop.f32.mrb[25].mxu0  ;;  %v1058_v31 = vmax.f32 %v797_v28, 0.0  ;;  %v799_v32 = vpop.f32.mrb[25].mxu1 }
 0x132   :  { %1819 = vst.msk [vmem:[#allocation7 + $0x58] sm:$0xff] %vm2438_vm3, %v2098_v25  ;;  %1863 = vst.msk [vmem:[#allocation7 + $0x1b8] sm:$0xff] %vm2438_vm3, %v2142_v27  ;;  %v971_v33 = vmax.f32 %v579_v30, 0.0  ;;  %v581_v34 = vpop.f32.mrb[26].mxu0  ;;  %v1059_v35 = vmax.f32 %v799_v32, 0.0  ;;  %v801_v36 = vpop.f32.mrb[26].mxu1 }
 0x133   :  { %v1142_v37 = vmin.f32 %v970_v29, 6.0  ;;  %v972_v38 = vmax.f32 %v581_v34, 0.0  ;;  %v583_v39 = vpop.f32.mrb[27].mxu0  ;;  %v1230_v40 = vmin.f32 %v1058_v31, 6.0  ;;  %v1060_v41 = vmax.f32 %v801_v36, 0.0  ;;  %v803_v42 = vpop.f32.mrb[27].mxu1 }
 0x134   :  { %v1143_v43 = vmin.f32 %v971_v33, 6.0  ;;  %v973_v44 = vmax.f32 %v583_v39, 0.0  ;;  %v1231_v45 = vmin.f32 %v1059_v35, 6.0  ;;  %v1061_v46 = vmax.f32 %v803_v42, 0.0 }
 0x135   :  { %v1144_v47 = vmin.f32 %v972_v38, 6.0  ;;  %v1232_v48 = vmin.f32 %v1060_v41, 6.0 }
 0x136   :  { %v2099_v49 = vpack.c.bf16 %v1143_v43, %v1142_v37  ;;  %v1145_v50 = vmin.f32 %v973_v44, 6.0  ;;  %v2143_v51 = vpack.c.bf16 %v1231_v45, %v1230_v40  ;;  %v1233_v52 = vmin.f32 %v1061_v46, 6.0 }
 0x138   :  { %1820 = vst.msk [vmem:[#allocation7 + $0x60] sm:$0xff] %vm2438_vm3, %v2099_v49  ;;  %v2100_v53 = vpack.c.bf16 %v1145_v50, %v1144_v47  ;;  %1864 = vst.msk [vmem:[#allocation7 + $0x1c0] sm:$0xff] %vm2438_vm3, %v2143_v51  ;;  %v587_v54 = vpop.f32.mrb[28].mxu0  ;;  %v2144_v55 = vpack.c.bf16 %v1233_v52, %v1232_v48  ;;  %v807_v56 = vpop.f32.mrb[28].mxu1 }
 0x139   :  { %v974_v57 = vmax.f32 %v587_v54, 0.0  ;;  %v589_v58 = vpop.f32.mrb[29].mxu0  ;;  %v1062_v59 = vmax.f32 %v807_v56, 0.0  ;;  %v809_v60 = vpop.f32.mrb[29].mxu1 }
 0x13a   :  { %1821 = vst.msk [vmem:[#allocation7 + $0x68] sm:$0xff] %vm2438_vm3, %v2100_v53  ;;  %1865 = vst.msk [vmem:[#allocation7 + $0x1c8] sm:$0xff] %vm2438_vm3, %v2144_v55  ;;  %v975_v61 = vmax.f32 %v589_v58, 0.0  ;;  %v591_v62 = vpop.f32.mrb[30].mxu0  ;;  %v1063_v63 = vmax.f32 %v809_v60, 0.0  ;;  %v811_v0 = vpop.f32.mrb[30].mxu1 }
 0x13b   :  { %v1146_v1 = vmin.f32 %v974_v57, 6.0  ;;  %v976_v2 = vmax.f32 %v591_v62, 0.0  ;;  %v593_v3 = vpop.f32.mrb[31].mxu0  ;;  %v1234_v5 = vmin.f32 %v1062_v59, 6.0  ;;  %v1064_v6 = vmax.f32 %v811_v0, 0.0  ;;  %v813_v7 = vpop.f32.mrb[31].mxu1 }
 0x13c   :  { %v1147_v8 = vmin.f32 %v975_v61, 6.0  ;;  %v977_v9 = vmax.f32 %v593_v3, 0.0  ;;  %v1235_v10 = vmin.f32 %v1063_v63, 6.0  ;;  %v1065_v11 = vmax.f32 %v813_v7, 0.0 }
 0x13d   :  { %v1148_v12 = vmin.f32 %v976_v2, 6.0  ;;  %v1236_v13 = vmin.f32 %v1064_v6, 6.0 }
 0x13e   :  { %v2101_v14 = vpack.c.bf16 %v1147_v8, %v1146_v1  ;;  %v1149_v15 = vmin.f32 %v977_v9, 6.0  ;;  %v2145_v16 = vpack.c.bf16 %v1235_v10, %v1234_v5  ;;  %v1237_v17 = vmin.f32 %v1065_v11, 6.0 }
 0x140   :  { %1822 = vst.msk [vmem:[#allocation7 + $0x70] sm:$0xff] %vm2438_vm3, %v2101_v14  ;;  %v2102_v18 = vpack.c.bf16 %v1149_v15, %v1148_v12  ;;  %1866 = vst.msk [vmem:[#allocation7 + $0x1d0] sm:$0xff] %vm2438_vm3, %v2145_v16  ;;  %v597_v19 = vpop.f32.mrb[32].mxu0  ;;  %v2146_v20 = vpack.c.bf16 %v1237_v17, %v1236_v13  ;;  %v817_v21 = vpop.f32.mrb[32].mxu1 }
 0x141   :  { %v978_v22 = vmax.f32 %v597_v19, 0.0  ;;  %v599_v23 = vpop.f32.mrb[33].mxu0  ;;  %v1066_v24 = vmax.f32 %v817_v21, 0.0  ;;  %v819_v25 = vpop.f32.mrb[33].mxu1 }
 0x142   :  { %1823 = vst.msk [vmem:[#allocation7 + $0x78] sm:$0xff] %vm2438_vm3, %v2102_v18  ;;  %1867 = vst.msk [vmem:[#allocation7 + $0x1d8] sm:$0xff] %vm2438_vm3, %v2146_v20  ;;  %v979_v26 = vmax.f32 %v599_v23, 0.0  ;;  %v601_v27 = vpop.f32.mrb[34].mxu0  ;;  %v1067_v28 = vmax.f32 %v819_v25, 0.0  ;;  %v821_v29 = vpop.f32.mrb[34].mxu1 }
 0x143   :  { %v1150_v30 = vmin.f32 %v978_v22, 6.0  ;;  %v980_v31 = vmax.f32 %v601_v27, 0.0  ;;  %v603_v32 = vpop.f32.mrb[35].mxu0  ;;  %v1238_v33 = vmin.f32 %v1066_v24, 6.0  ;;  %v1068_v34 = vmax.f32 %v821_v29, 0.0  ;;  %v823_v35 = vpop.f32.mrb[35].mxu1 }
 0x144   :  { %v1151_v36 = vmin.f32 %v979_v26, 6.0  ;;  %v981_v37 = vmax.f32 %v603_v32, 0.0  ;;  %v1239_v38 = vmin.f32 %v1067_v28, 6.0  ;;  %v1069_v39 = vmax.f32 %v823_v35, 0.0 }
 0x145   :  { %v1152_v40 = vmin.f32 %v980_v31, 6.0  ;;  %v1240_v41 = vmin.f32 %v1068_v34, 6.0 }
 0x146   :  { %v2103_v42 = vpack.c.bf16 %v1151_v36, %v1150_v30  ;;  %v1153_v43 = vmin.f32 %v981_v37, 6.0  ;;  %v2147_v44 = vpack.c.bf16 %v1239_v38, %v1238_v33  ;;  %v1241_v45 = vmin.f32 %v1069_v39, 6.0 }
 0x148   :  { %1824 = vst.msk [vmem:[#allocation7 + $0x80] sm:$0xff] %vm2438_vm3, %v2103_v42  ;;  %v2104_v46 = vpack.c.bf16 %v1153_v43, %v1152_v40  ;;  %1868 = vst.msk [vmem:[#allocation7 + $0x1e0] sm:$0xff] %vm2438_vm3, %v2147_v44  ;;  %v607_v47 = vpop.f32.mrb[36].mxu0  ;;  %v2148_v48 = vpack.c.bf16 %v1241_v45, %v1240_v41  ;;  %v827_v49 = vpop.f32.mrb[36].mxu1 }
 0x149   :  { %v982_v50 = vmax.f32 %v607_v47, 0.0  ;;  %v609_v51 = vpop.f32.mrb[37].mxu0  ;;  %v1070_v52 = vmax.f32 %v827_v49, 0.0  ;;  %v829_v53 = vpop.f32.mrb[37].mxu1 }
 0x14a   :  { %1825 = vst.msk [vmem:[#allocation7 + $0x88] sm:$0xff] %vm2438_vm3, %v2104_v46  ;;  %1869 = vst.msk [vmem:[#allocation7 + $0x1e8] sm:$0xff] %vm2438_vm3, %v2148_v48  ;;  %v983_v54 = vmax.f32 %v609_v51, 0.0  ;;  %v611_v55 = vpop.f32.mrb[38].mxu0  ;;  %v1071_v56 = vmax.f32 %v829_v53, 0.0  ;;  %v831_v57 = vpop.f32.mrb[38].mxu1 }
 0x14b   :  { %v1154_v58 = vmin.f32 %v982_v50, 6.0  ;;  %v984_v59 = vmax.f32 %v611_v55, 0.0  ;;  %v613_v60 = vpop.f32.mrb[39].mxu0  ;;  %v1242_v61 = vmin.f32 %v1070_v52, 6.0  ;;  %v1072_v62 = vmax.f32 %v831_v57, 0.0  ;;  %v833_v63 = vpop.f32.mrb[39].mxu1 }
 0x14c   :  { %v1155_v0 = vmin.f32 %v983_v54, 6.0  ;;  %v985_v1 = vmax.f32 %v613_v60, 0.0  ;;  %v1243_v2 = vmin.f32 %v1071_v56, 6.0  ;;  %v1073_v3 = vmax.f32 %v833_v63, 0.0 }
 0x14d   :  { %v1156_v5 = vmin.f32 %v984_v59, 6.0  ;;  %v1244_v6 = vmin.f32 %v1072_v62, 6.0 }
 0x14e   :  { %v2105_v7 = vpack.c.bf16 %v1155_v0, %v1154_v58  ;;  %v1157_v8 = vmin.f32 %v985_v1, 6.0  ;;  %v2149_v9 = vpack.c.bf16 %v1243_v2, %v1242_v61  ;;  %v1245_v10 = vmin.f32 %v1073_v3, 6.0 }
 0x150   :  { %1826 = vst.msk [vmem:[#allocation7 + $0x90] sm:$0xff] %vm2438_vm3, %v2105_v7  ;;  %v2106_v11 = vpack.c.bf16 %v1157_v8, %v1156_v5  ;;  %1870 = vst.msk [vmem:[#allocation7 + $0x1f0] sm:$0xff] %vm2438_vm3, %v2149_v9  ;;  %v617_v12 = vpop.f32.mrb[40].mxu0  ;;  %v2150_v13 = vpack.c.bf16 %v1245_v10, %v1244_v6  ;;  %v837_v14 = vpop.f32.mrb[40].mxu1 }
 0x151   :  { %v986_v15 = vmax.f32 %v617_v12, 0.0  ;;  %v619_v16 = vpop.f32.mrb[41].mxu0  ;;  %v1074_v17 = vmax.f32 %v837_v14, 0.0  ;;  %v839_v18 = vpop.f32.mrb[41].mxu1 }
 0x152   :  { %1827 = vst.msk [vmem:[#allocation7 + $0x98] sm:$0xff] %vm2438_vm3, %v2106_v11  ;;  %1871 = vst.msk [vmem:[#allocation7 + $0x1f8] sm:$0xff] %vm2438_vm3, %v2150_v13  ;;  %v987_v19 = vmax.f32 %v619_v16, 0.0  ;;  %v621_v20 = vpop.f32.mrb[42].mxu0  ;;  %v1075_v21 = vmax.f32 %v839_v18, 0.0  ;;  %v841_v22 = vpop.f32.mrb[42].mxu1 }
 0x153   :  { %v1158_v23 = vmin.f32 %v986_v15, 6.0  ;;  %v988_v24 = vmax.f32 %v621_v20, 0.0  ;;  %v623_v25 = vpop.f32.mrb[43].mxu0  ;;  %v1246_v26 = vmin.f32 %v1074_v17, 6.0  ;;  %v1076_v27 = vmax.f32 %v841_v22, 0.0  ;;  %v843_v28 = vpop.f32.mrb[43].mxu1 }
 0x154   :  { %v1159_v29 = vmin.f32 %v987_v19, 6.0  ;;  %v989_v30 = vmax.f32 %v623_v25, 0.0  ;;  %v1247_v31 = vmin.f32 %v1075_v21, 6.0  ;;  %v1077_v32 = vmax.f32 %v843_v28, 0.0 }
 0x155   :  { %v1160_v33 = vmin.f32 %v988_v24, 6.0  ;;  %v1248_v34 = vmin.f32 %v1076_v27, 6.0 }
 0x156   :  { %v2107_v35 = vpack.c.bf16 %v1159_v29, %v1158_v23  ;;  %v1161_v36 = vmin.f32 %v989_v30, 6.0  ;;  %v2151_v37 = vpack.c.bf16 %v1247_v31, %v1246_v26  ;;  %v1249_v38 = vmin.f32 %v1077_v32, 6.0 }
 0x158   :  { %1828 = vst.msk [vmem:[#allocation7 + $0xa0] sm:$0xff] %vm2438_vm3, %v2107_v35  ;;  %v2108_v39 = vpack.c.bf16 %v1161_v36, %v1160_v33  ;;  %1872 = vst.msk [vmem:[#allocation7 + $0x200] sm:$0xff] %vm2438_vm3, %v2151_v37  ;;  %v627_v40 = vpop.f32.mrb[44].mxu0  ;;  %v2152_v41 = vpack.c.bf16 %v1249_v38, %v1248_v34  ;;  %v847_v42 = vpop.f32.mrb[44].mxu1 }
 0x159   :  { %v990_v43 = vmax.f32 %v627_v40, 0.0  ;;  %v629_v44 = vpop.f32.mrb[45].mxu0  ;;  %v1078_v45 = vmax.f32 %v847_v42, 0.0  ;;  %v849_v46 = vpop.f32.mrb[45].mxu1 }
 0x15a   :  { %1829 = vst.msk [vmem:[#allocation7 + $0xa8] sm:$0xff] %vm2438_vm3, %v2108_v39  ;;  %1873 = vst.msk [vmem:[#allocation7 + $0x208] sm:$0xff] %vm2438_vm3, %v2152_v41  ;;  %v991_v47 = vmax.f32 %v629_v44, 0.0  ;;  %v631_v48 = vpop.f32.mrb[46].mxu0  ;;  %v1079_v49 = vmax.f32 %v849_v46, 0.0  ;;  %v851_v50 = vpop.f32.mrb[46].mxu1 }
 0x15b   :  { %v1162_v51 = vmin.f32 %v990_v43, 6.0  ;;  %v992_v52 = vmax.f32 %v631_v48, 0.0  ;;  %v633_v53 = vpop.f32.mrb[47].mxu0  ;;  %v1250_v54 = vmin.f32 %v1078_v45, 6.0  ;;  %v1080_v55 = vmax.f32 %v851_v50, 0.0  ;;  %v853_v56 = vpop.f32.mrb[47].mxu1 }
 0x15c   :  { %v1163_v57 = vmin.f32 %v991_v47, 6.0  ;;  %v993_v58 = vmax.f32 %v633_v53, 0.0  ;;  %v1251_v59 = vmin.f32 %v1079_v49, 6.0  ;;  %v1081_v60 = vmax.f32 %v853_v56, 0.0 }
 0x15d   :  { %v1164_v61 = vmin.f32 %v992_v52, 6.0  ;;  %v1252_v62 = vmin.f32 %v1080_v55, 6.0 }
 0x15e   :  { %v2109_v63 = vpack.c.bf16 %v1163_v57, %v1162_v51  ;;  %v1165_v0 = vmin.f32 %v993_v58, 6.0  ;;  %v2153_v1 = vpack.c.bf16 %v1251_v59, %v1250_v54  ;;  %v1253_v2 = vmin.f32 %v1081_v60, 6.0 }
 0x160   :  { %1830 = vst.msk [vmem:[#allocation7 + $0xb0] sm:$0xff] %vm2438_vm3, %v2109_v63  ;;  %v2110_v3 = vpack.c.bf16 %v1165_v0, %v1164_v61  ;;  %1874 = vst.msk [vmem:[#allocation7 + $0x210] sm:$0xff] %vm2438_vm3, %v2153_v1  ;;  %v637_v5 = vpop.f32.mrb[48].mxu0  ;;  %v2154_v6 = vpack.c.bf16 %v1253_v2, %v1252_v62  ;;  %v857_v7 = vpop.f32.mrb[48].mxu1 }
 0x161   :  { %v994_v8 = vmax.f32 %v637_v5, 0.0  ;;  %v639_v9 = vpop.f32.mrb[49].mxu0  ;;  %v1082_v10 = vmax.f32 %v857_v7, 0.0  ;;  %v859_v11 = vpop.f32.mrb[49].mxu1 }
 0x162   :  { %1831 = vst.msk [vmem:[#allocation7 + $0xb8] sm:$0xff] %vm2438_vm3, %v2110_v3  ;;  %1875 = vst.msk [vmem:[#allocation7 + $0x218] sm:$0xff] %vm2438_vm3, %v2154_v6  ;;  %v995_v12 = vmax.f32 %v639_v9, 0.0  ;;  %v641_v13 = vpop.f32.mrb[50].mxu0  ;;  %v1083_v14 = vmax.f32 %v859_v11, 0.0  ;;  %v861_v15 = vpop.f32.mrb[50].mxu1 }
 0x163   :  { %v1166_v16 = vmin.f32 %v994_v8, 6.0  ;;  %v996_v17 = vmax.f32 %v641_v13, 0.0  ;;  %v643_v18 = vpop.f32.mrb[51].mxu0  ;;  %v1254_v19 = vmin.f32 %v1082_v10, 6.0  ;;  %v1084_v20 = vmax.f32 %v861_v15, 0.0  ;;  %v863_v21 = vpop.f32.mrb[51].mxu1 }
 0x164   :  { %v1167_v22 = vmin.f32 %v995_v12, 6.0  ;;  %v997_v23 = vmax.f32 %v643_v18, 0.0  ;;  %v1255_v24 = vmin.f32 %v1083_v14, 6.0  ;;  %v1085_v25 = vmax.f32 %v863_v21, 0.0 }
 0x165   :  { %v1168_v26 = vmin.f32 %v996_v17, 6.0  ;;  %v1256_v27 = vmin.f32 %v1084_v20, 6.0 }
 0x166   :  { %v2111_v28 = vpack.c.bf16 %v1167_v22, %v1166_v16  ;;  %v1169_v29 = vmin.f32 %v997_v23, 6.0  ;;  %v2155_v30 = vpack.c.bf16 %v1255_v24, %v1254_v19  ;;  %v1257_v31 = vmin.f32 %v1085_v25, 6.0 }
 0x168   :  { %1832 = vst.msk [vmem:[#allocation7 + $0xc0] sm:$0xff] %vm2438_vm3, %v2111_v28  ;;  %v2112_v32 = vpack.c.bf16 %v1169_v29, %v1168_v26  ;;  %1876 = vst.msk [vmem:[#allocation7 + $0x220] sm:$0xff] %vm2438_vm3, %v2155_v30  ;;  %v647_v33 = vpop.f32.mrb[52].mxu0  ;;  %v2156_v34 = vpack.c.bf16 %v1257_v31, %v1256_v27  ;;  %v867_v35 = vpop.f32.mrb[52].mxu1 }
 0x169   :  { %v998_v36 = vmax.f32 %v647_v33, 0.0  ;;  %v649_v37 = vpop.f32.mrb[53].mxu0  ;;  %v1086_v38 = vmax.f32 %v867_v35, 0.0  ;;  %v869_v39 = vpop.f32.mrb[53].mxu1 }
 0x16a   :  { %1833 = vst.msk [vmem:[#allocation7 + $0xc8] sm:$0xff] %vm2438_vm3, %v2112_v32  ;;  %1877 = vst.msk [vmem:[#allocation7 + $0x228] sm:$0xff] %vm2438_vm3, %v2156_v34  ;;  %v999_v40 = vmax.f32 %v649_v37, 0.0  ;;  %v651_v41 = vpop.f32.mrb[54].mxu0  ;;  %v1087_v42 = vmax.f32 %v869_v39, 0.0  ;;  %v871_v43 = vpop.f32.mrb[54].mxu1 }
 0x16b   :  { %v1170_v44 = vmin.f32 %v998_v36, 6.0  ;;  %v1000_v45 = vmax.f32 %v651_v41, 0.0  ;;  %v653_v46 = vpop.f32.mrb[55].mxu0  ;;  %v1258_v47 = vmin.f32 %v1086_v38, 6.0  ;;  %v1088_v48 = vmax.f32 %v871_v43, 0.0  ;;  %v873_v49 = vpop.f32.mrb[55].mxu1 }
 0x16c   :  { %v1171_v50 = vmin.f32 %v999_v40, 6.0  ;;  %v1001_v51 = vmax.f32 %v653_v46, 0.0  ;;  %v1259_v52 = vmin.f32 %v1087_v42, 6.0  ;;  %v1089_v53 = vmax.f32 %v873_v49, 0.0 }
 0x16d   :  { %v1172_v54 = vmin.f32 %v1000_v45, 6.0  ;;  %v1260_v55 = vmin.f32 %v1088_v48, 6.0 }
 0x16e   :  { %v2113_v56 = vpack.c.bf16 %v1171_v50, %v1170_v44  ;;  %v1173_v57 = vmin.f32 %v1001_v51, 6.0  ;;  %v2157_v58 = vpack.c.bf16 %v1259_v52, %v1258_v47  ;;  %v1261_v59 = vmin.f32 %v1089_v53, 6.0 }
 0x170   :  { %1834 = vst.msk [vmem:[#allocation7 + $0xd0] sm:$0xff] %vm2438_vm3, %v2113_v56  ;;  %v2114_v60 = vpack.c.bf16 %v1173_v57, %v1172_v54  ;;  %1878 = vst.msk [vmem:[#allocation7 + $0x230] sm:$0xff] %vm2438_vm3, %v2157_v58  ;;  %v657_v61 = vpop.f32.mrb[56].mxu0  ;;  %v2158_v62 = vpack.c.bf16 %v1261_v59, %v1260_v55  ;;  %v877_v63 = vpop.f32.mrb[56].mxu1 }
 0x171   :  { %v1002_v0 = vmax.f32 %v657_v61, 0.0  ;;  %v659_v1 = vpop.f32.mrb[57].mxu0  ;;  %v1090_v2 = vmax.f32 %v877_v63, 0.0  ;;  %v879_v3 = vpop.f32.mrb[57].mxu1 }
 0x172   :  { %1835 = vst.msk [vmem:[#allocation7 + $0xd8] sm:$0xff] %vm2438_vm3, %v2114_v60  ;;  %1879 = vst.msk [vmem:[#allocation7 + $0x238] sm:$0xff] %vm2438_vm3, %v2158_v62  ;;  %v1003_v5 = vmax.f32 %v659_v1, 0.0  ;;  %v661_v6 = vpop.f32.mrb[58].mxu0  ;;  %v1091_v7 = vmax.f32 %v879_v3, 0.0  ;;  %v881_v8 = vpop.f32.mrb[58].mxu1 }
 0x173   :  { %v1174_v9 = vmin.f32 %v1002_v0, 6.0  ;;  %v1004_v10 = vmax.f32 %v661_v6, 0.0  ;;  %v663_v11 = vpop.f32.mrb[59].mxu0  ;;  %v1262_v12 = vmin.f32 %v1090_v2, 6.0  ;;  %v1092_v13 = vmax.f32 %v881_v8, 0.0  ;;  %v883_v14 = vpop.f32.mrb[59].mxu1 }
 0x174   :  { %v1175_v15 = vmin.f32 %v1003_v5, 6.0  ;;  %v1005_v16 = vmax.f32 %v663_v11, 0.0  ;;  %v1263_v17 = vmin.f32 %v1091_v7, 6.0  ;;  %v1093_v18 = vmax.f32 %v883_v14, 0.0 }
 0x175   :  { %v1176_v19 = vmin.f32 %v1004_v10, 6.0  ;;  %v1264_v20 = vmin.f32 %v1092_v13, 6.0 }
 0x176   :  { %v2115_v21 = vpack.c.bf16 %v1175_v15, %v1174_v9  ;;  %v1177_v22 = vmin.f32 %v1005_v16, 6.0  ;;  %v2159_v23 = vpack.c.bf16 %v1263_v17, %v1262_v12  ;;  %v1265_v24 = vmin.f32 %v1093_v18, 6.0 }
 0x178   :  { %1836 = vst.msk [vmem:[#allocation7 + $0xe0] sm:$0xff] %vm2438_vm3, %v2115_v21  ;;  %v2116_v25 = vpack.c.bf16 %v1177_v22, %v1176_v19  ;;  %1880 = vst.msk [vmem:[#allocation7 + $0x240] sm:$0xff] %vm2438_vm3, %v2159_v23  ;;  %v667_v26 = vpop.f32.mrb[60].mxu0  ;;  %v2160_v27 = vpack.c.bf16 %v1265_v24, %v1264_v20  ;;  %v887_v28 = vpop.f32.mrb[60].mxu1 }
 0x179   :  { %v1006_v29 = vmax.f32 %v667_v26, 0.0  ;;  %v669_v30 = vpop.f32.mrb[61].mxu0  ;;  %v1094_v31 = vmax.f32 %v887_v28, 0.0  ;;  %v889_v32 = vpop.f32.mrb[61].mxu1 }
 0x17a   :  { %1837 = vst.msk [vmem:[#allocation7 + $0xe8] sm:$0xff] %vm2438_vm3, %v2116_v25  ;;  %1881 = vst.msk [vmem:[#allocation7 + $0x248] sm:$0xff] %vm2438_vm3, %v2160_v27  ;;  %v1007_v33 = vmax.f32 %v669_v30, 0.0  ;;  %v671_v34 = vpop.f32.mrb[62].mxu0  ;;  %v1095_v35 = vmax.f32 %v889_v32, 0.0  ;;  %v891_v36 = vpop.f32.mrb[62].mxu1 }
 0x17b   :  { %v1178_v37 = vmin.f32 %v1006_v29, 6.0  ;;  %v1008_v38 = vmax.f32 %v671_v34, 0.0  ;;  %v673_v39 = vpop.f32.mrb[63].mxu0  ;;  %v1266_v40 = vmin.f32 %v1094_v31, 6.0  ;;  %v1096_v41 = vmax.f32 %v891_v36, 0.0  ;;  %v893_v42 = vpop.f32.mrb[63].mxu1 }
 0x17c   :  { %v1179_v43 = vmin.f32 %v1007_v33, 6.0  ;;  %v1009_v44 = vmax.f32 %v673_v39, 0.0  ;;  %v1267_v45 = vmin.f32 %v1095_v35, 6.0  ;;  %v1097_v46 = vmax.f32 %v893_v42, 0.0 }
 0x17d   :  { %v1180_v47 = vmin.f32 %v1008_v38, 6.0  ;;  %v1268_v48 = vmin.f32 %v1096_v41, 6.0 }
 0x17e   :  { %v2117_v49 = vpack.c.bf16 %v1179_v43, %v1178_v37  ;;  %v1181_v50 = vmin.f32 %v1009_v44, 6.0  ;;  %v2161_v51 = vpack.c.bf16 %v1267_v45, %v1266_v40  ;;  %v1269_v52 = vmin.f32 %v1097_v46, 6.0 }
 0x180   :  { %1838 = vst.msk [vmem:[#allocation7 + $0xf0] sm:$0xff] %vm2438_vm3, %v2117_v49  ;;  %v2118_v53 = vpack.c.bf16 %v1181_v50, %v1180_v47  ;;  %1882 = vst.msk [vmem:[#allocation7 + $0x250] sm:$0xff] %vm2438_vm3, %v2161_v51  ;;  %v677_v54 = vpop.f32.mrb[64].mxu0  ;;  %v2162_v55 = vpack.c.bf16 %v1269_v52, %v1268_v48  ;;  %v897_v56 = vpop.f32.mrb[64].mxu1 }
 0x181   :  { %v1010_v57 = vmax.f32 %v677_v54, 0.0  ;;  %v679_v58 = vpop.f32.mrb[65].mxu0  ;;  %v1098_v59 = vmax.f32 %v897_v56, 0.0  ;;  %v899_v60 = vpop.f32.mrb[65].mxu1 }
 0x182   :  { %1839 = vst.msk [vmem:[#allocation7 + $0xf8] sm:$0xff] %vm2438_vm3, %v2118_v53  ;;  %1883 = vst.msk [vmem:[#allocation7 + $0x258] sm:$0xff] %vm2438_vm3, %v2162_v55  ;;  %v1011_v61 = vmax.f32 %v679_v58, 0.0  ;;  %v681_v62 = vpop.f32.mrb[66].mxu0  ;;  %v1099_v63 = vmax.f32 %v899_v60, 0.0  ;;  %v901_v0 = vpop.f32.mrb[66].mxu1 }
 0x183   :  { %v1182_v1 = vmin.f32 %v1010_v57, 6.0  ;;  %v1012_v2 = vmax.f32 %v681_v62, 0.0  ;;  %v683_v3 = vpop.f32.mrb[67].mxu0  ;;  %v1270_v5 = vmin.f32 %v1098_v59, 6.0  ;;  %v1100_v6 = vmax.f32 %v901_v0, 0.0  ;;  %v903_v7 = vpop.f32.mrb[67].mxu1 }
 0x184   :  { %v1183_v8 = vmin.f32 %v1011_v61, 6.0  ;;  %v1013_v9 = vmax.f32 %v683_v3, 0.0  ;;  %v1271_v10 = vmin.f32 %v1099_v63, 6.0  ;;  %v1101_v11 = vmax.f32 %v903_v7, 0.0 }
 0x185   :  { %v1184_v12 = vmin.f32 %v1012_v2, 6.0  ;;  %v1272_v13 = vmin.f32 %v1100_v6, 6.0 }
 0x186   :  { %v2119_v14 = vpack.c.bf16 %v1183_v8, %v1182_v1  ;;  %v1185_v15 = vmin.f32 %v1013_v9, 6.0  ;;  %v2163_v16 = vpack.c.bf16 %v1271_v10, %v1270_v5  ;;  %v1273_v17 = vmin.f32 %v1101_v11, 6.0 }
 0x188   :  { %1840 = vst.msk [vmem:[#allocation7 + $0x100] sm:$0xff] %vm2438_vm3, %v2119_v14  ;;  %v2120_v18 = vpack.c.bf16 %v1185_v15, %v1184_v12  ;;  %1884 = vst.msk [vmem:[#allocation7 + $0x260] sm:$0xff] %vm2438_vm3, %v2163_v16  ;;  %v687_v19 = vpop.f32.mrb[68].mxu0  ;;  %v2164_v20 = vpack.c.bf16 %v1273_v17, %v1272_v13  ;;  %v907_v21 = vpop.f32.mrb[68].mxu1 }
 0x189   :  { %v1014_v22 = vmax.f32 %v687_v19, 0.0  ;;  %v689_v23 = vpop.f32.mrb[69].mxu0  ;;  %v1102_v24 = vmax.f32 %v907_v21, 0.0  ;;  %v909_v25 = vpop.f32.mrb[69].mxu1 }
 0x18a   :  { %1841 = vst.msk [vmem:[#allocation7 + $0x108] sm:$0xff] %vm2438_vm3, %v2120_v18  ;;  %1885 = vst.msk [vmem:[#allocation7 + $0x268] sm:$0xff] %vm2438_vm3, %v2164_v20  ;;  %v1015_v26 = vmax.f32 %v689_v23, 0.0  ;;  %v691_v27 = vpop.f32.mrb[70].mxu0  ;;  %v1103_v28 = vmax.f32 %v909_v25, 0.0  ;;  %v911_v29 = vpop.f32.mrb[70].mxu1 }
 0x18b   :  { %v1186_v30 = vmin.f32 %v1014_v22, 6.0  ;;  %v1016_v31 = vmax.f32 %v691_v27, 0.0  ;;  %v693_v32 = vpop.f32.mrb[71].mxu0  ;;  %v1274_v33 = vmin.f32 %v1102_v24, 6.0  ;;  %v1104_v34 = vmax.f32 %v911_v29, 0.0  ;;  %v913_v35 = vpop.f32.mrb[71].mxu1 }
 0x18c   :  { %v1187_v36 = vmin.f32 %v1015_v26, 6.0  ;;  %v1017_v37 = vmax.f32 %v693_v32, 0.0  ;;  %v1275_v38 = vmin.f32 %v1103_v28, 6.0  ;;  %v1105_v39 = vmax.f32 %v913_v35, 0.0 }
 0x18d   :  { %v1188_v40 = vmin.f32 %v1016_v31, 6.0  ;;  %v1276_v41 = vmin.f32 %v1104_v34, 6.0 }
 0x18e   :  { %v2121_v42 = vpack.c.bf16 %v1187_v36, %v1186_v30  ;;  %v1189_v43 = vmin.f32 %v1017_v37, 6.0  ;;  %v2165_v44 = vpack.c.bf16 %v1275_v38, %v1274_v33  ;;  %v1277_v45 = vmin.f32 %v1105_v39, 6.0 }
 0x190   :  { %1842 = vst.msk [vmem:[#allocation7 + $0x110] sm:$0xff] %vm2438_vm3, %v2121_v42  ;;  %v2122_v46 = vpack.c.bf16 %v1189_v43, %v1188_v40  ;;  %1886 = vst.msk [vmem:[#allocation7 + $0x270] sm:$0xff] %vm2438_vm3, %v2165_v44  ;;  %v697_v47 = vpop.f32.mrb[72].mxu0  ;;  %v2166_v48 = vpack.c.bf16 %v1277_v45, %v1276_v41  ;;  %v917_v49 = vpop.f32.mrb[72].mxu1 }
 0x191   :  { %v1018_v50 = vmax.f32 %v697_v47, 0.0  ;;  %v699_v51 = vpop.f32.mrb[73].mxu0  ;;  %v1106_v52 = vmax.f32 %v917_v49, 0.0  ;;  %v919_v53 = vpop.f32.mrb[73].mxu1 }
 0x192   :  { %1843 = vst.msk [vmem:[#allocation7 + $0x118] sm:$0xff] %vm2438_vm3, %v2122_v46  ;;  %1887 = vst.msk [vmem:[#allocation7 + $0x278] sm:$0xff] %vm2438_vm3, %v2166_v48  ;;  %v1019_v54 = vmax.f32 %v699_v51, 0.0  ;;  %v701_v55 = vpop.f32.mrb[74].mxu0  ;;  %v1107_v56 = vmax.f32 %v919_v53, 0.0  ;;  %v921_v57 = vpop.f32.mrb[74].mxu1 }
 0x193   :  { %v1190_v58 = vmin.f32 %v1018_v50, 6.0  ;;  %v1020_v59 = vmax.f32 %v701_v55, 0.0  ;;  %v703_v60 = vpop.f32.mrb[75].mxu0  ;;  %v1278_v61 = vmin.f32 %v1106_v52, 6.0  ;;  %v1108_v62 = vmax.f32 %v921_v57, 0.0  ;;  %v923_v63 = vpop.f32.mrb[75].mxu1 }
 0x194   :  { %v1191_v0 = vmin.f32 %v1019_v54, 6.0  ;;  %v1021_v1 = vmax.f32 %v703_v60, 0.0  ;;  %v1279_v2 = vmin.f32 %v1107_v56, 6.0  ;;  %v1109_v3 = vmax.f32 %v923_v63, 0.0 }
 0x195   :  { %v1192_v5 = vmin.f32 %v1020_v59, 6.0  ;;  %v1280_v6 = vmin.f32 %v1108_v62, 6.0 }
 0x196   :  { %v2123_v7 = vpack.c.bf16 %v1191_v0, %v1190_v58  ;;  %v1193_v8 = vmin.f32 %v1021_v1, 6.0  ;;  %v2167_v9 = vpack.c.bf16 %v1279_v2, %v1278_v61  ;;  %v1281_v10 = vmin.f32 %v1109_v3, 6.0 }
 0x198   :  { %1844 = vst.msk [vmem:[#allocation7 + $0x120] sm:$0xff] %vm2438_vm3, %v2123_v7  ;;  %v2124_v11 = vpack.c.bf16 %v1193_v8, %v1192_v5  ;;  %1888 = vst.msk [vmem:[#allocation7 + $0x280] sm:$0xff] %vm2438_vm3, %v2167_v9  ;;  %v707_v12 = vpop.f32.mrb[76].mxu0  ;;  %v2168_v13 = vpack.c.bf16 %v1281_v10, %v1280_v6  ;;  %v927_v14 = vpop.f32.mrb[76].mxu1 }
 0x199   :  { %v1022_v15 = vmax.f32 %v707_v12, 0.0  ;;  %v709_v16 = vpop.f32.mrb[77].mxu0  ;;  %v1110_v17 = vmax.f32 %v927_v14, 0.0  ;;  %v929_v18 = vpop.f32.mrb[77].mxu1 }
 0x19a   :  { %1845 = vst.msk [vmem:[#allocation7 + $0x128] sm:$0xff] %vm2438_vm3, %v2124_v11  ;;  %1889 = vst.msk [vmem:[#allocation7 + $0x288] sm:$0xff] %vm2438_vm3, %v2168_v13  ;;  %v1023_v19 = vmax.f32 %v709_v16, 0.0  ;;  %v711_v20 = vpop.f32.mrb[78].mxu0  ;;  %v1111_v21 = vmax.f32 %v929_v18, 0.0  ;;  %v931_v22 = vpop.f32.mrb[78].mxu1 }
 0x19b   :  { %v1194_v23 = vmin.f32 %v1022_v15, 6.0  ;;  %v1024_v24 = vmax.f32 %v711_v20, 0.0  ;;  %v713_v25 = vpop.f32.mrb[79].mxu0  ;;  %v1282_v26 = vmin.f32 %v1110_v17, 6.0  ;;  %v1112_v27 = vmax.f32 %v931_v22, 0.0  ;;  %v933_v28 = vpop.f32.mrb[79].mxu1 }
 0x19c   :  { %v1195_v29 = vmin.f32 %v1023_v19, 6.0  ;;  %v1025_v30 = vmax.f32 %v713_v25, 0.0  ;;  %v1283_v31 = vmin.f32 %v1111_v21, 6.0  ;;  %v1113_v32 = vmax.f32 %v933_v28, 0.0 }
 0x19d   :  { %v1196_v33 = vmin.f32 %v1024_v24, 6.0  ;;  %v1284_v34 = vmin.f32 %v1112_v27, 6.0 }
 0x19e   :  { %v2125_v35 = vpack.c.bf16 %v1195_v29, %v1194_v23  ;;  %v1197_v36 = vmin.f32 %v1025_v30, 6.0  ;;  %v2169_v37 = vpack.c.bf16 %v1283_v31, %v1282_v26  ;;  %v1285_v38 = vmin.f32 %v1113_v32, 6.0 }
 0x1a0   :  { %1846 = vst.msk [vmem:[#allocation7 + $0x130] sm:$0xff] %vm2438_vm3, %v2125_v35  ;;  %v2126_v39 = vpack.c.bf16 %v1197_v36, %v1196_v33  ;;  %1890 = vst.msk [vmem:[#allocation7 + $0x290] sm:$0xff] %vm2438_vm3, %v2169_v37  ;;  %v717_v40 = vpop.f32.mrb[80].mxu0  ;;  %v2170_v41 = vpack.c.bf16 %v1285_v38, %v1284_v34  ;;  %v937_v42 = vpop.f32.mrb[80].mxu1 }
 0x1a1   :  { %v1026_v43 = vmax.f32 %v717_v40, 0.0  ;;  %v719_v44 = vpop.f32.mrb[81].mxu0  ;;  %v1114_v45 = vmax.f32 %v937_v42, 0.0  ;;  %v939_v46 = vpop.f32.mrb[81].mxu1 }
 0x1a2   :  { %1847 = vst.msk [vmem:[#allocation7 + $0x138] sm:$0xff] %vm2438_vm3, %v2126_v39  ;;  %1891 = vst.msk [vmem:[#allocation7 + $0x298] sm:$0xff] %vm2438_vm3, %v2170_v41  ;;  %v1027_v47 = vmax.f32 %v719_v44, 0.0  ;;  %v721_v48 = vpop.f32.mrb[82].mxu0  ;;  %v1115_v49 = vmax.f32 %v939_v46, 0.0  ;;  %v941_v50 = vpop.f32.mrb[82].mxu1 }
 0x1a3   :  { %v1198_v51 = vmin.f32 %v1026_v43, 6.0  ;;  %v1028_v52 = vmax.f32 %v721_v48, 0.0  ;;  %v723_v53 = vpop.f32.mrb[83].mxu0  ;;  %v1286_v54 = vmin.f32 %v1114_v45, 6.0  ;;  %v1116_v55 = vmax.f32 %v941_v50, 0.0  ;;  %v943_v56 = vpop.f32.mrb[83].mxu1 }
 0x1a4   :  { %v1199_v57 = vmin.f32 %v1027_v47, 6.0  ;;  %v1029_v58 = vmax.f32 %v723_v53, 0.0  ;;  %v1287_v59 = vmin.f32 %v1115_v49, 6.0  ;;  %v1117_v60 = vmax.f32 %v943_v56, 0.0 }
 0x1a5   :  { %v1200_v61 = vmin.f32 %v1028_v52, 6.0  ;;  %v1288_v62 = vmin.f32 %v1116_v55, 6.0 }
 0x1a6   :  { %v2127_v63 = vpack.c.bf16 %v1199_v57, %v1198_v51  ;;  %v1201_v0 = vmin.f32 %v1029_v58, 6.0  ;;  %v2171_v1 = vpack.c.bf16 %v1287_v59, %v1286_v54  ;;  %v1289_v2 = vmin.f32 %v1117_v60, 6.0 }
 0x1a8   :  { %1848 = vst.msk [vmem:[#allocation7 + $0x140] sm:$0xff] %vm2438_vm3, %v2127_v63  ;;  %v2128_v3 = vpack.c.bf16 %v1201_v0, %v1200_v61  ;;  %1892 = vst.msk [vmem:[#allocation7 + $0x2a0] sm:$0xff] %vm2438_vm3, %v2171_v1  ;;  %v727_v5 = vpop.f32.mrb[84].mxu0  ;;  %v2172_v6 = vpack.c.bf16 %v1289_v2, %v1288_v62 }
 0x1a9   :  { %v1030_v7 = vmax.f32 %v727_v5, 0.0  ;;  %v729_v8 = vpop.f32.mrb[85].mxu0 }
 0x1aa   :  { %1849 = vst.msk [vmem:[#allocation7 + $0x148] sm:$0xff] %vm2438_vm3, %v2128_v3  ;;  %1893 = vst.msk [vmem:[#allocation7 + $0x2a8] sm:$0xff] %vm2438_vm3, %v2172_v6  ;;  %v1031_v9 = vmax.f32 %v729_v8, 0.0  ;;  %v731_v10 = vpop.f32.mrb[86].mxu0 }
 0x1ab   :  { %v1202_v11 = vmin.f32 %v1030_v7, 6.0  ;;  %v1032_v12 = vmax.f32 %v731_v10, 0.0  ;;  %v733_v13 = vpop.f32.mrb[87].mxu0 }
 0x1ac   :  { %v1203_v14 = vmin.f32 %v1031_v9, 6.0  ;;  %v1033_v15 = vmax.f32 %v733_v13, 0.0 }
 0x1ad   :  { %v1204_v16 = vmin.f32 %v1032_v12, 6.0 }
 0x1ae   :  { %v2129_v17 = vpack.c.bf16 %v1203_v14, %v1202_v11  ;;  %v1205_v18 = vmin.f32 %v1033_v15, 6.0 }
 0x1b0   :  { %1850 = vst.msk [vmem:[#allocation7 + $0x150] sm:$0xff] %vm2438_vm3, %v2129_v17  ;;  %v2130_v19 = vpack.c.bf16 %v1205_v18, %v1204_v16 }
 0x1b2   :  { %1851 = vst.msk [vmem:[#allocation7 + $0x158] sm:$0xff] %vm2438_vm3, %v2130_v19 }
 0x1b3   :  { %2283 = shalt.err (!%p2280_p6)
}
 0x1b4   :  { %s2284_s10 = scalar_lea.hbm %s2628_s2, 11008 }
 0x1b5   :  { %p2285_p7 = scmp.ne.s32.totalorder %s2628_s2, %s2284_s10  ;;  %p2288_p8 = scmp.lt.u32.totalorder %s2284_s10, %s2628_s2 }
 0x1b7   :  { %p2290_p9 = pnand %p2288_p8, %p2285_p7 }
 0x1b9   :  { %2293 = shalt.err (!%p2290_p9)
}
 0x1ba   :  { %s2306_s15 = smov 128   ;;  %s2307_s16 = smov 8  }
 0x1bb   :  { %1905 = dma.vmem_to_hbm [thread:$0]  %s1900_s6, 11008, %s2628_s2, [#allocation4], %s2306_s15, %s2306_s15, %s2307_s16  }
 0x1bc   :  { %2298 = dma.done.wait [#allocation4], 11008  }
 0x1bd   :  { %2299 = vsyncadd [#allocation4], 4294956288 }
 0x1be   :  { %1909 = vsyncpa [#allocation3], 1 }
 0x1bf   :  { %1910 = vsyncpa [#allocation6], 1 }
 0x1c0   :  { %1911 = vsyncpa [#allocation4], 1 }

// kernel: inception_v2_base.9
= control target key start
LH: loop header
LB: loop body
LE: loop exit
PB: predicated region body
PF: predicated region fallthrough
CT: control target
= control target key end

     0   :  { %7 = vsyncpa [#allocation3], 0  ;;  %s3531_s0 = inlined_call_operand.hbm [shape: bf16[2,342,8], index: 0, kind: input, shape index: {}]   ;;  %s3532_s1 = inlined_call_operand.hbm [shape: bf16[8,32], index: 1, kind: input, shape index: {}]   ;;  %s3533_s2 = inlined_call_operand.hbm [shape: f32[2,288,32], index: 2, kind: output, shape index: {}]  }
   0x1   :  { %9 = vsyncpa [#allocation3 + $0x1], 0 }
   0x2   :  { %10 = vsyncpa [#allocation6], 0 }
   0x3   :  { %11 = vsyncpa [#allocation4], 0 }
   0x4   :  { %13 = vsyncpa [#allocation4 + $0x1], 0  ;;  %s2236_s9 = smov 0   ;;  %s2238_s10 = smov 0  }
   0x5   :  { %s2240_s11 = smov 0   ;;  %s2242_s12 = smov 0  }
   0x6 LB: > { %s2257_s13 = sadd.s32 4294967295, %s2212_s12   ;;  %s1830_s14 = sadd.s32 4294967294, %s2212_s12   ;;  %s2212_s12 = sphi %s2242_s12, %s3608_s12   ;;  %s2208_s11 = sphi %s2240_s11, %s3607_s11   ;;  %s2204_s10 = sphi %s2238_s10, %s3606_s10   ;;  %s2200_s9 = sphi %s2236_s9, %s3605_s9  }
   0x7   : > { %s2261_s15 = sadd.s32 1, %s2212_s12   ;;  %s26_s16 = sadd.s32 1, %s2208_s11 }
   0x8   : > { %s23_s17 = ssub.s32 %s2212_s12, %s2261_s15  ;;  %p33_p0 = scmp.ne.s32.totalorder %s2208_s11, %s2204_s10 }
   0x9   : > { %p24_p1 = scmp.eq.s32.totalorder %s23_s17, 0  ;;  %p34_p2 = scmp.eq.s32.totalorder %s2212_s12, 0 }
   0xa   : > { %p39_p3 = scmp.ne.s32.totalorder %s2204_s10, %s2200_s9  ;;  %p3534_p4 = scmp.eq.s32.totalorder %s2257_s13, 0 }
   0xb   : > { %s2273_s18 = scalar_select %p24_p1, %s2208_s11, %s26_s16  }
   0xc   : > { %p2275_p5 = por %p34_p2, %p33_p0  ;;  %p2281_p6 = por %p3534_p4, %p39_p3 }
   0xd   : > { %p84_p7 = scmp.eq.s32.totalorder %s2257_s13, 1  ;;  %p90_p8 = scmp.eq.s32.totalorder %s1830_s14, 1 }
   0xe   : > { %s3565_s20 = scalar_select %p2281_p6, 1, 0 }
   0xf   : > { %p1831_p9 = scmp.ge.s32.totalorder %s2212_s12, 1  ;;  %p97_p10 = scmp.lt.s32.totalorder %s2212_s12, 3 }
  0x10   : > { %p2288_p11 = por %p84_p7, %p33_p0  ;;  %p2292_p12 = por %p90_p8, %p39_p3 }
  0x11   : > { %p2296_p13 = pnand %p1831_p9, %p97_p10  ;;  %s2214_s24 = smov [#allocation5]  }
  0x12   : > { %s3566_s21 = scalar_select %p2288_p11, 1, 0 }
  0x13   : > { %s3567_s22 = scalar_select %p2292_p12, 1, 0 }
  0x14   : > { %s3568_s23 = scalar_select %p2296_p13, 1, 0 }
  0x15   : > { %p2031_p2 = pneg %p2296_p13  ;;  %s110_s25 = sshll.u32 %s2214_s24, 4  ;;  %s111_s25 = int_to_ptr.vmem [resolvable:$true] %s110_s25 }
  0x16   : > { %p2044_p4 = scmp.lt.s32.totalorder %s2212_s12, 2  ;;  %p3569_p0 = scmp.eq.s32.totalorder %s2257_s13, 0 }
  0x17   : > { %s121_s27 = sand.u32 1, %s2208_s11   ;;  %s2084_s4 = scalar_lea.hbm %s3532_s1, 64 }
  0x18   : > { %p2306_p7 = pnand %p2031_p2, %p3569_p0  ;;  %p2313_p3 = pnand %p2044_p4, %p2275_p5 }
  0x19   : > { %s2018_s29 = smul.u32 172, %s121_s27  ;;  %p2085_p8 = scmp.ne.s32.totalorder %s3532_s1, %s2084_s4 }
  0x1a   : > { %s3571_s28 = scalar_select %p2313_p3, 1, 0 }
  0x1b   : > { %p2086_p9 = pneg %p2306_p7  ;;  %p2091_p4 = scmp.lt.u32.totalorder %s2084_s4, %s3532_s1 }
  0x1d   : > { %p2087_p10 = pnand %p2086_p9, %p2085_p8 }
  0x1f   : > { %p2088_p2 = pneg %p2087_p10 }
  0x21   : > { %p2093_p5 = pnand %p2091_p4, %p2088_p2 }
  0x23   : > { %2096 = shalt.err (!%p2093_p5)
}
  0x24   : > { %s2097_s14 = scalar_lea.vmem %s111_s25, 64  ;;  %p2105_p11 = scmp.lt.s32.totalorder %s111_s25, %s111_s25 }
  0x25   : > { %p2098_p0 = scmp.ne.s32.totalorder %s111_s25, %s2097_s14  ;;  %p2106_p6 = scmp.lt.s32.totalorder %s2097_s14, %s2097_s14 }
  0x27   : > { %p2100_p1 = pnand %p2098_p0, %p2086_p9  ;;  %p2107_p13 = por %p2106_p6, %p2105_p11 }
  0x29   : > { %p2101_p12 = pneg %p2100_p1 }
  0x2b   : > { %p2108_p3 = pnand %p2107_p13, %p2101_p12 }
  0x2d   : > { %2111 = shalt.err (!%p2108_p3)
}
  0x2e   : > { %2034 = dma.hbm_to_vmem [thread:$0]  (!%p2306_p7), %s3532_s1, 64, %s111_s25, [#allocation6]  }
  0x2f   : > { %s2019_s19 = smul.u32 2752, %s2212_s12  ;;  %s125_s24 = scalar_lea.vmem [#allocation2], %s2018_s29 }
  0x30   : > { %s132_s30 = sshll.u32 %s125_s24, 4  ;;  %s2341_s26 = scalar_lea.sflag [#allocation3], %s121_s27  ;;  %s2334_s30 = int_to_ptr.vmem [resolvable:$true] %s132_s30 }
  0x31   : > { %s2339_s5 = scalar_lea.hbm %s3531_s0, %s2019_s19  ;;  %p3572_p11 = scmp.ne.s32.totalorder %s3571_s28, 0 }
  0x32   : > { %s2112_s6 = scalar_lea.hbm %s2339_s5, 2752  ;;  %s2117_s7 = scalar_lea.hbm %s3531_s0, 5504 }
  0x33   : > { %p2113_p6 = scmp.ne.s32.totalorder %s2339_s5, %s2112_s6  ;;  %p2114_p12 = pneg %p3572_p11 }
  0x34   : > { %p2118_p7 = scmp.lt.u32.totalorder %s2339_s5, %s3531_s0  ;;  %p2119_p3 = scmp.lt.u32.totalorder %s2117_s7, %s2112_s6 }
  0x35   : > { %p2115_p13 = pnand %p2114_p12, %p2113_p6  ;;  %p2121_p9 = scmp.lt.u32.totalorder %s2112_s6, %s2339_s5 }
  0x36   : > { %p2120_p8 = por %p2119_p3, %p2118_p7 }
  0x37   : > { %p2116_p1 = pneg %p2115_p13 }
  0x38   : > { %p2122_p10 = por %p2121_p9, %p2120_p8 }
  0x3a   : > { %p2123_p2 = pnand %p2122_p10, %p2116_p1 }
  0x3c   : > { %2126 = shalt.err (!%p2123_p2)
}
  0x3d   : > { %s2127_s27 = scalar_lea.vmem %s2334_s30, 2752  ;;  %s2215_s16 = smov [#allocation2]  }
  0x3e   : > { %p2128_p4 = scmp.ne.s32.totalorder %s2334_s30, %s2127_s27  ;;  %s2132_s17 = sshll.u32 %s2215_s16, 4  ;;  %s2133_s17 = int_to_ptr.vmem [resolvable:$false] %s2132_s17 }
  0x3f   : > { %s2134_s19 = scalar_lea.vmem %s2133_s17, 5504  ;;  %p2135_p6 = scmp.lt.s32.totalorder %s2334_s30, %s2133_s17 }
  0x40   : > { %p2130_p5 = pnand %p2128_p4, %p2114_p12  ;;  %p2136_p13 = scmp.lt.s32.totalorder %s2134_s19, %s2127_s27 }
  0x42   : > { %p2131_p0 = pneg %p2130_p5  ;;  %p2137_p7 = por %p2136_p13, %p2135_p6 }
  0x44   : > { %p2138_p3 = pnand %p2137_p7, %p2131_p0 }
  0x46   : > { %2141 = shalt.err (!%p2138_p3)
}
  0x47   : > { %s2216_s24 = smov 64   ;;  %s2217_s3 = smov 4  }
  0x48   : > { %2038 = dma.hbm_to_vmem [thread:$0]  (!%p3572_p11), %s2339_s5, 2752, %s2334_s30, %s2341_s26, %s2216_s24, %s2216_s24, %s2217_s3  }
  0x49   : > { %p3573_p12 = scmp.ne.s32.totalorder %s3568_s23, 0 }
  0x4a   : > { %s2372_s4 = sand.u32 (!%p3573_p12), 1, %s2204_s10   ;;  %p3574_p1 = scmp.ne.s32.totalorder (!%p3573_p12), %s3565_s20, 0 }
  0x4b   : > { %144 = sbr.rel (%p3573_p12) target bundleno = 550 (0x226), region = 28  ;;  %s147_s25 = scalar_lea.sflag (!%p3573_p12), [#allocation3], %s2372_s4 }
  0x4c   : > { %s2020_s6 = smul.u32 (!%p3573_p12), 172, %s2372_s4 }
  0x4e   : > { %s2376_s29 = scalar_lea.vmem (!%p3573_p12), [#allocation2], %s2020_s6 }
  0x52   : > { %2187 = dma.done.wait (%p3574_p1), %s147_s25, 2752  }
  0x53   : > { %2189 = vsyncadd (%p3574_p1), %s147_s25, 4294964544  ;;  %p3575_p11 = scmp.eq.s32.totalorder %s2257_s13, 0 }
  0x55   : > { %2191 = dma.done.wait (%p3575_p11), [#allocation6], 64   ;;  %p3576_p8 = pmov %p3575_p11 }
  0x56   : > { %vm830_vm0 = vcmask 1043456   ;;  %v1388_v0 = vld [vmem:[#allocation5] sm:$0xf]  ;;  %v1859_v1 = vld [vmem:[%s2376_s29] sm:$0xff]   ;;  %vm323_vm1 = vcmask 1046528   ;;  %vm472_vm2 = vcmask 1045504  }
  0x57   : > { %2193 = vsyncadd (%p3576_p8), [#allocation6], 4294967232  ;;  %v1938_v2 = vld [vmem:[%s2376_s29 + $0x8] sm:$0xff]   ;;  %2016 = vmatprep.subr.msk.bf16.mxu0 %vm830_vm0, %v1388_v0  ;;  %v1445_v3 = vsel %vm830_vm0, %v1388_v0, 0  ;;  %v1860_v4 = vunpack.c.l.bf16 %v1859_v1  ;;  %v1861_v5 = vunpack.c.h.bf16 %v1859_v1  ;;  %v1939_v7 = vld [vmem:[%s2376_s29 + $0x10] sm:$0xff]   ;;  %2017 = vmatprep.subr.msk.bf16.mxu1 %vm830_vm0, %v1388_v0  ;;  %vm681_vm3 = vcmask 1044480  }
  0x58   : > { %v2390_v6 = vunpack.c.l.bf16 %v1938_v2  ;;  %v1940_v8 = vld [vmem:[%s2376_s29 + $0x18] sm:$0xff]   ;;  %v2395_v9 = vld [vmem:[%s2376_s29 + $0x20] sm:$0xff]   ;;  %1977 = vmatpush3.bf16.msra.mxu0 %v1445_v3  ;;  %v2398_v10 = vunpack.c.h.bf16 %v1938_v2  ;;  %v2400_v11 = vunpack.c.l.bf16 %v1939_v7  ;;  %v2402_v12 = vunpack.c.h.bf16 %v1939_v7  ;;  %2015 = vmatpush3.bf16.msra.mxu1 %v1445_v3  ;;  %v618_v39 = vld [vmem:[%s2376_s29 + $0x8] sm:$0xe]  ;;  %s2021_s20 = smul.u32 288, %s2372_s4  ;;  %p3602_p10 = scmp.ne.s32.totalorder %s3566_s21, 0 }
  0x59   : > { %v2404_v13 = vunpack.c.l.bf16 %v1940_v8  ;;  %v2406_v14 = vunpack.c.h.bf16 %v1940_v8  ;;  %v2409_v15 = vunpack.c.l.bf16 %v2395_v9  ;;  %v324_v16 = vrot.slane %v1860_v4, 1  ;;  %v469_v18 = vld [vmem:[%s2376_s29] sm:$0xe]  ;;  %v827_v0 = vld [vmem:[%s2376_s29 + $0x8] sm:$0xc]  ;;  %s2022_s28 = smul.u32 4608, %s2257_s13 }
  0x5a   : > { %v325_v17 = vrot.slane %v1861_v5, 1  ;;  %v327_v19 = vrot.slane %v2390_v6, 1  ;;  %v329_v20 = vrot.slane %v2398_v10, 1  ;;  %v331_v21 = vrot.slane %v2400_v11, 1  ;;  %s3406_s23 = scalar_lea.vmem [#allocation7], %s2021_s20  ;;  %s1734_s13 = scalar_lea.sflag [#allocation4], %s2372_s4 }
  0x5b   : > { %v333_v22 = vrot.slane %v2402_v12, 1  ;;  %v3545_v24 = vrot.slane %v2404_v13, 1  ;;  %v3546_v25 = vrot.slane %v2406_v14, 1  ;;  %v3542_v26 = vrot.slane %v2409_v15, 1  ;;  %s1747_s30 = sshll.u32 %s3406_s23, 4  ;;  %s3479_s7 = scalar_lea.hbm %s3533_s2, %s2022_s28  ;;  %s3481_s30 = int_to_ptr.vmem [resolvable:$true] %s1747_s30 }
  0x5c   : > { %v326_v23 = vsel %vm323_vm1, %v324_v16, %v325_v17  ;;  %v328_v27 = vsel %vm323_vm1, %v325_v17, %v327_v19  ;;  %v332_v28 = vsel %vm323_vm1, %v329_v20, %v331_v21  ;;  %v470_v30 = vunpack.c.l.bf16 %v469_v18  ;;  %s2142_s8 = scalar_lea.vmem %s3481_s30, 4608  ;;  %s2218_s14 = smov [#allocation7]  }
  0x5d   : > { %v433_v29 = vadd.f32 %v1860_v4, %v326_v23  ;;  %v336_v31 = vsel %vm323_vm1, %v333_v22, %v3545_v24  ;;  %v340_v32 = vsel %vm323_vm1, %v3546_v25, %v3542_v26  ;;  %v434_v33 = vadd.f32 %v1861_v5, %v328_v27  ;;  %p2143_p9 = scmp.ne.s32.totalorder %s3481_s30, %s2142_s8  ;;  %s2146_s27 = sshll.u32 %s2218_s14, 4  ;;  %s2147_s27 = int_to_ptr.vmem [resolvable:$false] %s2146_s27 }
  0x5e   : > { %v436_v34 = vadd.f32 %v2398_v10, %v332_v28  ;;  %v438_v35 = vadd.f32 %v2402_v12, %v336_v31  ;;  %v440_v36 = vadd.f32 %v2406_v14, %v340_v32  ;;  %v473_v37 = vrot.slane %v470_v30, 2  ;;  %v976_v32 = vld [vmem:[%s2376_s29 + $0x10] sm:$0xc]  ;;  %s2148_s16 = scalar_lea.vmem %s2147_s27, 9216  ;;  %p2149_p5 = scmp.lt.s32.totalorder %s3481_s30, %s2147_s27 }
  0x5f   : > { %v474_v38 = vrot.slane %v1861_v5, 2  ;;  %v476_v40 = vrot.slane %v2390_v6, 2  ;;  %v2444_v41 = vrot.slane %v2398_v10, 2  ;;  %v480_v42 = vrot.slane %v2400_v11, 2  ;;  %p2144_p2 = pnand %p2143_p9, %p3602_p10  ;;  %p2150_p0 = scmp.lt.s32.totalorder %s2148_s16, %s2142_s8 }
  0x60   : > { %v482_v43 = vrot.slane %v2402_v12, 2  ;;  %v484_v45 = vrot.slane %v2404_v13, 2  ;;  %v486_v46 = vrot.slane %v2406_v14, 2  ;;  %v3544_v47 = vrot.slane %v2409_v15, 2 }
  0x61   : > { %v475_v44 = vsel %vm472_vm2, %v473_v37, %v474_v38  ;;  %v477_v48 = vsel %vm472_vm2, %v474_v38, %v476_v40  ;;  %v481_v49 = vsel %vm472_vm2, %v2444_v41, %v480_v42  ;;  %v622_v51 = vunpack.c.l.bf16 %v618_v39  ;;  %p2145_p4 = pneg %p2144_p2  ;;  %p2151_p6 = por %p2150_p0, %p2149_p5 }
  0x62   : > { %v582_v50 = vadd.f32 %v475_v44, %v433_v29  ;;  %v485_v52 = vsel %vm472_vm2, %v482_v43, %v484_v45  ;;  %v489_v53 = vsel %vm472_vm2, %v486_v46, %v3544_v47  ;;  %v583_v54 = vadd.f32 %v477_v48, %v434_v33 }
  0x63   : > { %v585_v55 = vadd.f32 %v481_v49, %v436_v34  ;;  %v587_v56 = vadd.f32 %v485_v52, %v438_v35  ;;  %v2469_v57 = vadd.f32 %v489_v53, %v440_v36  ;;  %v630_v58 = vrot.slane %v622_v51, 2  ;;  %p2152_p13 = pnand %p2151_p6, %p2145_p4 }
  0x64   : > { %v682_v59 = vrot.slane %v622_v51, 3  ;;  %v643_v60 = vadd.f32 %v583_v54, %v481_v49  ;;  %v683_v62 = vrot.slane %v2398_v10, 3  ;;  %v685_v63 = vrot.slane %v2400_v11, 3 }
  0x65   : > { %v645_v61 = vadd.f32 %v585_v55, %v485_v52  ;;  %vm1039_vm4 = vcmask 1042432   ;;  %v631_v1 = vsel %vm472_vm2, %v630_v58, %v2444_v41  ;;  %v647_v2 = vadd.f32 %v587_v56, %v489_v53  ;;  %v1185_v52 = vld [vmem:[%s2376_s29 + $0x10] sm:$0x8] }
  0x66   : > { %v687_v3 = vrot.slane %v2402_v12, 3  ;;  %v3550_v4 = vrot.slane %v2404_v13, 3  ;;  %v642_v5 = vadd.f32 %v631_v1, %v582_v50  ;;  %v684_v7 = vsel %vm681_vm3, %v682_v59, %v683_v62 }
  0x67   : > { %v686_v8 = vsel %vm681_vm3, %v683_v62, %v685_v63  ;;  %v691_v16 = vrot.slane %v2406_v14, 3  ;;  %vm1188_vm5 = vcmask 1041408   ;;  %v3543_v18 = vrot.slane %v2409_v15, 3 }
  0x68   : > { %v690_v17 = vsel %vm681_vm3, %v687_v3, %v3550_v4  ;;  %v792_v23 = vadd.f32 %v686_v8, %v643_v60  ;;  %v828_v27 = vunpack.c.l.bf16 %v827_v0  ;;  %v791_v28 = vadd.f32 %v684_v7, %v642_v5 }
  0x69   : > { %v794_v29 = vadd.f32 %v690_v17, %v645_v61  ;;  %v832_v30 = vrot.slane %v2398_v10, 4  ;;  %v834_v31 = vrot.slane %v2400_v11, 4  ;;  %v694_v33 = vsel %vm681_vm3, %v691_v16, %v3543_v18 }
  0x6a   : > { %v831_v34 = vrot.slane %v828_v27, 4  ;;  %v836_v35 = vrot.slane %v2402_v12, 4  ;;  %v838_v36 = vrot.slane %v2404_v13, 4  ;;  %v796_v37 = vadd.f32 %v694_v33, %v647_v2 }
  0x6b   : > { %v835_v38 = vsel %vm830_vm0, %v832_v30, %v834_v31  ;;  %v840_v39 = vrot.slane %v2406_v14, 4  ;;  %v3549_v44 = vrot.slane %v2409_v15, 4  ;;  %v980_v51 = vunpack.c.l.bf16 %v976_v32 }
  0x6c   : > { %v833_v48 = vsel %vm830_vm0, %v831_v34, %v832_v30  ;;  %v839_v49 = vsel %vm830_vm0, %v836_v35, %v838_v36  ;;  %v941_v50 = vadd.f32 %v835_v38, %v792_v23  ;;  %v1041_v56 = vrot.slane %v2402_v12, 5 }
  0x6d   : > { %v843_v53 = vsel %vm830_vm0, %v840_v39, %v3549_v44  ;;  %v940_v54 = vadd.f32 %v833_v48, %v791_v28  ;;  %v943_v55 = vadd.f32 %v839_v49, %v794_v29  ;;  %v988_v59 = vrot.slane %v980_v51, 4 }
  0x6e   : > { %v2507_v58 = vadd.f32 %v843_v53, %v796_v37  ;;  %v1001_v60 = vadd.f32 %v941_v50, %v839_v49  ;;  %v1040_v61 = vrot.slane %v980_v51, 5  ;;  %v1043_v0 = vrot.slane %v2404_v13, 5  ;;  %v1947_v51 = vld [vmem:[%s2376_s29 + $0x50] sm:$0xff]  }
  0x6f   : > { %v1003_v62 = vadd.f32 %v943_v55, %v843_v53  ;;  %v1186_v1 = vunpack.c.l.bf16 %v1185_v52  ;;  %v1190_v2 = vrot.slane %v2402_v12, 6  ;;  %v989_v5 = vsel %vm830_vm0, %v988_v59, %v836_v35  ;;  %v1949_v55 = vld [vmem:[%s2376_s29 + $0x60] sm:$0xff]  }
  0x70   : > { %v1042_v7 = vsel %vm1039_vm4, %v1040_v61, %v1041_v56  ;;  %v1192_v8 = vrot.slane %v2404_v13, 6  ;;  %vm1389_vm6 = vcmask 64512   ;;  %v330_v17 = vsel %vm323_vm1, %v327_v19, %v329_v20 }
  0x71   : > { %v1000_v23 = vadd.f32 %v989_v5, %v940_v54  ;;  %v1044_v27 = vsel %vm1039_vm4, %v1041_v56, %v1043_v0  ;;  %v1189_v28 = vrot.slane %v1186_v1, 6  ;;  %v435_v29 = vadd.f32 %v2390_v6, %v330_v17  ;;  %v1946_v6 = vld [vmem:[%s2376_s29 + $0x48] sm:$0xff]   ;;  %v2566_v1 = vld [vmem:[%s2376_s29 + $0x70] sm:$0xff]  }
  0x72   : > { %v1150_v30 = vadd.f32 %v1044_v27, %v1001_v60  ;;  %v1193_v32 = vsel %vm1188_vm5, %v1190_v2, %v1192_v8  ;;  %v479_v33 = vsel %vm472_vm2, %v476_v40, %v2444_v41  ;;  %v2531_v10 = vsel %vm472_vm2, %v480_v42, %v482_v43 }
  0x73   : > { %v1149_v19 = vadd.f32 %v1042_v7, %v1000_v23  ;;  %v1191_v20 = vsel %vm1188_vm5, %v1189_v28, %v1190_v2  ;;  %v584_v34 = vadd.f32 %v479_v33, %v435_v29  ;;  %v688_v37 = vsel %vm681_vm3, %v685_v63, %v687_v3 }
  0x74   : > { %v1299_v38 = vadd.f32 %v1193_v32, %v1150_v30  ;;  %v837_v40 = vsel %vm830_vm0, %v834_v31, %v836_v35  ;;  %v2540_v41 = vsel %vm830_vm0, %v838_v36, %v840_v39  ;;  %v1045_v42 = vrot.slane %v2406_v14, 5  ;;  %v1948_v36 = vld [vmem:[%s2376_s29 + $0x58] sm:$0xff]  }
  0x75   : > { %v1298_v43 = vadd.f32 %v1191_v20, %v1149_v19  ;;  %v644_v48 = vadd.f32 %v584_v34, %v2531_v10  ;;  %v3548_v49 = vrot.slane %v2409_v15, 5  ;;  %v1194_v50 = vrot.slane %v2406_v14, 6 }
  0x76   : > { %v1335_v63 = vmul.f32 0.11111111, %v1299_v38  ;;  %v1046_v3 = vsel %vm1039_vm4, %v1043_v0, %v1045_v42  ;;  %v3547_v31 = vrot.slane %v2409_v15, 6  ;;  %v2549_v35 = vunpack.c.l.bf16 %v1946_v6  ;;  %v1950_v0 = vld [vmem:[%s2376_s29 + $0x68] sm:$0xff]  }
  0x77   : > { %v1334_v39 = vmul.f32 0.11111111, %v1298_v43  ;;  %v793_v52 = vadd.f32 %v688_v37, %v644_v48  ;;  %v1048_v53 = vsel %vm1039_vm4, %v1045_v42, %v3548_v49  ;;  %v1195_v54 = vsel %vm1188_vm5, %v1192_v8, %v1194_v50 }
  0x78   : > { %v1152_v56 = vadd.f32 %v1048_v53, %v1003_v62  ;;  %v1197_v59 = vsel %vm1188_vm5, %v1194_v50, %v3547_v31  ;;  %v2560_v60 = vunpack.c.h.bf16 %v1946_v6  ;;  %v2562_v61 = vunpack.c.l.bf16 %v1947_v51 }
  0x79   : > { %v1370_v2 = vpack.c.bf16 %v1335_v63, %v1334_v39  ;;  %v942_v5 = vadd.f32 %v837_v40, %v793_v52  ;;  %v2568_v7 = vunpack.c.h.bf16 %v1947_v51  ;;  %v2570_v17 = vunpack.c.l.bf16 %v1948_v36 }
  0x7a   : > { %v1301_v8 = vadd.f32 %v1197_v59, %v1152_v56  ;;  %v2572_v23 = vunpack.c.h.bf16 %v1948_v36  ;;  %v2574_v62 = vunpack.c.l.bf16 %v1949_v55  ;;  %v2576_v27 = vunpack.c.h.bf16 %v1949_v55 }
  0x7b   : > { %1978 = vmatprep.mubr.msk.bf16.mxu0 %vm1389_vm6, %v1370_v2  ;;  %v1002_v28 = vadd.f32 %v942_v5, %v2540_v41  ;;  %v2580_v29 = vunpack.c.l.bf16 %v1950_v0  ;;  %v2582_v30 = vunpack.c.h.bf16 %v1950_v0  ;;  %v2585_v32 = vunpack.c.l.bf16 %v2566_v1 }
  0x7c   : > { %v1337_v33 = vmul.f32 0.11111111, %v1301_v8  ;;  %v3539_v19 = vrot.slane %v2549_v35, 1  ;;  %v361_v20 = vrot.slane %v2560_v60, 1  ;;  %v363_v34 = vrot.slane %v2562_v61, 1 }
  0x7d   : > { %v1151_v37 = vadd.f32 %v1046_v3, %v1002_v28  ;;  %v365_v6 = vrot.slane %v2568_v7, 1  ;;  %v367_v38 = vrot.slane %v2570_v17, 1  ;;  %v369_v40 = vrot.slane %v2572_v23, 1 }
  0x7e   : > { %v362_v42 = vsel %vm323_vm1, %v3539_v19, %v361_v20  ;;  %v364_v43 = vsel %vm323_vm1, %v361_v20, %v363_v34  ;;  %v371_v48 = vrot.slane %v2574_v62, 1  ;;  %v373_v50 = vrot.slane %v2576_v27, 1 }
  0x7f   : > { %v1300_v51 = vadd.f32 %v1195_v54, %v1151_v37  ;;  %v366_v63 = vsel %vm323_vm1, %v363_v34, %v365_v6  ;;  %v368_v3 = vsel %vm323_vm1, %v365_v6, %v367_v38  ;;  %v370_v36 = vsel %vm323_vm1, %v367_v38, %v369_v40 }
  0x80   : > { %v372_v39 = vsel %vm323_vm1, %v369_v40, %v371_v48  ;;  %v374_v52 = vsel %vm323_vm1, %v371_v48, %v373_v50  ;;  %v375_v53 = vrot.slane %v2580_v29, 1  ;;  %v377_v55 = vrot.slane %v2582_v30, 1 }
  0x81   : > { %v1336_v56 = vmul.f32 0.11111111, %v1300_v51  ;;  %v3541_v59 = vrot.slane %v2585_v32, 1  ;;  %v451_v0 = vadd.f32 %v2549_v35, %v362_v42  ;;  %v452_v54 = vadd.f32 %v2560_v60, %v364_v43 }
  0x82   : > { %v376_v2 = vsel %vm323_vm1, %v373_v50, %v375_v53  ;;  %v378_v5 = vsel %vm323_vm1, %v375_v53, %v377_v55  ;;  %v453_v8 = vadd.f32 %v2562_v61, %v366_v63  ;;  %v454_v28 = vadd.f32 %v2568_v7, %v368_v3 }
  0x83   : > { %v1371_v20 = vpack.c.bf16 %v1337_v33, %v1336_v56  ;;  %v380_v34 = vsel %vm323_vm1, %v377_v55, %v3541_v59  ;;  %v455_v37 = vadd.f32 %v2570_v17, %v370_v36  ;;  %v456_v6 = vadd.f32 %v2572_v23, %v372_v39 }
  0x84   : > { %v457_v38 = vadd.f32 %v2574_v62, %v374_v52  ;;  %v458_v40 = vadd.f32 %v2576_v27, %v376_v2  ;;  %v459_v42 = vadd.f32 %v2580_v29, %v378_v5  ;;  %v460_v43 = vadd.f32 %v2582_v30, %v380_v34 }
  0x85   : > { %1979 = vmatmul.mubr.msk.bf16.vlgmr.msra.gmra.mrb[0].mxu0 %vm1389_vm6, %v1371_v20  ;;  %v3540_v33 = vrot.slane %v2549_v35, 2  ;;  %v510_v48 = vrot.slane %v2560_v60, 2  ;;  %v512_v50 = vrot.slane %v2562_v61, 2  ;;  %v514_v51 = vrot.slane %v2568_v7, 2 }
  0x86   : > { %v516_v63 = vrot.slane %v2570_v17, 2  ;;  %v518_v3 = vrot.slane %v2572_v23, 2  ;;  %v520_v36 = vrot.slane %v2574_v62, 2  ;;  %v522_v39 = vrot.slane %v2576_v27, 2 }
  0x87   : > { %v2634_v52 = vsel %vm472_vm2, %v3540_v33, %v510_v48  ;;  %v2637_v53 = vsel %vm472_vm2, %v510_v48, %v512_v50  ;;  %v515_v55 = vsel %vm472_vm2, %v512_v50, %v514_v51  ;;  %v524_v56 = vrot.slane %v2580_v29, 2 }
  0x88   : > { %v517_v2 = vsel %vm472_vm2, %v514_v51, %v516_v63  ;;  %v519_v5 = vsel %vm472_vm2, %v516_v63, %v518_v3  ;;  %v521_v20 = vsel %vm472_vm2, %v518_v3, %v520_v36  ;;  %v523_v34 = vsel %vm472_vm2, %v520_v36, %v522_v39 }
  0x89   : > { %v525_v19 = vsel %vm472_vm2, %v522_v39, %v524_v56  ;;  %v526_v33 = vrot.slane %v2582_v30, 2  ;;  %v528_v59 = vrot.slane %v2585_v32, 2  ;;  %v600_v48 = vadd.f32 %v2634_v52, %v451_v0 }
  0x8a   : > { %v601_v50 = vadd.f32 %v2637_v53, %v452_v54  ;;  %v602_v26 = vadd.f32 %v515_v55, %v453_v8  ;;  %v603_v18 = vadd.f32 %v517_v2, %v454_v28  ;;  %v604_v47 = vadd.f32 %v519_v5, %v455_v37 }
  0x8b   : > { %v527_v51 = vsel %vm472_vm2, %v524_v56, %v526_v33  ;;  %v529_v63 = vsel %vm472_vm2, %v526_v33, %v528_v59  ;;  %v605_v3 = vadd.f32 %v521_v20, %v456_v6  ;;  %v606_v36 = vadd.f32 %v523_v34, %v457_v38 }
  0x8c   : > { %v607_v39 = vadd.f32 %v525_v19, %v458_v40  ;;  %v2654_v24 = vadd.f32 %v527_v51, %v459_v42  ;;  %v2656_v25 = vadd.f32 %v529_v63, %v460_v43  ;;  %v660_v31 = vadd.f32 %v600_v48, %v515_v55 }
  0x8d   : > { %v661_v0 = vadd.f32 %v601_v50, %v517_v2  ;;  %v662_v49 = vadd.f32 %v602_v26, %v519_v5  ;;  %v663_v54 = vadd.f32 %v603_v18, %v521_v20  ;;  %v664_v8 = vadd.f32 %v604_v47, %v523_v34 }
  0x8e   : > { %v665_v28 = vadd.f32 %v605_v3, %v525_v19  ;;  %v666_v37 = vadd.f32 %v606_v36, %v527_v51  ;;  %v667_v44 = vadd.f32 %v607_v39, %v529_v63  ;;  %v3551_v56 = vrot.slane %v2562_v61, 3 }
  0x8f   : > { %v719_v4 = vrot.slane %v2568_v7, 3  ;;  %v721_v6 = vrot.slane %v2570_v17, 3  ;;  %v723_v38 = vrot.slane %v2572_v23, 3  ;;  %v725_v40 = vrot.slane %v2574_v62, 3 }
  0x90   : > { %v727_v42 = vrot.slane %v2576_v27, 3  ;;  %v729_v43 = vrot.slane %v2580_v29, 3  ;;  %v731_v26 = vrot.slane %v2582_v30, 3  ;;  %v733_v47 = vrot.slane %v2585_v32, 3 }
  0x91   : > { %v720_v18 = vsel %vm681_vm3, %v3551_v56, %v719_v4  ;;  %v722_v19 = vsel %vm681_vm3, %v719_v4, %v721_v6  ;;  %v724_v33 = vsel %vm681_vm3, %v721_v6, %v723_v38  ;;  %v726_v55 = vsel %vm681_vm3, %v723_v38, %v725_v40 }
  0x92   : > { %v728_v2 = vsel %vm681_vm3, %v725_v40, %v727_v42  ;;  %v730_v5 = vsel %vm681_vm3, %v727_v42, %v729_v43  ;;  %v732_v20 = vsel %vm681_vm3, %v729_v43, %v731_v26  ;;  %v734_v34 = vsel %vm681_vm3, %v731_v26, %v733_v47 }
  0x93   : > { %v809_v48 = vadd.f32 %v720_v18, %v660_v31  ;;  %v810_v50 = vadd.f32 %v722_v19, %v661_v0  ;;  %v811_v51 = vadd.f32 %v724_v33, %v662_v49  ;;  %v812_v63 = vadd.f32 %v726_v55, %v663_v54 }
  0x94   : > { %v813_v3 = vadd.f32 %v728_v2, %v664_v8  ;;  %v814_v4 = vadd.f32 %v730_v5, %v665_v28  ;;  %v815_v36 = vadd.f32 %v732_v20, %v666_v37  ;;  %v816_v39 = vadd.f32 %v734_v34, %v667_v44 }
  0x95   : > { %v3552_v6 = vrot.slane %v2562_v61, 4  ;;  %v868_v38 = vrot.slane %v2568_v7, 4  ;;  %v870_v40 = vrot.slane %v2570_v17, 4  ;;  %v872_v42 = vrot.slane %v2572_v23, 4 }
  0x96   : > { %v874_v43 = vrot.slane %v2574_v62, 4  ;;  %v876_v26 = vrot.slane %v2576_v27, 4  ;;  %v878_v31 = vrot.slane %v2580_v29, 4  ;;  %v880_v49 = vrot.slane %v2582_v30, 4 }
  0x97   : > { %v2690_v44 = vsel %vm830_vm0, %v3552_v6, %v868_v38  ;;  %v2693_v0 = vsel %vm830_vm0, %v868_v38, %v870_v40  ;;  %v873_v54 = vsel %vm830_vm0, %v870_v40, %v872_v42  ;;  %v882_v8 = vrot.slane %v2585_v32, 4 }
  0x98   : > { %v875_v28 = vsel %vm830_vm0, %v872_v42, %v874_v43  ;;  %v877_v37 = vsel %vm830_vm0, %v874_v43, %v876_v26  ;;  %v879_v18 = vsel %vm830_vm0, %v876_v26, %v878_v31  ;;  %v881_v19 = vsel %vm830_vm0, %v878_v31, %v880_v49 }
  0x99   : > { %v883_v33 = vsel %vm830_vm0, %v880_v49, %v882_v8  ;;  %v958_v55 = vadd.f32 %v2690_v44, %v809_v48  ;;  %v959_v2 = vadd.f32 %v2693_v0, %v810_v50  ;;  %v960_v5 = vadd.f32 %v873_v54, %v811_v51 }
  0x9a   : > { %v961_v20 = vadd.f32 %v875_v28, %v812_v63  ;;  %v962_v34 = vadd.f32 %v877_v37, %v813_v3  ;;  %v963_v38 = vadd.f32 %v879_v18, %v814_v4  ;;  %v2706_v40 = vadd.f32 %v881_v19, %v815_v36 }
  0x9b   : > { %v2708_v42 = vadd.f32 %v883_v33, %v816_v39  ;;  %v2710_v43 = vadd.f32 %v958_v55, %v873_v54  ;;  %v2712_v26 = vadd.f32 %v959_v2, %v875_v28  ;;  %v1020_v31 = vadd.f32 %v960_v5, %v877_v37  ;;  %v1942_v2 = vld [vmem:[%s2376_s29 + $0x28] sm:$0xff]  }
  0x9c   : > { %v1021_v56 = vadd.f32 %v961_v20, %v879_v18  ;;  %v1022_v6 = vadd.f32 %v962_v34, %v881_v19  ;;  %v1023_v49 = vadd.f32 %v963_v38, %v883_v33  ;;  %v3554_v48 = vrot.slane %v2574_v62, 5 }
  0x9d   : > { %v1081_v50 = vrot.slane %v2576_v27, 5  ;;  %v1083_v51 = vrot.slane %v2580_v29, 5  ;;  %v3553_v63 = vrot.slane %v2574_v62, 6  ;;  %v1230_v3 = vrot.slane %v2576_v27, 6 }
  0x9e   : > { %v1232_v4 = vrot.slane %v2580_v29, 6  ;;  %v1085_v36 = vrot.slane %v2582_v30, 5  ;;  %v1087_v39 = vrot.slane %v2585_v32, 5  ;;  %v1234_v54 = vrot.slane %v2582_v30, 6 }
  0x9f   : > { %v1082_v28 = vsel %vm1039_vm4, %v3554_v48, %v1081_v50  ;;  %v1084_v37 = vsel %vm1039_vm4, %v1081_v50, %v1083_v51  ;;  %v1231_v18 = vsel %vm1188_vm5, %v3553_v63, %v1230_v3  ;;  %v1236_v27 = vrot.slane %v2585_v32, 6 }
  0xa0   : > { %v1169_v19 = vadd.f32 %v1082_v28, %v1020_v31  ;;  %v1170_v29 = vadd.f32 %v1084_v37, %v1021_v56  ;;  %v1233_v33 = vsel %vm1188_vm5, %v1230_v3, %v1232_v4  ;;  %v1086_v55 = vsel %vm1039_vm4, %v1083_v51, %v1085_v36 }
  0xa1   : > { %v1088_v30 = vsel %vm1039_vm4, %v1085_v36, %v1087_v39  ;;  %v1171_v5 = vadd.f32 %v1086_v55, %v1022_v6  ;;  %v1235_v20 = vsel %vm1188_vm5, %v1232_v4, %v1234_v54  ;;  %v1237_v34 = vsel %vm1188_vm5, %v1234_v54, %v1236_v27 }
  0xa2   : > { %v1318_v38 = vadd.f32 %v1231_v18, %v1169_v19  ;;  %v1319_v50 = vadd.f32 %v1233_v33, %v1170_v29  ;;  %v1172_v31 = vadd.f32 %v1088_v30, %v1023_v49  ;;  %v2742_v56 = vunpack.c.h.bf16 %v2395_v9  ;;  %v2773_v30 = vld [vmem:[%s2376_s29 + $0x30] sm:$0xff]  }
  0xa3   : > { %v1320_v3 = vadd.f32 %v1235_v20, %v1171_v5  ;;  %v2744_v51 = vunpack.c.l.bf16 %v1942_v2  ;;  %v334_v6 = vsel %vm323_vm1, %v331_v21, %v333_v22  ;;  %v487_v4 = vsel %vm472_vm2, %v484_v45, %v486_v46 }
  0xa4   : > { %v1354_v36 = vmul.f32 0.11111111, %v1318_v38  ;;  %v1355_v49 = vmul.f32 0.11111111, %v1319_v50  ;;  %v1321_v9 = vadd.f32 %v1237_v34, %v1172_v31  ;;  %v437_v54 = vadd.f32 %v2400_v11, %v334_v6 }
  0xa5   : > { %v1356_v28 = vmul.f32 0.11111111, %v1320_v3  ;;  %v3577_v12 = vrot.slane %v2404_v13, 3  ;;  %v844_v21 = vrot.slane %v2742_v56, 4  ;;  %v846_v22 = vrot.slane %v2744_v51, 4 }
  0xa6   : > { %v1380_v18 = vpack.c.bf16 %v1355_v49, %v1354_v36  ;;  %v1357_v19 = vmul.f32 0.11111111, %v1321_v9  ;;  %v586_v45 = vadd.f32 %v2531_v10, %v437_v54  ;;  %v1049_v46 = vrot.slane %v2742_v56, 5 }
  0xa7   : > { %v692_v37 = vsel %vm681_vm3, %v3577_v12, %v691_v16  ;;  %v3578_v29 = vrot.slane %v2409_v15, 4  ;;  %v847_v33 = vsel %vm830_vm0, %v844_v21, %v846_v22  ;;  %v1051_v55 = vrot.slane %v2744_v51, 5 }
  0xa8   : > { %v1198_v16 = vrot.slane %v2742_v56, 6  ;;  %1998 = vmatprep.mubr.msk.bf16.mxu1 %vm1389_vm6, %v1380_v18  ;;  %v1381_v5 = vpack.c.bf16 %v1357_v19, %v1356_v28  ;;  %v646_v20 = vadd.f32 %v586_v45, %v487_v4  ;;  %v1005_v10 = vadd.f32 %v2507_v58, %v847_v33 }
  0xa9   : > { %v845_v11 = vsel %vm830_vm0, %v3578_v29, %v844_v21  ;;  %v3579_v34 = vrot.slane %v2409_v15, 5  ;;  %v1052_v50 = vsel %vm1039_vm4, %v1049_v46, %v1051_v55  ;;  %v3580_v31 = vrot.slane %v2409_v15, 6 }
  0xaa   : > { %v1200_v6 = vrot.slane %v2744_v51, 6  ;;  %v2785_v36 = vunpack.c.h.bf16 %v1942_v2  ;;  %1999 = vmatmul.mubr.msk.bf16.vlgmr.msra.gmra.mrb[0].mxu1 %vm1389_vm6, %v1381_v5  ;;  %v795_v49 = vadd.f32 %v692_v37, %v646_v20  ;;  %v1154_v9 = vadd.f32 %v1052_v50, %v1005_v10 }
  0xab   : > { %v1050_v38 = vsel %vm1039_vm4, %v3579_v34, %v1049_v46  ;;  %v1199_v3 = vsel %vm1188_vm5, %v3580_v31, %v1198_v16  ;;  %v2789_v58 = vunpack.c.l.bf16 %v2773_v30  ;;  %v3581_v54 = vrot.slane %v2406_v14, 1 }
  0xac   : > { %v3582_v28 = vrot.slane %v2404_v13, 1  ;;  %v1201_v21 = vsel %vm1188_vm5, %v1198_v16, %v1200_v6  ;;  %v490_v2 = vrot.slane %v2742_v56, 2  ;;  %v492_v19 = vrot.slane %v2744_v51, 2 }
  0xad   : > { %v944_v37 = vadd.f32 %v2540_v41, %v795_v49  ;;  %v1303_v45 = vadd.f32 %v1201_v21, %v1154_v9  ;;  %v695_v46 = vrot.slane %v2742_v56, 3  ;;  %v697_v29 = vrot.slane %v2744_v51, 3 }
  0xae   : > { %v338_v12 = vsel %vm323_vm1, %v3582_v28, %v3581_v54  ;;  %v3583_v14 = vrot.slane %v2409_v15, 2  ;;  %v848_v20 = vrot.slane %v2785_v36, 4  ;;  %v3584_v50 = vrot.slane %v2409_v15, 3 }
  0xaf   : > { %v439_v18 = vadd.f32 %v2404_v13, %v338_v12  ;;  %v2811_v13 = vsel %vm472_vm2, %v490_v2, %v492_v19  ;;  %v1004_v10 = vadd.f32 %v944_v37, %v845_v11  ;;  %v1339_v41 = vmul.f32 0.11111111, %v1303_v45 }
  0xb0   : > { %v2806_v5 = vsel %vm472_vm2, %v3583_v14, %v490_v2  ;;  %v649_v34 = vadd.f32 %v2469_v57, %v2811_v13  ;;  %v696_v31 = vsel %vm681_vm3, %v3584_v50, %v695_v46  ;;  %v698_v9 = vsel %vm681_vm3, %v695_v46, %v697_v29 }
  0xb1   : > { %v588_v16 = vadd.f32 %v487_v4, %v439_v18  ;;  %v2824_v4 = vsel %vm830_vm0, %v846_v22, %v848_v20  ;;  %v850_v54 = vrot.slane %v2789_v58, 4  ;;  %v1153_v28 = vadd.f32 %v1050_v38, %v1004_v10  ;;  %v1952_v22 = vld [vmem:[%s2376_s29 + $0x78] sm:$0xff]  }
  0xb2   : > { %v798_v12 = vadd.f32 %v698_v9, %v649_v34  ;;  %v1053_v21 = vrot.slane %v2785_v36, 5  ;;  %v1055_v57 = vrot.slane %v2789_v58, 5  ;;  %v1202_v37 = vrot.slane %v2785_v36, 6 }
  0xb3   : > { %v648_v49 = vadd.f32 %v588_v16, %v2806_v5  ;;  %v2832_v2 = vsel %vm830_vm0, %v848_v20, %v850_v54  ;;  %v1204_v45 = vrot.slane %v2789_v58, 6  ;;  %v1302_v46 = vadd.f32 %v1199_v3, %v1153_v28 }
  0xb4   : > { %v947_v14 = vadd.f32 %v847_v33, %v798_v12  ;;  %v1054_v38 = vsel %vm1039_vm4, %v1051_v55, %v1053_v21  ;;  %v1056_v16 = vsel %vm1039_vm4, %v1053_v21, %v1055_v57  ;;  %v1203_v34 = vsel %vm1188_vm5, %v1200_v6, %v1202_v37 }
  0xb5   : > { %v797_v18 = vadd.f32 %v696_v31, %v648_v49  ;;  %v1205_v20 = vsel %vm1188_vm5, %v1202_v37, %v1204_v45  ;;  %v2846_v50 = vunpack.c.h.bf16 %v2566_v1  ;;  %v1338_v31 = vmul.f32 0.11111111, %v1302_v46 }
  0xb6   : > { %v1007_v33 = vadd.f32 %v947_v14, %v2832_v2  ;;  %v2849_v3 = vunpack.c.l.bf16 %v1952_v22  ;;  %v2851_v55 = vunpack.c.h.bf16 %v1952_v22  ;;  %vm1696_vm7 = vcmask 261120  }
  0xb7   : > { %v946_v10 = vadd.f32 %v845_v11, %v797_v18  ;;  %v884_v11 = vrot.slane %v2846_v50, 4  ;;  %v1089_v6 = vrot.slane %v2846_v50, 5  ;;  %v1238_v9 = vrot.slane %v2846_v50, 6  ;;  %v2860_v18 = vld [vmem:[%s2376_s29 + $0x80] sm:$0xff]  }
  0xb8   : > { %v1372_v28 = vpack.c.bf16 %v1339_v41, %v1338_v31  ;;  %v1156_v12 = vadd.f32 %v1056_v16, %v1007_v33  ;;  %v886_v1 = vrot.slane %v2849_v3, 4  ;;  %v1091_v21 = vrot.slane %v2849_v3, 5 }
  0xb9   : > { %v1006_v49 = vadd.f32 %v946_v10, %v2824_v4  ;;  %v885_v22 = vsel %vm830_vm0, %v882_v8, %v884_v11  ;;  %v1090_v46 = vsel %vm1039_vm4, %v1087_v39, %v1089_v6  ;;  %v1239_v41 = vsel %vm1188_vm5, %v1236_v27, %v1238_v9 }
  0xba   : > { %1982 = vmatprep.mubr.msk.bf16.mxu0 %vm1389_vm6, %v1372_v28  ;;  %v1305_v14 = vadd.f32 %v1205_v20, %v1156_v12  ;;  %v887_v16 = vsel %vm830_vm0, %v884_v11, %v886_v1  ;;  %v1024_v10 = vadd.f32 %v2706_v40, %v885_v22  ;;  %v1240_v33 = vrot.slane %v2849_v3, 6 }
  0xbb   : > { %v1155_v37 = vadd.f32 %v1054_v38, %v1006_v49  ;;  %v1092_v38 = vsel %vm1039_vm4, %v1089_v6, %v1091_v21  ;;  %v1025_v8 = vadd.f32 %v2708_v42, %v887_v16  ;;  %v2878_v39 = vunpack.c.l.bf16 %v2860_v18 }
  0xbc   : > { %v1341_v49 = vmul.f32 0.11111111, %v1305_v14  ;;  %v1173_v63 = vadd.f32 %v1090_v46, %v1024_v10  ;;  %v530_v27 = vrot.slane %v2846_v50, 2  ;;  %v532_v20 = vrot.slane %v2849_v3, 2 }
  0xbd   : > { %v1304_v31 = vadd.f32 %v1203_v34, %v1155_v37  ;;  %v1174_v11 = vadd.f32 %v1092_v38, %v1025_v8  ;;  %v1241_v40 = vsel %vm1188_vm5, %v1238_v9, %v1240_v33  ;;  %v735_v6 = vrot.slane %v2846_v50, 3 }
  0xbe   : > { %v1322_v34 = vadd.f32 %v1239_v41, %v1173_v63  ;;  %v2887_v42 = vsel %vm472_vm2, %v528_v59, %v530_v27  ;;  %v2892_v12 = vsel %vm472_vm2, %v530_v27, %v532_v20  ;;  %v3560_v37 = vrot.slane %v2849_v3, 3 }
  0xbf   : > { %v1340_v28 = vmul.f32 0.11111111, %v1304_v31  ;;  %v1323_v14 = vadd.f32 %v1241_v40, %v1174_v11  ;;  %v668_v9 = vadd.f32 %v2654_v24, %v2887_v42  ;;  %v669_v63 = vadd.f32 %v2656_v25, %v2892_v12  ;;  %v1944_v11 = vld [vmem:[%s2376_s29 + $0x38] sm:$0xff]  }
  0xc0   : > { %v1358_v41 = vmul.f32 0.11111111, %v1322_v34  ;;  %v736_v59 = vsel %vm681_vm3, %v733_v47, %v735_v6  ;;  %v738_v10 = vsel %vm681_vm3, %v735_v6, %v3560_v37  ;;  %v888_v38 = vrot.slane %v2851_v55, 4  ;;  %v1954_v37 = vld [vmem:[%s2376_s29 + $0x88] sm:$0xff]  }
  0xc1   : > { %v1373_v46 = vpack.c.bf16 %v1341_v49, %v1340_v28  ;;  %v1359_v31 = vmul.f32 0.11111111, %v1323_v14  ;;  %v817_v8 = vadd.f32 %v736_v59, %v668_v9  ;;  %v818_v49 = vadd.f32 %v738_v10, %v669_v63 }
  0xc2   : > { %v3559_v24 = vrot.slane %v2878_v39, 4  ;;  %v2909_v25 = vsel %vm830_vm0, %v886_v1, %v888_v38  ;;  %v1093_v27 = vrot.slane %v2851_v55, 5  ;;  %v3556_v47 = vrot.slane %v2878_v39, 5 }
  0xc3   : > { %1983 = vmatmul.mubr.msk.bf16.gmra.mrb[4].mxu0 %vm1389_vm6, %v1373_v46  ;;  %v1242_v28 = vrot.slane %v2851_v55, 6  ;;  %v1382_v40 = vpack.c.bf16 %v1359_v31, %v1358_v41  ;;  %v966_v34 = vadd.f32 %v885_v22, %v817_v8  ;;  %v967_v46 = vadd.f32 %v887_v16, %v818_v49 }
  0xc4   : > { %v2918_v6 = vsel %vm830_vm0, %v888_v38, %v3559_v24  ;;  %v1094_v14 = vsel %vm1039_vm4, %v1091_v21, %v1093_v27  ;;  %v1096_v1 = vsel %vm1039_vm4, %v1093_v27, %v3556_v47  ;;  %v3555_v63 = vrot.slane %v2878_v39, 6 }
  0xc5   : > { %v1243_v9 = vsel %vm1188_vm5, %v1240_v33, %v1242_v28  ;;  %2002 = vmatprep.mubr.msk.bf16.mxu1 %vm1389_vm6, %v1382_v40  ;;  %v1026_v41 = vadd.f32 %v966_v34, %v2909_v25  ;;  %v1027_v59 = vadd.f32 %v967_v46, %v2918_v6  ;;  %v2930_v10 = vunpack.c.h.bf16 %v2773_v30 }
  0xc6   : > { %v2932_v22 = vunpack.c.l.bf16 %v1944_v11  ;;  %v1245_v21 = vsel %vm1188_vm5, %v1242_v28, %v3555_v63  ;;  %v341_v16 = vrot.slane %v2742_v56, 1  ;;  %v343_v33 = vrot.slane %v2744_v51, 1 }
  0xc7   : > { %v494_v38 = vrot.slane %v2785_v36, 2  ;;  %v1175_v31 = vadd.f32 %v1094_v14, %v1026_v41  ;;  %v1176_v8 = vadd.f32 %v1096_v1, %v1027_v59  ;;  %v496_v49 = vrot.slane %v2789_v58, 2 }
  0xc8   : > { %v699_v27 = vrot.slane %v2785_v36, 3  ;;  %v3585_v30 = vrot.slane %v2409_v15, 1  ;;  %v344_v34 = vsel %vm323_vm1, %v341_v16, %v343_v33  ;;  %v701_v46 = vrot.slane %v2789_v58, 3 }
  0xc9   : > { %v495_v28 = vsel %vm472_vm2, %v492_v19, %v494_v38  ;;  %v1324_v48 = vadd.f32 %v1243_v9, %v1175_v31  ;;  %v1325_v63 = vadd.f32 %v1245_v21, %v1176_v8  ;;  %v442_v1 = vadd.f32 %v2742_v56, %v344_v34 }
  0xca   : > { %v342_v40 = vsel %vm323_vm1, %v3585_v30, %v341_v16  ;;  %v497_v41 = vsel %vm472_vm2, %v494_v38, %v496_v49  ;;  %v700_v59 = vsel %vm681_vm3, %v697_v29, %v699_v27  ;;  %v702_v16 = vsel %vm681_vm3, %v699_v27, %v701_v46 }
  0xcb   : > { %v441_v14 = vadd.f32 %v2409_v15, %v342_v40  ;;  %v852_v30 = vrot.slane %v2930_v10, 4  ;;  %v1360_v19 = vmul.f32 0.11111111, %v1324_v48  ;;  %v1361_v47 = vmul.f32 0.11111111, %v1325_v63  ;;  %v2970_v63 = vld [vmem:[%s2376_s29 + $0x40] sm:$0xff]  }
  0xcc   : > { %v591_v21 = vadd.f32 %v2811_v13, %v442_v1  ;;  %v854_v56 = vrot.slane %v2932_v22, 4  ;;  %v1057_v38 = vrot.slane %v2930_v10, 5  ;;  %v1059_v29 = vrot.slane %v2932_v22, 5 }
  0xcd   : > { %v590_v9 = vadd.f32 %v2806_v5, %v441_v14  ;;  %v2963_v15 = vsel %vm830_vm0, %v850_v54, %v852_v30  ;;  %v1383_v31 = vpack.c.bf16 %v1361_v47, %v1360_v19  ;;  %v1206_v48 = vrot.slane %v2930_v10, 6 }
  0xce   : > { %v651_v27 = vadd.f32 %v591_v21, %v497_v41  ;;  %v855_v5 = vsel %vm830_vm0, %v852_v30, %v854_v56  ;;  %v1058_v13 = vsel %vm1039_vm4, %v1055_v57, %v1057_v38  ;;  %v1060_v54 = vsel %vm1039_vm4, %v1057_v38, %v1059_v29 }
  0xcf   : > { %v650_v8 = vadd.f32 %v590_v9, %v495_v28  ;;  %v1208_v40 = vrot.slane %v2932_v22, 6  ;;  %2003 = vmatmul.mubr.msk.bf16.gmra.mrb[4].mxu1 %vm1389_vm6, %v1383_v31  ;;  %v1207_v14 = vsel %vm1188_vm5, %v1204_v45, %v1206_v48  ;;  %v2982_v1 = vunpack.c.h.bf16 %v1944_v11 }
  0xd0   : > { %v800_v47 = vadd.f32 %v702_v16, %v651_v27  ;;  %v2986_v19 = vunpack.c.l.bf16 %v2970_v63  ;;  %v345_v57 = vrot.slane %v2785_v36, 1  ;;  %v3557_v9 = vrot.slane %v2789_v58, 1 }
  0xd1   : > { %v799_v34 = vadd.f32 %v700_v59, %v650_v8  ;;  %v1209_v30 = vsel %vm1188_vm5, %v1206_v48, %v1208_v40  ;;  %v498_v16 = vrot.slane %v2930_v10, 2  ;;  %v3558_v38 = vrot.slane %v2932_v22, 2 }
  0xd2   : > { %v949_v59 = vadd.f32 %v2832_v2, %v800_v47  ;;  %v346_v45 = vsel %vm323_vm1, %v343_v33, %v345_v57  ;;  %v348_v11 = vsel %vm323_vm1, %v345_v57, %v3557_v9  ;;  %v703_v31 = vrot.slane %v2930_v10, 3 }
  0xd3   : > { %v948_v21 = vadd.f32 %v2824_v4, %v799_v34  ;;  %v705_v8 = vrot.slane %v2932_v22, 3  ;;  %v443_v4 = vadd.f32 %v2744_v51, %v346_v45  ;;  %v444_v2 = vadd.f32 %v2785_v36, %v348_v11 }
  0xd4   : > { %v1009_v48 = vadd.f32 %v949_v59, %v855_v5  ;;  %v3004_v34 = vsel %vm472_vm2, %v496_v49, %v498_v16  ;;  %v3009_v33 = vsel %vm472_vm2, %v498_v16, %v3558_v38  ;;  %v704_v47 = vsel %vm681_vm3, %v701_v46, %v703_v31 }
  0xd5   : > { %v1008_v27 = vadd.f32 %v948_v21, %v2963_v15  ;;  %v706_v57 = vsel %vm681_vm3, %v703_v31, %v705_v8  ;;  %v592_v51 = vadd.f32 %v495_v28, %v443_v4  ;;  %v593_v45 = vadd.f32 %v497_v41, %v444_v2 }
  0xd6   : > { %v1158_v59 = vadd.f32 %v1060_v54, %v1009_v48  ;;  %v856_v36 = vrot.slane %v2982_v1, 4  ;;  %v858_v49 = vrot.slane %v2986_v19, 4  ;;  %v1061_v11 = vrot.slane %v2982_v1, 5 }
  0xd7   : > { %v1157_v21 = vadd.f32 %v1058_v13, %v1008_v27  ;;  %v1063_v9 = vrot.slane %v2986_v19, 5  ;;  %v652_v46 = vadd.f32 %v592_v51, %v3004_v34  ;;  %v653_v24 = vadd.f32 %v593_v45, %v3009_v33 }
  0xd8   : > { %v1307_v38 = vadd.f32 %v1209_v30, %v1158_v59  ;;  %v3023_v13 = vsel %vm830_vm0, %v854_v56, %v856_v36  ;;  %v3028_v28 = vsel %vm830_vm0, %v856_v36, %v858_v49  ;;  %v1062_v41 = vsel %vm1039_vm4, %v1059_v29, %v1061_v11 }
  0xd9   : > { %v1306_v16 = vadd.f32 %v1207_v14, %v1157_v21  ;;  %v1064_v54 = vsel %vm1039_vm4, %v1061_v11, %v1063_v9  ;;  %v801_v31 = vadd.f32 %v704_v47, %v652_v46  ;;  %v802_v27 = vadd.f32 %v706_v57, %v653_v24 }
  0xda   : > { %v1343_v30 = vmul.f32 0.11111111, %v1307_v38  ;;  %v1210_v48 = vrot.slane %v2982_v1, 6  ;;  %v3561_v56 = vrot.slane %v2986_v19, 6  ;;  %v3037_v4 = vunpack.c.h.bf16 %v2860_v18 }
  0xdb   : > { %v1342_v14 = vmul.f32 0.11111111, %v1306_v16  ;;  %v3039_v2 = vunpack.c.l.bf16 %v1954_v37  ;;  %v950_v29 = vadd.f32 %v2963_v15, %v801_v31  ;;  %v951_v59 = vadd.f32 %v855_v5, %v802_v27 }
  0xdc   : > { %v381_v51 = vrot.slane %v2846_v50, 1  ;;  %v1211_v45 = vsel %vm1188_vm5, %v1208_v40, %v1210_v48  ;;  %v1213_v24 = vsel %vm1188_vm5, %v1210_v48, %v3561_v56  ;;  %v383_v38 = vrot.slane %v2849_v3, 1 }
  0xdd   : > { %v1374_v21 = vpack.c.bf16 %v1343_v30, %v1342_v14  ;;  %v534_v47 = vrot.slane %v2851_v55, 2  ;;  %v1010_v18 = vadd.f32 %v950_v29, %v3023_v13  ;;  %v1011_v57 = vadd.f32 %v951_v59, %v3028_v28 }
  0xde   : > { %v3586_v15 = vrot.slane %v2585_v32, 1  ;;  %v536_v40 = vrot.slane %v2878_v39, 2  ;;  %v384_v36 = vsel %vm323_vm1, %v381_v51, %v383_v38  ;;  %v739_v46 = vrot.slane %v2851_v55, 3 }
  0xdf   : > { %1986 = vmatprep.mubr.msk.bf16.mxu0 %vm1389_vm6, %v1374_v21  ;;  %v535_v16 = vsel %vm472_vm2, %v532_v20, %v534_v47  ;;  %v1159_v14 = vadd.f32 %v1062_v41, %v1010_v18  ;;  %v1160_v30 = vadd.f32 %v1064_v54, %v1011_v57  ;;  %v462_v31 = vadd.f32 %v2846_v50, %v384_v36 }
  0xe0   : > { %v382_v5 = vsel %vm323_vm1, %v3586_v15, %v381_v51  ;;  %v537_v27 = vsel %vm472_vm2, %v534_v47, %v536_v40  ;;  %v3587_v21 = vrot.slane %v2849_v3, 3  ;;  %v892_v59 = vrot.slane %v3037_v4, 4 }
  0xe1   : > { %v461_v11 = vadd.f32 %v2585_v32, %v382_v5  ;;  %v741_v32 = vrot.slane %v2878_v39, 3  ;;  %v1308_v51 = vadd.f32 %v1211_v45, %v1159_v14  ;;  %v1309_v20 = vadd.f32 %v1213_v24, %v1160_v30 }
  0xe2   : > { %v740_v29 = vsel %vm681_vm3, %v3587_v21, %v739_v46  ;;  %v611_v15 = vadd.f32 %v2892_v12, %v462_v31  ;;  %v894_v41 = vrot.slane %v3039_v2, 4  ;;  %v1097_v18 = vrot.slane %v3037_v4, 5 }
  0xe3   : > { %v610_v48 = vadd.f32 %v2887_v42, %v461_v11  ;;  %v742_v50 = vsel %vm681_vm3, %v739_v46, %v741_v32  ;;  %v3588_v42 = vrot.slane %v2878_v39, 4  ;;  %v1344_v57 = vmul.f32 0.11111111, %v1308_v51  ;;  %v3087_v51 = vld [vmem:[%s2376_s29 + $0x90] sm:$0xff]  }
  0xe4   : > { %v1345_v5 = vmul.f32 0.11111111, %v1309_v20  ;;  %v671_v36 = vadd.f32 %v611_v15, %v537_v27  ;;  %v895_v45 = vsel %vm830_vm0, %v892_v59, %v894_v41  ;;  %v3589_v12 = vrot.slane %v2878_v39, 5 }
  0xe5   : > { %v670_v54 = vadd.f32 %v610_v48, %v535_v16  ;;  %v893_v47 = vsel %vm830_vm0, %v3588_v42, %v892_v59  ;;  %v1099_v14 = vrot.slane %v3039_v2, 5  ;;  %v1246_v46 = vrot.slane %v3037_v4, 6 }
  0xe6   : > { %v1098_v11 = vsel %vm1039_vm4, %v3589_v12, %v1097_v18  ;;  %v1375_v30 = vpack.c.bf16 %v1345_v5, %v1344_v57  ;;  %v820_v31 = vadd.f32 %v742_v50, %v671_v36  ;;  %v1248_v48 = vrot.slane %v3039_v2, 6 }
  0xe7   : > { %v819_v24 = vadd.f32 %v740_v29, %v670_v54  ;;  %v3084_v21 = vunpack.c.h.bf16 %v1954_v37  ;;  %v1100_v29 = vsel %vm1039_vm4, %v1097_v18, %v1099_v14  ;;  %v3590_v59 = vrot.slane %v2878_v39, 6 }
  0xe8   : > { %v385_v54 = vrot.slane %v2851_v55, 1  ;;  %1987 = vmatmul.mubr.msk.bf16.gmra.mrb[8].mxu0 %vm1389_vm6, %v1375_v30  ;;  %v969_v50 = vadd.f32 %v2918_v6, %v820_v31  ;;  %v1249_v42 = vsel %vm1188_vm5, %v1246_v46, %v1248_v48  ;;  %v387_v37 = vrot.slane %v2878_v39, 1 }
  0xe9   : > { %v968_v20 = vadd.f32 %v2909_v25, %v819_v24  ;;  %v1247_v15 = vsel %vm1188_vm5, %v3590_v59, %v1246_v46  ;;  %v538_v57 = vrot.slane %v3037_v4, 2  ;;  %v540_v18 = vrot.slane %v3039_v2, 2 }
  0xea   : > { %v386_v25 = vsel %vm323_vm1, %v383_v38, %v385_v54  ;;  %v3103_v36 = vunpack.c.l.bf16 %v3087_v51  ;;  %v1029_v24 = vadd.f32 %v969_v50, %v895_v45  ;;  %v388_v12 = vsel %vm323_vm1, %v385_v54, %v387_v37 }
  0xeb   : > { %v1028_v5 = vadd.f32 %v968_v20, %v893_v47  ;;  %v463_v6 = vadd.f32 %v2849_v3, %v386_v25  ;;  %v3110_v46 = vsel %vm472_vm2, %v536_v40, %v538_v57  ;;  %v464_v31 = vadd.f32 %v2851_v55, %v388_v12 }
  0xec   : > { %v3116_v38 = vsel %vm472_vm2, %v538_v57, %v540_v18  ;;  %v743_v20 = vrot.slane %v3037_v4, 3  ;;  %v1178_v59 = vadd.f32 %v1100_v29, %v1029_v24  ;;  %v745_v56 = vrot.slane %v3039_v2, 3 }
  0xed   : > { %v1177_v30 = vadd.f32 %v1098_v11, %v1028_v5  ;;  %v612_v50 = vadd.f32 %v535_v16, %v463_v6  ;;  %v896_v54 = vrot.slane %v3084_v21, 4  ;;  %v613_v25 = vadd.f32 %v537_v27, %v464_v31 }
  0xee   : > { %v744_v40 = vsel %vm681_vm3, %v741_v32, %v743_v20  ;;  %v898_v11 = vrot.slane %v3103_v36, 4  ;;  %v1327_v55 = vadd.f32 %v1249_v42, %v1178_v59  ;;  %v746_v57 = vsel %vm681_vm3, %v743_v20, %v745_v56 }
  0xef   : > { %v1326_v3 = vadd.f32 %v1247_v15, %v1177_v30  ;;  %v672_v5 = vadd.f32 %v612_v50, %v3110_v46  ;;  %v3128_v29 = vsel %vm830_vm0, %v894_v41, %v896_v54  ;;  %v673_v24 = vadd.f32 %v613_v25, %v3116_v38 }
  0xf0   : > { %v3134_v27 = vsel %vm830_vm0, %v896_v54, %v898_v11  ;;  %v1101_v32 = vrot.slane %v3084_v21, 5  ;;  %v1363_v15 = vmul.f32 0.11111111, %v1327_v55  ;;  %v1103_v12 = vrot.slane %v3103_v36, 5 }
  0xf1   : > { %v1362_v16 = vmul.f32 0.11111111, %v1326_v3  ;;  %v821_v42 = vadd.f32 %v744_v40, %v672_v5  ;;  %v1250_v6 = vrot.slane %v3084_v21, 6  ;;  %v822_v30 = vadd.f32 %v746_v57, %v673_v24 }
  0xf2   : > { %v1102_v41 = vsel %vm1039_vm4, %v1099_v14, %v1101_v32  ;;  %v3562_v31 = vrot.slane %v3103_v36, 6  ;;  %v3142_v20 = vunpack.c.h.bf16 %v2970_v63  ;;  %v1104_v54 = vsel %vm1039_vm4, %v1101_v32, %v1103_v12 }
  0xf3   : > { %v1384_v59 = vpack.c.bf16 %v1363_v15, %v1362_v16  ;;  %v970_v50 = vadd.f32 %v893_v47, %v821_v42  ;;  %v1251_v3 = vsel %vm1188_vm5, %v1248_v48, %v1250_v6  ;;  %v971_v25 = vadd.f32 %v895_v45, %v822_v30 }
  0xf4   : > { %v1253_v40 = vsel %vm1188_vm5, %v1250_v6, %v3562_v31  ;;  %v349_v14 = vrot.slane %v2930_v10, 1  ;;  %v351_v55 = vrot.slane %v2932_v22, 1  ;;  %v502_v47 = vrot.slane %v2982_v1, 2 }
  0xf5   : > { %2006 = vmatprep.mubr.msk.bf16.mxu1 %vm1389_vm6, %v1384_v59  ;;  %v1030_v63 = vadd.f32 %v970_v50, %v3128_v29  ;;  %v504_v5 = vrot.slane %v2986_v19, 2  ;;  %v707_v57 = vrot.slane %v2982_v1, 3  ;;  %v1031_v45 = vadd.f32 %v971_v25, %v3134_v27 }
  0xf6   : > { %v3591_v48 = vrot.slane %v2789_v58, 1  ;;  %v352_v24 = vsel %vm323_vm1, %v349_v14, %v351_v55  ;;  %v709_v32 = vrot.slane %v2986_v19, 3  ;;  %v3592_v30 = vrot.slane %v2932_v22, 2 }
  0xf7   : > { %v1179_v15 = vadd.f32 %v1102_v41, %v1030_v63  ;;  %v446_v6 = vadd.f32 %v2930_v10, %v352_v24  ;;  %v1180_v50 = vadd.f32 %v1104_v54, %v1031_v45  ;;  %v505_v25 = vsel %vm472_vm2, %v502_v47, %v504_v5 }
  0xf8   : > { %v350_v16 = vsel %vm323_vm1, %v3591_v48, %v349_v14  ;;  %v503_v59 = vsel %vm472_vm2, %v3592_v30, %v502_v47  ;;  %v708_v48 = vsel %vm681_vm3, %v705_v8, %v707_v57  ;;  %v710_v14 = vsel %vm681_vm3, %v707_v57, %v709_v32 }
  0xf9   : > { %v445_v42 = vadd.f32 %v2789_v58, %v350_v16  ;;  %v1328_v31 = vadd.f32 %v1251_v3, %v1179_v15  ;;  %v595_v58 = vadd.f32 %v3009_v33, %v446_v6  ;;  %v860_v10 = vrot.slane %v3142_v20, 4 }
  0xfa   : > { %v1329_v63 = vadd.f32 %v1253_v40, %v1180_v50  ;;  %v862_v16 = vrot.slane %v2549_v35, 4  ;;  %v1065_v54 = vrot.slane %v3142_v20, 5  ;;  %v1067_v47 = vrot.slane %v2549_v35, 5 }
  0xfb   : > { %v594_v41 = vadd.f32 %v3004_v34, %v445_v42  ;;  %v1364_v45 = vmul.f32 0.11111111, %v1328_v31  ;;  %v655_v30 = vadd.f32 %v595_v58, %v505_v25  ;;  %v861_v8 = vsel %vm830_vm0, %v858_v49, %v860_v10 }
  0xfc   : > { %v1365_v3 = vmul.f32 0.11111111, %v1329_v63  ;;  %v863_v34 = vsel %vm830_vm0, %v860_v10, %v862_v16  ;;  %v1066_v33 = vsel %vm1039_vm4, %v1063_v9, %v1065_v54  ;;  %v1068_v40 = vsel %vm1039_vm4, %v1065_v54, %v1067_v47 }
  0xfd   : > { %v654_v24 = vadd.f32 %v594_v41, %v503_v59  ;;  %v804_v15 = vadd.f32 %v710_v14, %v655_v30  ;;  %v1214_v42 = vrot.slane %v3142_v20, 6  ;;  %v1216_v31 = vrot.slane %v2549_v35, 6 }
  0xfe   : > { %v1385_v6 = vpack.c.bf16 %v1365_v3, %v1364_v45  ;;  %v353_v50 = vrot.slane %v2982_v1, 1  ;;  %v3563_v49 = vrot.slane %v2986_v19, 1  ;;  %v506_v41 = vrot.slane %v3142_v20, 2 }
  0xff   : > { %v803_v57 = vadd.f32 %v708_v48, %v654_v24  ;;  %v953_v10 = vadd.f32 %v3028_v28, %v804_v15  ;;  %v3593_v9 = vrot.slane %v2986_v19, 6  ;;  %v1217_v14 = vsel %vm1188_vm5, %v1214_v42, %v1216_v31 }
 0x100   : > { %2007 = vmatmul.mubr.msk.bf16.gmra.mrb[8].mxu1 %vm1389_vm6, %v1385_v6  ;;  %v354_v63 = vsel %vm323_vm1, %v351_v55, %v353_v50  ;;  %v356_v54 = vsel %vm323_vm1, %v353_v50, %v3563_v49  ;;  %v3205_v45 = vsel %vm472_vm2, %v504_v5, %v506_v41  ;;  %v711_v55 = vrot.slane %v3142_v20, 3 }
 0x101   : > { %v952_v58 = vadd.f32 %v3023_v13, %v803_v57  ;;  %v1215_v48 = vsel %vm1188_vm5, %v3593_v9, %v1214_v42  ;;  %v3594_v13 = vrot.slane %v2549_v35, 2  ;;  %v1013_v30 = vadd.f32 %v953_v10, %v863_v34 }
 0x102   : > { %v447_v3 = vadd.f32 %v2932_v22, %v354_v63  ;;  %v448_v57 = vadd.f32 %v2982_v1, %v356_v54  ;;  %v713_v15 = vrot.slane %v2549_v35, 3  ;;  %v864_v42 = vrot.slane %v2560_v60, 4 }
 0x103   : > { %v3210_v28 = vsel %vm472_vm2, %v506_v41, %v3594_v13  ;;  %v1012_v24 = vadd.f32 %v952_v58, %v861_v8  ;;  %v1069_v5 = vrot.slane %v2560_v60, 5  ;;  %v1162_v50 = vadd.f32 %v1068_v40, %v1013_v30 }
 0x104   : > { %v596_v9 = vadd.f32 %v503_v59, %v447_v3  ;;  %v597_v49 = vadd.f32 %v505_v25, %v448_v57  ;;  %v712_v41 = vsel %vm681_vm3, %v709_v32, %v711_v55  ;;  %v714_v22 = vsel %vm681_vm3, %v711_v55, %v713_v15 }
 0x105   : > { %v1161_v6 = vadd.f32 %v1066_v33, %v1012_v24  ;;  %v3223_v1 = vsel %vm830_vm0, %v862_v16, %v864_v42  ;;  %v3595_v58 = vrot.slane %v2562_v61, 4  ;;  %v1311_v54 = vadd.f32 %v1217_v14, %v1162_v50 }
 0x106   : > { %v656_v33 = vadd.f32 %v596_v9, %v3205_v45  ;;  %v657_v59 = vadd.f32 %v597_v49, %v3210_v28  ;;  %v1070_v32 = vsel %vm1039_vm4, %v1067_v47, %v1069_v5  ;;  %v1071_v25 = vrot.slane %v2562_v61, 5 }
 0x107   : > { %v3228_v10 = vsel %vm830_vm0, %v864_v42, %v3595_v58  ;;  %v1310_v63 = vadd.f32 %v1215_v48, %v1161_v6  ;;  %v1218_v40 = vrot.slane %v2560_v60, 6  ;;  %v1220_v16 = vrot.slane %v2562_v61, 6  ;;  %v3261_v58 = vld [vmem:[%s2376_s29 + $0x98] sm:$0xff]  }
 0x108   : > { %v1347_v24 = vmul.f32 0.11111111, %v1311_v54  ;;  %v805_v30 = vadd.f32 %v712_v41, %v656_v33  ;;  %v806_v3 = vadd.f32 %v714_v22, %v657_v59  ;;  %v1072_v48 = vsel %vm1039_vm4, %v1069_v5, %v1071_v25 }
 0x109   : > { %v1346_v13 = vmul.f32 0.11111111, %v1310_v63  ;;  %v1219_v14 = vsel %vm1188_vm5, %v1216_v31, %v1218_v40  ;;  %v1221_v47 = vsel %vm1188_vm5, %v1218_v40, %v1220_v16  ;;  %v389_v49 = vrot.slane %v3037_v4, 1 }
 0x10a   : > { %v954_v55 = vadd.f32 %v861_v8, %v805_v30  ;;  %v955_v42 = vadd.f32 %v863_v34, %v806_v3  ;;  %v391_v6 = vrot.slane %v3039_v2, 1  ;;  %v3249_v5 = vrot.slane %v3084_v21, 2 }
 0x10b   : > { %v1376_v57 = vpack.c.bf16 %v1347_v24, %v1346_v13  ;;  %v390_v50 = vsel %vm323_vm1, %v387_v37, %v389_v49  ;;  %v3252_v31 = vunpack.c.h.bf16 %v3087_v51  ;;  %v632_v9 = vrot.slane %v3103_v36, 2 }
 0x10c   : > { %v1014_v41 = vadd.f32 %v954_v55, %v3223_v1  ;;  %v1015_v8 = vadd.f32 %v955_v42, %v3228_v10  ;;  %v392_v34 = vsel %vm323_vm1, %v389_v49, %v391_v6  ;;  %v465_v22 = vadd.f32 %v2878_v39, %v390_v50 }
 0x10d   : > { %1990 = vmatprep.mubr.msk.bf16.mxu0 %vm1389_vm6, %v1376_v57  ;;  %v466_v37 = vadd.f32 %v3037_v4, %v392_v34  ;;  %v543_v51 = vsel %vm472_vm2, %v540_v18, %v3249_v5  ;;  %v633_v63 = vsel %vm472_vm2, %v3249_v5, %v632_v9  ;;  %v747_v54 = vrot.slane %v3084_v21, 3  ;;  %v284_v57 = vld [vmem:[%s2376_s29 + $0x90] sm:$0x1]  ;;  %v621_v34 = vld [vmem:[%s2376_s29 + $0x98] sm:$0x1] }
 0x10e   : > { %v1163_v33 = vadd.f32 %v1070_v32, %v1014_v41  ;;  %v1164_v59 = vadd.f32 %v1072_v48, %v1015_v8  ;;  %v614_v40 = vadd.f32 %v3110_v46, %v465_v22  ;;  %v749_v39 = vrot.slane %v3103_v36, 3 }
 0x10f   : > { %v615_v13 = vadd.f32 %v3116_v38, %v466_v37  ;;  %v748_v4 = vsel %vm681_vm3, %v745_v56, %v747_v54  ;;  %v3278_v18 = vrot.slane %v3252_v31, 4  ;;  %v3281_v24 = vunpack.c.l.bf16 %v3261_v58 }
 0x110   : > { %v1312_v30 = vadd.f32 %v1219_v14, %v1163_v33  ;;  %v1313_v32 = vadd.f32 %v1221_v47, %v1164_v59  ;;  %v674_v3 = vadd.f32 %v614_v40, %v543_v51  ;;  %v750_v46 = vsel %vm681_vm3, %v747_v54, %v749_v39 }
 0x111   : > { %v675_v48 = vadd.f32 %v633_v63, %v615_v13  ;;  %v3290_v56 = vsel %vm830_vm0, %v898_v11, %v3278_v18  ;;  %v990_v38 = vrot.slane %v3281_v24, 4  ;;  %v1105_v49 = vrot.slane %v3252_v31, 5 }
 0x112   : > { %v1348_v14 = vmul.f32 0.11111111, %v1312_v30  ;;  %v1349_v47 = vmul.f32 0.11111111, %v1313_v32  ;;  %v823_v55 = vadd.f32 %v748_v4, %v674_v3  ;;  %v1107_v42 = vrot.slane %v3281_v24, 5 }
 0x113   : > { %v824_v50 = vadd.f32 %v750_v46, %v675_v48  ;;  %v991_v41 = vsel %vm830_vm0, %v3278_v18, %v990_v38  ;;  %v1106_v11 = vsel %vm1039_vm4, %v1103_v12, %v1105_v49  ;;  %v1254_v8 = vrot.slane %v3252_v31, 6  ;;  %v678_v3 = vld [vmem:[%s2376_s29 + $0x98] sm:$0x3] }
 0x114   : > { %v1377_v22 = vpack.c.bf16 %v1349_v47, %v1348_v14  ;;  %v972_v37 = vadd.f32 %v3128_v29, %v823_v55  ;;  %v1108_v63 = vsel %vm1039_vm4, %v1105_v49, %v1107_v42  ;;  %v1256_v54 = vrot.slane %v3281_v24, 6 }
 0x115   : > { %v973_v33 = vadd.f32 %v3134_v27, %v824_v50  ;;  %v3596_v59 = vrot.slane %v3103_v36, 6  ;;  %v285_v12 = vunpack.c.l.bf16 %v284_v57  ;;  %v393_v13 = vrot.slane %v3084_v21, 1 }
 0x116   : > { %1991 = vmatmul.mubr.msk.bf16.gmra.mrb[12].mxu0 %vm1389_vm6, %v1377_v22  ;;  %v1032_v4 = vadd.f32 %v972_v37, %v3290_v56  ;;  %v1257_v29 = vsel %vm1188_vm5, %v1254_v8, %v1256_v54  ;;  %v625_v30 = vunpack.c.l.bf16 %v621_v34  ;;  %v634_v32 = vrot.slane %v3252_v31, 2 }
 0x117   : > { %v1255_v40 = vsel %vm1188_vm5, %v3596_v59, %v1254_v8  ;;  %v1033_v27 = vadd.f32 %v991_v41, %v973_v33  ;;  %v394_v46 = vsel %vm323_vm1, %v391_v6, %v393_v13  ;;  %v395_v48 = vrot.slane %v285_v12, 1 }
 0x118   : > { %v544_v49 = vrot.slane %v285_v12, 2  ;;  %v1181_v57 = vadd.f32 %v1106_v11, %v1032_v4  ;;  %v467_v14 = vadd.f32 %v3039_v2, %v394_v46  ;;  %v635_v47 = vsel %vm472_vm2, %v632_v9, %v634_v32  ;;  %v979_v12 = vld [vmem:[%s2376_s29 + $0xa0] sm:$0x3] }
 0x119   : > { %v636_v55 = vrot.slane %v625_v30, 2  ;;  %v1182_v50 = vadd.f32 %v1108_v63, %v1033_v27  ;;  %v396_v22 = vsel %vm323_vm1, %v393_v13, %v395_v48  ;;  %v679_v34 = vunpack.c.l.bf16 %v678_v3  ;;  %v1036_v27 = vld [vmem:[%s2376_s29 + $0xa0] sm:$0x7] }
 0x11a   : > { %v545_v8 = vsel %vm472_vm2, %v3249_v5, %v544_v49  ;;  %v1330_v41 = vadd.f32 %v1255_v40, %v1181_v57  ;;  %v468_v6 = vadd.f32 %v3084_v21, %v396_v22  ;;  %v616_v37 = vadd.f32 %v543_v51, %v467_v14 }
 0x11b   : > { %v637_v11 = vsel %vm472_vm2, %v634_v32, %v636_v55  ;;  %v1331_v33 = vadd.f32 %v1257_v29, %v1182_v50  ;;  %v751_v2 = vrot.slane %v3252_v31, 3  ;;  %v753_v59 = vrot.slane %v679_v34, 3 }
 0x11c   : > { %v902_v9 = vrot.slane %v679_v34, 4  ;;  %v1366_v63 = vmul.f32 0.11111111, %v1330_v41  ;;  %v617_v4 = vadd.f32 %v545_v8, %v468_v6  ;;  %v676_v13 = vadd.f32 %v635_v47, %v616_v37 }
 0x11d   : > { %v1937_v30 = vunpack.c.h.bf16 %v3261_v58  ;;  %v1367_v5 = vmul.f32 0.11111111, %v1331_v33  ;;  %v752_v21 = vsel %vm681_vm3, %v749_v39, %v751_v2  ;;  %v754_v51 = vsel %vm681_vm3, %v751_v2, %v753_v59 }
 0x11e   : > { %v903_v40 = vsel %vm830_vm0, %v3278_v18, %v902_v9  ;;  %v677_v31 = vadd.f32 %v637_v11, %v617_v4  ;;  %v825_v29 = vadd.f32 %v752_v21, %v676_v13  ;;  %v983_v32 = vunpack.c.l.bf16 %v979_v12 }
 0x11f   : > { %v992_v3 = vrot.slane %v1937_v30, 4  ;;  %v1386_v46 = vpack.c.bf16 %v1367_v5, %v1366_v63  ;;  %v1037_v48 = vunpack.c.l.bf16 %v1036_v27  ;;  %v1109_v49 = vrot.slane %v1937_v30, 5 }
 0x120   : > { %v1258_v57 = vrot.slane %v1937_v30, 6  ;;  %v826_v58 = vadd.f32 %v754_v51, %v677_v31  ;;  %v974_v14 = vadd.f32 %v3290_v56, %v825_v29  ;;  %v994_v39 = vrot.slane %v983_v32, 4 }
 0x121   : > { %v993_v36 = vsel %vm830_vm0, %v990_v38, %v992_v3  ;;  %2010 = vmatprep.mubr.msk.bf16.mxu1 %vm1389_vm6, %v1386_v46  ;;  %v1110_v18 = vsel %vm1039_vm4, %v1107_v42, %v1109_v49  ;;  %v1111_v47 = vrot.slane %v1037_v48, 5  ;;  %v1260_v55 = vrot.slane %v1037_v48, 6 }
 0x122   : > { %v975_v50 = vadd.f32 %v903_v40, %v826_v58  ;;  %v995_v22 = vsel %vm830_vm0, %v992_v3, %v994_v39  ;;  %v1034_v8 = vadd.f32 %v993_v36, %v974_v14  ;;  %v357_v34 = vrot.slane %v3142_v20, 1 }
 0x123   : > { %v1112_v56 = vsel %vm1039_vm4, %v1109_v49, %v1111_v47  ;;  %v1259_v38 = vsel %vm1188_vm5, %v1256_v54, %v1258_v57  ;;  %v715_v41 = vrot.slane %v2560_v60, 3  ;;  %v3597_v42 = vrot.slane %v2986_v19, 1 }
 0x124   : > { %v1035_v6 = vadd.f32 %v995_v22, %v975_v50  ;;  %v1183_v37 = vadd.f32 %v1110_v18, %v1034_v8  ;;  %v3598_v33 = vrot.slane %v2549_v35, 1  ;;  %v1261_v59 = vsel %vm1188_vm5, %v1258_v57, %v1260_v55 }
 0x125   : > { %v358_v11 = vsel %vm323_vm1, %v3597_v42, %v357_v34  ;;  %v1075_v60 = vrot.slane %v2570_v17, 5  ;;  %v716_v13 = vsel %vm681_vm3, %v713_v15, %v715_v41  ;;  %v3599_v30 = vrot.slane %v2562_v61, 3 }
 0x126   : > { %v360_v2 = vsel %vm323_vm1, %v357_v34, %v3598_v33  ;;  %v449_v9 = vadd.f32 %v2986_v19, %v358_v11  ;;  %v1184_v12 = vadd.f32 %v1112_v56, %v1035_v6  ;;  %v1332_v54 = vadd.f32 %v1259_v38, %v1183_v37 }
 0x127   : > { %v450_v24 = vadd.f32 %v3142_v20, %v360_v2  ;;  %v718_v27 = vsel %vm681_vm3, %v715_v41, %v3599_v30  ;;  %v1224_v20 = vrot.slane %v2570_v17, 6  ;;  %v1077_v21 = vrot.slane %v2572_v23, 5 }
 0x128   : > { %v598_v63 = vadd.f32 %v3205_v45, %v449_v9  ;;  %v1333_v5 = vadd.f32 %v1261_v59, %v1184_v12  ;;  %v1368_v19 = vmul.f32 0.11111111, %v1332_v54  ;;  %v3600_v15 = vrot.slane %v2574_v62, 5 }
 0x129   : > { %v599_v4 = vadd.f32 %v3210_v28, %v450_v24  ;;  %v1073_v28 = vrot.slane %v2568_v7, 5  ;;  %v1078_v35 = vsel %vm1039_vm4, %v1075_v60, %v1077_v21  ;;  %v1226_v29 = vrot.slane %v2572_v23, 6 }
 0x12a   : > { %v658_v51 = vadd.f32 %v598_v63, %v2634_v52  ;;  %v1369_v40 = vmul.f32 0.11111111, %v1333_v5  ;;  %v1080_v31 = vsel %vm1039_vm4, %v1077_v21, %v3600_v15  ;;  %v1167_v17 = vadd.f32 %v1078_v35, %v2710_v43 }
 0x12b   : > { %v659_v45 = vadd.f32 %v599_v4, %v2637_v53  ;;  %v1168_v46 = vadd.f32 %v1080_v31, %v2712_v26  ;;  %v1222_v53 = vrot.slane %v2568_v7, 6  ;;  %v1227_v48 = vsel %vm1188_vm5, %v1224_v20, %v1226_v29 }
 0x12c   : > { %v807_v32 = vadd.f32 %v716_v13, %v658_v51  ;;  %v1387_v52 = vpack.c.bf16 %v1369_v40, %v1368_v19  ;;  %v3601_v49 = vrot.slane %v2574_v62, 6  ;;  %v1316_v23 = vadd.f32 %v1227_v48, %v1167_v17 }
 0x12d   : > { %v808_v3 = vadd.f32 %v718_v27, %v659_v45  ;;  %v1074_v43 = vsel %vm1039_vm4, %v1071_v25, %v1073_v28  ;;  %v1076_v7 = vsel %vm1039_vm4, %v1073_v28, %v1075_v60 }
 0x12e   : > { %v1229_v57 = vsel %vm1188_vm5, %v1226_v29, %v3601_v49  ;;  %v956_v58 = vadd.f32 %v3223_v1, %v807_v32  ;;  %2011 = vmatmul.mubr.msk.bf16.gmra.mrb[12].mxu1 %vm1389_vm6, %v1387_v52  ;;  %v1352_v39 = vmul.f32 0.11111111, %v1316_v23  ;;  %v1223_v1 = vsel %vm1188_vm5, %v1220_v16, %v1222_v53 }
 0x12f   : > { %v957_v14 = vadd.f32 %v3228_v10, %v808_v3  ;;  %v1317_v36 = vadd.f32 %v1229_v57, %v1168_v46  ;;  %v1225_v10 = vsel %vm1188_vm5, %v1222_v53, %v1224_v20 }
 0x130   : > { %v1016_v26 = vadd.f32 %v956_v58, %v2690_v44 }
 0x131   : > { %v1017_v62 = vadd.f32 %v957_v14, %v2693_v0  ;;  %v1353_v18 = vmul.f32 0.11111111, %v1317_v36 }
 0x132   : > { %v1165_v47 = vadd.f32 %v1074_v43, %v1016_v26 }
 0x133   : > { %v1166_v55 = vadd.f32 %v1076_v7, %v1017_v62  ;;  %v1379_v50 = vpack.c.bf16 %v1353_v18, %v1352_v39 }
 0x134   : > { %v1314_v22 = vadd.f32 %v1223_v1, %v1165_v47 }
 0x135   : > { %v1315_v25 = vadd.f32 %v1225_v10, %v1166_v55 }
 0x136   : > { %v1350_v8 = vmul.f32 0.11111111, %v1314_v22 }
 0x137   : > { %v1351_v34 = vmul.f32 0.11111111, %v1315_v25 }
 0x139   : > { %v1378_v56 = vpack.c.bf16 %v1351_v34, %v1350_v8 }
 0x13b   : > { %1994 = vmatprep.mubr.msk.bf16.mxu0 %vm1389_vm6, %v1378_v56 }
 0x13c   : > { %1995 = vmatmul.mubr.msk.bf16.gmra.mrb[16].mxu0 %vm1389_vm6, %v1379_v50 }
 0x158   : > { %v1980_v44 = vpop.f32.mrb[0].mxu0 }
 0x159   : > { %v1626_v0 = vmax.f32 %v1980_v44, 0.0  ;;  %v1481_v61 = vpop.f32.mrb[1].mxu0 }
 0x15a   : > { %v1624_v16 = vmax.f32 %v1481_v61, 0.0  ;;  %v1981_v38 = vpop.f32.mrb[2].mxu0 }
 0x15b   : > { %v1662_v41 = vmin.f32 %v1626_v0, 6.0  ;;  %v1627_v6 = vmax.f32 %v1981_v38, 0.0  ;;  %v1484_v37 = vpop.f32.mrb[3].mxu0 }
 0x15c   : > { %v1660_v42 = vmin.f32 %v1624_v16, 6.0  ;;  %v1625_v11 = vmax.f32 %v1484_v37, 0.0 }
 0x15d   : > { %1699 = vst.msk [vmem:[%s3406_s23 + $0x10] sm:$0xff] %vm1696_vm7, %v1662_v41  ;;  %v1663_v33 = vmin.f32 %v1627_v6, 6.0 }
 0x15e   : > { %1697 = vst.msk [vmem:[%s3406_s23] sm:$0xff] %vm1696_vm7, %v1660_v42  ;;  %v1661_v2 = vmin.f32 %v1625_v11, 6.0 }
 0x15f   : > { %1700 = vst.msk [vmem:[%s3406_s23 + $0x18] sm:$0xff] %vm1696_vm7, %v1663_v33 }
 0x160   : > { %1698 = vst.msk [vmem:[%s3406_s23 + $0x8] sm:$0xff] %vm1696_vm7, %v1661_v2 }
 0x17d   : > { %v2000_v59 = vpop.f32.mrb[0].mxu1 }
 0x17e   : > { %v1646_v9 = vmax.f32 %v2000_v59, 0.0  ;;  %v1561_v24 = vpop.f32.mrb[1].mxu1 }
 0x17f   : > { %v1644_v12 = vmax.f32 %v1561_v24, 0.0  ;;  %v2001_v54 = vpop.f32.mrb[2].mxu1 }
 0x180   : > { %v1682_v60 = vmin.f32 %v1646_v9, 6.0  ;;  %v1647_v63 = vmax.f32 %v2001_v54, 0.0  ;;  %v1564_v4 = vpop.f32.mrb[3].mxu1 }
 0x181   : > { %v1680_v13 = vmin.f32 %v1644_v12, 6.0  ;;  %v1645_v30 = vmax.f32 %v1564_v4, 0.0 }
 0x182   : > { %1719 = vst.msk [vmem:[%s3406_s23 + $0xb0] sm:$0xff] %vm1696_vm7, %v1682_v60  ;;  %v1683_v27 = vmin.f32 %v1647_v63, 6.0 }
 0x183   : > { %1717 = vst.msk [vmem:[%s3406_s23 + $0xa0] sm:$0xff] %vm1696_vm7, %v1680_v13  ;;  %v1681_v5 = vmin.f32 %v1645_v30, 6.0 }
 0x184   : > { %1720 = vst.msk [vmem:[%s3406_s23 + $0xb8] sm:$0xff] %vm1696_vm7, %v1683_v27 }
 0x185   : > { %1718 = vst.msk [vmem:[%s3406_s23 + $0xa8] sm:$0xff] %vm1696_vm7, %v1681_v5 }
 0x196   : > { %v1984_v19 = vpop.f32.mrb[4].mxu0 }
 0x197   : > { %v1630_v20 = vmax.f32 %v1984_v19, 0.0  ;;  %v1497_v21 = vpop.f32.mrb[5].mxu0 }
 0x198   : > { %v1628_v51 = vmax.f32 %v1497_v21, 0.0  ;;  %v1985_v45 = vpop.f32.mrb[6].mxu0 }
 0x199   : > { %v1666_v28 = vmin.f32 %v1630_v20, 6.0  ;;  %v1631_v40 = vmax.f32 %v1985_v45, 0.0  ;;  %v1500_v35 = vpop.f32.mrb[7].mxu0 }
 0x19a   : > { %v1664_v15 = vmin.f32 %v1628_v51, 6.0  ;;  %v1629_v31 = vmax.f32 %v1500_v35, 0.0 }
 0x19b   : > { %1703 = vst.msk [vmem:[%s3406_s23 + $0x30] sm:$0xff] %vm1696_vm7, %v1666_v28  ;;  %v1667_v29 = vmin.f32 %v1631_v40, 6.0 }
 0x19c   : > { %1701 = vst.msk [vmem:[%s3406_s23 + $0x20] sm:$0xff] %vm1696_vm7, %v1664_v15  ;;  %v1665_v32 = vmin.f32 %v1629_v31, 6.0 }
 0x19d   : > { %1704 = vst.msk [vmem:[%s3406_s23 + $0x38] sm:$0xff] %vm1696_vm7, %v1667_v29 }
 0x19e   : > { %1702 = vst.msk [vmem:[%s3406_s23 + $0x28] sm:$0xff] %vm1696_vm7, %v1665_v32 }
 0x1a2   : > { %v2004_v3 = vpop.f32.mrb[4].mxu1 }
 0x1a3   : > { %v1650_v17 = vmax.f32 %v2004_v3, 0.0  ;;  %v1577_v46 = vpop.f32.mrb[5].mxu1 }
 0x1a4   : > { %v1648_v52 = vmax.f32 %v1577_v46, 0.0  ;;  %v2005_v53 = vpop.f32.mrb[6].mxu1 }
 0x1a5   : > { %v1686_v48 = vmin.f32 %v1650_v17, 6.0  ;;  %v1651_v49 = vmax.f32 %v2005_v53, 0.0  ;;  %v1580_v57 = vpop.f32.mrb[7].mxu1 }
 0x1a6   : > { %v1684_v58 = vmin.f32 %v1648_v52, 6.0  ;;  %v1649_v14 = vmax.f32 %v1580_v57, 0.0 }
 0x1a7   : > { %1723 = vst.msk [vmem:[%s3406_s23 + $0xd0] sm:$0xff] %vm1696_vm7, %v1686_v48  ;;  %v1687_v23 = vmin.f32 %v1651_v49, 6.0 }
 0x1a8   : > { %1721 = vst.msk [vmem:[%s3406_s23 + $0xc0] sm:$0xff] %vm1696_vm7, %v1684_v58  ;;  %v1685_v36 = vmin.f32 %v1649_v14, 6.0 }
 0x1a9   : > { %1724 = vst.msk [vmem:[%s3406_s23 + $0xd8] sm:$0xff] %vm1696_vm7, %v1687_v23 }
 0x1aa   : > { %1722 = vst.msk [vmem:[%s3406_s23 + $0xc8] sm:$0xff] %vm1696_vm7, %v1685_v36 }
 0x1bb   : > { %v1988_v43 = vpop.f32.mrb[8].mxu0 }
 0x1bc   : > { %v1634_v7 = vmax.f32 %v1988_v43, 0.0  ;;  %v1513_v26 = vpop.f32.mrb[9].mxu0 }
 0x1bd   : > { %v1632_v62 = vmax.f32 %v1513_v26, 0.0  ;;  %v1989_v39 = vpop.f32.mrb[10].mxu0 }
 0x1be   : > { %v1670_v18 = vmin.f32 %v1634_v7, 6.0  ;;  %v1635_v1 = vmax.f32 %v1989_v39, 0.0  ;;  %v1516_v10 = vpop.f32.mrb[11].mxu0 }
 0x1bf   : > { %v1668_v47 = vmin.f32 %v1632_v62, 6.0  ;;  %v1633_v55 = vmax.f32 %v1516_v10, 0.0 }
 0x1c0   : > { %1707 = vst.msk [vmem:[%s3406_s23 + $0x50] sm:$0xff] %vm1696_vm7, %v1670_v18  ;;  %v1671_v50 = vmin.f32 %v1635_v1, 6.0 }
 0x1c1   : > { %1705 = vst.msk [vmem:[%s3406_s23 + $0x40] sm:$0xff] %vm1696_vm7, %v1668_v47  ;;  %v1669_v22 = vmin.f32 %v1633_v55, 6.0 }
 0x1c2   : > { %1708 = vst.msk [vmem:[%s3406_s23 + $0x58] sm:$0xff] %vm1696_vm7, %v1671_v50 }
 0x1c3   : > { %1706 = vst.msk [vmem:[%s3406_s23 + $0x48] sm:$0xff] %vm1696_vm7, %v1669_v22 }
 0x1d3   : > { %v2008_v25 = vpop.f32.mrb[8].mxu1 }
 0x1d4   : > { %v1654_v8 = vmax.f32 %v2008_v25, 0.0  ;;  %v1593_v34 = vpop.f32.mrb[9].mxu1 }
 0x1d5   : > { %v1652_v56 = vmax.f32 %v1593_v34, 0.0  ;;  %v2009_v44 = vpop.f32.mrb[10].mxu1 }
 0x1d6   : > { %v1690_v0 = vmin.f32 %v1654_v8, 6.0  ;;  %v1655_v61 = vmax.f32 %v2009_v44, 0.0  ;;  %v1596_v16 = vpop.f32.mrb[11].mxu1 }
 0x1d7   : > { %v1688_v38 = vmin.f32 %v1652_v56, 6.0  ;;  %v1653_v41 = vmax.f32 %v1596_v16, 0.0 }
 0x1d8   : > { %1727 = vst.msk [vmem:[%s3406_s23 + $0xf0] sm:$0xff] %vm1696_vm7, %v1690_v0  ;;  %v1691_v6 = vmin.f32 %v1655_v61, 6.0 }
 0x1d9   : > { %1725 = vst.msk [vmem:[%s3406_s23 + $0xe0] sm:$0xff] %vm1696_vm7, %v1688_v38  ;;  %v1689_v37 = vmin.f32 %v1653_v41, 6.0 }
 0x1da   : > { %1728 = vst.msk [vmem:[%s3406_s23 + $0xf8] sm:$0xff] %vm1696_vm7, %v1691_v6 }
 0x1db   : > { %1726 = vst.msk [vmem:[%s3406_s23 + $0xe8] sm:$0xff] %vm1696_vm7, %v1689_v37 }
 0x1e9   : > { %v1992_v42 = vpop.f32.mrb[12].mxu0 }
 0x1ea   : > { %v1638_v11 = vmax.f32 %v1992_v42, 0.0  ;;  %v1529_v33 = vpop.f32.mrb[13].mxu0 }
 0x1eb   : > { %v1636_v2 = vmax.f32 %v1529_v33, 0.0  ;;  %v1993_v59 = vpop.f32.mrb[14].mxu0 }
 0x1ec   : > { %v1674_v9 = vmin.f32 %v1638_v11, 6.0  ;;  %v1639_v24 = vmax.f32 %v1993_v59, 0.0  ;;  %v1532_v12 = vpop.f32.mrb[15].mxu0 }
 0x1ed   : > { %v1672_v54 = vmin.f32 %v1636_v2, 6.0  ;;  %v1637_v60 = vmax.f32 %v1532_v12, 0.0 }
 0x1ee   : > { %1711 = vst.msk [vmem:[%s3406_s23 + $0x70] sm:$0xff] %vm1696_vm7, %v1674_v9  ;;  %v1675_v63 = vmin.f32 %v1639_v24, 6.0 }
 0x1ef   : > { %1709 = vst.msk [vmem:[%s3406_s23 + $0x60] sm:$0xff] %vm1696_vm7, %v1672_v54  ;;  %v1673_v4 = vmin.f32 %v1637_v60, 6.0 }
 0x1f0   : > { %1712 = vst.msk [vmem:[%s3406_s23 + $0x78] sm:$0xff] %vm1696_vm7, %v1675_v63 }
 0x1f1   : > { %1710 = vst.msk [vmem:[%s3406_s23 + $0x68] sm:$0xff] %vm1696_vm7, %v1673_v4 }
 0x201   : > { %v2012_v13 = vpop.f32.mrb[12].mxu1 }
 0x202   : > { %v1658_v30 = vmax.f32 %v2012_v13, 0.0  ;;  %v1609_v27 = vpop.f32.mrb[13].mxu1 }
 0x203   : > { %v1656_v5 = vmax.f32 %v1609_v27, 0.0  ;;  %v2013_v19 = vpop.f32.mrb[14].mxu1 }
 0x204   : > { %v1694_v20 = vmin.f32 %v1658_v30, 6.0  ;;  %v1659_v21 = vmax.f32 %v2013_v19, 0.0  ;;  %v1612_v51 = vpop.f32.mrb[15].mxu1 }
 0x205   : > { %v1692_v45 = vmin.f32 %v1656_v5, 6.0  ;;  %v1657_v28 = vmax.f32 %v1612_v51, 0.0 }
 0x206   : > { %1731 = vst.msk [vmem:[%s3406_s23 + $0x110] sm:$0xff] %vm1696_vm7, %v1694_v20  ;;  %v1695_v40 = vmin.f32 %v1659_v21, 6.0 }
 0x207   : > { %1729 = vst.msk [vmem:[%s3406_s23 + $0x100] sm:$0xff] %vm1696_vm7, %v1692_v45  ;;  %v1693_v35 = vmin.f32 %v1657_v28, 6.0 }
 0x208   : > { %1732 = vst.msk [vmem:[%s3406_s23 + $0x118] sm:$0xff] %vm1696_vm7, %v1695_v40 }
 0x209   : > { %1730 = vst.msk [vmem:[%s3406_s23 + $0x108] sm:$0xff] %vm1696_vm7, %v1693_v35 }
 0x20f   : > { %v1996_v15 = vpop.f32.mrb[16].mxu0 }
 0x210   : > { %v1642_v31 = vmax.f32 %v1996_v15, 0.0  ;;  %v1545_v29 = vpop.f32.mrb[17].mxu0 }
 0x211   : > { %v1640_v32 = vmax.f32 %v1545_v29, 0.0  ;;  %v1997_v3 = vpop.f32.mrb[18].mxu0 }
 0x212   : > { %v1678_v17 = vmin.f32 %v1642_v31, 6.0  ;;  %v1643_v46 = vmax.f32 %v1997_v3, 0.0  ;;  %v1548_v52 = vpop.f32.mrb[19].mxu0 }
 0x213   : > { %v1676_v53 = vmin.f32 %v1640_v32, 6.0  ;;  %v1641_v48 = vmax.f32 %v1548_v52, 0.0 }
 0x214   : > { %1715 = vst.msk [vmem:[%s3406_s23 + $0x90] sm:$0xff] %vm1696_vm7, %v1678_v17  ;;  %v1679_v49 = vmin.f32 %v1643_v46, 6.0 }
 0x215   : > { %1713 = vst.msk [vmem:[%s3406_s23 + $0x80] sm:$0xff] %vm1696_vm7, %v1676_v53  ;;  %v1677_v57 = vmin.f32 %v1641_v48, 6.0 }
 0x216   : > { %1716 = vst.msk [vmem:[%s3406_s23 + $0x98] sm:$0xff] %vm1696_vm7, %v1679_v49 }
 0x217   : > { %1714 = vst.msk [vmem:[%s3406_s23 + $0x88] sm:$0xff] %vm1696_vm7, %v1677_v57 }
 0x218   : > { %2155 = shalt.err (!%p2152_p13)
}
 0x219   : > { %s2156_s17 = scalar_lea.hbm %s3479_s7, 4608  ;;  %s2160_s3 = scalar_lea.hbm %s3533_s2, 9216 }
 0x21a   : > { %p2157_p7 = scmp.ne.s32.totalorder %s3479_s7, %s2156_s17  ;;  %p2161_p1 = scmp.lt.u32.totalorder %s3479_s7, %s3533_s2 }
 0x21b   : > { %p2162_p11 = scmp.lt.u32.totalorder %s2160_s3, %s2156_s17  ;;  %p2164_p9 = scmp.lt.u32.totalorder %s2156_s17, %s3479_s7 }
 0x21c   : > { %p2158_p3 = pnand %p2157_p7, %p3602_p10 }
 0x21d   : > { %p2163_p8 = por %p2162_p11, %p2161_p1 }
 0x21e   : > { %p2159_p12 = pneg %p2158_p3 }
 0x21f   : > { %p2165_p2 = por %p2164_p9, %p2163_p8 }
 0x221   : > { %p2166_p4 = pnand %p2165_p2, %p2159_p12 }
 0x223   : > { %2169 = shalt.err (!%p2166_p4)
}
 0x224   : > { %s2219_s29 = smov 128   ;;  %s2220_s20 = smov 8  }
 0x225   : > { %2029 = dma.vmem_to_hbm [thread:$0]  (%p3602_p10), %s3481_s30, 4608, %s3479_s7, %s1734_s13, %s2219_s29, %s2219_s29, %s2220_s20  }
 0x226 PF: > { %s1762_s23 = sand.u32 1, %s2200_s9   ;;  %p3603_p5 = scmp.ne.s32.totalorder %s3567_s22, 0 }
 0x227   : > { %p3604_p0 = scmp.ge.s32.totalorder %s2212_s12, 2  ;;  %s1763_s28 = scalar_lea.sflag [#allocation4], %s1762_s23 }
 0x229   : > { %p2040_p6 = pnand %p3604_p0, %p3603_p5 }
 0x22b   : > { %2195 = dma.done.wait (!%p2040_p6), %s1763_s28, 4608  }
 0x22c   : > { %2197 = vsyncadd (!%p2040_p6), %s1763_s28, 4294962688  ;;  %p16_p13 = scmp.ge.s32.totalorder %s2261_s15, 4   ;;  %s3605_s9 = smov %s2204_s10 }
 0x22d   : > { %s3606_s10 = smov %s2208_s11  ;;  %s3607_s11 = smov %s2273_s18 }
 0x22e   : > { %s3608_s12 = smov %s2261_s15  ;;  %18 = sbr.rel (!%p16_p13) target bundleno = 6 (0x6), region = 77 }
 0x235   :  { %1768 = vsyncpa [#allocation3], 1 }
 0x236   :  { %1770 = vsyncpa [#allocation3 + $0x1], 1 }
 0x237   :  { %1771 = vsyncpa [#allocation6], 1 }
 0x238   :  { %1772 = vsyncpa [#allocation4], 1 }
 0x239   :  { %1774 = vsyncpa [#allocation4 + $0x1], 1 }

// kernel: inception_v2_base.7
= control target key start
LH: loop header
LB: loop body
LE: loop exit
PB: predicated region body
PF: predicated region fallthrough
CT: control target
= control target key end

     0   :  { %7 = vsyncpa [#allocation3], 0  ;;  %s6851_s0 = inlined_call_operand.hbm [shape: bf16[2,342,64], index: 0, kind: input, shape index: {}]   ;;  %s6852_s1 = inlined_call_operand.hbm [shape: bf16[9,64,96], index: 1, kind: input, shape index: {}]   ;;  %s6853_s2 = inlined_call_operand.hbm [shape: bf16[2,288,96], index: 2, kind: output, shape index: {}]  }
   0x1   :  { %9 = vsyncpa [#allocation3 + $0x1], 0 }
   0x2   :  { %10 = vsyncpa [#allocation6], 0 }
   0x3   :  { %11 = vsyncpa [#allocation4], 0 }
   0x4   :  { %13 = vsyncpa [#allocation4 + $0x1], 0  ;;  %s5794_s9 = smov 0   ;;  %s5796_s10 = smov 0  }
   0x5   :  { %s5798_s11 = smov 0   ;;  %s5800_s12 = smov 0  }
   0x6 LB: > { %s5815_s13 = sadd.s32 4294967295, %s5770_s12   ;;  %s4227_s14 = sadd.s32 4294967294, %s5770_s12   ;;  %s5770_s12 = sphi %s5800_s12, %s6873_s12   ;;  %s5766_s11 = sphi %s5798_s11, %s6872_s11   ;;  %s5762_s10 = sphi %s5796_s10, %s6871_s10   ;;  %s5758_s9 = sphi %s5794_s9, %s6870_s9  }
   0x7   : > { %p39_p0 = scmp.ne.s32.totalorder %s5762_s10, %s5758_s9  ;;  %p6854_p1 = scmp.eq.s32.totalorder %s5815_s13, 0 }
   0x8   : > { %p90_p3 = scmp.eq.s32.totalorder %s4227_s14, 1  ;;  %p4228_p5 = scmp.ge.s32.totalorder %s5770_s12, 1 }
   0x9   : > { %p5824_p4 = por %p6854_p1, %p39_p0  ;;  %p97_p7 = scmp.lt.s32.totalorder %s5770_s12, 3 }
   0xa   : > { %p5829_p6 = por %p90_p3, %p39_p0  ;;  %s5772_s18 = smov [#allocation5]  }
   0xb   : > { %s6857_s15 = scalar_select %p5824_p4, 1, 0 }
   0xc   : > { %s6858_s16 = scalar_select %p5829_p6, 1, 0 }
   0xd   : > { %p5834_p8 = pnand %p4228_p5, %p97_p7  ;;  %s109_s19 = sshll.u32 %s5772_s18, 4  ;;  %s5838_s19 = int_to_ptr.vmem [resolvable:$true] %s109_s19 }
   0xe   : > { %s5850_s21 = sadd.s32 1, %s5770_s12   ;;  %s26_s22 = sadd.s32 1, %s5766_s11 }
   0xf   : > { %s6859_s17 = scalar_select %p5834_p8, 1, 0 }
  0x10   : > { %p5472_p9 = pneg %p5834_p8  ;;  %s23_s23 = ssub.s32 %s5770_s12, %s5850_s21 }
  0x11   : > { %s5642_s26 = scalar_lea.hbm %s6852_s1, 4608 }
  0x12   : > { %p5845_p11 = pnand %p5472_p9, %p6854_p1  ;;  %p5643_p12 = scmp.ne.s32.totalorder %s6852_s1, %s5642_s26 }
  0x13   : > { %p5649_p5 = scmp.lt.u32.totalorder %s5642_s26, %s6852_s1 }
  0x14   : > { %p5644_p13 = pneg %p5845_p11 }
  0x16   : > { %p5645_p0 = pnand %p5644_p13, %p5643_p12 }
  0x18   : > { %p5646_p3 = pneg %p5645_p0 }
  0x1a   : > { %p5651_p7 = pnand %p5649_p5, %p5646_p3 }
  0x1c   : > { %5654 = shalt.err (!%p5651_p7)
}
  0x1d   : > { %s5655_s3 = scalar_lea.vmem %s5838_s19, 4608  ;;  %p5663_p2 = scmp.lt.s32.totalorder %s5838_s19, %s5838_s19 }
  0x1e   : > { %p5656_p9 = scmp.ne.s32.totalorder %s5838_s19, %s5655_s3  ;;  %p5664_p6 = scmp.lt.s32.totalorder %s5655_s3, %s5655_s3 }
  0x20   : > { %p5658_p10 = pnand %p5656_p9, %p5644_p13  ;;  %p5665_p4 = por %p5664_p6, %p5663_p2 }
  0x22   : > { %p5659_p1 = pneg %p5658_p10 }
  0x24   : > { %p5666_p8 = pnand %p5665_p4, %p5659_p1 }
  0x26   : > { %5669 = shalt.err (!%p5666_p8)
}
  0x27   : > { %s5773_s4 = smov 64   ;;  %s5774_s5 = smov 4  }
  0x28   : > { %5475 = dma.hbm_to_vmem [thread:$0]  (!%p5845_p11), %s6852_s1, 4608, %s5838_s19, [#allocation6], %s5773_s4, %s5773_s4, %s5774_s5  }
  0x29   : > { %p24_p1 = scmp.eq.s32.totalorder %s23_s23, 0  ;;  %p33_p2 = scmp.ne.s32.totalorder %s5766_s11, %s5762_s10 }
  0x2a   : > { %p34_p4 = scmp.eq.s32.totalorder %s5770_s12, 0  ;;  %p5485_p6 = scmp.lt.s32.totalorder %s5770_s12, 2 }
  0x2b   : > { %s5884_s8 = scalar_select %p24_p1, %s5766_s11, %s26_s22  }
  0x2c   : > { %p35_p8 = por %p34_p4, %p33_p2  ;;  %p6861_p10 = scmp.eq.s32.totalorder %s5815_s13, 1 }
  0x2d   : > { %s123_s18 = sand.u32 1, %s5766_s11   ;;  %s5460_s20 = smul.u32 2752, %s5770_s12 }
  0x2e   : > { %p5888_p12 = por %p6861_p10, %p33_p2  ;;  %s5459_s24 = smul.u32 172, %s123_s18 }
  0x2f   : > { %p5894_p13 = pnand %p5485_p6, %p35_p8  ;;  %s5901_s22 = scalar_lea.hbm %s6851_s0, %s5460_s20 }
  0x30   : > { %s127_s26 = scalar_lea.vmem [#allocation2], %s5459_s24  ;;  %s5905_s28 = scalar_lea.sflag [#allocation3], %s123_s18 }
  0x31   : > { %s134_s27 = sshll.u32 %s127_s26, 4  ;;  %s5670_s29 = scalar_lea.hbm %s5901_s22, 2752  ;;  %s5903_s27 = int_to_ptr.vmem [resolvable:$true] %s134_s27 }
  0x32   : > { %p5671_p11 = scmp.ne.s32.totalorder %s5901_s22, %s5670_s29  ;;  %p5672_p0 = pneg %p5894_p13 }
  0x33   : > { %s5675_s6 = scalar_lea.hbm %s6851_s0, 5504  ;;  %p5676_p7 = scmp.lt.u32.totalorder %s5901_s22, %s6851_s0 }
  0x34   : > { %p5673_p3 = pnand %p5672_p0, %p5671_p11  ;;  %p5677_p9 = scmp.lt.u32.totalorder %s5675_s6, %s5670_s29 }
  0x35   : > { %p5679_p2 = scmp.lt.u32.totalorder %s5670_s29, %s5901_s22 }
  0x36   : > { %p5674_p5 = pneg %p5673_p3  ;;  %p5678_p1 = por %p5677_p9, %p5676_p7 }
  0x38   : > { %p5680_p4 = por %p5679_p2, %p5678_p1 }
  0x3a   : > { %p5681_p6 = pnand %p5680_p4, %p5674_p5 }
  0x3c   : > { %5684 = shalt.err (!%p5681_p6)
}
  0x3d   : > { %s5685_s18 = scalar_lea.vmem %s5903_s27, 2752  ;;  %s5775_s24 = smov [#allocation2]  }
  0x3e   : > { %p5686_p8 = scmp.ne.s32.totalorder %s5903_s27, %s5685_s18  ;;  %s5690_s19 = sshll.u32 %s5775_s24, 4  ;;  %s5691_s19 = int_to_ptr.vmem [resolvable:$false] %s5690_s19 }
  0x3f   : > { %s5692_s23 = scalar_lea.vmem %s5691_s19, 5504  ;;  %p5693_p3 = scmp.lt.s32.totalorder %s5903_s27, %s5691_s19 }
  0x40   : > { %p5688_p10 = pnand %p5686_p8, %p5672_p0  ;;  %p5694_p7 = scmp.lt.s32.totalorder %s5692_s23, %s5685_s18 }
  0x42   : > { %p5689_p11 = pneg %p5688_p10  ;;  %p5695_p9 = por %p5694_p7, %p5693_p3 }
  0x44   : > { %p5696_p1 = pnand %p5695_p9, %p5689_p11 }
  0x46   : > { %5699 = shalt.err (!%p5696_p1)
}
  0x47   : > { %5479 = dma.hbm_to_vmem [thread:$0]  (!%p5894_p13), %s5901_s22, 2752, %s5903_s27, %s5905_s28, %s5773_s4, %s5773_s4, %s5774_s5  }
  0x48   : > { %p6864_p0 = scmp.ne.s32.totalorder %s6859_s17, 0 }
  0x49   : > { %s5939_s26 = sand.u32 (!%p6864_p0), 1, %s5762_s10   ;;  %p6865_p5 = scmp.ne.s32.totalorder (!%p6864_p0), %s6857_s15, 0 }
  0x4a   : > { %146 = sbr.rel (%p6864_p0) target bundleno = 662 (0x296), region = 28  ;;  %s149_s30 = scalar_lea.sflag (!%p6864_p0), [#allocation3], %s5939_s26 }
  0x4b   : > { %s5461_s29 = smul.u32 (!%p6864_p0), 172, %s5939_s26 }
  0x4d   : > { %s5943_s3 = scalar_lea.vmem (!%p6864_p0), [#allocation2], %s5461_s29 }
  0x51   : > { %5745 = dma.done.wait (%p6865_p5), %s149_s30, 2752  }
  0x52   : > { %5747 = vsyncadd (%p6865_p5), %s149_s30, 4294964544  ;;  %p6866_p13 = scmp.eq.s32.totalorder %s5815_s13, 0 }
  0x54   : > { %5749 = dma.done.wait (%p6866_p13), [#allocation6], 4608   ;;  %p6867_p2 = pmov %p6866_p13 }
  0x55   : > { %v5525_v0 = vld [vmem:[#allocation5 + $0x20] sm:$0xff]   ;;  %v5527_v2 = vld [vmem:[#allocation5 + $0x28] sm:$0xff]   ;;  %v5529_v4 = vld [vmem:[#allocation5 + $0x30] sm:$0xff]   ;;  %vm325_vm0 = vsmask.f32 7424  ;;  %vm498_vm1 = vcmask 523264  }
  0x56   : > { %5751 = vsyncadd (%p6867_p2), [#allocation6], 4294962688  ;;  %v5526_v1 = vld [vmem:[#allocation5 + $0x80] sm:$0xff]   ;;  %4767 = vmatprep.subr.bf16.mxu1 %v5525_v0  ;;  %v5528_v3 = vld [vmem:[#allocation5 + $0x88] sm:$0xff]   ;;  %vm1789_vm2 = vsmask.f32 6400 }
  0x57   : > { %4943 = vmatprep.subr.bf16.mxu0 %v5526_v1  ;;  %4768 = vmatpush3.bf16.msra.mxu1 %v5525_v0  ;;  %v5530_v5 = vld [vmem:[#allocation5 + $0x90] sm:$0xff]   ;;  %v5531_v6 = vld [vmem:[#allocation5 + $0x38] sm:$0xff]   ;;  %v5539_v33 = vld [vmem:[#allocation5 + $0xa0] sm:$0xff]   ;;  %vm2264_vm3 = vcmask 1045504   ;;  %vm980_vm4 = vcmask 1046528   ;;  %vm3548_vm6 = vcmask 1044480  }
  0x58   : > { %4944 = vmatpush3.bf16.msra.mxu0 %v5526_v1  ;;  %4769 = vmatprep.subr.bf16.mxu1 %v5527_v2  ;;  %v5532_v7 = vld [vmem:[#allocation5 + $0x98] sm:$0xff]   ;;  %v178_v8 = vld [vmem:[%s5943_s3] sm:$0xf]  ;;  %v5962_v13 = vld [vmem:[%s5943_s3 + $0xc] sm:$0xf]  ;;  %s5462_s15 = smul.u32 144, %s5939_s26 }
  0x59   : > { %4945 = vmatprep.subr.bf16.mxu0 %v5528_v3  ;;  %v179_v9 = vld [vmem:[%s5943_s3 + $0x4] sm:$0xf]  ;;  %v5958_v11 = vld [vmem:[%s5943_s3 + $0x8] sm:$0xff]   ;;  %v5969_v18 = vld [vmem:[%s5943_s3 + $0x10] sm:$0xff]   ;;  %vm3073_vm5 = vsmask.f32 5376 }
  0x5a   : > { %v5955_v10 = vcombine.low %v178_v8, %v179_v9  ;;  %v1309_v12 = vld [vmem:[%s5943_s3 + $0x8] sm:$0xe]  ;;  %v334_v16 = vshll.u32 %v5958_v11, 16  ;;  %v338_v17 = vshrl.u32 %v5958_v11, 16  ;;  %v5972_v19 = vld [vmem:[%s5943_s3 + $0x10] sm:$0xff]   ;;  %v1799_v23 = vshrl.u32 %v5969_v18, 16 }
  0x5b   : > { %4770 = vmatpush3.bf16.msra.mxu1 %v5527_v2  ;;  %v5975_v20 = vcombine.low %v1309_v12, %v5962_v13  ;;  %v1802_v24 = vshll.u32 %v5969_v18, 16  ;;  %v342_v27 = vshll.u32 %v5972_v19, 16  ;;  %v5983_v28 = vld [vmem:[%s5943_s3 + $0x18] sm:$0xff]   ;;  %v346_v42 = vshrl.u32 %v5972_v19, 16  ;;  %v5996_v47 = vld [vmem:[%s5943_s3 + $0x20] sm:$0xff]   ;;  %v6009_v59 = vld [vmem:[%s5943_s3 + $0x28] sm:$0xff]  }
  0x5c   : > { %4946 = vmatpush3.bf16.msra.mxu0 %v5528_v3  ;;  %4771 = vmatprep.subr.bf16.mxu1 %v5529_v4  ;;  %v327_v14 = vshrl.u32 %v5955_v10, 16  ;;  %v329_v15 = vshll.u32 %v5955_v10, 16  ;;  %v336_v22 = vrot.slane %v334_v16, 1  ;;  %v1801_v31 = vrot.slane %v1799_v23, 1  ;;  %v5986_v34 = vld [vmem:[%s5943_s3 + $0x18] sm:$0xff]   ;;  %v5999_v48 = vld [vmem:[%s5943_s3 + $0x20] sm:$0xff]  }
  0x5d   : > { %4947 = vmatprep.subr.bf16.mxu0 %v5530_v5  ;;  %v1791_v25 = vshrl.u32 %v5975_v20, 16  ;;  %v1794_v26 = vshll.u32 %v5975_v20, 16  ;;  %v1804_v32 = vrot.slane %v1802_v24, 2  ;;  %v344_v37 = vrot.slane %v342_v27, 1  ;;  %v5543_v56 = vld [vmem:[#allocation5] sm:$0xff]   ;;  %s6715_s17 = scalar_lea.vmem [#allocation7], %s5462_s15 }
  0x5e   : > { %v331_v21 = vrot.slane %v329_v15, 1  ;;  %v340_v30 = vor.u32 %v338_v17, %v336_v22  ;;  %v1808_v38 = vshrl.u32 %v5983_v28, 16  ;;  %v1811_v41 = vshll.u32 %v5983_v28, 16  ;;  %v6025_v17 = vld [vmem:[%s5943_s3 + $0x30] sm:$0xff]   ;;  %v6036_v27 = vld [vmem:[%s5943_s3 + $0x38] sm:$0xff]   ;;  %s5463_s4 = smul.u32 2304, %s5815_s13 }
  0x5f   : > { %4772 = vmatpush3.bf16.msra.mxu1 %v5529_v4  ;;  %v1793_v35 = vrot.slane %v1791_v25, 1  ;;  %v1796_v36 = vrot.slane %v1794_v26, 2  ;;  %v1805_v40 = vor.u32 %v1804_v32, %v1801_v31  ;;  %v350_v46 = vshll.u32 %v5986_v34, 16  ;;  %v5545_v4 = vld [vmem:[#allocation5 + $0xa8] sm:$0xff]   ;;  %v5550_v31 = vld [vmem:[#allocation5 + $0xb0] sm:$0xff]   ;;  %s4144_s5 = sshll.u32 %s6715_s17, 4  ;;  %s6801_s5 = int_to_ptr.vmem [resolvable:$true] %s4144_s5 }
  0x60   : > { %4948 = vmatpush3.bf16.msra.mxu0 %v5530_v5  ;;  %4773 = vmatprep.subr.bf16.mxu1 %v5531_v6  ;;  %v332_v29 = vor.u32 %v331_v21, %v327_v14  ;;  %v345_v44 = vsel %vm325_vm0, %v340_v30, %v344_v37  ;;  %v1810_v45 = vrot.slane %v1808_v38, 1  ;;  %v1813_v49 = vrot.slane %v1811_v41, 2  ;;  %v6045_v38 = vld [vmem:[%s5943_s3 + $0x40] sm:$0xff]   ;;  %s6799_s27 = scalar_lea.hbm %s6853_s2, %s5463_s4  ;;  %s4131_s13 = scalar_lea.sflag [#allocation4], %s5939_s26 }
  0x61   : > { %4949 = vmatprep.subr.bf16.mxu0 %v5532_v7  ;;  %v1797_v43 = vor.u32 %v1796_v36, %v1793_v35  ;;  %v348_v50 = vor.u32 %v346_v42, %v344_v37  ;;  %v354_v51 = vshrl.u32 %v5986_v34, 16  ;;  %v352_v53 = vrot.slane %v350_v46, 1  ;;  %v6042_v37 = vld [vmem:[%s5943_s3 + $0x38] sm:$0xff]   ;;  %s5700_s28 = scalar_lea.vmem %s6801_s5, 2304  ;;  %s5776_s6 = smov [#allocation7]  }
  0x62   : > { %v337_v39 = vsel %vm325_vm0, %v332_v29, %v336_v22  ;;  %v1817_v54 = vshrl.u32 %v5996_v47, 16  ;;  %v1820_v55 = vshll.u32 %v5996_v47, 16  ;;  %v1814_v57 = vor.u32 %v1813_v49, %v1810_v45  ;;  %v6030_v22 = vld [vmem:[%s5943_s3 + $0x30] sm:$0xff]   ;;  %v6056_v49 = vld [vmem:[%s5943_s3 + $0x40] sm:$0xff]   ;;  %p5701_p4 = scmp.ne.s32.totalorder %s6801_s5, %s5700_s28  ;;  %s5704_s7 = sshll.u32 %s5776_s6, 4  ;;  %s5705_s7 = int_to_ptr.vmem [resolvable:$false] %s5704_s7 }
  0x63   : > { %4774 = vmatpush3.bf16.msra.mxu1 %v5531_v6  ;;  %4775 = vmatprep.mubr.msk.bf16.mxu1 %vm498_vm1, %v337_v39  ;;  %v1806_v52 = vsel %vm1789_vm2, %v1797_v43, %v1805_v40  ;;  %v358_v58 = vshll.u32 %v5999_v48, 16  ;;  %v353_v60 = vsel %vm325_vm0, %v348_v50, %v352_v53  ;;  %v356_v63 = vor.u32 %v354_v51, %v352_v53  ;;  %v6018_v6 = vld [vmem:[%s5943_s3 + $0x28] sm:$0xff]   ;;  %s5706_s20 = scalar_lea.vmem %s5705_s7, 4608  ;;  %p5707_p10 = scmp.lt.s32.totalorder %s6801_s5, %s5705_s7 }
  0x64   : > { %4950 = vmatpush3.bf16.msra.mxu0 %v5532_v7  ;;  %4951 = vmatprep.mubr.msk.bf16.mxu0 %vm498_vm1, %v1806_v52  ;;  %v1819_v61 = vrot.slane %v1817_v54, 1  ;;  %v1822_v62 = vrot.slane %v1820_v55, 2  ;;  %v1815_v0 = vsel %vm1789_vm2, %v1805_v40, %v1814_v57  ;;  %v1826_v2 = vshrl.u32 %v6009_v59, 16  ;;  %p5702_p6 = pnand %p5701_p4, %p5888_p12  ;;  %p5708_p11 = scmp.lt.s32.totalorder %s5706_s20, %s5700_s28 }
  0x65   : > { %4987 = vmatprep.subr.bf16.mxu0 %v5539_v33  ;;  %4811 = vmatprep.subr.bf16.mxu1 %v5543_v56  ;;  %v360_v1 = vrot.slane %v358_v58, 1  ;;  %v1829_v3 = vshll.u32 %v6009_v59, 16  ;;  %v362_v7 = vshrl.u32 %v5999_v48, 16  ;;  %v366_v16 = vshll.u32 %v6018_v6, 16  ;;  %v6061_v58 = vld [vmem:[%s5943_s3 + $0x48] sm:$0xff]  }
  0x66   : > { %4776 = vmatmul.mubr.msk.bf16.vlgmr.msra.gmra.mrb[0].mxu1 %vm498_vm1, %v345_v44  ;;  %v1823_v5 = vor.u32 %v1822_v62, %v1819_v61  ;;  %v1828_v9 = vrot.slane %v1826_v2, 1  ;;  %v370_v23 = vshrl.u32 %v6018_v6, 16  ;;  %v1835_v25 = vshrl.u32 %v6025_v17, 16  ;;  %p5703_p8 = pneg %p5702_p6  ;;  %p5709_p3 = por %p5708_p11, %p5707_p10 }
  0x67   : > { %4779 = vmatprep.mubr.msk.bf16.mxu1 %vm498_vm1, %v353_v60  ;;  %4812 = vmatpush3.bf16.msra.mxu1 %v5543_v56  ;;  %v361_v8 = vsel %vm325_vm0, %v356_v63, %v360_v1  ;;  %v1831_v12 = vrot.slane %v1829_v3, 2  ;;  %v364_v15 = vor.u32 %v362_v7, %v360_v1  ;;  %v368_v24 = vrot.slane %v366_v16, 1  ;;  %v5555_v3 = vld [vmem:[#allocation5 + $0x8] sm:$0xff]  }
  0x68   : > { %4952 = vmatmul.mubr.msk.bf16.vlgmr.msra.gmra.mrb[0].mxu0 %vm498_vm1, %v1815_v0  ;;  %v1824_v14 = vsel %vm1789_vm2, %v1814_v57, %v1823_v5  ;;  %v1838_v26 = vshll.u32 %v6025_v17, 16  ;;  %v374_v30 = vshll.u32 %v6030_v22, 16  ;;  %v1844_v40 = vshrl.u32 %v6036_v27, 16  ;;  %4813 = vmatprep.subr.bf16.mxu1 %v5555_v3  ;;  %p5710_p7 = pnand %p5709_p3, %p5703_p8 }
  0x69   : > { %4988 = vmatpush3.bf16.msra.mxu0 %v5539_v33  ;;  %4955 = vmatprep.mubr.msk.bf16.mxu0 %vm498_vm1, %v1824_v14  ;;  %v1832_v21 = vor.u32 %v1831_v12, %v1828_v9  ;;  %v369_v32 = vsel %vm325_vm0, %v364_v15, %v368_v24  ;;  %v1837_v33 = vrot.slane %v1835_v25, 1  ;;  %v372_v36 = vor.u32 %v370_v23, %v368_v24  ;;  %v6073_v9 = vld [vmem:[%s5943_s3 + $0x48] sm:$0xff]   ;;  %v6081_v24 = vld [vmem:[%s5943_s3 + $0x50] sm:$0xff]  }
  0x6a   : > { %4989 = vmatprep.subr.bf16.mxu0 %v5545_v4  ;;  %v1840_v35 = vrot.slane %v1838_v26, 2  ;;  %v376_v39 = vrot.slane %v374_v30, 1  ;;  %v1847_v41 = vshll.u32 %v6036_v27, 16  ;;  %v378_v42 = vshrl.u32 %v6030_v22, 16 }
  0x6b   : > { %v1833_v29 = vsel %vm1789_vm2, %v1823_v5, %v1832_v21  ;;  %v382_v44 = vshll.u32 %v6042_v37, 16  ;;  %v1853_v45 = vshrl.u32 %v6045_v38, 16  ;;  %v1856_v46 = vshll.u32 %v6045_v38, 16  ;;  %4814 = vmatpush3.bf16.msra.mxu1 %v5555_v3 }
  0x6c   : > { %v1841_v43 = vor.u32 %v1840_v35, %v1837_v33  ;;  %v377_v50 = vsel %vm325_vm0, %v372_v36, %v376_v39  ;;  %v1846_v51 = vrot.slane %v1844_v40, 1  ;;  %v1849_v52 = vrot.slane %v1847_v41, 2  ;;  %v6091_v35 = vld [vmem:[%s5943_s3 + $0x58] sm:$0xff]  }
  0x6d   : > { %4990 = vmatpush3.bf16.msra.mxu0 %v5545_v4  ;;  %v380_v53 = vor.u32 %v378_v42, %v376_v39  ;;  %v384_v55 = vrot.slane %v382_v44, 1  ;;  %v1855_v56 = vrot.slane %v1853_v45, 1  ;;  %v1858_v57 = vrot.slane %v1856_v46, 2  ;;  %v5556_v4 = vld [vmem:[#allocation5 + $0xb8] sm:$0xff]   ;;  %v6094_v36 = vld [vmem:[%s5943_s3 + $0x58] sm:$0xff]  }
  0x6e   : > { %4780 = vmatmul.mubr.msk.bf16.gmra.mrb[4].mxu1 %vm498_vm1, %v361_v8  ;;  %4991 = vmatprep.subr.bf16.mxu0 %v5550_v31  ;;  %v1842_v54 = vsel %vm1789_vm2, %v1832_v21, %v1841_v43  ;;  %v1850_v60 = vor.u32 %v1849_v52, %v1846_v51  ;;  %v386_v61 = vshrl.u32 %v6042_v37, 16  ;;  %v390_v62 = vshll.u32 %v6056_v49, 16 }
  0x6f   : > { %4783 = vmatprep.mubr.msk.bf16.mxu1 %vm498_vm1, %v369_v32  ;;  %v385_v63 = vsel %vm325_vm0, %v380_v53, %v384_v55  ;;  %v1859_v0 = vor.u32 %v1858_v57, %v1855_v56  ;;  %v1862_v1 = vshrl.u32 %v6061_v58, 16  ;;  %v1865_v2 = vshll.u32 %v6061_v58, 16 }
  0x70   : > { %4956 = vmatmul.mubr.msk.bf16.gmra.mrb[4].mxu0 %vm498_vm1, %v1833_v29  ;;  %v1851_v5 = vsel %vm1789_vm2, %v1841_v43, %v1850_v60  ;;  %v388_v7 = vor.u32 %v386_v61, %v384_v55  ;;  %v392_v8 = vrot.slane %v390_v62, 1  ;;  %v394_v16 = vshrl.u32 %v6056_v49, 16  ;;  %v2251_v43 = vld [vmem:[%s5943_s3 + $0x8] sm:$0xc]  ;;  %v5564_v61 = vld [vmem:[#allocation5 + $0xc0] sm:$0xff]  }
  0x71   : > { %4992 = vmatpush3.bf16.msra.mxu0 %v5550_v31  ;;  %4959 = vmatprep.mubr.msk.bf16.mxu0 %vm498_vm1, %v1842_v54  ;;  %v1860_v12 = vsel %vm1789_vm2, %v1850_v60, %v1859_v0  ;;  %v1864_v14 = vrot.slane %v1862_v1, 1  ;;  %v1867_v15 = vrot.slane %v1865_v2, 2  ;;  %v398_v21 = vshll.u32 %v6073_v9, 16  ;;  %v6086_v31 = vld [vmem:[%s5943_s3 + $0x50] sm:$0xff]   ;;  %v6107_v54 = vld [vmem:[%s5943_s3 + $0x60] sm:$0xff]  }
  0x72   : > { %4993 = vmatprep.subr.bf16.mxu0 %v5556_v4  ;;  %v393_v23 = vsel %vm325_vm0, %v388_v7, %v392_v8  ;;  %v402_v25 = vshrl.u32 %v6073_v9, 16  ;;  %v396_v29 = vor.u32 %v394_v16, %v392_v8  ;;  %v1871_v32 = vshrl.u32 %v6081_v24, 16 }
  0x73   : > { %v1868_v26 = vor.u32 %v1867_v15, %v1864_v14  ;;  %v400_v30 = vrot.slane %v398_v21, 1  ;;  %v1874_v33 = vshll.u32 %v6081_v24, 16  ;;  %v406_v41 = vshll.u32 %v6086_v31, 16  ;;  %v6127_v21 = vld [vmem:[%s5943_s3 + $0x70] sm:$0xff]  }
  0x74   : > { %v410_v42 = vshrl.u32 %v6086_v31, 16  ;;  %v1873_v44 = vrot.slane %v1871_v32, 1  ;;  %v1880_v46 = vshrl.u32 %v6091_v35, 16  ;;  %v414_v53 = vshll.u32 %v6094_v36, 16 }
  0x75   : > { %4994 = vmatpush3.bf16.msra.mxu0 %v5556_v4  ;;  %v401_v39 = vsel %vm325_vm0, %v396_v29, %v400_v30  ;;  %v404_v40 = vor.u32 %v402_v25, %v400_v30  ;;  %v1876_v45 = vrot.slane %v1874_v33, 2  ;;  %v1869_v51 = vsel %vm1789_vm2, %v1859_v0, %v1868_v26  ;;  %v5565_v4 = vld [vmem:[#allocation5 + $0x10] sm:$0xff]   ;;  %v5571_v33 = vld [vmem:[#allocation5 + $0x18] sm:$0xff]  }
  0x76   : > { %4784 = vmatmul.mubr.msk.bf16.gmra.mrb[8].mxu1 %vm498_vm1, %v377_v50  ;;  %v1883_v50 = vshll.u32 %v6091_v35, 16  ;;  %v408_v52 = vrot.slane %v406_v41, 1  ;;  %v1882_v56 = vrot.slane %v1880_v46, 1  ;;  %v4384_v60 = vcombine.low %v2251_v43, %v5962_v13  ;;  %5031 = vmatprep.subr.bf16.mxu0 %v5564_v61  ;;  %v6133_v29 = vld [vmem:[%s5943_s3 + $0x78] sm:$0xff]   ;;  %v6147_v46 = vld [vmem:[%s5943_s3 + $0x80] sm:$0xff]  }
  0x77   : > { %4787 = vmatprep.mubr.msk.bf16.mxu1 %vm498_vm1, %v385_v63  ;;  %v1877_v55 = vor.u32 %v1876_v45, %v1873_v44  ;;  %v416_v63 = vrot.slane %v414_v53, 1  ;;  %v418_v2 = vshrl.u32 %v6094_v36, 16  ;;  %v422_v3 = vshll.u32 %v6107_v54, 16  ;;  %4815 = vmatprep.subr.bf16.mxu1 %v5565_v4 }
  0x78   : > { %4960 = vmatmul.mubr.msk.bf16.gmra.mrb[8].mxu0 %vm498_vm1, %v1851_v5  ;;  %v1885_v57 = vrot.slane %v1883_v50, 2  ;;  %v412_v62 = vor.u32 %v410_v42, %v408_v52  ;;  %v409_v0 = vsel %vm325_vm0, %v404_v40, %v408_v52  ;;  %v6116_v5 = vld [vmem:[%s5943_s3 + $0x68] sm:$0xff]   ;;  %v2266_v8 = vrot.slane %v5969_v18, 2  ;;  %4816 = vmatpush3.bf16.msra.mxu1 %v5565_v4 }
  0x79   : > { %4963 = vmatprep.mubr.msk.bf16.mxu0 %vm498_vm1, %v1860_v12  ;;  %v1878_v1 = vsel %vm1789_vm2, %v1868_v26, %v1877_v55  ;;  %v426_v12 = vshrl.u32 %v6107_v54, 16  ;;  %v2265_v14 = vrot.slane %v4384_v60, 2  ;;  %v430_v15 = vshll.u32 %v6116_v5, 16  ;;  %4817 = vmatprep.subr.bf16.mxu1 %v5571_v33  ;;  %v6152_v52 = vld [vmem:[%s5943_s3 + $0x88] sm:$0xff]   ;;  %v5570_v60 = vld [vmem:[#allocation5 + $0xc8] sm:$0xff]  }
  0x7a   : > { %v6119_v13 = vor.u32 %v1885_v57, %v1882_v56  ;;  %v417_v7 = vsel %vm325_vm0, %v412_v62, %v416_v63  ;;  %v424_v16 = vrot.slane %v422_v3, 1  ;;  %v438_v32 = vshll.u32 %v6127_v21, 16  ;;  %v6155_v56 = vld [vmem:[#allocation5 + $0x40] sm:$0xff]  }
  0x7b   : > { %v432_v26 = vrot.slane %v430_v15, 1  ;;  %v2267_v30 = vsel %vm2264_vm3, %v2265_v14, %v2266_v8  ;;  %v434_v40 = vshrl.u32 %v6116_v5, 16  ;;  %v2268_v41 = vrot.slane %v5983_v28, 2 }
  0x7c   : > { %v1887_v25 = vsel %vm1789_vm2, %v1877_v55, %v6119_v13  ;;  %v428_v18 = vor.u32 %v426_v12, %v424_v16  ;;  %v442_v43 = vshrl.u32 %v6127_v21, 16  ;;  %v446_v44 = vshll.u32 %v6133_v29, 16  ;;  %4818 = vmatpush3.bf16.msra.mxu1 %v5571_v33  ;;  %v6185_v33 = vld [vmem:[#allocation5 + $0xe0] sm:$0xff]  }
  0x7d   : > { %v2270_v45 = vrot.slane %v5996_v47, 2  ;;  %v440_v50 = vrot.slane %v438_v32, 1  ;;  %v2269_v28 = vsel %vm2264_vm3, %v2266_v8, %v2268_v41  ;;  %v454_v47 = vshll.u32 %v6147_v46, 16  ;;  %4855 = vmatprep.subr.bf16.mxu1 %v6155_v56  ;;  %v5574_v8 = vld [vmem:[#allocation5 + $0xd0] sm:$0xff]  }
  0x7e   : > { %4788 = vmatmul.mubr.msk.bf16.gmra.mrb[12].mxu1 %vm498_vm1, %v393_v23  ;;  %v420_v23 = vor.u32 %v418_v2, %v416_v63  ;;  %v433_v42 = vsel %vm325_vm0, %v428_v18, %v432_v26  ;;  %v448_v55 = vrot.slane %v446_v44, 1  ;;  %v2272_v62 = vrot.slane %v6009_v59, 2 }
  0x7f   : > { %4791 = vmatprep.mubr.msk.bf16.mxu1 %vm498_vm1, %v401_v39  ;;  %v444_v53 = vor.u32 %v442_v43, %v440_v50  ;;  %v2271_v57 = vsel %vm2264_vm3, %v2268_v41, %v2270_v45  ;;  %v458_v3 = vshrl.u32 %v6147_v46, 16  ;;  %v462_v4 = vshll.u32 %v6152_v52, 16 }
  0x80   : > { %4964 = vmatmul.mubr.msk.bf16.gmra.mrb[12].mxu0 %vm498_vm1, %v1869_v51  ;;  %v425_v39 = vsel %vm325_vm0, %v420_v23, %v424_v16  ;;  %v436_v51 = vor.u32 %v434_v40, %v432_v26  ;;  %v456_v59 = vrot.slane %v454_v47, 1  ;;  %v5580_v16 = vld [vmem:[#allocation5 + $0xd8] sm:$0xff]   ;;  %v2276_v26 = vrot.slane %v6036_v27, 2  ;;  %v6231_v47 = vld [vmem:[%s5943_s3 + $0x78] sm:$0xff]  }
  0x81   : > { %4967 = vmatprep.mubr.msk.bf16.mxu0 %vm498_vm1, %v1878_v1  ;;  %v2274_v1 = vrot.slane %v6025_v17, 2  ;;  %v449_v2 = vsel %vm325_vm0, %v444_v53, %v448_v55  ;;  %v464_v14 = vrot.slane %v462_v4, 1  ;;  %v2278_v32 = vrot.slane %v6045_v38, 2 }
  0x82   : > { %v441_v63 = vsel %vm325_vm0, %v436_v51, %v440_v50  ;;  %v460_v12 = vor.u32 %v458_v3, %v456_v59  ;;  %v2282_v43 = vrot.slane %v6081_v24, 2  ;;  %v2284_v51 = vrot.slane %v6091_v35, 2  ;;  %v5583_v24 = vld [vmem:[#allocation5 + $0x48] sm:$0xff]   ;;  %v5590_v35 = vld [vmem:[#allocation5 + $0x50] sm:$0xff]  }
  0x83   : > { %v2275_v15 = vsel %vm2264_vm3, %v2272_v62, %v2274_v1  ;;  %v2277_v41 = vsel %vm2264_vm3, %v2274_v1, %v2276_v26  ;;  %v2279_v27 = vsel %vm2264_vm3, %v2276_v26, %v2278_v32  ;;  %v6254_v3 = vld [vmem:[%s5943_s3 + $0x90] sm:$0xff]   ;;  %vm4093_vm7 = vcmask 781312  }
  0x86   : > { %4792 = vmatmul.mubr.msk.bf16.gmra.mrb[16].mxu1 %vm498_vm1, %v409_v0  ;;  %v450_v0 = vshrl.u32 %v6133_v29, 16 }
  0x87   : > { %4795 = vmatprep.mubr.msk.bf16.mxu1 %vm498_vm1, %v417_v7  ;;  %v6170_v7 = vld [vmem:[%s5943_s3 + $0x90] ss:$0 sps:$4 sm:$0x11]  }
  0x88   : > { %4968 = vmatmul.mubr.msk.bf16.gmra.mrb[16].mxu0 %vm498_vm1, %v1887_v25  ;;  %v452_v17 = vor.u32 %v450_v0, %v448_v55  ;;  %v466_v25 = vshrl.u32 %v6152_v52, 16  ;;  %v470_v18 = vshll.u32 %v6170_v7, 16  ;;  %v6219_v55 = vld [vmem:[%s5943_s3 + $0x70] sm:$0xff]   ;;  %v6250_v0 = vld [vmem:[%s5943_s3 + $0x88] sm:$0xff]  }
  0x89   : > { %4995 = vmatprep.mubr.msk.bf16.mxu0 %vm498_vm1, %v2267_v30  ;;  %v465_v30 = vsel %vm325_vm0, %v460_v12, %v464_v14  ;;  %v2296_v4 = vrot.slane %v6250_v0, 2  ;;  %v6270_v12 = vld [vmem:[%s5943_s3 + $0x98] ss:$0 sps:$4 sm:$0x33]  }
  0x8a   : > { %v457_v23 = vsel %vm325_vm0, %v452_v17, %v456_v59  ;;  %v472_v40 = vrot.slane %v470_v18, 1  ;;  %v2298_v59 = vrot.slane %v6254_v3, 2  ;;  %v6264_v17 = vld [vmem:[%s5943_s3 + $0x14] sm:$0xf] }
  0x8e   : > { %4796 = vmatmul.mubr.msk.bf16.gmra.mrb[20].mxu1 %vm498_vm1, %v425_v39  ;;  %v468_v39 = vor.u32 %v466_v25, %v464_v14  ;;  %v2299_v14 = vsel %vm2264_vm3, %v2296_v4, %v2298_v59 }
  0x8f   : > { %4799 = vmatprep.mubr.msk.bf16.mxu1 %vm498_vm1, %v433_v42  ;;  %v2280_v42 = vrot.slane %v6061_v58, 2 }
  0x90   : > { %4996 = vmatmul.mubr.msk.bf16.vlgmr.msra.gmra.mrb[0].mxu0 %vm498_vm1, %v2269_v28  ;;  %v473_v38 = vsel %vm325_vm0, %v468_v39, %v472_v40  ;;  %v2285_v28 = vsel %vm2264_vm3, %v2282_v43, %v2284_v51  ;;  %v6294_v39 = vld [vmem:[%s5943_s3 + $0x28] sm:$0xff]  }
  0x91   : > { %5032 = vmatpush3.bf16.msra.mxu0 %v5564_v61  ;;  %4999 = vmatprep.mubr.msk.bf16.mxu0 %vm498_vm1, %v2271_v57  ;;  %v2273_v61 = vsel %vm2264_vm3, %v2270_v45, %v2272_v62  ;;  %v2281_v44 = vsel %vm2264_vm3, %v2278_v32, %v2280_v42  ;;  %v6201_v45 = vld [vmem:[%s5943_s3 + $0x60] sm:$0xff]   ;;  %v2283_v50 = vsel %vm2264_vm3, %v2280_v42, %v2282_v43  ;;  %v6310_v43 = vld [vmem:[%s5943_s3 + $0x38] sm:$0xff]  }
  0x92   : > { %5033 = vmatprep.subr.bf16.mxu0 %v5570_v60  ;;  %v2286_v58 = vrot.slane %v6201_v45, 2 }
  0x94   : > { %v2287_v53 = vsel %vm2264_vm3, %v2284_v51, %v2286_v58  ;;  %v2741_v51 = vrot.slane %v6310_v43, 2 }
  0x95   : > { %5034 = vmatpush3.bf16.msra.mxu0 %v5570_v60  ;;  %v6233_v60 = vld [vmem:[#allocation5 + $0x60] sm:$0xff]  }
  0x96   : > { %4800 = vmatmul.mubr.msk.bf16.gmra.mrb[24].mxu1 %vm498_vm1, %v441_v63  ;;  %5035 = vmatprep.subr.bf16.mxu0 %v5574_v8  ;;  %v6237_v63 = vld [vmem:[%s5943_s3 + $0x80] sm:$0xff]  }
  0x97   : > { %4803 = vmatprep.mubr.msk.bf16.mxu1 %vm498_vm1, %v449_v2 }
  0x98   : > { %5000 = vmatmul.mubr.msk.bf16.gmra.mrb[4].mxu0 %vm498_vm1, %v2273_v61 }
  0x99   : > { %5003 = vmatprep.mubr.msk.bf16.mxu0 %vm498_vm1, %v2275_v15  ;;  %5036 = vmatpush3.bf16.msra.mxu0 %v5574_v8  ;;  %v2593_v8 = vld [vmem:[%s5943_s3 + $0x10] sm:$0xc] }
  0x9a   : > { %5037 = vmatprep.subr.bf16.mxu0 %v5580_v16  ;;  %v6274_v15 = vcombine.low %v2593_v8, %v6264_v17 }
  0x9c   : > { %v2732_v25 = vrot.slane %v6274_v15, 2 }
  0x9d   : > { %5038 = vmatpush3.bf16.msra.mxu0 %v5580_v16  ;;  %v6277_v16 = vld [vmem:[%s5943_s3 + $0x18] sm:$0xff]  }
  0x9e   : > { %4804 = vmatmul.mubr.msk.bf16.gmra.mrb[28].mxu1 %vm498_vm1, %v457_v23  ;;  %5075 = vmatprep.subr.bf16.mxu0 %v6185_v33  ;;  %v2300_v23 = vrot.slane %v6270_v12, 2  ;;  %v2733_v18 = vrot.slane %v6277_v16, 2 }
  0x9f   : > { %4807 = vmatprep.mubr.msk.bf16.mxu1 %vm498_vm1, %v465_v30  ;;  %v6290_v30 = vld [vmem:[%s5943_s3 + $0x20] sm:$0xff]  }
  0xa0   : > { %5004 = vmatmul.mubr.msk.bf16.gmra.mrb[8].mxu0 %vm498_vm1, %v2277_v41  ;;  %v2301_v26 = vsel %vm2264_vm3, %v2298_v59, %v2300_v23  ;;  %v2734_v32 = vsel %vm2264_vm3, %v2732_v25, %v2733_v18  ;;  %v2735_v40 = vrot.slane %v6290_v30, 2  ;;  %v2737_v41 = vrot.slane %v6294_v39, 2 }
  0xa1   : > { %5007 = vmatprep.mubr.msk.bf16.mxu0 %vm498_vm1, %v2279_v27 }
  0xa2   : > { %v2736_v27 = vsel %vm2264_vm3, %v2733_v18, %v2735_v40  ;;  %v2738_v42 = vsel %vm2264_vm3, %v2735_v40, %v2737_v41  ;;  %v5625_v18 = vld [vmem:[%s5943_s3 + $0x10] sm:$0xff]   ;;  %v6362_v40 = vld [vmem:[%s5943_s3 + $0x60] sm:$0xff]  }
  0xa6   : > { %4808 = vmatmul.mubr.msk.bf16.gmra.mrb[32].mxu1 %vm498_vm1, %v473_v38  ;;  %v6306_v38 = vld [vmem:[%s5943_s3 + $0x30] sm:$0xff]  }
  0xa7   : > { %4819 = vmatprep.mubr.msk.bf16.mxu1 %vm498_vm1, %v5955_v10  ;;  %v6213_v10 = vld [vmem:[%s5943_s3 + $0x68] sm:$0xff]  }
  0xa8   : > { %5008 = vmatmul.mubr.msk.bf16.gmra.mrb[12].mxu0 %vm498_vm1, %v2281_v44  ;;  %v5595_v44 = vld [vmem:[#allocation5 + $0xe8] sm:$0xff]  }
  0xa9   : > { %5011 = vmatprep.mubr.msk.bf16.mxu0 %vm498_vm1, %v2283_v50  ;;  %v2739_v50 = vrot.slane %v6306_v38, 2 }
  0xae   : > { %4820 = vmatmul.mubr.msk.bf16.vlgmr.msra.gmra.mrb[0].mxu1 %vm498_vm1, %v5958_v11  ;;  %v2288_v11 = vrot.slane %v6213_v10, 2 }
  0xaf   : > { %4823 = vmatprep.mubr.msk.bf16.mxu1 %vm498_vm1, %v5972_v19  ;;  %4856 = vmatpush3.bf16.msra.mxu1 %v6155_v56  ;;  %v5596_v19 = vld [vmem:[#allocation5 + $0x58] sm:$0xff]   ;;  %v2290_v56 = vrot.slane %v6219_v55, 2 }
  0xb0   : > { %4857 = vmatprep.subr.bf16.mxu1 %v5583_v24  ;;  %5012 = vmatmul.mubr.msk.bf16.gmra.mrb[16].mxu0 %vm498_vm1, %v2285_v28  ;;  %v2289_v57 = vsel %vm2264_vm3, %v2286_v58, %v2288_v11  ;;  %v5602_v58 = vld [vmem:[#allocation5 + $0xf0] sm:$0xff]  }
  0xb1   : > { %5015 = vmatprep.mubr.msk.bf16.mxu0 %vm498_vm1, %v2287_v53  ;;  %v2291_v62 = vsel %vm2264_vm3, %v2288_v11, %v2290_v56  ;;  %v6323_v28 = vld [vmem:[%s5943_s3 + $0x40] sm:$0xff]  }
  0xb2   : > { %v967_v53 = vld [vmem:[%s5943_s3] sm:$0xe]  ;;  %v5608_v11 = vld [vmem:[#allocation5 + $0xf8] sm:$0xff]  }
  0xb3   : > { %4858 = vmatpush3.bf16.msra.mxu1 %v5583_v24  ;;  %v2740_v24 = vsel %vm2264_vm3, %v2737_v41, %v2739_v50  ;;  %v5626_v41 = vld [vmem:[%s5943_s3 + $0x18] sm:$0xff]  }
  0xb4   : > { %4859 = vmatprep.subr.bf16.mxu1 %v5590_v35 }
  0xb6   : > { %4824 = vmatmul.mubr.msk.bf16.gmra.mrb[4].mxu1 %vm498_vm1, %v5986_v34  ;;  %v2292_v34 = vrot.slane %v6231_v47, 2 }
  0xb7   : > { %4827 = vmatprep.mubr.msk.bf16.mxu1 %vm498_vm1, %v5999_v48  ;;  %4860 = vmatpush3.bf16.msra.mxu1 %v5590_v35  ;;  %v2294_v48 = vrot.slane %v6237_v63, 2  ;;  %v6327_v35 = vld [vmem:[%s5943_s3 + $0x48] sm:$0xff]  }
  0xb8   : > { %4861 = vmatprep.subr.bf16.mxu1 %v5596_v19  ;;  %5016 = vmatmul.mubr.msk.bf16.gmra.mrb[20].mxu0 %vm498_vm1, %v2289_v57  ;;  %v2293_v1 = vsel %vm2264_vm3, %v2290_v56, %v2292_v34  ;;  %v5623_v56 = vld [vmem:[%s5943_s3 + $0x4] sm:$0xf] }
  0xb9   : > { %5019 = vmatprep.mubr.msk.bf16.mxu0 %vm498_vm1, %v2291_v62  ;;  %v2295_v2 = vsel %vm2264_vm3, %v2292_v34, %v2294_v48  ;;  %v2297_v61 = vsel %vm2264_vm3, %v2294_v48, %v2296_v4  ;;  %v4297_v57 = vcombine.low %v967_v53, %v5623_v56  ;;  %v2745_v62 = vrot.slane %v6327_v35, 2  ;;  %v6335_v34 = vld [vmem:[#allocation5 + $0x100] sm:$0xff]   ;;  %v5627_v53 = vld [vmem:[%s5943_s3 + $0x20] sm:$0xff]  }
  0xba   : > { %v5624_v4 = vld [vmem:[%s5943_s3 + $0x8] sm:$0xff]   ;;  %v6381_v56 = vld [vmem:[%s5943_s3 + $0x70] sm:$0xff]  }
  0xbb   : > { %4862 = vmatpush3.bf16.msra.mxu1 %v5596_v19  ;;  %v2743_v19 = vrot.slane %v6323_v28, 2  ;;  %v982_v59 = vrot.slane %v5624_v4, 1 }
  0xbc   : > { %4899 = vmatprep.subr.bf16.mxu1 %v6233_v60 }
  0xbd   : > { %v2744_v48 = vsel %vm2264_vm3, %v2741_v51, %v2743_v19  ;;  %v2746_v8 = vsel %vm2264_vm3, %v2743_v19, %v2745_v62 }
  0xbe   : > { %4828 = vmatmul.mubr.msk.bf16.gmra.mrb[8].mxu1 %vm498_vm1, %v6018_v6 }
  0xbf   : > { %4831 = vmatprep.mubr.msk.bf16.mxu1 %vm498_vm1, %v6030_v22 }
  0xc0   : > { %5020 = vmatmul.mubr.msk.bf16.gmra.mrb[24].mxu0 %vm498_vm1, %v2293_v1  ;;  %v6343_v1 = vld [vmem:[%s5943_s3 + $0x50] sm:$0xff]  }
  0xc1   : > { %5023 = vmatprep.mubr.msk.bf16.mxu0 %vm498_vm1, %v2295_v2  ;;  %v981_v2 = vrot.slane %v4297_v57, 1  ;;  %v990_v57 = vrot.slane %v6018_v6, 1  ;;  %v5617_v6 = vld [vmem:[#allocation5 + $0x78] sm:$0xff]  }
  0xc3   : > { %v983_v23 = vsel %vm980_vm4, %v981_v2, %v982_v59  ;;  %v6386_v2 = vld [vmem:[%s5943_s3 + $0x78] sm:$0xff]  }
  0xc6   : > { %4832 = vmatmul.mubr.msk.bf16.gmra.mrb[12].mxu1 %vm498_vm1, %v6042_v37 }
  0xc7   : > { %4835 = vmatprep.mubr.msk.bf16.mxu1 %vm498_vm1, %v6056_v49 }
  0xc8   : > { %5024 = vmatmul.mubr.msk.bf16.gmra.mrb[28].mxu0 %vm498_vm1, %v2297_v61  ;;  %v6348_v61 = vld [vmem:[%s5943_s3 + $0x58] sm:$0xff]  }
  0xc9   : > { %5027 = vmatprep.mubr.msk.bf16.mxu0 %vm498_vm1, %v2299_v14  ;;  %v2747_v14 = vrot.slane %v6343_v1, 2  ;;  %v2749_v25 = vrot.slane %v6348_v61, 2 }
  0xce   : > { %4836 = vmatmul.mubr.msk.bf16.gmra.mrb[16].mxu1 %vm498_vm1, %v6073_v9 }
  0xcf   : > { %4839 = vmatprep.mubr.msk.bf16.mxu1 %vm498_vm1, %v6086_v31 }
  0xd0   : > { %5028 = vmatmul.mubr.msk.bf16.gmra.mrb[32].mxu0 %vm498_vm1, %v2301_v26  ;;  %v984_v26 = vrot.slane %v5625_v18, 1  ;;  %v994_v18 = vrot.slane %v6042_v37, 1 }
  0xd1   : > { %5039 = vmatprep.mubr.msk.bf16.mxu0 %vm498_vm1, %v2734_v32  ;;  %v2748_v32 = vsel %vm2264_vm3, %v2745_v62, %v2747_v14  ;;  %v5615_v62 = vld [vmem:[#allocation5 + $0x70] sm:$0xff]  }
  0xd6   : > { %4840 = vmatmul.mubr.msk.bf16.gmra.mrb[20].mxu1 %vm498_vm1, %v6094_v36 }
  0xd7   : > { %4843 = vmatprep.mubr.msk.bf16.mxu1 %vm498_vm1, %v6107_v54 }
  0xd8   : > { %5040 = vmatmul.mubr.msk.bf16.vlgmr.msra.gmra.mrb[0].mxu0 %vm498_vm1, %v2736_v27  ;;  %v986_v27 = vrot.slane %v5626_v41, 1 }
  0xd9   : > { %5076 = vmatpush3.bf16.msra.mxu0 %v6185_v33  ;;  %5043 = vmatprep.mubr.msk.bf16.mxu0 %vm498_vm1, %v2738_v42  ;;  %v2742_v33 = vsel %vm2264_vm3, %v2739_v50, %v2741_v51  ;;  %v2750_v42 = vsel %vm2264_vm3, %v2747_v14, %v2749_v25  ;;  %v985_v50 = vsel %vm980_vm4, %v982_v59, %v984_v26  ;;  %v2751_v51 = vrot.slane %v6362_v40, 2 }
  0xda   : > { %5077 = vmatprep.subr.bf16.mxu0 %v5595_v44  ;;  %v992_v14 = vrot.slane %v6030_v22, 1 }
  0xdb   : > { %v2752_v19 = vsel %vm2264_vm3, %v2749_v25, %v2751_v51  ;;  %v6399_v25 = vld [vmem:[%s5943_s3 + $0x80] sm:$0xff]  }
  0xdc   : > { %v993_v41 = vsel %vm980_vm4, %v990_v57, %v992_v14  ;;  %v2759_v22 = vrot.slane %v6399_v25, 2 }
  0xdd   : > { %5078 = vmatpush3.bf16.msra.mxu0 %v5595_v44  ;;  %v6367_v44 = vld [vmem:[%s5943_s3 + $0x68] sm:$0xff]  }
  0xde   : > { %4844 = vmatmul.mubr.msk.bf16.gmra.mrb[24].mxu1 %vm498_vm1, %v6116_v5  ;;  %5079 = vmatprep.subr.bf16.mxu0 %v5602_v58 }
  0xdf   : > { %4847 = vmatprep.mubr.msk.bf16.mxu1 %vm498_vm1, %v6127_v21 }
  0xe0   : > { %5044 = vmatmul.mubr.msk.bf16.gmra.mrb[4].mxu0 %vm498_vm1, %v2740_v24  ;;  %v5611_v24 = vld [vmem:[#allocation5 + $0x68] sm:$0xff]  }
  0xe1   : > { %5047 = vmatprep.mubr.msk.bf16.mxu0 %vm498_vm1, %v2742_v33  ;;  %5080 = vmatpush3.bf16.msra.mxu0 %v5602_v58  ;;  %v987_v58 = vsel %vm980_vm4, %v984_v26, %v986_v27  ;;  %v2753_v33 = vrot.slane %v6367_v44, 2 }
  0xe2   : > { %5081 = vmatprep.subr.bf16.mxu0 %v5608_v11 }
  0xe5   : > { %5082 = vmatpush3.bf16.msra.mxu0 %v5608_v11  ;;  %v988_v11 = vrot.slane %v5627_v53, 1 }
  0xe6   : > { %4848 = vmatmul.mubr.msk.bf16.gmra.mrb[28].mxu1 %vm498_vm1, %v6133_v29  ;;  %5119 = vmatprep.subr.bf16.mxu0 %v6335_v34 }
  0xe7   : > { %4851 = vmatprep.mubr.msk.bf16.mxu1 %vm498_vm1, %v6147_v46  ;;  %v989_v4 = vsel %vm980_vm4, %v986_v27, %v988_v11  ;;  %v991_v59 = vsel %vm980_vm4, %v988_v11, %v990_v57  ;;  %v995_v27 = vsel %vm980_vm4, %v992_v14, %v994_v18  ;;  %v1002_v14 = vrot.slane %v6094_v36, 1 }
  0xe8   : > { %5048 = vmatmul.mubr.msk.bf16.gmra.mrb[8].mxu0 %vm498_vm1, %v2744_v48  ;;  %v2754_v48 = vsel %vm2264_vm3, %v2751_v51, %v2753_v33  ;;  %v3101_v36 = vshrl.u32 %v6294_v39, 16 }
  0xe9   : > { %5051 = vmatprep.mubr.msk.bf16.mxu0 %vm498_vm1, %v2746_v8  ;;  %v2757_v8 = vrot.slane %v6386_v2, 2 }
  0xeb   : > { %v2760_v51 = vsel %vm2264_vm3, %v2757_v8, %v2759_v22 }
  0xee   : > { %4852 = vmatmul.mubr.msk.bf16.gmra.mrb[32].mxu1 %vm498_vm1, %v6152_v52 }
  0xef   : > { %4863 = vmatprep.mubr.msk.bf16.mxu1 %vm498_vm1, %v983_v23 }
  0xf0   : > { %5052 = vmatmul.mubr.msk.bf16.gmra.mrb[12].mxu0 %vm498_vm1, %v2748_v32  ;;  %v6404_v32 = vld [vmem:[%s5943_s3 + $0x88] sm:$0xff]  }
  0xf1   : > { %5055 = vmatprep.mubr.msk.bf16.mxu0 %vm498_vm1, %v2750_v42  ;;  %v6411_v42 = vld [vmem:[#allocation5 + $0x80] sm:$0xff]   ;;  %v2761_v37 = vrot.slane %v6404_v32, 2 }
  0xf3   : > { %v2762_v53 = vsel %vm2264_vm3, %v2759_v22, %v2761_v37 }
  0xf6   : > { %4864 = vmatmul.mubr.msk.bf16.vlgmr.msra.gmra.mrb[0].mxu1 %vm498_vm1, %v985_v50  ;;  %v996_v50 = vrot.slane %v6056_v49, 1 }
  0xf7   : > { %4867 = vmatprep.mubr.msk.bf16.mxu1 %vm498_vm1, %v987_v58  ;;  %4900 = vmatpush3.bf16.msra.mxu1 %v6233_v60  ;;  %v2755_v60 = vrot.slane %v6381_v56, 2  ;;  %v6420_v58 = vld [vmem:[%s5943_s3 + $0x90] sm:$0xff]  }
  0xf8   : > { %4901 = vmatprep.subr.bf16.mxu1 %v5611_v24  ;;  %5056 = vmatmul.mubr.msk.bf16.gmra.mrb[16].mxu0 %vm498_vm1, %v2752_v19  ;;  %v997_v11 = vsel %vm980_vm4, %v994_v18, %v996_v50  ;;  %v2763_v19 = vrot.slane %v6420_v58, 2 }
  0xf9   : > { %5059 = vmatprep.mubr.msk.bf16.mxu0 %vm498_vm1, %v2754_v48  ;;  %v2756_v23 = vsel %vm2264_vm3, %v2753_v33, %v2755_v60  ;;  %v2758_v26 = vsel %vm2264_vm3, %v2755_v60, %v2757_v8  ;;  %v6424_v33 = vld [vmem:[%s5943_s3 + $0x98] sm:$0xff]   ;;  %v3083_v48 = vshrl.u32 %v6277_v16, 16  ;;  %v1000_v60 = vrot.slane %v6086_v31, 1  ;;  %v5613_v8 = vld [vmem:[%s5943_s3 + $0xa0] ss:$0 sps:$4 sm:$0x33]  }
  0xfa   : > { %v2765_v57 = vrot.slane %v6424_v33, 2  ;;  %v2767_v22 = vrot.slane %v5613_v8, 2 }
  0xfb   : > { %4902 = vmatpush3.bf16.msra.mxu1 %v5611_v24  ;;  %v998_v24 = vrot.slane %v6073_v9, 1  ;;  %v3078_v9 = vshll.u32 %v6274_v15, 16  ;;  %v1003_v31 = vsel %vm980_vm4, %v1000_v60, %v1002_v14 }
  0xfc   : > { %4903 = vmatprep.subr.bf16.mxu1 %v5615_v62 }
  0xfd   : > { %v999_v49 = vsel %vm980_vm4, %v996_v50, %v998_v24  ;;  %v3080_v18 = vrot.slane %v3078_v9, 3 }
  0xfe   : > { %4868 = vmatmul.mubr.msk.bf16.gmra.mrb[4].mxu1 %vm498_vm1, %v989_v4  ;;  %v3086_v4 = vshll.u32 %v6277_v16, 16 }
  0xff   : > { %4871 = vmatprep.mubr.msk.bf16.mxu1 %vm498_vm1, %v991_v59  ;;  %4904 = vmatpush3.bf16.msra.mxu1 %v5615_v62  ;;  %v3075_v62 = vshrl.u32 %v6274_v15, 16  ;;  %v2764_v59 = vsel %vm2264_vm3, %v2761_v37, %v2763_v19  ;;  %v3085_v15 = vrot.slane %v3083_v48, 2  ;;  %v3095_v37 = vshll.u32 %v6290_v30, 16 }
 0x100   : > { %4905 = vmatprep.subr.bf16.mxu1 %v5617_v6  ;;  %5060 = vmatmul.mubr.msk.bf16.gmra.mrb[20].mxu0 %vm498_vm1, %v2756_v23  ;;  %v3103_v48 = vrot.slane %v3101_v36, 2  ;;  %v3128_v36 = vshrl.u32 %v6323_v28, 16 }
 0x101   : > { %5063 = vmatprep.mubr.msk.bf16.mxu0 %vm498_vm1, %v2758_v26  ;;  %v3077_v23 = vrot.slane %v3075_v62, 2  ;;  %v3088_v26 = vrot.slane %v3086_v4, 3  ;;  %v1006_v62 = vrot.slane %v6116_v5, 1  ;;  %v3119_v5 = vshrl.u32 %v6310_v43, 16 }
 0x103   : > { %4906 = vmatpush3.bf16.msra.mxu1 %v5617_v6  ;;  %v2766_v6 = vsel %vm2264_vm3, %v2763_v19, %v2765_v57  ;;  %v3081_v50 = vor.u32 %v3080_v18, %v3077_v23  ;;  %v3122_v23 = vshll.u32 %v6310_v43, 16 }
 0x104   : > { %5163 = vmatprep.subr.bf16.mxu1 %v6411_v42 }
 0x106   : > { %4872 = vmatmul.mubr.msk.bf16.gmra.mrb[8].mxu1 %vm498_vm1, %v993_v41  ;;  %v1001_v41 = vsel %vm980_vm4, %v998_v24, %v1000_v60  ;;  %v1004_v24 = vrot.slane %v6107_v54, 1  ;;  %v3110_v54 = vshrl.u32 %v6306_v38, 16 }
 0x107   : > { %4875 = vmatprep.mubr.msk.bf16.mxu1 %vm498_vm1, %v995_v27  ;;  %v3092_v27 = vshrl.u32 %v6290_v30, 16 }
 0x108   : > { %5064 = vmatmul.mubr.msk.bf16.gmra.mrb[24].mxu0 %vm498_vm1, %v2760_v51  ;;  %v3089_v51 = vor.u32 %v3088_v26, %v3085_v15  ;;  %v1005_v60 = vsel %vm980_vm4, %v1002_v14, %v1004_v24  ;;  %v1008_v14 = vrot.slane %v6127_v21, 1  ;;  %v3112_v15 = vrot.slane %v3110_v54, 2 }
 0x109   : > { %5067 = vmatprep.mubr.msk.bf16.mxu0 %vm498_vm1, %v2762_v53  ;;  %v3104_v53 = vshll.u32 %v6294_v39, 16  ;;  %v3094_v19 = vrot.slane %v3092_v27, 2  ;;  %v3124_v27 = vrot.slane %v3122_v23, 3  ;;  %v3155_v23 = vshrl.u32 %v6348_v61, 16 }
 0x10a   : > { %v3090_v9 = vsel %vm3073_vm5, %v3081_v50, %v3089_v51  ;;  %v1009_v50 = vsel %vm980_vm4, %v1006_v62, %v1008_v14 }
 0x10b   : > { %v3106_v4 = vrot.slane %v3104_v53, 3 }
 0x10d   : > { %v3107_v8 = vor.u32 %v3106_v4, %v3103_v48  ;;  %v1014_v48 = vrot.slane %v6152_v52, 1  ;;  %v3149_v52 = vshll.u32 %v6343_v1, 16 }
 0x10e   : > { %4876 = vmatmul.mubr.msk.bf16.gmra.mrb[12].mxu1 %vm498_vm1, %v997_v11  ;;  %v2768_v11 = vsel %vm2264_vm3, %v2765_v57, %v2767_v22  ;;  %v3113_v57 = vshll.u32 %v6306_v38, 16 }
 0x10f   : > { %4879 = vmatprep.mubr.msk.bf16.mxu1 %vm498_vm1, %v999_v49  ;;  %v3097_v49 = vrot.slane %v3095_v37, 3  ;;  %v5616_v37 = vld [vmem:[#allocation5 + $0x108] sm:$0xff]  }
 0x110   : > { %5068 = vmatmul.mubr.msk.bf16.gmra.mrb[28].mxu0 %vm498_vm1, %v2764_v59  ;;  %v3115_v26 = vrot.slane %v3113_v57, 3  ;;  %v3146_v57 = vshrl.u32 %v6343_v1, 16 }
 0x111   : > { %5071 = vmatprep.mubr.msk.bf16.mxu0 %vm498_vm1, %v2766_v6  ;;  %v3098_v59 = vor.u32 %v3097_v49, %v3094_v19  ;;  %v1007_v6 = vsel %vm980_vm4, %v1004_v24, %v1006_v62  ;;  %v3137_v24 = vshrl.u32 %v6327_v35, 16  ;;  %v5618_v19 = vld [vmem:[#allocation5 + $0x110] sm:$0xff]   ;;  %v3130_v62 = vrot.slane %v3128_v36, 2 }
 0x112   : > { %v3116_v21 = vor.u32 %v3115_v26, %v3112_v15  ;;  %v3148_v15 = vrot.slane %v3146_v57, 2 }
 0x113   : > { %v3099_v18 = vsel %vm3073_vm5, %v3089_v51, %v3098_v59  ;;  %v3108_v22 = vsel %vm3073_vm5, %v3098_v59, %v3107_v8 }
 0x114   : > { %v3117_v49 = vsel %vm3073_vm5, %v3107_v8, %v3116_v21 }
 0x116   : > { %4880 = vmatmul.mubr.msk.bf16.gmra.mrb[16].mxu1 %vm498_vm1, %v1001_v41  ;;  %v1010_v41 = vrot.slane %v6133_v29, 1  ;;  %v3131_v29 = vshll.u32 %v6323_v28, 16 }
 0x117   : > { %4883 = vmatprep.mubr.msk.bf16.mxu1 %vm498_vm1, %v1003_v31  ;;  %v3121_v31 = vrot.slane %v3119_v5, 2 }
 0x118   : > { %5072 = vmatmul.mubr.msk.bf16.gmra.mrb[32].mxu0 %vm498_vm1, %v2768_v11  ;;  %v1011_v51 = vsel %vm980_vm4, %v1008_v14, %v1010_v41  ;;  %v3140_v11 = vshll.u32 %v6327_v35, 16  ;;  %v3158_v14 = vshll.u32 %v6348_v61, 16 }
 0x119   : > { %5083 = vmatprep.mubr.msk.bf16.mxu0 %vm498_vm1, %v3090_v9  ;;  %v3125_v53 = vor.u32 %v3124_v27, %v3121_v31  ;;  %v3133_v9 = vrot.slane %v3131_v29, 3  ;;  %v5629_v31 = vld [vmem:[%s5943_s3 + $0x10] sm:$0xff]   ;;  %v3167_v29 = vshll.u32 %v6362_v40, 16 }
 0x11a   : > { %v3142_v59 = vrot.slane %v3140_v11, 3  ;;  %v1449_v27 = vrot.slane %v5629_v31, 1  ;;  %v3176_v11 = vshll.u32 %v6367_v44, 16  ;;  %v5633_v31 = vld [vmem:[%s5943_s3 + $0x30] sm:$0xff]  }
 0x11b   : > { %v3126_v4 = vsel %vm3073_vm5, %v3116_v21, %v3125_v53  ;;  %v3160_v21 = vrot.slane %v3158_v14, 3  ;;  %v3194_v14 = vshll.u32 %v6386_v2, 16 }
 0x11e   : > { %4884 = vmatmul.mubr.msk.bf16.gmra.mrb[20].mxu1 %vm498_vm1, %v1005_v60  ;;  %v3139_v60 = vrot.slane %v3137_v24, 2  ;;  %v3173_v24 = vshrl.u32 %v6367_v44, 16 }
 0x11f   : > { %4887 = vmatprep.mubr.msk.bf16.mxu1 %vm498_vm1, %v1007_v6  ;;  %v5619_v6 = vld [vmem:[#allocation5 + $0x118] sm:$0xff]  }
 0x120   : > { %5084 = vmatmul.mubr.msk.bf16.vlgmr.msra.gmra.mrb[0].mxu0 %vm498_vm1, %v3099_v18  ;;  %v3143_v5 = vor.u32 %v3142_v59, %v3139_v60  ;;  %v1016_v18 = vrot.slane %v6170_v7, 1  ;;  %v3175_v59 = vrot.slane %v3173_v24, 2 }
 0x121   : > { %5120 = vmatpush3.bf16.msra.mxu0 %v6335_v34  ;;  %5087 = vmatprep.mubr.msk.bf16.mxu0 %vm498_vm1, %v3108_v22  ;;  %v1012_v34 = vrot.slane %v6147_v46, 1  ;;  %v3134_v46 = vor.u32 %v3133_v9, %v3130_v62  ;;  %v1448_v22 = vrot.slane %v5975_v20, 1  ;;  %v3164_v20 = vshrl.u32 %v6362_v40, 16 }
 0x122   : > { %5121 = vmatprep.subr.bf16.mxu0 %v5616_v37  ;;  %v3169_v9 = vrot.slane %v3167_v29, 3  ;;  %v3203_v29 = vshll.u32 %v6399_v25, 16 }
 0x123   : > { %v1013_v54 = vsel %vm980_vm4, %v1010_v41, %v1012_v34  ;;  %v1015_v8 = vsel %vm980_vm4, %v1012_v34, %v1014_v48  ;;  %v3135_v26 = vsel %vm3073_vm5, %v3125_v53, %v3134_v46  ;;  %v3151_v41 = vrot.slane %v3149_v52, 3 }
 0x124   : > { %v1450_v36 = vsel %vm980_vm4, %v1448_v22, %v1449_v27  ;;  %v3166_v62 = vrot.slane %v3164_v20, 2  ;;  %v3185_v52 = vshll.u32 %v6381_v56, 16  ;;  %v3200_v20 = vshrl.u32 %v6399_v25, 16 }
 0x125   : > { %5122 = vmatpush3.bf16.msra.mxu0 %v5616_v37  ;;  %v3144_v37 = vsel %vm3073_vm5, %v3134_v46, %v3143_v5  ;;  %v3152_v7 = vor.u32 %v3151_v41, %v3148_v15 }
 0x126   : > { %4888 = vmatmul.mubr.msk.bf16.gmra.mrb[24].mxu1 %vm498_vm1, %v1009_v50  ;;  %5123 = vmatprep.subr.bf16.mxu0 %v5618_v19  ;;  %v3157_v50 = vrot.slane %v3155_v23, 2  ;;  %v3170_v57 = vor.u32 %v3169_v9, %v3166_v62  ;;  %v3191_v23 = vshrl.u32 %v6386_v2, 16  ;;  %v3187_v22 = vrot.slane %v3185_v52, 3 }
 0x127   : > { %4891 = vmatprep.mubr.msk.bf16.mxu1 %vm498_vm1, %v1011_v51  ;;  %v1017_v51 = vsel %vm980_vm4, %v1014_v48, %v1016_v18  ;;  %v5631_v48 = vld [vmem:[%s5943_s3 + $0x20] sm:$0xff]   ;;  %v5632_v18 = vld [vmem:[%s5943_s3 + $0x28] sm:$0xff]   ;;  %v3202_v9 = vrot.slane %v3200_v20, 2 }
 0x128   : > { %5088 = vmatmul.mubr.msk.bf16.gmra.mrb[4].mxu0 %vm498_vm1, %v3117_v49  ;;  %v3161_v53 = vor.u32 %v3160_v21, %v3157_v50  ;;  %v3153_v49 = vsel %vm3073_vm5, %v3143_v5, %v3152_v7  ;;  %v1455_v15 = vrot.slane %v5632_v18, 1  ;;  %v3193_v21 = vrot.slane %v3191_v23, 2 }
 0x129   : > { %5091 = vmatprep.mubr.msk.bf16.mxu0 %vm498_vm1, %v3126_v4  ;;  %5124 = vmatpush3.bf16.msra.mxu0 %v5618_v19  ;;  %v5630_v19 = vld [vmem:[%s5943_s3 + $0x18] sm:$0xff]   ;;  %v1453_v4 = vrot.slane %v5631_v48, 1  ;;  %v3205_v48 = vrot.slane %v3203_v29, 3  ;;  %v3221_v23 = vshll.u32 %v6420_v58, 16  ;;  %v3227_v18 = vshrl.u32 %v6424_v33, 16 }
 0x12a   : > { %5125 = vmatprep.subr.bf16.mxu0 %v5619_v6  ;;  %v1451_v34 = vrot.slane %v5630_v19, 1  ;;  %v3162_v60 = vsel %vm3073_vm5, %v3152_v7, %v3161_v53  ;;  %v3212_v19 = vshll.u32 %v6404_v32, 16 }
 0x12b   : > { %v1456_v7 = vsel %vm980_vm4, %v1453_v4, %v1455_v15 }
 0x12c   : > { %v1454_v46 = vsel %vm980_vm4, %v1451_v34, %v1453_v4  ;;  %v5637_v4 = vld [vmem:[%s5943_s3 + $0x40] sm:$0xff]  }
 0x12d   : > { %5126 = vmatpush3.bf16.msra.mxu0 %v5619_v6  ;;  %v3178_v6 = vrot.slane %v3176_v11, 3  ;;  %v3209_v11 = vshrl.u32 %v6404_v32, 16 }
 0x12e   : > { %4892 = vmatmul.mubr.msk.bf16.gmra.mrb[28].mxu1 %vm498_vm1, %v1013_v54  ;;  %v1452_v54 = vsel %vm980_vm4, %v1449_v27, %v1451_v34  ;;  %v1457_v27 = vrot.slane %v5633_v31, 1  ;;  %v5636_v34 = vld [vmem:[%s5943_s3 + $0x38] sm:$0xff]  }
 0x12f   : > { %4895 = vmatprep.mubr.msk.bf16.mxu1 %vm498_vm1, %v1015_v8  ;;  %v3182_v8 = vshrl.u32 %v6381_v56, 16  ;;  %v3179_v5 = vor.u32 %v3178_v6, %v3175_v59  ;;  %v5638_v59 = vld [vmem:[#allocation5 + $0x98] sm:$0xff]  }
 0x130   : > { %5092 = vmatmul.mubr.msk.bf16.gmra.mrb[8].mxu0 %vm498_vm1, %v3135_v26  ;;  %v3171_v26 = vsel %vm3073_vm5, %v3161_v53, %v3170_v57  ;;  %v5635_v53 = vld [vmem:[#allocation5 + $0x90] sm:$0xff]  }
 0x131   : > { %5095 = vmatprep.mubr.msk.bf16.mxu0 %vm498_vm1, %v3144_v37  ;;  %v3184_v41 = vrot.slane %v3182_v8, 2  ;;  %v5634_v37 = vld [vmem:[#allocation5 + $0x88] sm:$0xff]   ;;  %v3180_v50 = vsel %vm3073_vm5, %v3170_v57, %v3179_v5  ;;  %v3214_v57 = vrot.slane %v3212_v19, 3  ;;  %v3206_v8 = vor.u32 %v3205_v48, %v3202_v9  ;;  %v3535_v19 = vld [vmem:[%s5943_s3 + $0x10] sm:$0x8] }
 0x136   : > { %4896 = vmatmul.mubr.msk.bf16.gmra.mrb[32].mxu1 %vm498_vm1, %v1017_v51  ;;  %v3196_v51 = vrot.slane %v3194_v14, 3 }
 0x137   : > { %4907 = vmatprep.mubr.msk.bf16.mxu1 %vm498_vm1, %v1450_v36  ;;  %v1458_v36 = vsel %vm980_vm4, %v1455_v15, %v1457_v27  ;;  %v3230_v15 = vshll.u32 %v6424_v33, 16 }
 0x138   : > { %5096 = vmatmul.mubr.msk.bf16.gmra.mrb[12].mxu0 %vm498_vm1, %v3153_v49  ;;  %v3197_v24 = vor.u32 %v3196_v51, %v3193_v21  ;;  %v1459_v49 = vrot.slane %v5636_v34, 1  ;;  %v6559_v21 = vld [vmem:[%s5943_s3 + $0xa0] ss:$0 sps:$4 sm:$0x77]   ;;  %v5641_v34 = vld [vmem:[%s5943_s3 + $0x58] sm:$0xff]  }
 0x139   : > { %5099 = vmatprep.mubr.msk.bf16.mxu0 %vm498_vm1, %v3162_v60  ;;  %v1461_v60 = vrot.slane %v5637_v4, 1  ;;  %v1469_v4 = vrot.slane %v6201_v45, 1 }
 0x13b   : > { %v1462_v52 = vsel %vm980_vm4, %v1459_v49, %v1461_v60 }
 0x13e   : > { %4908 = vmatmul.mubr.msk.bf16.vlgmr.msra.gmra.mrb[0].mxu1 %vm498_vm1, %v1452_v54  ;;  %v3211_v54 = vrot.slane %v3209_v11, 2 }
 0x13f   : > { %4911 = vmatprep.mubr.msk.bf16.mxu1 %vm498_vm1, %v1454_v46  ;;  %5167 = vmatpush3.bf16.msra.mxu1 %v6411_v42  ;;  %v3188_v42 = vor.u32 %v3187_v22, %v3184_v41  ;;  %v1460_v46 = vsel %vm980_vm4, %v1457_v27, %v1459_v49  ;;  %v3207_v22 = vsel %vm3073_vm5, %v3197_v24, %v3206_v8  ;;  %v3223_v27 = vrot.slane %v3221_v23, 3 }
 0x140   : > { %5164 = vmatprep.subr.bf16.mxu1 %v5634_v37  ;;  %5100 = vmatmul.mubr.msk.bf16.gmra.mrb[16].mxu0 %vm498_vm1, %v3171_v26  ;;  %v3215_v14 = vor.u32 %v3214_v57, %v3211_v54  ;;  %v5639_v26 = vld [vmem:[%s5943_s3 + $0x48] sm:$0xff]   ;;  %v1467_v49 = vrot.slane %v5641_v34, 1  ;;  %v1898_v34 = vshrl.u32 %v6213_v10, 16 }
 0x141   : > { %5103 = vmatprep.mubr.msk.bf16.mxu0 %vm498_vm1, %v3180_v50  ;;  %v3189_v62 = vsel %vm3073_vm5, %v3179_v5, %v3188_v42  ;;  %v3198_v6 = vsel %vm3073_vm5, %v3188_v42, %v3197_v24  ;;  %v3218_v5 = vshrl.u32 %v6420_v58, 16  ;;  %v1463_v41 = vrot.slane %v5639_v26, 1 }
 0x142   : > { %v3216_v51 = vsel %vm3073_vm5, %v3206_v8, %v3215_v14  ;;  %v3232_v42 = vrot.slane %v3230_v15, 3  ;;  %v3239_v24 = vshll.u32 %v6559_v21, 16  ;;  %v1470_v57 = vsel %vm980_vm4, %v1467_v49, %v1469_v4 }
 0x143   : > { %5168 = vmatpush3.bf16.msra.mxu1 %v5634_v37  ;;  %v3220_v31 = vrot.slane %v3218_v5, 2  ;;  %v5640_v37 = vld [vmem:[%s5943_s3 + $0x50] sm:$0xff]   ;;  %v3550_v8 = vrot.slane %v6277_v16, 3  ;;  %v1473_v5 = vrot.slane %v6219_v55, 1  ;;  %v3552_v16 = vrot.slane %v6290_v30, 3 }
 0x144   : > { %5165 = vmatprep.subr.bf16.mxu1 %v5635_v53  ;;  %v1465_v50 = vrot.slane %v5640_v37, 1  ;;  %v3241_v48 = vrot.slane %v3239_v24, 3  ;;  %v3554_v15 = vrot.slane %v6294_v39, 3  ;;  %v1475_v26 = vrot.slane %v6231_v47, 1 }
 0x145   : > { %v3224_v20 = vor.u32 %v3223_v27, %v3220_v31  ;;  %v3556_v39 = vrot.slane %v6306_v38, 3  ;;  %v3558_v37 = vrot.slane %v6310_v43, 3 }
 0x146   : > { %4912 = vmatmul.mubr.msk.bf16.gmra.mrb[4].mxu1 %vm498_vm1, %v1456_v7  ;;  %v3229_v7 = vrot.slane %v3227_v18, 2  ;;  %v1466_v29 = vsel %vm980_vm4, %v1463_v41, %v1465_v50  ;;  %v3555_v31 = vsel %vm3548_vm6, %v3552_v16, %v3554_v15  ;;  %v1476_v30 = vsel %vm980_vm4, %v1473_v5, %v1475_v26 }
 0x147   : > { %4915 = vmatprep.mubr.msk.bf16.mxu1 %vm498_vm1, %v1458_v36  ;;  %5169 = vmatpush3.bf16.msra.mxu1 %v5635_v53  ;;  %v1464_v36 = vsel %vm980_vm4, %v1461_v60, %v1463_v41  ;;  %v3236_v53 = vshrl.u32 %v6559_v21, 16  ;;  %v3553_v41 = vsel %vm3548_vm6, %v3550_v8, %v3552_v16  ;;  %v3559_v38 = vsel %vm3548_vm6, %v3556_v39, %v3558_v37 }
 0x148   : > { %5166 = vmatprep.subr.bf16.mxu1 %v5638_v59  ;;  %5104 = vmatmul.mubr.msk.bf16.gmra.mrb[20].mxu0 %vm498_vm1, %v3189_v62  ;;  %v3233_v11 = vor.u32 %v3232_v42, %v3229_v7  ;;  %v3225_v62 = vsel %vm3073_vm5, %v3215_v14, %v3224_v20  ;;  %v1481_v7 = vrot.slane %v6254_v3, 1  ;;  %v1889_v42 = vshrl.u32 %v6201_v45, 16 }
 0x149   : > { %5107 = vmatprep.mubr.msk.bf16.mxu0 %vm498_vm1, %v3198_v6  ;;  %v3238_v9 = vrot.slane %v3236_v53, 2  ;;  %v1468_v6 = vsel %vm980_vm4, %v1465_v50, %v1467_v49  ;;  %v1479_v50 = vrot.slane %v6250_v0, 1  ;;  %v1901_v49 = vshll.u32 %v6213_v10, 16 }
 0x14a   : > { %v3234_v60 = vsel %vm3073_vm5, %v3224_v20, %v3233_v11  ;;  %v5622_v20 = vld [vmem:[%s5943_s3 + $0x98] ss:$0 sps:$4 sm:$0x11]   ;;  %v1891_v24 = vrot.slane %v1889_v42, 1 }
 0x14b   : > { %5170 = vmatpush3.bf16.msra.mxu1 %v5638_v59  ;;  %v4471_v59 = vcombine.low %v3535_v19, %v6264_v17  ;;  %v3242_v54 = vor.u32 %v3241_v48, %v3238_v9  ;;  %v1482_v53 = vsel %vm980_vm4, %v1479_v50, %v1481_v7  ;;  %v3562_v19 = vrot.slane %v6327_v35, 3 }
 0x14c   : > { %v1910_v48 = vshll.u32 %v6219_v55, 16 }
 0x14d   : > { %v3243_v17 = vsel %vm3073_vm5, %v3233_v11, %v3242_v54 }
 0x14e   : > { %4916 = vmatmul.mubr.msk.bf16.gmra.mrb[8].mxu1 %vm498_vm1, %v1460_v46  ;;  %v3549_v46 = vrot.slane %v4471_v59, 3  ;;  %v1903_v59 = vrot.slane %v1901_v49, 2 }
 0x14f   : > { %4919 = vmatprep.mubr.msk.bf16.mxu1 %vm498_vm1, %v1462_v52  ;;  %v1471_v52 = vrot.slane %v6213_v10, 1 }
 0x150   : > { %5108 = vmatmul.mubr.msk.bf16.gmra.mrb[24].mxu0 %vm498_vm1, %v3207_v22  ;;  %v3551_v23 = vsel %vm3548_vm6, %v3549_v46, %v3550_v8  ;;  %v1477_v22 = vrot.slane %v6237_v63, 1  ;;  %v3566_v46 = vrot.slane %v6348_v61, 3  ;;  %v1916_v8 = vshrl.u32 %v6231_v47, 16 }
 0x151   : > { %5111 = vmatprep.mubr.msk.bf16.mxu0 %vm498_vm1, %v3216_v51  ;;  %v1472_v14 = vsel %vm980_vm4, %v1469_v4, %v1471_v52  ;;  %v1474_v18 = vsel %vm980_vm4, %v1471_v52, %v1473_v5  ;;  %v3557_v51 = vsel %vm3548_vm6, %v3554_v15, %v3556_v39  ;;  %v1919_v52 = vshll.u32 %v6231_v47, 16 }
 0x152   : > { %v1478_v27 = vsel %vm980_vm4, %v1475_v26, %v1477_v22  ;;  %v1480_v43 = vsel %vm980_vm4, %v1477_v22, %v1479_v50  ;;  %v1934_v22 = vshrl.u32 %v6250_v0, 16 }
 0x153   : > { %v1921_v16 = vrot.slane %v1919_v52, 2 }
 0x154   : > { %v1936_v50 = vrot.slane %v1934_v22, 1 }
 0x156   : > { %4920 = vmatmul.mubr.msk.bf16.gmra.mrb[12].mxu1 %vm498_vm1, %v1464_v36  ;;  %v1892_v36 = vshll.u32 %v6201_v45, 16  ;;  %v1483_v45 = vrot.slane %v5622_v20, 1  ;;  %v1955_v20 = vshll.u32 %v6270_v12, 16 }
 0x157   : > { %4923 = vmatprep.mubr.msk.bf16.mxu1 %vm498_vm1, %v1466_v29  ;;  %v3560_v29 = vrot.slane %v6323_v28, 3  ;;  %v1907_v28 = vshrl.u32 %v6219_v55, 16 }
 0x158   : > { %5112 = vmatmul.mubr.msk.bf16.gmra.mrb[28].mxu0 %vm498_vm1, %v3225_v62  ;;  %v1894_v11 = vrot.slane %v1892_v36, 2  ;;  %v1484_v35 = vsel %vm980_vm4, %v1481_v7, %v1483_v45  ;;  %v3572_v7 = vrot.slane %v6381_v56, 3 }
 0x159   : > { %5115 = vmatprep.mubr.msk.bf16.mxu0 %vm498_vm1, %v3234_v60  ;;  %v3561_v62 = vsel %vm3548_vm6, %v3558_v37, %v3560_v29  ;;  %v3563_v4 = vsel %vm3548_vm6, %v3560_v29, %v3562_v19  ;;  %v1900_v60 = vrot.slane %v1898_v34, 1  ;;  %v1909_v54 = vrot.slane %v1907_v28, 1 }
 0x15a   : > { %v1895_v9 = vor.u32 %v1894_v11, %v1891_v24  ;;  %v3578_v34 = vrot.slane %v6404_v32, 3  ;;  %v3582_v28 = vrot.slane %v6424_v33, 3 }
 0x15b   : > { %v1904_v55 = vor.u32 %v1903_v59, %v1900_v60 }
 0x15c   : > { %v1896_v10 = vsel %vm1789_vm2, %v6119_v13, %v1895_v9  ;;  %v1928_v13 = vshll.u32 %v6237_v63, 16 }
 0x15d   : > { %v1905_v61 = vsel %vm1789_vm2, %v1895_v9, %v1904_v55 }
 0x15e   : > { %4924 = vmatmul.mubr.msk.bf16.gmra.mrb[16].mxu1 %vm498_vm1, %v1468_v6  ;;  %v3564_v6 = vrot.slane %v6343_v1, 3  ;;  %v1925_v1 = vshrl.u32 %v6237_v63, 16  ;;  %v1930_v26 = vrot.slane %v1928_v13, 2 }
 0x15f   : > { %4927 = vmatprep.mubr.msk.bf16.mxu1 %vm498_vm1, %v1470_v57  ;;  %v1912_v57 = vrot.slane %v1910_v48, 2 }
 0x160   : > { %5116 = vmatmul.mubr.msk.bf16.gmra.mrb[32].mxu0 %vm498_vm1, %v3243_v17  ;;  %v3565_v17 = vsel %vm3548_vm6, %v3562_v19, %v3564_v6  ;;  %v1927_v15 = vrot.slane %v1925_v1, 1  ;;  %v3576_v19 = vrot.slane %v6399_v25, 3  ;;  %v3580_v25 = vrot.slane %v6420_v58, 3 }
 0x161   : > { %5127 = vmatprep.mubr.msk.bf16.mxu0 %vm498_vm1, %v3551_v23  ;;  %v1913_v5 = vor.u32 %v1912_v57, %v1909_v54  ;;  %v3567_v23 = vsel %vm3548_vm6, %v3564_v6, %v3566_v46 }
 0x162   : > { %v1931_v39 = vor.u32 %v1930_v26, %v1927_v15  ;;  %v3581_v32 = vsel %vm3548_vm6, %v3578_v34, %v3580_v25  ;;  %v3583_v48 = vsel %vm3548_vm6, %v3580_v25, %v3582_v28 }
 0x163   : > { %v1914_v47 = vsel %vm1789_vm2, %v1904_v55, %v1913_v5 }
 0x166   : > { %4928 = vmatmul.mubr.msk.bf16.gmra.mrb[20].mxu1 %vm498_vm1, %v1472_v14  ;;  %v1918_v14 = vrot.slane %v1916_v8, 1 }
 0x167   : > { %4931 = vmatprep.mubr.msk.bf16.mxu1 %vm498_vm1, %v1474_v18  ;;  %v3568_v18 = vrot.slane %v6362_v40, 3  ;;  %v1943_v40 = vshrl.u32 %v6254_v3, 16 }
 0x168   : > { %5128 = vmatmul.mubr.msk.bf16.vlgmr.msra.gmra.mrb[0].mxu0 %vm498_vm1, %v3553_v41  ;;  %v3570_v41 = vrot.slane %v6367_v44, 3  ;;  %v1922_v63 = vor.u32 %v1921_v16, %v1918_v14 }
 0x169   : > { %5131 = vmatprep.mubr.msk.bf16.mxu0 %vm498_vm1, %v3555_v31  ;;  %v1937_v31 = vshll.u32 %v6250_v0, 16  ;;  %v1945_v42 = vrot.slane %v1943_v40, 1 }
 0x16a   : > { %v3571_v37 = vsel %vm3548_vm6, %v3568_v18, %v3570_v41  ;;  %v1923_v44 = vsel %vm1789_vm2, %v1913_v5, %v1922_v63  ;;  %v1932_v0 = vsel %vm1789_vm2, %v1922_v63, %v1931_v39  ;;  %v3573_v29 = vsel %vm3548_vm6, %v3570_v41, %v3572_v7 }
 0x16e   : > { %4932 = vmatmul.mubr.msk.bf16.gmra.mrb[24].mxu1 %vm498_vm1, %v1476_v30  ;;  %v3569_v30 = vsel %vm3548_vm6, %v3566_v46, %v3568_v18 }
 0x16f   : > { %4935 = vmatprep.mubr.msk.bf16.mxu1 %vm498_vm1, %v1478_v27  ;;  %v1946_v27 = vshll.u32 %v6254_v3, 16 }
 0x170   : > { %5132 = vmatmul.mubr.msk.bf16.gmra.mrb[4].mxu0 %vm498_vm1, %v3557_v51  ;;  %v1939_v51 = vrot.slane %v1937_v31, 2 }
 0x171   : > { %5135 = vmatprep.mubr.msk.bf16.mxu0 %vm498_vm1, %v3559_v38  ;;  %v1948_v36 = vrot.slane %v1946_v27, 2  ;;  %v3574_v38 = vrot.slane %v6386_v2, 3  ;;  %v1957_v2 = vrot.slane %v1955_v20, 2 }
 0x172   : > { %v1940_v3 = vor.u32 %v1939_v51, %v1936_v50 }
 0x173   : > { %v3575_v56 = vsel %vm3548_vm6, %v3572_v7, %v3574_v38  ;;  %v3577_v49 = vsel %vm3548_vm6, %v3574_v38, %v3576_v19 }
 0x174   : > { %v1941_v24 = vsel %vm1789_vm2, %v1931_v39, %v1940_v3 }
 0x176   : > { %4936 = vmatmul.mubr.msk.bf16.gmra.mrb[28].mxu1 %vm498_vm1, %v1480_v43  ;;  %v1952_v43 = vshrl.u32 %v6270_v12, 16 }
 0x177   : > { %4939 = vmatprep.mubr.msk.bf16.mxu1 %vm498_vm1, %v1482_v53  ;;  %v1949_v53 = vor.u32 %v1948_v36, %v1945_v42 }
 0x178   : > { %5136 = vmatmul.mubr.msk.bf16.gmra.mrb[8].mxu0 %vm498_vm1, %v3561_v62  ;;  %v1954_v11 = vrot.slane %v1952_v43, 1  ;;  %v3579_v62 = vsel %vm3548_vm6, %v3576_v19, %v3578_v34 }
 0x179   : > { %5139 = vmatprep.mubr.msk.bf16.mxu0 %vm498_vm1, %v3563_v4  ;;  %v1950_v45 = vsel %vm1789_vm2, %v1940_v3, %v1949_v53  ;;  %v3584_v4 = vrot.slane %v6559_v21, 3 }
 0x17a   : > { %v1958_v12 = vor.u32 %v1957_v2, %v1954_v11 }
 0x17c   : > { %v1959_v9 = vsel %vm1789_vm2, %v1949_v53, %v1958_v12 }
 0x17e   : > { %4940 = vmatmul.mubr.msk.bf16.gmra.mrb[32].mxu1 %vm498_vm1, %v1484_v35  ;;  %v3585_v35 = vsel %vm3548_vm6, %v3582_v28, %v3584_v4 }
 0x17f   : > { %4971 = vmatprep.mubr.msk.bf16.mxu1 %vm498_vm1, %v1896_v10 }
 0x180   : > { %5140 = vmatmul.mubr.msk.bf16.gmra.mrb[12].mxu0 %vm498_vm1, %v3565_v17 }
 0x181   : > { %5143 = vmatprep.mubr.msk.bf16.mxu0 %vm498_vm1, %v3567_v23 }
 0x186   : > { %4972 = vmatmul.mubr.msk.bf16.vlgmr.msra.gmra.mrb[20].mxu1 %vm498_vm1, %v1905_v61 }
 0x187   : > { %4975 = vmatprep.mubr.msk.bf16.mxu1 %vm498_vm1, %v1914_v47 }
 0x188   : > { %5144 = vmatmul.mubr.msk.bf16.gmra.mrb[16].mxu0 %vm498_vm1, %v3569_v30 }
 0x189   : > { %5147 = vmatprep.mubr.msk.bf16.mxu0 %vm498_vm1, %v3571_v37 }
 0x18e   : > { %4976 = vmatmul.mubr.msk.bf16.gmra.mrb[24].mxu1 %vm498_vm1, %v1923_v44 }
 0x18f   : > { %4979 = vmatprep.mubr.msk.bf16.mxu1 %vm498_vm1, %v1932_v0 }
 0x190   : > { %5148 = vmatmul.mubr.msk.bf16.gmra.mrb[20].mxu0 %vm498_vm1, %v3573_v29 }
 0x191   : > { %5151 = vmatprep.mubr.msk.bf16.mxu0 %vm498_vm1, %v3575_v56 }
 0x196   : > { %4980 = vmatmul.mubr.msk.bf16.gmra.mrb[28].mxu1 %vm498_vm1, %v1941_v24 }
 0x197   : > { %4983 = vmatprep.mubr.msk.bf16.mxu1 %vm498_vm1, %v1950_v45 }
 0x198   : > { %5152 = vmatmul.mubr.msk.bf16.gmra.mrb[24].mxu0 %vm498_vm1, %v3577_v49 }
 0x199   : > { %5155 = vmatprep.mubr.msk.bf16.mxu0 %vm498_vm1, %v3579_v62 }
 0x19e   : > { %4984 = vmatmul.mubr.msk.bf16.gmra.mrb[32].mxu1 %vm498_vm1, %v1959_v9 }
 0x1a0   : > { %5156 = vmatmul.mubr.msk.bf16.gmra.mrb[28].mxu0 %vm498_vm1, %v3581_v32 }
 0x1a1   : > { %5159 = vmatprep.mubr.msk.bf16.mxu0 %vm498_vm1, %v3583_v48 }
 0x1a8   : > { %5160 = vmatmul.mubr.msk.bf16.gmra.mrb[32].mxu0 %vm498_vm1, %v3585_v35 }
 0x211   : > { %v4909_v60 = vpop.f32.mrb[0].mxu1 }
 0x212   : > { %v1597_v58 = vpop.f32.mrb[1].mxu1 }
 0x213   : > { %v4910_v59 = vpop.f32.mrb[2].mxu1 }
 0x214   : > { %v1600_v33 = vpop.f32.mrb[3].mxu1 }
 0x219   : > { %v4913_v6 = vpop.f32.mrb[4].mxu1 }
 0x21a   : > { %v1613_v10 = vpop.f32.mrb[5].mxu1 }
 0x21b   : > { %v4914_v54 = vpop.f32.mrb[6].mxu1 }
 0x21c   : > { %v1616_v57 = vpop.f32.mrb[7].mxu1 }
 0x221   : > { %v4917_v46 = vpop.f32.mrb[8].mxu1 }
 0x222   : > { %v6692_v55 = vpop.f32.mrb[9].mxu1 }
 0x223   : > { %v6694_v8 = vpop.f32.mrb[10].mxu1 }
 0x224   : > { %v6696_v52 = vpop.f32.mrb[11].mxu1 }
 0x229   : > { %v6698_v21 = vpop.f32.mrb[12].mxu1 }
 0x22a   : > { %v6700_v17 = vpop.f32.mrb[13].mxu1 }
 0x22b   : > { %v6702_v5 = vpop.f32.mrb[14].mxu1 }
 0x22c   : > { %v6704_v1 = vpop.f32.mrb[15].mxu1 }
 0x231   : > { %v6706_v13 = vpop.f32.mrb[16].mxu1 }
 0x232   : > { %v6708_v23 = vpop.f32.mrb[17].mxu1 }
 0x233   : > { %v6710_v61 = vpop.f32.mrb[18].mxu1 }
 0x234   : > { %v6712_v14 = vpop.f32.mrb[19].mxu1 }
 0x23b   : > { %v5129_v16 = vpop.f32.mrb[0].mxu0 }
 0x23c   : > { %v5171_v18 = vadd.f32 %v5129_v16, %v4909_v60  ;;  %v3698_v47 = vpop.f32.mrb[1].mxu0 }
 0x23d   : > { %v5172_v15 = vadd.f32 %v3698_v47, %v1597_v58  ;;  %v5130_v26 = vpop.f32.mrb[2].mxu0 }
 0x23e   : > { %v3879_v41 = vmax.f32 %v5171_v18, 0.0  ;;  %v5173_v63 = vadd.f32 %v5130_v26, %v4910_v59  ;;  %v3701_v22 = vpop.f32.mrb[3].mxu0 }
 0x23f   : > { %v3877_v31 = vmax.f32 %v5172_v15, 0.0  ;;  %v5174_v30 = vadd.f32 %v3701_v22, %v1600_v33 }
 0x240   : > { %v3915_v39 = vmin.f32 %v3879_v41, 6.0  ;;  %v3880_v40 = vmax.f32 %v5173_v63, 0.0 }
 0x241   : > { %v3913_v27 = vmin.f32 %v3877_v31, 6.0  ;;  %v3878_v37 = vmax.f32 %v5174_v30, 0.0 }
 0x242   : > { %v4535_v44 = vpack.c.bf16 %v3915_v39, %v3915_v39  ;;  %v3916_v50 = vmin.f32 %v3880_v40, 6.0 }
 0x243   : > { %v4533_v51 = vpack.c.bf16 %v3913_v27, %v3913_v27  ;;  %v3914_v7 = vmin.f32 %v3878_v37, 6.0  ;;  %v5133_v0 = vpop.f32.mrb[4].mxu0 }
 0x244   : > { %4096 = vst.msk [vmem:[%s6715_s17 + $0x8] sm:$0xf] %vm4093_vm7, %v4535_v44  ;;  %v4536_v42 = vpack.c.bf16 %v3916_v50, %v3916_v50  ;;  %v5175_v36 = vadd.f32 %v5133_v0, %v4913_v6  ;;  %v3714_v38 = vpop.f32.mrb[5].mxu0 }
 0x245   : > { %4094 = vst.msk [vmem:[%s6715_s17] sm:$0xf] %vm4093_vm7, %v4533_v51  ;;  %v4534_v3 = vpack.c.bf16 %v3914_v7, %v3914_v7  ;;  %v5176_v43 = vadd.f32 %v3714_v38, %v1613_v10  ;;  %v5134_v20 = vpop.f32.mrb[6].mxu0 }
 0x246   : > { %4097 = vst.msk [vmem:[%s6715_s17 + $0xc] sm:$0xf] %vm4093_vm7, %v4536_v42  ;;  %v3883_v29 = vmax.f32 %v5175_v36, 0.0  ;;  %v5177_v53 = vadd.f32 %v5134_v20, %v4914_v54  ;;  %v3717_v56 = vpop.f32.mrb[7].mxu0 }
 0x247   : > { %4095 = vst.msk [vmem:[%s6715_s17 + $0x4] sm:$0xf] %vm4093_vm7, %v4534_v3  ;;  %v3881_v24 = vmax.f32 %v5176_v43, 0.0  ;;  %v5178_v11 = vadd.f32 %v3717_v56, %v1616_v57 }
 0x248   : > { %v3919_v2 = vmin.f32 %v3883_v29, 6.0  ;;  %v3884_v19 = vmax.f32 %v5177_v53, 0.0 }
 0x249   : > { %v3917_v45 = vmin.f32 %v3881_v24, 6.0  ;;  %v3882_v34 = vmax.f32 %v5178_v11, 0.0 }
 0x24a   : > { %v4539_v12 = vpack.c.bf16 %v3919_v2, %v3919_v2  ;;  %v3920_v49 = vmin.f32 %v3884_v19, 6.0 }
 0x24b   : > { %v4537_v62 = vpack.c.bf16 %v3917_v45, %v3917_v45  ;;  %v3918_v9 = vmin.f32 %v3882_v34, 6.0  ;;  %v5137_v25 = vpop.f32.mrb[8].mxu0 }
 0x24c   : > { %4100 = vst.msk [vmem:[%s6715_s17 + $0x18] sm:$0xf] %vm4093_vm7, %v4539_v12  ;;  %v4540_v28 = vpack.c.bf16 %v3920_v49, %v3920_v49  ;;  %v5179_v32 = vadd.f32 %v5137_v25, %v4917_v46  ;;  %v3730_v48 = vpop.f32.mrb[9].mxu0 }
 0x24d   : > { %4098 = vst.msk [vmem:[%s6715_s17 + $0x10] sm:$0xf] %vm4093_vm7, %v4537_v62  ;;  %v4538_v4 = vpack.c.bf16 %v3918_v9, %v3918_v9  ;;  %v5180_v35 = vadd.f32 %v3730_v48, %v6692_v55  ;;  %v5138_v60 = vpop.f32.mrb[10].mxu0 }
 0x24e   : > { %4101 = vst.msk [vmem:[%s6715_s17 + $0x1c] sm:$0xf] %vm4093_vm7, %v4540_v28  ;;  %v3887_v58 = vmax.f32 %v5179_v32, 0.0  ;;  %v5181_v59 = vadd.f32 %v5138_v60, %v6694_v8  ;;  %v3733_v33 = vpop.f32.mrb[11].mxu0 }
 0x24f   : > { %4099 = vst.msk [vmem:[%s6715_s17 + $0x14] sm:$0xf] %vm4093_vm7, %v4538_v4  ;;  %v3885_v6 = vmax.f32 %v5180_v35, 0.0  ;;  %v5182_v10 = vadd.f32 %v3733_v33, %v6696_v52 }
 0x250   : > { %v3923_v54 = vmin.f32 %v3887_v58, 6.0  ;;  %v3888_v57 = vmax.f32 %v5181_v59, 0.0 }
 0x251   : > { %v3921_v46 = vmin.f32 %v3885_v6, 6.0  ;;  %v3886_v16 = vmax.f32 %v5182_v10, 0.0 }
 0x252   : > { %v4543_v55 = vpack.c.bf16 %v3923_v54, %v3923_v54  ;;  %v3924_v18 = vmin.f32 %v3888_v57, 6.0 }
 0x253   : > { %v4541_v47 = vpack.c.bf16 %v3921_v46, %v3921_v46  ;;  %v3922_v15 = vmin.f32 %v3886_v16, 6.0  ;;  %v5141_v26 = vpop.f32.mrb[12].mxu0 }
 0x254   : > { %4104 = vst.msk [vmem:[%s6715_s17 + $0x28] sm:$0xf] %vm4093_vm7, %v4543_v55  ;;  %v4544_v8 = vpack.c.bf16 %v3924_v18, %v3924_v18  ;;  %v5183_v41 = vadd.f32 %v5141_v26, %v6698_v21  ;;  %v3746_v63 = vpop.f32.mrb[13].mxu0 }
 0x255   : > { %4102 = vst.msk [vmem:[%s6715_s17 + $0x20] sm:$0xf] %vm4093_vm7, %v4541_v47  ;;  %v4542_v52 = vpack.c.bf16 %v3922_v15, %v3922_v15  ;;  %v5184_v22 = vadd.f32 %v3746_v63, %v6700_v17  ;;  %v5142_v31 = vpop.f32.mrb[14].mxu0 }
 0x256   : > { %4105 = vst.msk [vmem:[%s6715_s17 + $0x2c] sm:$0xf] %vm4093_vm7, %v4544_v8  ;;  %v3891_v30 = vmax.f32 %v5183_v41, 0.0  ;;  %v5185_v39 = vadd.f32 %v5142_v31, %v6702_v5  ;;  %v3749_v40 = vpop.f32.mrb[15].mxu0 }
 0x257   : > { %4103 = vst.msk [vmem:[%s6715_s17 + $0x24] sm:$0xf] %vm4093_vm7, %v4542_v52  ;;  %v3889_v37 = vmax.f32 %v5184_v22, 0.0  ;;  %v5186_v21 = vadd.f32 %v3749_v40, %v6704_v1 }
 0x258   : > { %v3927_v50 = vmin.f32 %v3891_v30, 6.0  ;;  %v3892_v51 = vmax.f32 %v5185_v39, 0.0 }
 0x259   : > { %v4973_v27 = vpop.f32.mrb[20].mxu1  ;;  %v3925_v17 = vmin.f32 %v3889_v37, 6.0  ;;  %v3890_v0 = vmax.f32 %v5186_v21, 0.0 }
 0x25a   : > { %v2152_v44 = vpop.f32.mrb[21].mxu1  ;;  %v4547_v36 = vpack.c.bf16 %v3927_v50, %v3927_v50  ;;  %v3928_v38 = vmin.f32 %v3892_v51, 6.0 }
 0x25b   : > { %v4974_v7 = vpop.f32.mrb[22].mxu1  ;;  %v4545_v5 = vpack.c.bf16 %v3925_v17, %v3925_v17  ;;  %v3926_v3 = vmin.f32 %v3890_v0, 6.0  ;;  %v5145_v43 = vpop.f32.mrb[16].mxu0 }
 0x25c   : > { %v2155_v42 = vpop.f32.mrb[23].mxu1  ;;  %4108 = vst.msk [vmem:[%s6715_s17 + $0x38] sm:$0xf] %vm4093_vm7, %v4547_v36  ;;  %v4548_v20 = vpack.c.bf16 %v3928_v38, %v3928_v38  ;;  %v5187_v1 = vadd.f32 %v5145_v43, %v6706_v13  ;;  %v3762_v29 = vpop.f32.mrb[17].mxu0 }
 0x25d   : > { %4106 = vst.msk [vmem:[%s6715_s17 + $0x30] sm:$0xf] %vm4093_vm7, %v4545_v5  ;;  %v4546_v53 = vpack.c.bf16 %v3926_v3, %v3926_v3  ;;  %v5188_v56 = vadd.f32 %v3762_v29, %v6708_v23  ;;  %v5146_v24 = vpop.f32.mrb[18].mxu0 }
 0x25e   : > { %4109 = vst.msk [vmem:[%s6715_s17 + $0x3c] sm:$0xf] %vm4093_vm7, %v4548_v20  ;;  %v3895_v11 = vmax.f32 %v5187_v1, 0.0  ;;  %v5189_v2 = vadd.f32 %v5146_v24, %v6710_v61  ;;  %v3765_v19 = vpop.f32.mrb[19].mxu0 }
 0x25f   : > { %4107 = vst.msk [vmem:[%s6715_s17 + $0x34] sm:$0xf] %vm4093_vm7, %v4546_v53  ;;  %v3893_v34 = vmax.f32 %v5188_v56, 0.0  ;;  %v5190_v13 = vadd.f32 %v3765_v19, %v6712_v14 }
 0x260   : > { %v3931_v49 = vmin.f32 %v3895_v11, 6.0  ;;  %v3896_v62 = vmax.f32 %v5189_v2, 0.0 }
 0x261   : > { %v4977_v45 = vpop.f32.mrb[24].mxu1  ;;  %v3929_v23 = vmin.f32 %v3893_v34, 6.0  ;;  %v3894_v25 = vmax.f32 %v5190_v13, 0.0 }
 0x262   : > { %v2168_v12 = vpop.f32.mrb[25].mxu1  ;;  %v4551_v32 = vpack.c.bf16 %v3931_v49, %v3931_v49  ;;  %v3932_v48 = vmin.f32 %v3896_v62, 6.0 }
 0x263   : > { %v4978_v9 = vpop.f32.mrb[26].mxu1  ;;  %v4549_v61 = vpack.c.bf16 %v3929_v23, %v3929_v23  ;;  %v3930_v4 = vmin.f32 %v3894_v25, 6.0  ;;  %v5149_v35 = vpop.f32.mrb[20].mxu0 }
 0x264   : > { %v2171_v28 = vpop.f32.mrb[27].mxu1  ;;  %4112 = vst.msk [vmem:[%s6715_s17 + $0x48] sm:$0xf] %vm4093_vm7, %v4551_v32  ;;  %v4552_v60 = vpack.c.bf16 %v3932_v48, %v3932_v48  ;;  %v5191_v58 = vadd.f32 %v5149_v35, %v4973_v27  ;;  %v3778_v14 = vpop.f32.mrb[21].mxu0 }
 0x265   : > { %4110 = vst.msk [vmem:[%s6715_s17 + $0x40] sm:$0xf] %vm4093_vm7, %v4549_v61  ;;  %v4550_v59 = vpack.c.bf16 %v3930_v4, %v3930_v4  ;;  %v5192_v33 = vadd.f32 %v3778_v14, %v2152_v44  ;;  %v5150_v6 = vpop.f32.mrb[22].mxu0 }
 0x266   : > { %4113 = vst.msk [vmem:[%s6715_s17 + $0x4c] sm:$0xf] %vm4093_vm7, %v4552_v60  ;;  %v3899_v10 = vmax.f32 %v5191_v58, 0.0  ;;  %v5193_v54 = vadd.f32 %v5150_v6, %v4974_v7  ;;  %v3781_v57 = vpop.f32.mrb[23].mxu0 }
 0x267   : > { %4111 = vst.msk [vmem:[%s6715_s17 + $0x44] sm:$0xf] %vm4093_vm7, %v4550_v59  ;;  %v3897_v16 = vmax.f32 %v5192_v33, 0.0  ;;  %v5194_v55 = vadd.f32 %v3781_v57, %v2155_v42 }
 0x268   : > { %v3935_v47 = vmin.f32 %v3899_v10, 6.0  ;;  %v3900_v15 = vmax.f32 %v5193_v54, 0.0 }
 0x269   : > { %v4981_v46 = vpop.f32.mrb[28].mxu1  ;;  %v3933_v8 = vmin.f32 %v3897_v16, 6.0  ;;  %v3898_v41 = vmax.f32 %v5194_v55, 0.0 }
 0x26a   : > { %v2184_v18 = vpop.f32.mrb[29].mxu1  ;;  %v4555_v52 = vpack.c.bf16 %v3935_v47, %v3935_v47  ;;  %v3936_v22 = vmin.f32 %v3900_v15, 6.0 }
 0x26b   : > { %v4982_v26 = vpop.f32.mrb[30].mxu1  ;;  %v4553_v31 = vpack.c.bf16 %v3933_v8, %v3933_v8  ;;  %v3934_v30 = vmin.f32 %v3898_v41, 6.0  ;;  %v5153_v39 = vpop.f32.mrb[24].mxu0 }
 0x26c   : > { %v2187_v63 = vpop.f32.mrb[31].mxu1  ;;  %4116 = vst.msk [vmem:[%s6715_s17 + $0x58] sm:$0xf] %vm4093_vm7, %v4555_v52  ;;  %v4556_v40 = vpack.c.bf16 %v3936_v22, %v3936_v22  ;;  %v5195_v27 = vadd.f32 %v5153_v39, %v4977_v45  ;;  %v3794_v37 = vpop.f32.mrb[25].mxu0 }
 0x26d   : > { %4114 = vst.msk [vmem:[%s6715_s17 + $0x50] sm:$0xf] %vm4093_vm7, %v4553_v31  ;;  %v4554_v21 = vpack.c.bf16 %v3934_v30, %v3934_v30  ;;  %v5196_v44 = vadd.f32 %v3794_v37, %v2168_v12  ;;  %v5154_v50 = vpop.f32.mrb[26].mxu0 }
 0x26e   : > { %4117 = vst.msk [vmem:[%s6715_s17 + $0x5c] sm:$0xf] %vm4093_vm7, %v4556_v40  ;;  %v3903_v51 = vmax.f32 %v5195_v27, 0.0  ;;  %v5197_v7 = vadd.f32 %v5154_v50, %v4978_v9  ;;  %v3797_v17 = vpop.f32.mrb[27].mxu0 }
 0x26f   : > { %4115 = vst.msk [vmem:[%s6715_s17 + $0x54] sm:$0xf] %vm4093_vm7, %v4554_v21  ;;  %v3901_v42 = vmax.f32 %v5196_v44, 0.0  ;;  %v5198_v36 = vadd.f32 %v3797_v17, %v2171_v28 }
 0x270   : > { %v3939_v5 = vmin.f32 %v3903_v51, 6.0  ;;  %v3904_v3 = vmax.f32 %v5197_v7, 0.0 }
 0x271   : > { %v4985_v0 = vpop.f32.mrb[32].mxu1  ;;  %v3937_v20 = vmin.f32 %v3901_v42, 6.0  ;;  %v3902_v1 = vmax.f32 %v5198_v36, 0.0 }
 0x272   : > { %v2200_v38 = vpop.f32.mrb[33].mxu1  ;;  %v4559_v53 = vpack.c.bf16 %v3939_v5, %v3939_v5  ;;  %v3940_v56 = vmin.f32 %v3904_v3, 6.0 }
 0x273   : > { %v4986_v43 = vpop.f32.mrb[34].mxu1  ;;  %v4557_v24 = vpack.c.bf16 %v3937_v20, %v3937_v20  ;;  %v3938_v11 = vmin.f32 %v3902_v1, 6.0  ;;  %v5157_v2 = vpop.f32.mrb[28].mxu0 }
 0x274   : > { %v2203_v29 = vpop.f32.mrb[35].mxu1  ;;  %4120 = vst.msk [vmem:[%s6715_s17 + $0x68] sm:$0xf] %vm4093_vm7, %v4559_v53  ;;  %v4560_v19 = vpack.c.bf16 %v3940_v56, %v3940_v56  ;;  %v5199_v45 = vadd.f32 %v5157_v2, %v4981_v46  ;;  %v3810_v34 = vpop.f32.mrb[29].mxu0 }
 0x275   : > { %4118 = vst.msk [vmem:[%s6715_s17 + $0x60] sm:$0xf] %vm4093_vm7, %v4557_v24  ;;  %v4558_v13 = vpack.c.bf16 %v3938_v11, %v3938_v11  ;;  %v5200_v12 = vadd.f32 %v3810_v34, %v2184_v18  ;;  %v5158_v49 = vpop.f32.mrb[30].mxu0 }
 0x276   : > { %4121 = vst.msk [vmem:[%s6715_s17 + $0x6c] sm:$0xf] %vm4093_vm7, %v4560_v19  ;;  %v3907_v62 = vmax.f32 %v5199_v45, 0.0  ;;  %v5201_v9 = vadd.f32 %v5158_v49, %v4982_v26  ;;  %v3813_v23 = vpop.f32.mrb[31].mxu0 }
 0x277   : > { %4119 = vst.msk [vmem:[%s6715_s17 + $0x64] sm:$0xf] %vm4093_vm7, %v4558_v13  ;;  %v3905_v25 = vmax.f32 %v5200_v12, 0.0  ;;  %v5202_v28 = vadd.f32 %v3813_v23, %v2187_v63 }
 0x278   : > { %v3943_v32 = vmin.f32 %v3907_v62, 6.0  ;;  %v3908_v48 = vmax.f32 %v5201_v9, 0.0 }
 0x279   : > { %v3941_v61 = vmin.f32 %v3905_v25, 6.0  ;;  %v3906_v4 = vmax.f32 %v5202_v28, 0.0 }
 0x27a   : > { %v4563_v35 = vpack.c.bf16 %v3943_v32, %v3943_v32  ;;  %v3944_v60 = vmin.f32 %v3908_v48, 6.0 }
 0x27b   : > { %v4561_v58 = vpack.c.bf16 %v3941_v61, %v3941_v61  ;;  %v3942_v14 = vmin.f32 %v3906_v4, 6.0  ;;  %v5161_v59 = vpop.f32.mrb[32].mxu0 }
 0x27c   : > { %4124 = vst.msk [vmem:[%s6715_s17 + $0x78] sm:$0xf] %vm4093_vm7, %v4563_v35  ;;  %v4564_v33 = vpack.c.bf16 %v3944_v60, %v3944_v60  ;;  %v5203_v6 = vadd.f32 %v5161_v59, %v4985_v0  ;;  %v3826_v10 = vpop.f32.mrb[33].mxu0 }
 0x27d   : > { %4122 = vst.msk [vmem:[%s6715_s17 + $0x70] sm:$0xf] %vm4093_vm7, %v4561_v58  ;;  %v4562_v54 = vpack.c.bf16 %v3942_v14, %v3942_v14  ;;  %v5204_v57 = vadd.f32 %v3826_v10, %v2200_v38  ;;  %v5162_v46 = vpop.f32.mrb[34].mxu0 }
 0x27e   : > { %4125 = vst.msk [vmem:[%s6715_s17 + $0x7c] sm:$0xf] %vm4093_vm7, %v4564_v33  ;;  %v3911_v16 = vmax.f32 %v5203_v6, 0.0  ;;  %v5205_v55 = vadd.f32 %v5162_v46, %v4986_v43  ;;  %v3829_v18 = vpop.f32.mrb[35].mxu0 }
 0x27f   : > { %4123 = vst.msk [vmem:[%s6715_s17 + $0x74] sm:$0xf] %vm4093_vm7, %v4562_v54  ;;  %v3909_v47 = vmax.f32 %v5204_v57, 0.0  ;;  %v5206_v15 = vadd.f32 %v3829_v18, %v2203_v29 }
 0x280   : > { %v3947_v26 = vmin.f32 %v3911_v16, 6.0  ;;  %v3912_v8 = vmax.f32 %v5205_v55, 0.0 }
 0x281   : > { %v3945_v41 = vmin.f32 %v3909_v47, 6.0  ;;  %v3910_v63 = vmax.f32 %v5206_v15, 0.0 }
 0x282   : > { %v4567_v52 = vpack.c.bf16 %v3947_v26, %v3947_v26  ;;  %v3948_v22 = vmin.f32 %v3912_v8, 6.0 }
 0x283   : > { %v4565_v31 = vpack.c.bf16 %v3945_v41, %v3945_v41  ;;  %v3946_v30 = vmin.f32 %v3910_v63, 6.0 }
 0x284   : > { %4128 = vst.msk [vmem:[%s6715_s17 + $0x88] sm:$0xf] %vm4093_vm7, %v4567_v52  ;;  %v4568_v39 = vpack.c.bf16 %v3948_v22, %v3948_v22 }
 0x285   : > { %4126 = vst.msk [vmem:[%s6715_s17 + $0x80] sm:$0xf] %vm4093_vm7, %v4565_v31  ;;  %v4566_v40 = vpack.c.bf16 %v3946_v30, %v3946_v30 }
 0x286   : > { %4129 = vst.msk [vmem:[%s6715_s17 + $0x8c] sm:$0xf] %vm4093_vm7, %v4568_v39 }
 0x287   : > { %4127 = vst.msk [vmem:[%s6715_s17 + $0x84] sm:$0xf] %vm4093_vm7, %v4566_v40 }
 0x288   : > { %5713 = shalt.err (!%p5710_p7)
}
 0x289   : > { %s5714_s18 = scalar_lea.hbm %s6799_s27, 2304  ;;  %s5718_s23 = scalar_lea.hbm %s6853_s2, 4608 }
 0x28a   : > { %p5715_p9 = scmp.ne.s32.totalorder %s6799_s27, %s5714_s18  ;;  %p5719_p5 = scmp.lt.u32.totalorder %s6799_s27, %s6853_s2 }
 0x28b   : > { %p5720_p13 = scmp.lt.u32.totalorder %s5718_s23, %s5714_s18  ;;  %p5722_p4 = scmp.lt.u32.totalorder %s5714_s18, %s6799_s27 }
 0x28c   : > { %p5716_p1 = pnand %p5715_p9, %p5888_p12 }
 0x28d   : > { %p5721_p2 = por %p5720_p13, %p5719_p5 }
 0x28e   : > { %p5717_p0 = pneg %p5716_p1 }
 0x28f   : > { %p5723_p6 = por %p5722_p4, %p5721_p2 }
 0x291   : > { %p5724_p8 = pnand %p5723_p6, %p5717_p0 }
 0x293   : > { %5727 = shalt.err (!%p5724_p8)
}
 0x294   : > { %s5777_s3 = smov 64   ;;  %s5778_s15 = smov 4  }
 0x295   : > { %5470 = dma.vmem_to_hbm [thread:$0]  (%p5888_p12), %s6801_s5, 2304, %s6799_s27, %s4131_s13, %s5777_s3, %s5777_s3, %s5778_s15  }
 0x296 PF: > { %s4159_s17 = sand.u32 1, %s5758_s9   ;;  %p6868_p10 = scmp.ne.s32.totalorder %s6858_s16, 0 }
 0x297   : > { %p6869_p11 = scmp.ge.s32.totalorder %s5770_s12, 2  ;;  %s4160_s4 = scalar_lea.sflag [#allocation4], %s4159_s17 }
 0x299   : > { %p5481_p3 = pnand %p6869_p11, %p6868_p10 }
 0x29b   : > { %5753 = dma.done.wait (!%p5481_p3), %s4160_s4, 2304  }
 0x29c   : > { %5755 = vsyncadd (!%p5481_p3), %s4160_s4, 4294964992  ;;  %p16_p7 = scmp.ge.s32.totalorder %s5850_s21, 4   ;;  %s6870_s9 = smov %s5762_s10 }
 0x29d   : > { %s6871_s10 = smov %s5766_s11  ;;  %s6872_s11 = smov %s5884_s8 }
 0x29e   : > { %s6873_s12 = smov %s5850_s21  ;;  %18 = sbr.rel (!%p16_p7) target bundleno = 6 (0x6), region = 85 }
 0x2a5   :  { %4165 = vsyncpa [#allocation3], 1 }
 0x2a6   :  { %4167 = vsyncpa [#allocation3 + $0x1], 1 }
 0x2a7   :  { %4168 = vsyncpa [#allocation6], 1 }
 0x2a8   :  { %4169 = vsyncpa [#allocation4], 1 }
 0x2a9   :  { %4171 = vsyncpa [#allocation4 + $0x1], 1 }

// kernel: inception_v2_base.6
= control target key start
LH: loop header
LB: loop body
LE: loop exit
PB: predicated region body
PF: predicated region fallthrough
CT: control target
= control target key end

     0   :  { %7 = vsyncpa [#allocation3], 0  ;;  %s6625_s0 = inlined_call_operand.hbm [shape: bf16[2,342,64], index: 0, kind: input, shape index: {}]   ;;  %s6626_s1 = inlined_call_operand.hbm [shape: bf16[9,64,64], index: 1, kind: input, shape index: {}]   ;;  %s6627_s2 = inlined_call_operand.hbm [shape: f32[2,288,64], index: 2, kind: output, shape index: {}]  }
   0x1   :  { %9 = vsyncpa [#allocation3 + $0x1], 0 }
   0x2   :  { %10 = vsyncpa [#allocation6], 0 }
   0x3   :  { %11 = vsyncpa [#allocation4], 0 }
   0x4   :  { %13 = vsyncpa [#allocation4 + $0x1], 0  ;;  %s5577_s9 = smov 0   ;;  %s5579_s10 = smov 0  }
   0x5   :  { %s5581_s11 = smov 0   ;;  %s5583_s12 = smov 0  }
   0x6 LB: > { %s5598_s13 = sadd.s32 4294967295, %s5553_s12   ;;  %s4082_s14 = sadd.s32 4294967294, %s5553_s12   ;;  %s5553_s12 = sphi %s5583_s12, %s6647_s12   ;;  %s5549_s11 = sphi %s5581_s11, %s6646_s11   ;;  %s5545_s10 = sphi %s5579_s10, %s6645_s10   ;;  %s5541_s9 = sphi %s5577_s9, %s6644_s9  }
   0x7   : > { %p39_p0 = scmp.ne.s32.totalorder %s5545_s10, %s5541_s9  ;;  %p6628_p1 = scmp.eq.s32.totalorder %s5598_s13, 0 }
   0x8   : > { %p90_p3 = scmp.eq.s32.totalorder %s4082_s14, 1  ;;  %p4083_p5 = scmp.ge.s32.totalorder %s5553_s12, 1 }
   0x9   : > { %p5607_p4 = por %p6628_p1, %p39_p0  ;;  %p97_p7 = scmp.lt.s32.totalorder %s5553_s12, 3 }
   0xa   : > { %p5612_p6 = por %p90_p3, %p39_p0  ;;  %s5555_s18 = smov [#allocation5]  }
   0xb   : > { %s6631_s15 = scalar_select %p5607_p4, 1, 0 }
   0xc   : > { %s6632_s16 = scalar_select %p5612_p6, 1, 0 }
   0xd   : > { %p5617_p8 = pnand %p4083_p5, %p97_p7  ;;  %s109_s19 = sshll.u32 %s5555_s18, 4  ;;  %s5621_s19 = int_to_ptr.vmem [resolvable:$true] %s109_s19 }
   0xe   : > { %s5633_s21 = sadd.s32 1, %s5553_s12   ;;  %s26_s22 = sadd.s32 1, %s5549_s11 }
   0xf   : > { %s6633_s17 = scalar_select %p5617_p8, 1, 0 }
  0x10   : > { %p5255_p9 = pneg %p5617_p8  ;;  %s23_s23 = ssub.s32 %s5553_s12, %s5633_s21 }
  0x11   : > { %s5425_s26 = scalar_lea.hbm %s6626_s1, 4608 }
  0x12   : > { %p5628_p11 = pnand %p5255_p9, %p6628_p1  ;;  %p5426_p12 = scmp.ne.s32.totalorder %s6626_s1, %s5425_s26 }
  0x13   : > { %p5432_p5 = scmp.lt.u32.totalorder %s5425_s26, %s6626_s1 }
  0x14   : > { %p5427_p13 = pneg %p5628_p11 }
  0x16   : > { %p5428_p0 = pnand %p5427_p13, %p5426_p12 }
  0x18   : > { %p5429_p3 = pneg %p5428_p0 }
  0x1a   : > { %p5434_p7 = pnand %p5432_p5, %p5429_p3 }
  0x1c   : > { %5437 = shalt.err (!%p5434_p7)
}
  0x1d   : > { %s5438_s3 = scalar_lea.vmem %s5621_s19, 4608  ;;  %p5446_p2 = scmp.lt.s32.totalorder %s5621_s19, %s5621_s19 }
  0x1e   : > { %p5439_p9 = scmp.ne.s32.totalorder %s5621_s19, %s5438_s3  ;;  %p5447_p6 = scmp.lt.s32.totalorder %s5438_s3, %s5438_s3 }
  0x20   : > { %p5441_p10 = pnand %p5439_p9, %p5427_p13  ;;  %p5448_p4 = por %p5447_p6, %p5446_p2 }
  0x22   : > { %p5442_p1 = pneg %p5441_p10 }
  0x24   : > { %p5449_p8 = pnand %p5448_p4, %p5442_p1 }
  0x26   : > { %5452 = shalt.err (!%p5449_p8)
}
  0x27   : > { %s5556_s4 = smov 64   ;;  %s5557_s5 = smov 4  }
  0x28   : > { %5258 = dma.hbm_to_vmem [thread:$0]  (!%p5628_p11), %s6626_s1, 4608, %s5621_s19, [#allocation6], %s5556_s4, %s5556_s4, %s5557_s5  }
  0x29   : > { %p24_p1 = scmp.eq.s32.totalorder %s23_s23, 0  ;;  %p33_p2 = scmp.ne.s32.totalorder %s5549_s11, %s5545_s10 }
  0x2a   : > { %p34_p4 = scmp.eq.s32.totalorder %s5553_s12, 0  ;;  %p5268_p6 = scmp.lt.s32.totalorder %s5553_s12, 2 }
  0x2b   : > { %s5667_s8 = scalar_select %p24_p1, %s5549_s11, %s26_s22  }
  0x2c   : > { %p35_p8 = por %p34_p4, %p33_p2  ;;  %p6635_p10 = scmp.eq.s32.totalorder %s5598_s13, 1 }
  0x2d   : > { %s123_s18 = sand.u32 1, %s5549_s11   ;;  %s5243_s20 = smul.u32 2752, %s5553_s12 }
  0x2e   : > { %p5671_p12 = por %p6635_p10, %p33_p2  ;;  %s5242_s24 = smul.u32 172, %s123_s18 }
  0x2f   : > { %p5677_p13 = pnand %p5268_p6, %p35_p8  ;;  %s5684_s22 = scalar_lea.hbm %s6625_s0, %s5243_s20 }
  0x30   : > { %s127_s26 = scalar_lea.vmem [#allocation2], %s5242_s24  ;;  %s5688_s28 = scalar_lea.sflag [#allocation3], %s123_s18 }
  0x31   : > { %s134_s27 = sshll.u32 %s127_s26, 4  ;;  %s5453_s29 = scalar_lea.hbm %s5684_s22, 2752  ;;  %s5686_s27 = int_to_ptr.vmem [resolvable:$true] %s134_s27 }
  0x32   : > { %p5454_p11 = scmp.ne.s32.totalorder %s5684_s22, %s5453_s29  ;;  %p5455_p0 = pneg %p5677_p13 }
  0x33   : > { %s5458_s6 = scalar_lea.hbm %s6625_s0, 5504  ;;  %p5459_p7 = scmp.lt.u32.totalorder %s5684_s22, %s6625_s0 }
  0x34   : > { %p5456_p3 = pnand %p5455_p0, %p5454_p11  ;;  %p5460_p9 = scmp.lt.u32.totalorder %s5458_s6, %s5453_s29 }
  0x35   : > { %p5462_p2 = scmp.lt.u32.totalorder %s5453_s29, %s5684_s22 }
  0x36   : > { %p5457_p5 = pneg %p5456_p3  ;;  %p5461_p1 = por %p5460_p9, %p5459_p7 }
  0x38   : > { %p5463_p4 = por %p5462_p2, %p5461_p1 }
  0x3a   : > { %p5464_p6 = pnand %p5463_p4, %p5457_p5 }
  0x3c   : > { %5467 = shalt.err (!%p5464_p6)
}
  0x3d   : > { %s5468_s18 = scalar_lea.vmem %s5686_s27, 2752  ;;  %s5558_s24 = smov [#allocation2]  }
  0x3e   : > { %p5469_p8 = scmp.ne.s32.totalorder %s5686_s27, %s5468_s18  ;;  %s5473_s19 = sshll.u32 %s5558_s24, 4  ;;  %s5474_s19 = int_to_ptr.vmem [resolvable:$false] %s5473_s19 }
  0x3f   : > { %s5475_s23 = scalar_lea.vmem %s5474_s19, 5504  ;;  %p5476_p3 = scmp.lt.s32.totalorder %s5686_s27, %s5474_s19 }
  0x40   : > { %p5471_p10 = pnand %p5469_p8, %p5455_p0  ;;  %p5477_p7 = scmp.lt.s32.totalorder %s5475_s23, %s5468_s18 }
  0x42   : > { %p5472_p11 = pneg %p5471_p10  ;;  %p5478_p9 = por %p5477_p7, %p5476_p3 }
  0x44   : > { %p5479_p1 = pnand %p5478_p9, %p5472_p11 }
  0x46   : > { %5482 = shalt.err (!%p5479_p1)
}
  0x47   : > { %5262 = dma.hbm_to_vmem [thread:$0]  (!%p5677_p13), %s5684_s22, 2752, %s5686_s27, %s5688_s28, %s5556_s4, %s5556_s4, %s5557_s5  }
  0x48   : > { %p6638_p0 = scmp.ne.s32.totalorder %s6633_s17, 0 }
  0x49   : > { %s5722_s26 = sand.u32 (!%p6638_p0), 1, %s5545_s10   ;;  %p6639_p5 = scmp.ne.s32.totalorder (!%p6638_p0), %s6631_s15, 0 }
  0x4a   : > { %146 = sbr.rel (%p6638_p0) target bundleno = 660 (0x294), region = 28  ;;  %s149_s30 = scalar_lea.sflag (!%p6638_p0), [#allocation3], %s5722_s26 }
  0x4b   : > { %s5244_s29 = smul.u32 (!%p6638_p0), 172, %s5722_s26 }
  0x4d   : > { %s5726_s3 = scalar_lea.vmem (!%p6638_p0), [#allocation2], %s5244_s29 }
  0x51   : > { %5528 = dma.done.wait (%p6639_p5), %s149_s30, 2752  }
  0x52   : > { %5530 = vsyncadd (%p6639_p5), %s149_s30, 4294964544  ;;  %p6640_p13 = scmp.eq.s32.totalorder %s5598_s13, 0 }
  0x54   : > { %5532 = dma.done.wait (%p6640_p13), [#allocation6], 4608   ;;  %p6641_p2 = pmov %p6640_p13 }
  0x55   : > { %v5308_v0 = vld [vmem:[#allocation5 + $0x20] sm:$0xff]   ;;  %v5310_v2 = vld [vmem:[#allocation5 + $0x28] sm:$0xff]   ;;  %v5312_v4 = vld [vmem:[#allocation5 + $0x30] sm:$0xff]   ;;  %vm325_vm0 = vsmask.f32 7424  ;;  %vm498_vm1 = vcmask 523264  }
  0x56   : > { %5534 = vsyncadd (%p6641_p2), [#allocation6], 4294962688  ;;  %v5309_v1 = vld [vmem:[#allocation5 + $0x80] sm:$0xff]   ;;  %4550 = vmatprep.subr.bf16.mxu1 %v5308_v0  ;;  %v5311_v3 = vld [vmem:[#allocation5 + $0x88] sm:$0xff]   ;;  %vm1789_vm2 = vsmask.f32 6400 }
  0x57   : > { %4726 = vmatprep.subr.bf16.mxu0 %v5309_v1  ;;  %4551 = vmatpush3.bf16.msra.mxu1 %v5308_v0  ;;  %v5313_v5 = vld [vmem:[#allocation5 + $0x90] sm:$0xff]   ;;  %v5314_v6 = vld [vmem:[#allocation5 + $0x38] sm:$0xff]   ;;  %v5322_v33 = vld [vmem:[#allocation5 + $0xa0] sm:$0xff]   ;;  %vm2264_vm3 = vcmask 1045504   ;;  %vm980_vm4 = vcmask 1046528   ;;  %vm3548_vm6 = vcmask 1044480  }
  0x58   : > { %4727 = vmatpush3.bf16.msra.mxu0 %v5309_v1  ;;  %4552 = vmatprep.subr.bf16.mxu1 %v5310_v2  ;;  %v5315_v7 = vld [vmem:[#allocation5 + $0x98] sm:$0xff]   ;;  %v178_v8 = vld [vmem:[%s5726_s3] sm:$0xf]  ;;  %v5745_v13 = vld [vmem:[%s5726_s3 + $0xc] sm:$0xf]  ;;  %s5245_s15 = smul.u32 288, %s5722_s26 }
  0x59   : > { %4728 = vmatprep.subr.bf16.mxu0 %v5311_v3  ;;  %v179_v9 = vld [vmem:[%s5726_s3 + $0x4] sm:$0xf]  ;;  %v5741_v11 = vld [vmem:[%s5726_s3 + $0x8] sm:$0xff]   ;;  %v5752_v18 = vld [vmem:[%s5726_s3 + $0x10] sm:$0xff]   ;;  %vm3073_vm5 = vsmask.f32 5376 }
  0x5a   : > { %v5738_v10 = vcombine.low %v178_v8, %v179_v9  ;;  %v1309_v12 = vld [vmem:[%s5726_s3 + $0x8] sm:$0xe]  ;;  %v334_v16 = vshll.u32 %v5741_v11, 16  ;;  %v338_v17 = vshrl.u32 %v5741_v11, 16  ;;  %v5755_v19 = vld [vmem:[%s5726_s3 + $0x10] sm:$0xff]   ;;  %v1799_v23 = vshrl.u32 %v5752_v18, 16 }
  0x5b   : > { %4553 = vmatpush3.bf16.msra.mxu1 %v5310_v2  ;;  %v5758_v20 = vcombine.low %v1309_v12, %v5745_v13  ;;  %v1802_v24 = vshll.u32 %v5752_v18, 16  ;;  %v342_v27 = vshll.u32 %v5755_v19, 16  ;;  %v5766_v28 = vld [vmem:[%s5726_s3 + $0x18] sm:$0xff]   ;;  %v346_v42 = vshrl.u32 %v5755_v19, 16  ;;  %v5779_v47 = vld [vmem:[%s5726_s3 + $0x20] sm:$0xff]   ;;  %v5792_v59 = vld [vmem:[%s5726_s3 + $0x28] sm:$0xff]  }
  0x5c   : > { %4729 = vmatpush3.bf16.msra.mxu0 %v5311_v3  ;;  %4554 = vmatprep.subr.bf16.mxu1 %v5312_v4  ;;  %v327_v14 = vshrl.u32 %v5738_v10, 16  ;;  %v329_v15 = vshll.u32 %v5738_v10, 16  ;;  %v336_v22 = vrot.slane %v334_v16, 1  ;;  %v1801_v31 = vrot.slane %v1799_v23, 1  ;;  %v5769_v34 = vld [vmem:[%s5726_s3 + $0x18] sm:$0xff]   ;;  %v5782_v48 = vld [vmem:[%s5726_s3 + $0x20] sm:$0xff]  }
  0x5d   : > { %4730 = vmatprep.subr.bf16.mxu0 %v5313_v5  ;;  %v1791_v25 = vshrl.u32 %v5758_v20, 16  ;;  %v1794_v26 = vshll.u32 %v5758_v20, 16  ;;  %v1804_v32 = vrot.slane %v1802_v24, 2  ;;  %v344_v37 = vrot.slane %v342_v27, 1  ;;  %v5326_v56 = vld [vmem:[#allocation5] sm:$0xff]   ;;  %s6492_s17 = scalar_lea.vmem [#allocation7], %s5245_s15 }
  0x5e   : > { %v331_v21 = vrot.slane %v329_v15, 1  ;;  %v340_v30 = vor.u32 %v338_v17, %v336_v22  ;;  %v1808_v38 = vshrl.u32 %v5766_v28, 16  ;;  %v1811_v41 = vshll.u32 %v5766_v28, 16  ;;  %v5808_v17 = vld [vmem:[%s5726_s3 + $0x30] sm:$0xff]   ;;  %v5819_v27 = vld [vmem:[%s5726_s3 + $0x38] sm:$0xff]   ;;  %s5246_s4 = smul.u32 4608, %s5598_s13 }
  0x5f   : > { %4555 = vmatpush3.bf16.msra.mxu1 %v5312_v4  ;;  %v1793_v35 = vrot.slane %v1791_v25, 1  ;;  %v1796_v36 = vrot.slane %v1794_v26, 2  ;;  %v1805_v40 = vor.u32 %v1804_v32, %v1801_v31  ;;  %v350_v46 = vshll.u32 %v5769_v34, 16  ;;  %v5328_v4 = vld [vmem:[#allocation5 + $0xa8] sm:$0xff]   ;;  %v5333_v31 = vld [vmem:[#allocation5 + $0xb0] sm:$0xff]   ;;  %s3999_s5 = sshll.u32 %s6492_s17, 4  ;;  %s6575_s5 = int_to_ptr.vmem [resolvable:$true] %s3999_s5 }
  0x60   : > { %4731 = vmatpush3.bf16.msra.mxu0 %v5313_v5  ;;  %4556 = vmatprep.subr.bf16.mxu1 %v5314_v6  ;;  %v332_v29 = vor.u32 %v331_v21, %v327_v14  ;;  %v345_v44 = vsel %vm325_vm0, %v340_v30, %v344_v37  ;;  %v1810_v45 = vrot.slane %v1808_v38, 1  ;;  %v1813_v49 = vrot.slane %v1811_v41, 2  ;;  %v5828_v38 = vld [vmem:[%s5726_s3 + $0x40] sm:$0xff]   ;;  %s6573_s27 = scalar_lea.hbm %s6627_s2, %s5246_s4  ;;  %s3986_s13 = scalar_lea.sflag [#allocation4], %s5722_s26 }
  0x61   : > { %4732 = vmatprep.subr.bf16.mxu0 %v5315_v7  ;;  %v1797_v43 = vor.u32 %v1796_v36, %v1793_v35  ;;  %v348_v50 = vor.u32 %v346_v42, %v344_v37  ;;  %v354_v51 = vshrl.u32 %v5769_v34, 16  ;;  %v352_v53 = vrot.slane %v350_v46, 1  ;;  %v5825_v37 = vld [vmem:[%s5726_s3 + $0x38] sm:$0xff]   ;;  %s5483_s28 = scalar_lea.vmem %s6575_s5, 4608  ;;  %s5559_s6 = smov [#allocation7]  }
  0x62   : > { %v337_v39 = vsel %vm325_vm0, %v332_v29, %v336_v22  ;;  %v1817_v54 = vshrl.u32 %v5779_v47, 16  ;;  %v1820_v55 = vshll.u32 %v5779_v47, 16  ;;  %v1814_v57 = vor.u32 %v1813_v49, %v1810_v45  ;;  %v5813_v22 = vld [vmem:[%s5726_s3 + $0x30] sm:$0xff]   ;;  %v5839_v49 = vld [vmem:[%s5726_s3 + $0x40] sm:$0xff]   ;;  %p5484_p4 = scmp.ne.s32.totalorder %s6575_s5, %s5483_s28  ;;  %s5487_s7 = sshll.u32 %s5559_s6, 4  ;;  %s5488_s7 = int_to_ptr.vmem [resolvable:$false] %s5487_s7 }
  0x63   : > { %4557 = vmatpush3.bf16.msra.mxu1 %v5314_v6  ;;  %4558 = vmatprep.mubr.msk.bf16.mxu1 %vm498_vm1, %v337_v39  ;;  %v1806_v52 = vsel %vm1789_vm2, %v1797_v43, %v1805_v40  ;;  %v358_v58 = vshll.u32 %v5782_v48, 16  ;;  %v353_v60 = vsel %vm325_vm0, %v348_v50, %v352_v53  ;;  %v356_v63 = vor.u32 %v354_v51, %v352_v53  ;;  %v5801_v6 = vld [vmem:[%s5726_s3 + $0x28] sm:$0xff]   ;;  %s5489_s20 = scalar_lea.vmem %s5488_s7, 9216  ;;  %p5490_p10 = scmp.lt.s32.totalorder %s6575_s5, %s5488_s7 }
  0x64   : > { %4733 = vmatpush3.bf16.msra.mxu0 %v5315_v7  ;;  %4734 = vmatprep.mubr.msk.bf16.mxu0 %vm498_vm1, %v1806_v52  ;;  %v1819_v61 = vrot.slane %v1817_v54, 1  ;;  %v1822_v62 = vrot.slane %v1820_v55, 2  ;;  %v1815_v0 = vsel %vm1789_vm2, %v1805_v40, %v1814_v57  ;;  %v1826_v2 = vshrl.u32 %v5792_v59, 16  ;;  %p5485_p6 = pnand %p5484_p4, %p5671_p12  ;;  %p5491_p11 = scmp.lt.s32.totalorder %s5489_s20, %s5483_s28 }
  0x65   : > { %4770 = vmatprep.subr.bf16.mxu0 %v5322_v33  ;;  %4594 = vmatprep.subr.bf16.mxu1 %v5326_v56  ;;  %v360_v1 = vrot.slane %v358_v58, 1  ;;  %v1829_v3 = vshll.u32 %v5792_v59, 16  ;;  %v362_v7 = vshrl.u32 %v5782_v48, 16  ;;  %v366_v16 = vshll.u32 %v5801_v6, 16  ;;  %v5844_v58 = vld [vmem:[%s5726_s3 + $0x48] sm:$0xff]  }
  0x66   : > { %4559 = vmatmul.mubr.msk.bf16.vlgmr.msra.gmra.mrb[0].mxu1 %vm498_vm1, %v345_v44  ;;  %v1823_v5 = vor.u32 %v1822_v62, %v1819_v61  ;;  %v1828_v9 = vrot.slane %v1826_v2, 1  ;;  %v370_v23 = vshrl.u32 %v5801_v6, 16  ;;  %v1835_v25 = vshrl.u32 %v5808_v17, 16  ;;  %p5486_p8 = pneg %p5485_p6  ;;  %p5492_p3 = por %p5491_p11, %p5490_p10 }
  0x67   : > { %4562 = vmatprep.mubr.msk.bf16.mxu1 %vm498_vm1, %v353_v60  ;;  %4595 = vmatpush3.bf16.msra.mxu1 %v5326_v56  ;;  %v361_v8 = vsel %vm325_vm0, %v356_v63, %v360_v1  ;;  %v1831_v12 = vrot.slane %v1829_v3, 2  ;;  %v364_v15 = vor.u32 %v362_v7, %v360_v1  ;;  %v368_v24 = vrot.slane %v366_v16, 1  ;;  %v5338_v3 = vld [vmem:[#allocation5 + $0x8] sm:$0xff]  }
  0x68   : > { %4735 = vmatmul.mubr.msk.bf16.vlgmr.msra.gmra.mrb[0].mxu0 %vm498_vm1, %v1815_v0  ;;  %v1824_v14 = vsel %vm1789_vm2, %v1814_v57, %v1823_v5  ;;  %v1838_v26 = vshll.u32 %v5808_v17, 16  ;;  %v374_v30 = vshll.u32 %v5813_v22, 16  ;;  %v1844_v40 = vshrl.u32 %v5819_v27, 16  ;;  %4596 = vmatprep.subr.bf16.mxu1 %v5338_v3  ;;  %p5493_p7 = pnand %p5492_p3, %p5486_p8 }
  0x69   : > { %4771 = vmatpush3.bf16.msra.mxu0 %v5322_v33  ;;  %4738 = vmatprep.mubr.msk.bf16.mxu0 %vm498_vm1, %v1824_v14  ;;  %v1832_v21 = vor.u32 %v1831_v12, %v1828_v9  ;;  %v369_v32 = vsel %vm325_vm0, %v364_v15, %v368_v24  ;;  %v1837_v33 = vrot.slane %v1835_v25, 1  ;;  %v372_v36 = vor.u32 %v370_v23, %v368_v24  ;;  %v5856_v9 = vld [vmem:[%s5726_s3 + $0x48] sm:$0xff]   ;;  %v5864_v24 = vld [vmem:[%s5726_s3 + $0x50] sm:$0xff]  }
  0x6a   : > { %4772 = vmatprep.subr.bf16.mxu0 %v5328_v4  ;;  %v1840_v35 = vrot.slane %v1838_v26, 2  ;;  %v376_v39 = vrot.slane %v374_v30, 1  ;;  %v1847_v41 = vshll.u32 %v5819_v27, 16  ;;  %v378_v42 = vshrl.u32 %v5813_v22, 16 }
  0x6b   : > { %v1833_v29 = vsel %vm1789_vm2, %v1823_v5, %v1832_v21  ;;  %v382_v44 = vshll.u32 %v5825_v37, 16  ;;  %v1853_v45 = vshrl.u32 %v5828_v38, 16  ;;  %v1856_v46 = vshll.u32 %v5828_v38, 16  ;;  %4597 = vmatpush3.bf16.msra.mxu1 %v5338_v3 }
  0x6c   : > { %v1841_v43 = vor.u32 %v1840_v35, %v1837_v33  ;;  %v377_v50 = vsel %vm325_vm0, %v372_v36, %v376_v39  ;;  %v1846_v51 = vrot.slane %v1844_v40, 1  ;;  %v1849_v52 = vrot.slane %v1847_v41, 2  ;;  %v5874_v35 = vld [vmem:[%s5726_s3 + $0x58] sm:$0xff]  }
  0x6d   : > { %4773 = vmatpush3.bf16.msra.mxu0 %v5328_v4  ;;  %v380_v53 = vor.u32 %v378_v42, %v376_v39  ;;  %v384_v55 = vrot.slane %v382_v44, 1  ;;  %v1855_v56 = vrot.slane %v1853_v45, 1  ;;  %v1858_v57 = vrot.slane %v1856_v46, 2  ;;  %v5339_v4 = vld [vmem:[#allocation5 + $0xb8] sm:$0xff]   ;;  %v5877_v36 = vld [vmem:[%s5726_s3 + $0x58] sm:$0xff]  }
  0x6e   : > { %4563 = vmatmul.mubr.msk.bf16.gmra.mrb[4].mxu1 %vm498_vm1, %v361_v8  ;;  %4774 = vmatprep.subr.bf16.mxu0 %v5333_v31  ;;  %v1842_v54 = vsel %vm1789_vm2, %v1832_v21, %v1841_v43  ;;  %v1850_v60 = vor.u32 %v1849_v52, %v1846_v51  ;;  %v386_v61 = vshrl.u32 %v5825_v37, 16  ;;  %v390_v62 = vshll.u32 %v5839_v49, 16 }
  0x6f   : > { %4566 = vmatprep.mubr.msk.bf16.mxu1 %vm498_vm1, %v369_v32  ;;  %v385_v63 = vsel %vm325_vm0, %v380_v53, %v384_v55  ;;  %v1859_v0 = vor.u32 %v1858_v57, %v1855_v56  ;;  %v1862_v1 = vshrl.u32 %v5844_v58, 16  ;;  %v1865_v2 = vshll.u32 %v5844_v58, 16 }
  0x70   : > { %4739 = vmatmul.mubr.msk.bf16.gmra.mrb[4].mxu0 %vm498_vm1, %v1833_v29  ;;  %v1851_v5 = vsel %vm1789_vm2, %v1841_v43, %v1850_v60  ;;  %v388_v7 = vor.u32 %v386_v61, %v384_v55  ;;  %v392_v8 = vrot.slane %v390_v62, 1  ;;  %v394_v16 = vshrl.u32 %v5839_v49, 16  ;;  %v2251_v43 = vld [vmem:[%s5726_s3 + $0x8] sm:$0xc]  ;;  %v5347_v61 = vld [vmem:[#allocation5 + $0xc0] sm:$0xff]  }
  0x71   : > { %4775 = vmatpush3.bf16.msra.mxu0 %v5333_v31  ;;  %4742 = vmatprep.mubr.msk.bf16.mxu0 %vm498_vm1, %v1842_v54  ;;  %v1860_v12 = vsel %vm1789_vm2, %v1850_v60, %v1859_v0  ;;  %v1864_v14 = vrot.slane %v1862_v1, 1  ;;  %v1867_v15 = vrot.slane %v1865_v2, 2  ;;  %v398_v21 = vshll.u32 %v5856_v9, 16  ;;  %v5869_v31 = vld [vmem:[%s5726_s3 + $0x50] sm:$0xff]   ;;  %v5890_v54 = vld [vmem:[%s5726_s3 + $0x60] sm:$0xff]  }
  0x72   : > { %4776 = vmatprep.subr.bf16.mxu0 %v5339_v4  ;;  %v393_v23 = vsel %vm325_vm0, %v388_v7, %v392_v8  ;;  %v402_v25 = vshrl.u32 %v5856_v9, 16  ;;  %v396_v29 = vor.u32 %v394_v16, %v392_v8  ;;  %v1871_v32 = vshrl.u32 %v5864_v24, 16 }
  0x73   : > { %v1868_v26 = vor.u32 %v1867_v15, %v1864_v14  ;;  %v400_v30 = vrot.slane %v398_v21, 1  ;;  %v1874_v33 = vshll.u32 %v5864_v24, 16  ;;  %v406_v41 = vshll.u32 %v5869_v31, 16  ;;  %v5910_v21 = vld [vmem:[%s5726_s3 + $0x70] sm:$0xff]  }
  0x74   : > { %v410_v42 = vshrl.u32 %v5869_v31, 16  ;;  %v1873_v44 = vrot.slane %v1871_v32, 1  ;;  %v1880_v46 = vshrl.u32 %v5874_v35, 16  ;;  %v414_v53 = vshll.u32 %v5877_v36, 16 }
  0x75   : > { %4777 = vmatpush3.bf16.msra.mxu0 %v5339_v4  ;;  %v401_v39 = vsel %vm325_vm0, %v396_v29, %v400_v30  ;;  %v404_v40 = vor.u32 %v402_v25, %v400_v30  ;;  %v1876_v45 = vrot.slane %v1874_v33, 2  ;;  %v1869_v51 = vsel %vm1789_vm2, %v1859_v0, %v1868_v26  ;;  %v5348_v4 = vld [vmem:[#allocation5 + $0x10] sm:$0xff]   ;;  %v5354_v33 = vld [vmem:[#allocation5 + $0x18] sm:$0xff]  }
  0x76   : > { %4567 = vmatmul.mubr.msk.bf16.gmra.mrb[8].mxu1 %vm498_vm1, %v377_v50  ;;  %v1883_v50 = vshll.u32 %v5874_v35, 16  ;;  %v408_v52 = vrot.slane %v406_v41, 1  ;;  %v1882_v56 = vrot.slane %v1880_v46, 1  ;;  %v4239_v60 = vcombine.low %v2251_v43, %v5745_v13  ;;  %4814 = vmatprep.subr.bf16.mxu0 %v5347_v61  ;;  %v5916_v29 = vld [vmem:[%s5726_s3 + $0x78] sm:$0xff]   ;;  %v5930_v46 = vld [vmem:[%s5726_s3 + $0x80] sm:$0xff]  }
  0x77   : > { %4570 = vmatprep.mubr.msk.bf16.mxu1 %vm498_vm1, %v385_v63  ;;  %v1877_v55 = vor.u32 %v1876_v45, %v1873_v44  ;;  %v416_v63 = vrot.slane %v414_v53, 1  ;;  %v418_v2 = vshrl.u32 %v5877_v36, 16  ;;  %v422_v3 = vshll.u32 %v5890_v54, 16  ;;  %4598 = vmatprep.subr.bf16.mxu1 %v5348_v4 }
  0x78   : > { %4743 = vmatmul.mubr.msk.bf16.gmra.mrb[8].mxu0 %vm498_vm1, %v1851_v5  ;;  %v1885_v57 = vrot.slane %v1883_v50, 2  ;;  %v412_v62 = vor.u32 %v410_v42, %v408_v52  ;;  %v409_v0 = vsel %vm325_vm0, %v404_v40, %v408_v52  ;;  %v5899_v5 = vld [vmem:[%s5726_s3 + $0x68] sm:$0xff]   ;;  %v2266_v8 = vrot.slane %v5752_v18, 2  ;;  %4599 = vmatpush3.bf16.msra.mxu1 %v5348_v4 }
  0x79   : > { %4746 = vmatprep.mubr.msk.bf16.mxu0 %vm498_vm1, %v1860_v12  ;;  %v1878_v1 = vsel %vm1789_vm2, %v1868_v26, %v1877_v55  ;;  %v426_v12 = vshrl.u32 %v5890_v54, 16  ;;  %v2265_v14 = vrot.slane %v4239_v60, 2  ;;  %v430_v15 = vshll.u32 %v5899_v5, 16  ;;  %4600 = vmatprep.subr.bf16.mxu1 %v5354_v33  ;;  %v5935_v52 = vld [vmem:[%s5726_s3 + $0x88] sm:$0xff]   ;;  %v5353_v60 = vld [vmem:[#allocation5 + $0xc8] sm:$0xff]  }
  0x7a   : > { %v5902_v13 = vor.u32 %v1885_v57, %v1882_v56  ;;  %v417_v7 = vsel %vm325_vm0, %v412_v62, %v416_v63  ;;  %v424_v16 = vrot.slane %v422_v3, 1  ;;  %v438_v32 = vshll.u32 %v5910_v21, 16  ;;  %v5938_v56 = vld [vmem:[#allocation5 + $0x40] sm:$0xff]  }
  0x7b   : > { %v432_v26 = vrot.slane %v430_v15, 1  ;;  %v2267_v30 = vsel %vm2264_vm3, %v2265_v14, %v2266_v8  ;;  %v434_v40 = vshrl.u32 %v5899_v5, 16  ;;  %v2268_v41 = vrot.slane %v5766_v28, 2 }
  0x7c   : > { %v1887_v25 = vsel %vm1789_vm2, %v1877_v55, %v5902_v13  ;;  %v428_v18 = vor.u32 %v426_v12, %v424_v16  ;;  %v442_v43 = vshrl.u32 %v5910_v21, 16  ;;  %v446_v44 = vshll.u32 %v5916_v29, 16  ;;  %4601 = vmatpush3.bf16.msra.mxu1 %v5354_v33  ;;  %v5968_v33 = vld [vmem:[#allocation5 + $0xe0] sm:$0xff]  }
  0x7d   : > { %v2270_v45 = vrot.slane %v5779_v47, 2  ;;  %v440_v50 = vrot.slane %v438_v32, 1  ;;  %v2269_v28 = vsel %vm2264_vm3, %v2266_v8, %v2268_v41  ;;  %v454_v47 = vshll.u32 %v5930_v46, 16  ;;  %4638 = vmatprep.subr.bf16.mxu1 %v5938_v56  ;;  %v5357_v8 = vld [vmem:[#allocation5 + $0xd0] sm:$0xff]  }
  0x7e   : > { %4571 = vmatmul.mubr.msk.bf16.gmra.mrb[12].mxu1 %vm498_vm1, %v393_v23  ;;  %v420_v23 = vor.u32 %v418_v2, %v416_v63  ;;  %v433_v42 = vsel %vm325_vm0, %v428_v18, %v432_v26  ;;  %v448_v55 = vrot.slane %v446_v44, 1  ;;  %v2272_v62 = vrot.slane %v5792_v59, 2 }
  0x7f   : > { %4574 = vmatprep.mubr.msk.bf16.mxu1 %vm498_vm1, %v401_v39  ;;  %v444_v53 = vor.u32 %v442_v43, %v440_v50  ;;  %v2271_v57 = vsel %vm2264_vm3, %v2268_v41, %v2270_v45  ;;  %v458_v3 = vshrl.u32 %v5930_v46, 16  ;;  %v462_v4 = vshll.u32 %v5935_v52, 16 }
  0x80   : > { %4747 = vmatmul.mubr.msk.bf16.gmra.mrb[12].mxu0 %vm498_vm1, %v1869_v51  ;;  %v425_v39 = vsel %vm325_vm0, %v420_v23, %v424_v16  ;;  %v436_v51 = vor.u32 %v434_v40, %v432_v26  ;;  %v456_v59 = vrot.slane %v454_v47, 1  ;;  %v5363_v16 = vld [vmem:[#allocation5 + $0xd8] sm:$0xff]   ;;  %v2276_v26 = vrot.slane %v5819_v27, 2  ;;  %v6014_v47 = vld [vmem:[%s5726_s3 + $0x78] sm:$0xff]  }
  0x81   : > { %4750 = vmatprep.mubr.msk.bf16.mxu0 %vm498_vm1, %v1878_v1  ;;  %v2274_v1 = vrot.slane %v5808_v17, 2  ;;  %v449_v2 = vsel %vm325_vm0, %v444_v53, %v448_v55  ;;  %v464_v14 = vrot.slane %v462_v4, 1  ;;  %v2278_v32 = vrot.slane %v5828_v38, 2 }
  0x82   : > { %v441_v63 = vsel %vm325_vm0, %v436_v51, %v440_v50  ;;  %v460_v12 = vor.u32 %v458_v3, %v456_v59  ;;  %v2282_v43 = vrot.slane %v5864_v24, 2  ;;  %v2284_v51 = vrot.slane %v5874_v35, 2  ;;  %v5366_v24 = vld [vmem:[#allocation5 + $0x48] sm:$0xff]   ;;  %v5373_v35 = vld [vmem:[#allocation5 + $0x50] sm:$0xff]  }
  0x83   : > { %v2275_v15 = vsel %vm2264_vm3, %v2272_v62, %v2274_v1  ;;  %v2277_v41 = vsel %vm2264_vm3, %v2274_v1, %v2276_v26  ;;  %v2279_v27 = vsel %vm2264_vm3, %v2276_v26, %v2278_v32  ;;  %v6037_v3 = vld [vmem:[%s5726_s3 + $0x90] sm:$0xff]  }
  0x86   : > { %4575 = vmatmul.mubr.msk.bf16.gmra.mrb[16].mxu1 %vm498_vm1, %v409_v0  ;;  %v450_v0 = vshrl.u32 %v5916_v29, 16 }
  0x87   : > { %4578 = vmatprep.mubr.msk.bf16.mxu1 %vm498_vm1, %v417_v7  ;;  %v5953_v7 = vld [vmem:[%s5726_s3 + $0x90] ss:$0 sps:$4 sm:$0x11]  }
  0x88   : > { %4751 = vmatmul.mubr.msk.bf16.gmra.mrb[16].mxu0 %vm498_vm1, %v1887_v25  ;;  %v452_v17 = vor.u32 %v450_v0, %v448_v55  ;;  %v466_v25 = vshrl.u32 %v5935_v52, 16  ;;  %v470_v18 = vshll.u32 %v5953_v7, 16  ;;  %v6002_v55 = vld [vmem:[%s5726_s3 + $0x70] sm:$0xff]   ;;  %v6033_v0 = vld [vmem:[%s5726_s3 + $0x88] sm:$0xff]  }
  0x89   : > { %4778 = vmatprep.mubr.msk.bf16.mxu0 %vm498_vm1, %v2267_v30  ;;  %v465_v30 = vsel %vm325_vm0, %v460_v12, %v464_v14  ;;  %v2296_v4 = vrot.slane %v6033_v0, 2  ;;  %v6053_v12 = vld [vmem:[%s5726_s3 + $0x98] ss:$0 sps:$4 sm:$0x33]  }
  0x8a   : > { %v457_v23 = vsel %vm325_vm0, %v452_v17, %v456_v59  ;;  %v472_v40 = vrot.slane %v470_v18, 1  ;;  %v2298_v59 = vrot.slane %v6037_v3, 2  ;;  %v6047_v17 = vld [vmem:[%s5726_s3 + $0x14] sm:$0xf] }
  0x8e   : > { %4579 = vmatmul.mubr.msk.bf16.gmra.mrb[20].mxu1 %vm498_vm1, %v425_v39  ;;  %v468_v39 = vor.u32 %v466_v25, %v464_v14  ;;  %v2299_v14 = vsel %vm2264_vm3, %v2296_v4, %v2298_v59 }
  0x8f   : > { %4582 = vmatprep.mubr.msk.bf16.mxu1 %vm498_vm1, %v433_v42  ;;  %v2280_v42 = vrot.slane %v5844_v58, 2 }
  0x90   : > { %4779 = vmatmul.mubr.msk.bf16.vlgmr.msra.gmra.mrb[0].mxu0 %vm498_vm1, %v2269_v28  ;;  %v473_v38 = vsel %vm325_vm0, %v468_v39, %v472_v40  ;;  %v2285_v28 = vsel %vm2264_vm3, %v2282_v43, %v2284_v51  ;;  %v6077_v39 = vld [vmem:[%s5726_s3 + $0x28] sm:$0xff]  }
  0x91   : > { %4815 = vmatpush3.bf16.msra.mxu0 %v5347_v61  ;;  %4782 = vmatprep.mubr.msk.bf16.mxu0 %vm498_vm1, %v2271_v57  ;;  %v2273_v61 = vsel %vm2264_vm3, %v2270_v45, %v2272_v62  ;;  %v2281_v44 = vsel %vm2264_vm3, %v2278_v32, %v2280_v42  ;;  %v5984_v45 = vld [vmem:[%s5726_s3 + $0x60] sm:$0xff]   ;;  %v2283_v50 = vsel %vm2264_vm3, %v2280_v42, %v2282_v43  ;;  %v6093_v43 = vld [vmem:[%s5726_s3 + $0x38] sm:$0xff]  }
  0x92   : > { %4816 = vmatprep.subr.bf16.mxu0 %v5353_v60  ;;  %v2286_v58 = vrot.slane %v5984_v45, 2 }
  0x94   : > { %v2287_v53 = vsel %vm2264_vm3, %v2284_v51, %v2286_v58  ;;  %v2741_v51 = vrot.slane %v6093_v43, 2 }
  0x95   : > { %4817 = vmatpush3.bf16.msra.mxu0 %v5353_v60  ;;  %v6016_v60 = vld [vmem:[#allocation5 + $0x60] sm:$0xff]  }
  0x96   : > { %4583 = vmatmul.mubr.msk.bf16.gmra.mrb[24].mxu1 %vm498_vm1, %v441_v63  ;;  %4818 = vmatprep.subr.bf16.mxu0 %v5357_v8  ;;  %v6020_v63 = vld [vmem:[%s5726_s3 + $0x80] sm:$0xff]  }
  0x97   : > { %4586 = vmatprep.mubr.msk.bf16.mxu1 %vm498_vm1, %v449_v2 }
  0x98   : > { %4783 = vmatmul.mubr.msk.bf16.gmra.mrb[4].mxu0 %vm498_vm1, %v2273_v61 }
  0x99   : > { %4786 = vmatprep.mubr.msk.bf16.mxu0 %vm498_vm1, %v2275_v15  ;;  %4819 = vmatpush3.bf16.msra.mxu0 %v5357_v8  ;;  %v2593_v8 = vld [vmem:[%s5726_s3 + $0x10] sm:$0xc] }
  0x9a   : > { %4820 = vmatprep.subr.bf16.mxu0 %v5363_v16  ;;  %v6057_v15 = vcombine.low %v2593_v8, %v6047_v17 }
  0x9c   : > { %v2732_v25 = vrot.slane %v6057_v15, 2 }
  0x9d   : > { %4821 = vmatpush3.bf16.msra.mxu0 %v5363_v16  ;;  %v6060_v16 = vld [vmem:[%s5726_s3 + $0x18] sm:$0xff]  }
  0x9e   : > { %4587 = vmatmul.mubr.msk.bf16.gmra.mrb[28].mxu1 %vm498_vm1, %v457_v23  ;;  %4858 = vmatprep.subr.bf16.mxu0 %v5968_v33  ;;  %v2300_v23 = vrot.slane %v6053_v12, 2  ;;  %v2733_v18 = vrot.slane %v6060_v16, 2 }
  0x9f   : > { %4590 = vmatprep.mubr.msk.bf16.mxu1 %vm498_vm1, %v465_v30  ;;  %v6073_v30 = vld [vmem:[%s5726_s3 + $0x20] sm:$0xff]  }
  0xa0   : > { %4787 = vmatmul.mubr.msk.bf16.gmra.mrb[8].mxu0 %vm498_vm1, %v2277_v41  ;;  %v2301_v26 = vsel %vm2264_vm3, %v2298_v59, %v2300_v23  ;;  %v2734_v32 = vsel %vm2264_vm3, %v2732_v25, %v2733_v18  ;;  %v2735_v40 = vrot.slane %v6073_v30, 2  ;;  %v2737_v41 = vrot.slane %v6077_v39, 2 }
  0xa1   : > { %4790 = vmatprep.mubr.msk.bf16.mxu0 %vm498_vm1, %v2279_v27 }
  0xa2   : > { %v2736_v27 = vsel %vm2264_vm3, %v2733_v18, %v2735_v40  ;;  %v2738_v42 = vsel %vm2264_vm3, %v2735_v40, %v2737_v41  ;;  %v5408_v18 = vld [vmem:[%s5726_s3 + $0x10] sm:$0xff]   ;;  %v6145_v40 = vld [vmem:[%s5726_s3 + $0x60] sm:$0xff]  }
  0xa6   : > { %4591 = vmatmul.mubr.msk.bf16.gmra.mrb[32].mxu1 %vm498_vm1, %v473_v38  ;;  %v6089_v38 = vld [vmem:[%s5726_s3 + $0x30] sm:$0xff]  }
  0xa7   : > { %4602 = vmatprep.mubr.msk.bf16.mxu1 %vm498_vm1, %v5738_v10  ;;  %v5996_v10 = vld [vmem:[%s5726_s3 + $0x68] sm:$0xff]  }
  0xa8   : > { %4791 = vmatmul.mubr.msk.bf16.gmra.mrb[12].mxu0 %vm498_vm1, %v2281_v44  ;;  %v5378_v44 = vld [vmem:[#allocation5 + $0xe8] sm:$0xff]  }
  0xa9   : > { %4794 = vmatprep.mubr.msk.bf16.mxu0 %vm498_vm1, %v2283_v50  ;;  %v2739_v50 = vrot.slane %v6089_v38, 2 }
  0xae   : > { %4603 = vmatmul.mubr.msk.bf16.vlgmr.msra.gmra.mrb[0].mxu1 %vm498_vm1, %v5741_v11  ;;  %v2288_v11 = vrot.slane %v5996_v10, 2 }
  0xaf   : > { %4606 = vmatprep.mubr.msk.bf16.mxu1 %vm498_vm1, %v5755_v19  ;;  %4639 = vmatpush3.bf16.msra.mxu1 %v5938_v56  ;;  %v5379_v19 = vld [vmem:[#allocation5 + $0x58] sm:$0xff]   ;;  %v2290_v56 = vrot.slane %v6002_v55, 2 }
  0xb0   : > { %4640 = vmatprep.subr.bf16.mxu1 %v5366_v24  ;;  %4795 = vmatmul.mubr.msk.bf16.gmra.mrb[16].mxu0 %vm498_vm1, %v2285_v28  ;;  %v2289_v57 = vsel %vm2264_vm3, %v2286_v58, %v2288_v11  ;;  %v5385_v58 = vld [vmem:[#allocation5 + $0xf0] sm:$0xff]  }
  0xb1   : > { %4798 = vmatprep.mubr.msk.bf16.mxu0 %vm498_vm1, %v2287_v53  ;;  %v2291_v62 = vsel %vm2264_vm3, %v2288_v11, %v2290_v56  ;;  %v6106_v28 = vld [vmem:[%s5726_s3 + $0x40] sm:$0xff]  }
  0xb2   : > { %v967_v53 = vld [vmem:[%s5726_s3] sm:$0xe]  ;;  %v5391_v11 = vld [vmem:[#allocation5 + $0xf8] sm:$0xff]  }
  0xb3   : > { %4641 = vmatpush3.bf16.msra.mxu1 %v5366_v24  ;;  %v2740_v24 = vsel %vm2264_vm3, %v2737_v41, %v2739_v50  ;;  %v5409_v41 = vld [vmem:[%s5726_s3 + $0x18] sm:$0xff]  }
  0xb4   : > { %4642 = vmatprep.subr.bf16.mxu1 %v5373_v35 }
  0xb6   : > { %4607 = vmatmul.mubr.msk.bf16.gmra.mrb[4].mxu1 %vm498_vm1, %v5769_v34  ;;  %v2292_v34 = vrot.slane %v6014_v47, 2 }
  0xb7   : > { %4610 = vmatprep.mubr.msk.bf16.mxu1 %vm498_vm1, %v5782_v48  ;;  %4643 = vmatpush3.bf16.msra.mxu1 %v5373_v35  ;;  %v2294_v48 = vrot.slane %v6020_v63, 2  ;;  %v6110_v35 = vld [vmem:[%s5726_s3 + $0x48] sm:$0xff]  }
  0xb8   : > { %4644 = vmatprep.subr.bf16.mxu1 %v5379_v19  ;;  %4799 = vmatmul.mubr.msk.bf16.gmra.mrb[20].mxu0 %vm498_vm1, %v2289_v57  ;;  %v2293_v1 = vsel %vm2264_vm3, %v2290_v56, %v2292_v34  ;;  %v5406_v56 = vld [vmem:[%s5726_s3 + $0x4] sm:$0xf] }
  0xb9   : > { %4802 = vmatprep.mubr.msk.bf16.mxu0 %vm498_vm1, %v2291_v62  ;;  %v2295_v2 = vsel %vm2264_vm3, %v2292_v34, %v2294_v48  ;;  %v2297_v61 = vsel %vm2264_vm3, %v2294_v48, %v2296_v4  ;;  %v4152_v57 = vcombine.low %v967_v53, %v5406_v56  ;;  %v2745_v62 = vrot.slane %v6110_v35, 2  ;;  %v6118_v34 = vld [vmem:[#allocation5 + $0x100] sm:$0xff]   ;;  %v5410_v53 = vld [vmem:[%s5726_s3 + $0x20] sm:$0xff]  }
  0xba   : > { %v5407_v4 = vld [vmem:[%s5726_s3 + $0x8] sm:$0xff]   ;;  %v6164_v56 = vld [vmem:[%s5726_s3 + $0x70] sm:$0xff]  }
  0xbb   : > { %4645 = vmatpush3.bf16.msra.mxu1 %v5379_v19  ;;  %v2743_v19 = vrot.slane %v6106_v28, 2  ;;  %v982_v59 = vrot.slane %v5407_v4, 1 }
  0xbc   : > { %4682 = vmatprep.subr.bf16.mxu1 %v6016_v60 }
  0xbd   : > { %v2744_v48 = vsel %vm2264_vm3, %v2741_v51, %v2743_v19  ;;  %v2746_v8 = vsel %vm2264_vm3, %v2743_v19, %v2745_v62 }
  0xbe   : > { %4611 = vmatmul.mubr.msk.bf16.gmra.mrb[8].mxu1 %vm498_vm1, %v5801_v6 }
  0xbf   : > { %4614 = vmatprep.mubr.msk.bf16.mxu1 %vm498_vm1, %v5813_v22 }
  0xc0   : > { %4803 = vmatmul.mubr.msk.bf16.gmra.mrb[24].mxu0 %vm498_vm1, %v2293_v1  ;;  %v6126_v1 = vld [vmem:[%s5726_s3 + $0x50] sm:$0xff]  }
  0xc1   : > { %4806 = vmatprep.mubr.msk.bf16.mxu0 %vm498_vm1, %v2295_v2  ;;  %v981_v2 = vrot.slane %v4152_v57, 1  ;;  %v990_v57 = vrot.slane %v5801_v6, 1  ;;  %v5400_v6 = vld [vmem:[#allocation5 + $0x78] sm:$0xff]  }
  0xc3   : > { %v983_v23 = vsel %vm980_vm4, %v981_v2, %v982_v59  ;;  %v6169_v2 = vld [vmem:[%s5726_s3 + $0x78] sm:$0xff]  }
  0xc6   : > { %4615 = vmatmul.mubr.msk.bf16.gmra.mrb[12].mxu1 %vm498_vm1, %v5825_v37 }
  0xc7   : > { %4618 = vmatprep.mubr.msk.bf16.mxu1 %vm498_vm1, %v5839_v49 }
  0xc8   : > { %4807 = vmatmul.mubr.msk.bf16.gmra.mrb[28].mxu0 %vm498_vm1, %v2297_v61  ;;  %v6131_v61 = vld [vmem:[%s5726_s3 + $0x58] sm:$0xff]  }
  0xc9   : > { %4810 = vmatprep.mubr.msk.bf16.mxu0 %vm498_vm1, %v2299_v14  ;;  %v2747_v14 = vrot.slane %v6126_v1, 2  ;;  %v2749_v25 = vrot.slane %v6131_v61, 2 }
  0xce   : > { %4619 = vmatmul.mubr.msk.bf16.gmra.mrb[16].mxu1 %vm498_vm1, %v5856_v9 }
  0xcf   : > { %4622 = vmatprep.mubr.msk.bf16.mxu1 %vm498_vm1, %v5869_v31 }
  0xd0   : > { %4811 = vmatmul.mubr.msk.bf16.gmra.mrb[32].mxu0 %vm498_vm1, %v2301_v26  ;;  %v984_v26 = vrot.slane %v5408_v18, 1  ;;  %v994_v18 = vrot.slane %v5825_v37, 1 }
  0xd1   : > { %4822 = vmatprep.mubr.msk.bf16.mxu0 %vm498_vm1, %v2734_v32  ;;  %v2748_v32 = vsel %vm2264_vm3, %v2745_v62, %v2747_v14  ;;  %v5398_v62 = vld [vmem:[#allocation5 + $0x70] sm:$0xff]  }
  0xd6   : > { %4623 = vmatmul.mubr.msk.bf16.gmra.mrb[20].mxu1 %vm498_vm1, %v5877_v36 }
  0xd7   : > { %4626 = vmatprep.mubr.msk.bf16.mxu1 %vm498_vm1, %v5890_v54 }
  0xd8   : > { %4823 = vmatmul.mubr.msk.bf16.vlgmr.msra.gmra.mrb[0].mxu0 %vm498_vm1, %v2736_v27  ;;  %v986_v27 = vrot.slane %v5409_v41, 1 }
  0xd9   : > { %4859 = vmatpush3.bf16.msra.mxu0 %v5968_v33  ;;  %4826 = vmatprep.mubr.msk.bf16.mxu0 %vm498_vm1, %v2738_v42  ;;  %v2742_v33 = vsel %vm2264_vm3, %v2739_v50, %v2741_v51  ;;  %v2750_v42 = vsel %vm2264_vm3, %v2747_v14, %v2749_v25  ;;  %v985_v50 = vsel %vm980_vm4, %v982_v59, %v984_v26  ;;  %v2751_v51 = vrot.slane %v6145_v40, 2 }
  0xda   : > { %4860 = vmatprep.subr.bf16.mxu0 %v5378_v44  ;;  %v992_v14 = vrot.slane %v5813_v22, 1 }
  0xdb   : > { %v2752_v19 = vsel %vm2264_vm3, %v2749_v25, %v2751_v51  ;;  %v6182_v25 = vld [vmem:[%s5726_s3 + $0x80] sm:$0xff]  }
  0xdc   : > { %v993_v41 = vsel %vm980_vm4, %v990_v57, %v992_v14  ;;  %v2759_v22 = vrot.slane %v6182_v25, 2 }
  0xdd   : > { %4861 = vmatpush3.bf16.msra.mxu0 %v5378_v44  ;;  %v6150_v44 = vld [vmem:[%s5726_s3 + $0x68] sm:$0xff]  }
  0xde   : > { %4627 = vmatmul.mubr.msk.bf16.gmra.mrb[24].mxu1 %vm498_vm1, %v5899_v5  ;;  %4862 = vmatprep.subr.bf16.mxu0 %v5385_v58 }
  0xdf   : > { %4630 = vmatprep.mubr.msk.bf16.mxu1 %vm498_vm1, %v5910_v21 }
  0xe0   : > { %4827 = vmatmul.mubr.msk.bf16.gmra.mrb[4].mxu0 %vm498_vm1, %v2740_v24  ;;  %v5394_v24 = vld [vmem:[#allocation5 + $0x68] sm:$0xff]  }
  0xe1   : > { %4830 = vmatprep.mubr.msk.bf16.mxu0 %vm498_vm1, %v2742_v33  ;;  %4863 = vmatpush3.bf16.msra.mxu0 %v5385_v58  ;;  %v987_v58 = vsel %vm980_vm4, %v984_v26, %v986_v27  ;;  %v2753_v33 = vrot.slane %v6150_v44, 2 }
  0xe2   : > { %4864 = vmatprep.subr.bf16.mxu0 %v5391_v11 }
  0xe5   : > { %4865 = vmatpush3.bf16.msra.mxu0 %v5391_v11  ;;  %v988_v11 = vrot.slane %v5410_v53, 1 }
  0xe6   : > { %4631 = vmatmul.mubr.msk.bf16.gmra.mrb[28].mxu1 %vm498_vm1, %v5916_v29  ;;  %4902 = vmatprep.subr.bf16.mxu0 %v6118_v34 }
  0xe7   : > { %4634 = vmatprep.mubr.msk.bf16.mxu1 %vm498_vm1, %v5930_v46  ;;  %v989_v4 = vsel %vm980_vm4, %v986_v27, %v988_v11  ;;  %v991_v59 = vsel %vm980_vm4, %v988_v11, %v990_v57  ;;  %v995_v27 = vsel %vm980_vm4, %v992_v14, %v994_v18  ;;  %v1002_v14 = vrot.slane %v5877_v36, 1 }
  0xe8   : > { %4831 = vmatmul.mubr.msk.bf16.gmra.mrb[8].mxu0 %vm498_vm1, %v2744_v48  ;;  %v2754_v48 = vsel %vm2264_vm3, %v2751_v51, %v2753_v33  ;;  %v3101_v36 = vshrl.u32 %v6077_v39, 16 }
  0xe9   : > { %4834 = vmatprep.mubr.msk.bf16.mxu0 %vm498_vm1, %v2746_v8  ;;  %v2757_v8 = vrot.slane %v6169_v2, 2 }
  0xeb   : > { %v2760_v51 = vsel %vm2264_vm3, %v2757_v8, %v2759_v22 }
  0xee   : > { %4635 = vmatmul.mubr.msk.bf16.gmra.mrb[32].mxu1 %vm498_vm1, %v5935_v52 }
  0xef   : > { %4646 = vmatprep.mubr.msk.bf16.mxu1 %vm498_vm1, %v983_v23 }
  0xf0   : > { %4835 = vmatmul.mubr.msk.bf16.gmra.mrb[12].mxu0 %vm498_vm1, %v2748_v32  ;;  %v6187_v32 = vld [vmem:[%s5726_s3 + $0x88] sm:$0xff]  }
  0xf1   : > { %4838 = vmatprep.mubr.msk.bf16.mxu0 %vm498_vm1, %v2750_v42  ;;  %v6194_v42 = vld [vmem:[#allocation5 + $0x80] sm:$0xff]   ;;  %v2761_v37 = vrot.slane %v6187_v32, 2 }
  0xf3   : > { %v2762_v53 = vsel %vm2264_vm3, %v2759_v22, %v2761_v37 }
  0xf6   : > { %4647 = vmatmul.mubr.msk.bf16.vlgmr.msra.gmra.mrb[0].mxu1 %vm498_vm1, %v985_v50  ;;  %v996_v50 = vrot.slane %v5839_v49, 1 }
  0xf7   : > { %4650 = vmatprep.mubr.msk.bf16.mxu1 %vm498_vm1, %v987_v58  ;;  %4683 = vmatpush3.bf16.msra.mxu1 %v6016_v60  ;;  %v2755_v60 = vrot.slane %v6164_v56, 2  ;;  %v6203_v58 = vld [vmem:[%s5726_s3 + $0x90] sm:$0xff]  }
  0xf8   : > { %4684 = vmatprep.subr.bf16.mxu1 %v5394_v24  ;;  %4839 = vmatmul.mubr.msk.bf16.gmra.mrb[16].mxu0 %vm498_vm1, %v2752_v19  ;;  %v997_v11 = vsel %vm980_vm4, %v994_v18, %v996_v50  ;;  %v2763_v19 = vrot.slane %v6203_v58, 2 }
  0xf9   : > { %4842 = vmatprep.mubr.msk.bf16.mxu0 %vm498_vm1, %v2754_v48  ;;  %v2756_v23 = vsel %vm2264_vm3, %v2753_v33, %v2755_v60  ;;  %v2758_v26 = vsel %vm2264_vm3, %v2755_v60, %v2757_v8  ;;  %v6207_v33 = vld [vmem:[%s5726_s3 + $0x98] sm:$0xff]   ;;  %v3083_v48 = vshrl.u32 %v6060_v16, 16  ;;  %v1000_v60 = vrot.slane %v5869_v31, 1  ;;  %v5396_v8 = vld [vmem:[%s5726_s3 + $0xa0] ss:$0 sps:$4 sm:$0x33]  }
  0xfa   : > { %v2765_v57 = vrot.slane %v6207_v33, 2  ;;  %v2767_v22 = vrot.slane %v5396_v8, 2 }
  0xfb   : > { %4685 = vmatpush3.bf16.msra.mxu1 %v5394_v24  ;;  %v998_v24 = vrot.slane %v5856_v9, 1  ;;  %v3078_v9 = vshll.u32 %v6057_v15, 16  ;;  %v1003_v31 = vsel %vm980_vm4, %v1000_v60, %v1002_v14 }
  0xfc   : > { %4686 = vmatprep.subr.bf16.mxu1 %v5398_v62 }
  0xfd   : > { %v999_v49 = vsel %vm980_vm4, %v996_v50, %v998_v24  ;;  %v3080_v18 = vrot.slane %v3078_v9, 3 }
  0xfe   : > { %4651 = vmatmul.mubr.msk.bf16.gmra.mrb[4].mxu1 %vm498_vm1, %v989_v4  ;;  %v3086_v4 = vshll.u32 %v6060_v16, 16 }
  0xff   : > { %4654 = vmatprep.mubr.msk.bf16.mxu1 %vm498_vm1, %v991_v59  ;;  %4687 = vmatpush3.bf16.msra.mxu1 %v5398_v62  ;;  %v3075_v62 = vshrl.u32 %v6057_v15, 16  ;;  %v2764_v59 = vsel %vm2264_vm3, %v2761_v37, %v2763_v19  ;;  %v3085_v15 = vrot.slane %v3083_v48, 2  ;;  %v3095_v37 = vshll.u32 %v6073_v30, 16 }
 0x100   : > { %4688 = vmatprep.subr.bf16.mxu1 %v5400_v6  ;;  %4843 = vmatmul.mubr.msk.bf16.gmra.mrb[20].mxu0 %vm498_vm1, %v2756_v23  ;;  %v3103_v48 = vrot.slane %v3101_v36, 2  ;;  %v3128_v36 = vshrl.u32 %v6106_v28, 16 }
 0x101   : > { %4846 = vmatprep.mubr.msk.bf16.mxu0 %vm498_vm1, %v2758_v26  ;;  %v3077_v23 = vrot.slane %v3075_v62, 2  ;;  %v3088_v26 = vrot.slane %v3086_v4, 3  ;;  %v1006_v62 = vrot.slane %v5899_v5, 1  ;;  %v3119_v5 = vshrl.u32 %v6093_v43, 16 }
 0x103   : > { %4689 = vmatpush3.bf16.msra.mxu1 %v5400_v6  ;;  %v2766_v6 = vsel %vm2264_vm3, %v2763_v19, %v2765_v57  ;;  %v3081_v50 = vor.u32 %v3080_v18, %v3077_v23  ;;  %v3122_v23 = vshll.u32 %v6093_v43, 16 }
 0x104   : > { %4946 = vmatprep.subr.bf16.mxu1 %v6194_v42 }
 0x106   : > { %4655 = vmatmul.mubr.msk.bf16.gmra.mrb[8].mxu1 %vm498_vm1, %v993_v41  ;;  %v1001_v41 = vsel %vm980_vm4, %v998_v24, %v1000_v60  ;;  %v1004_v24 = vrot.slane %v5890_v54, 1  ;;  %v3110_v54 = vshrl.u32 %v6089_v38, 16 }
 0x107   : > { %4658 = vmatprep.mubr.msk.bf16.mxu1 %vm498_vm1, %v995_v27  ;;  %v3092_v27 = vshrl.u32 %v6073_v30, 16 }
 0x108   : > { %4847 = vmatmul.mubr.msk.bf16.gmra.mrb[24].mxu0 %vm498_vm1, %v2760_v51  ;;  %v3089_v51 = vor.u32 %v3088_v26, %v3085_v15  ;;  %v1005_v60 = vsel %vm980_vm4, %v1002_v14, %v1004_v24  ;;  %v1008_v14 = vrot.slane %v5910_v21, 1  ;;  %v3112_v15 = vrot.slane %v3110_v54, 2 }
 0x109   : > { %4850 = vmatprep.mubr.msk.bf16.mxu0 %vm498_vm1, %v2762_v53  ;;  %v3104_v53 = vshll.u32 %v6077_v39, 16  ;;  %v3094_v19 = vrot.slane %v3092_v27, 2  ;;  %v3124_v27 = vrot.slane %v3122_v23, 3  ;;  %v3155_v23 = vshrl.u32 %v6131_v61, 16 }
 0x10a   : > { %v3090_v9 = vsel %vm3073_vm5, %v3081_v50, %v3089_v51  ;;  %v1009_v50 = vsel %vm980_vm4, %v1006_v62, %v1008_v14 }
 0x10b   : > { %v3106_v4 = vrot.slane %v3104_v53, 3 }
 0x10d   : > { %v3107_v8 = vor.u32 %v3106_v4, %v3103_v48  ;;  %v1014_v48 = vrot.slane %v5935_v52, 1  ;;  %v3149_v52 = vshll.u32 %v6126_v1, 16 }
 0x10e   : > { %4659 = vmatmul.mubr.msk.bf16.gmra.mrb[12].mxu1 %vm498_vm1, %v997_v11  ;;  %v2768_v11 = vsel %vm2264_vm3, %v2765_v57, %v2767_v22  ;;  %v3113_v57 = vshll.u32 %v6089_v38, 16 }
 0x10f   : > { %4662 = vmatprep.mubr.msk.bf16.mxu1 %vm498_vm1, %v999_v49  ;;  %v3097_v49 = vrot.slane %v3095_v37, 3  ;;  %v5399_v37 = vld [vmem:[#allocation5 + $0x108] sm:$0xff]  }
 0x110   : > { %4851 = vmatmul.mubr.msk.bf16.gmra.mrb[28].mxu0 %vm498_vm1, %v2764_v59  ;;  %v3115_v26 = vrot.slane %v3113_v57, 3  ;;  %v3146_v57 = vshrl.u32 %v6126_v1, 16 }
 0x111   : > { %4854 = vmatprep.mubr.msk.bf16.mxu0 %vm498_vm1, %v2766_v6  ;;  %v3098_v59 = vor.u32 %v3097_v49, %v3094_v19  ;;  %v1007_v6 = vsel %vm980_vm4, %v1004_v24, %v1006_v62  ;;  %v3137_v24 = vshrl.u32 %v6110_v35, 16  ;;  %v5401_v19 = vld [vmem:[#allocation5 + $0x110] sm:$0xff]   ;;  %v3130_v62 = vrot.slane %v3128_v36, 2 }
 0x112   : > { %v3116_v21 = vor.u32 %v3115_v26, %v3112_v15  ;;  %v3148_v15 = vrot.slane %v3146_v57, 2 }
 0x113   : > { %v3099_v18 = vsel %vm3073_vm5, %v3089_v51, %v3098_v59  ;;  %v3108_v22 = vsel %vm3073_vm5, %v3098_v59, %v3107_v8 }
 0x114   : > { %v3117_v49 = vsel %vm3073_vm5, %v3107_v8, %v3116_v21 }
 0x116   : > { %4663 = vmatmul.mubr.msk.bf16.gmra.mrb[16].mxu1 %vm498_vm1, %v1001_v41  ;;  %v1010_v41 = vrot.slane %v5916_v29, 1  ;;  %v3131_v29 = vshll.u32 %v6106_v28, 16 }
 0x117   : > { %4666 = vmatprep.mubr.msk.bf16.mxu1 %vm498_vm1, %v1003_v31  ;;  %v3121_v31 = vrot.slane %v3119_v5, 2 }
 0x118   : > { %4855 = vmatmul.mubr.msk.bf16.gmra.mrb[32].mxu0 %vm498_vm1, %v2768_v11  ;;  %v1011_v51 = vsel %vm980_vm4, %v1008_v14, %v1010_v41  ;;  %v3140_v11 = vshll.u32 %v6110_v35, 16  ;;  %v3158_v14 = vshll.u32 %v6131_v61, 16 }
 0x119   : > { %4866 = vmatprep.mubr.msk.bf16.mxu0 %vm498_vm1, %v3090_v9  ;;  %v3125_v53 = vor.u32 %v3124_v27, %v3121_v31  ;;  %v3133_v9 = vrot.slane %v3131_v29, 3  ;;  %v5412_v31 = vld [vmem:[%s5726_s3 + $0x10] sm:$0xff]   ;;  %v3167_v29 = vshll.u32 %v6145_v40, 16 }
 0x11a   : > { %v3142_v59 = vrot.slane %v3140_v11, 3  ;;  %v1449_v27 = vrot.slane %v5412_v31, 1  ;;  %v3176_v11 = vshll.u32 %v6150_v44, 16  ;;  %v5416_v31 = vld [vmem:[%s5726_s3 + $0x30] sm:$0xff]  }
 0x11b   : > { %v3126_v4 = vsel %vm3073_vm5, %v3116_v21, %v3125_v53  ;;  %v3160_v21 = vrot.slane %v3158_v14, 3  ;;  %v3194_v14 = vshll.u32 %v6169_v2, 16 }
 0x11e   : > { %4667 = vmatmul.mubr.msk.bf16.gmra.mrb[20].mxu1 %vm498_vm1, %v1005_v60  ;;  %v3139_v60 = vrot.slane %v3137_v24, 2  ;;  %v3173_v24 = vshrl.u32 %v6150_v44, 16 }
 0x11f   : > { %4670 = vmatprep.mubr.msk.bf16.mxu1 %vm498_vm1, %v1007_v6  ;;  %v5402_v6 = vld [vmem:[#allocation5 + $0x118] sm:$0xff]  }
 0x120   : > { %4867 = vmatmul.mubr.msk.bf16.vlgmr.msra.gmra.mrb[0].mxu0 %vm498_vm1, %v3099_v18  ;;  %v3143_v5 = vor.u32 %v3142_v59, %v3139_v60  ;;  %v1016_v18 = vrot.slane %v5953_v7, 1  ;;  %v3175_v59 = vrot.slane %v3173_v24, 2 }
 0x121   : > { %4903 = vmatpush3.bf16.msra.mxu0 %v6118_v34  ;;  %4870 = vmatprep.mubr.msk.bf16.mxu0 %vm498_vm1, %v3108_v22  ;;  %v1012_v34 = vrot.slane %v5930_v46, 1  ;;  %v3134_v46 = vor.u32 %v3133_v9, %v3130_v62  ;;  %v1448_v22 = vrot.slane %v5758_v20, 1  ;;  %v3164_v20 = vshrl.u32 %v6145_v40, 16 }
 0x122   : > { %4904 = vmatprep.subr.bf16.mxu0 %v5399_v37  ;;  %v3169_v9 = vrot.slane %v3167_v29, 3  ;;  %v3203_v29 = vshll.u32 %v6182_v25, 16 }
 0x123   : > { %v1013_v54 = vsel %vm980_vm4, %v1010_v41, %v1012_v34  ;;  %v1015_v8 = vsel %vm980_vm4, %v1012_v34, %v1014_v48  ;;  %v3135_v26 = vsel %vm3073_vm5, %v3125_v53, %v3134_v46  ;;  %v3151_v41 = vrot.slane %v3149_v52, 3 }
 0x124   : > { %v1450_v36 = vsel %vm980_vm4, %v1448_v22, %v1449_v27  ;;  %v3166_v62 = vrot.slane %v3164_v20, 2  ;;  %v3185_v52 = vshll.u32 %v6164_v56, 16  ;;  %v3200_v20 = vshrl.u32 %v6182_v25, 16 }
 0x125   : > { %4905 = vmatpush3.bf16.msra.mxu0 %v5399_v37  ;;  %v3144_v37 = vsel %vm3073_vm5, %v3134_v46, %v3143_v5  ;;  %v3152_v7 = vor.u32 %v3151_v41, %v3148_v15 }
 0x126   : > { %4671 = vmatmul.mubr.msk.bf16.gmra.mrb[24].mxu1 %vm498_vm1, %v1009_v50  ;;  %4906 = vmatprep.subr.bf16.mxu0 %v5401_v19  ;;  %v3157_v50 = vrot.slane %v3155_v23, 2  ;;  %v3170_v57 = vor.u32 %v3169_v9, %v3166_v62  ;;  %v3191_v23 = vshrl.u32 %v6169_v2, 16  ;;  %v3187_v22 = vrot.slane %v3185_v52, 3 }
 0x127   : > { %4674 = vmatprep.mubr.msk.bf16.mxu1 %vm498_vm1, %v1011_v51  ;;  %v1017_v51 = vsel %vm980_vm4, %v1014_v48, %v1016_v18  ;;  %v5414_v48 = vld [vmem:[%s5726_s3 + $0x20] sm:$0xff]   ;;  %v5415_v18 = vld [vmem:[%s5726_s3 + $0x28] sm:$0xff]   ;;  %v3202_v9 = vrot.slane %v3200_v20, 2 }
 0x128   : > { %4871 = vmatmul.mubr.msk.bf16.gmra.mrb[4].mxu0 %vm498_vm1, %v3117_v49  ;;  %v3161_v53 = vor.u32 %v3160_v21, %v3157_v50  ;;  %v3153_v49 = vsel %vm3073_vm5, %v3143_v5, %v3152_v7  ;;  %v1455_v15 = vrot.slane %v5415_v18, 1  ;;  %v3193_v21 = vrot.slane %v3191_v23, 2 }
 0x129   : > { %4874 = vmatprep.mubr.msk.bf16.mxu0 %vm498_vm1, %v3126_v4  ;;  %4907 = vmatpush3.bf16.msra.mxu0 %v5401_v19  ;;  %v5413_v19 = vld [vmem:[%s5726_s3 + $0x18] sm:$0xff]   ;;  %v1453_v4 = vrot.slane %v5414_v48, 1  ;;  %v3205_v48 = vrot.slane %v3203_v29, 3  ;;  %v3221_v23 = vshll.u32 %v6203_v58, 16  ;;  %v3227_v18 = vshrl.u32 %v6207_v33, 16 }
 0x12a   : > { %4908 = vmatprep.subr.bf16.mxu0 %v5402_v6  ;;  %v1451_v34 = vrot.slane %v5413_v19, 1  ;;  %v3162_v60 = vsel %vm3073_vm5, %v3152_v7, %v3161_v53  ;;  %v3212_v19 = vshll.u32 %v6187_v32, 16 }
 0x12b   : > { %v1456_v7 = vsel %vm980_vm4, %v1453_v4, %v1455_v15 }
 0x12c   : > { %v1454_v46 = vsel %vm980_vm4, %v1451_v34, %v1453_v4  ;;  %v5420_v4 = vld [vmem:[%s5726_s3 + $0x40] sm:$0xff]  }
 0x12d   : > { %4909 = vmatpush3.bf16.msra.mxu0 %v5402_v6  ;;  %v3178_v6 = vrot.slane %v3176_v11, 3  ;;  %v3209_v11 = vshrl.u32 %v6187_v32, 16 }
 0x12e   : > { %4675 = vmatmul.mubr.msk.bf16.gmra.mrb[28].mxu1 %vm498_vm1, %v1013_v54  ;;  %v1452_v54 = vsel %vm980_vm4, %v1449_v27, %v1451_v34  ;;  %v1457_v27 = vrot.slane %v5416_v31, 1  ;;  %v5419_v34 = vld [vmem:[%s5726_s3 + $0x38] sm:$0xff]  }
 0x12f   : > { %4678 = vmatprep.mubr.msk.bf16.mxu1 %vm498_vm1, %v1015_v8  ;;  %v3182_v8 = vshrl.u32 %v6164_v56, 16  ;;  %v3179_v5 = vor.u32 %v3178_v6, %v3175_v59  ;;  %v5421_v59 = vld [vmem:[#allocation5 + $0x98] sm:$0xff]  }
 0x130   : > { %4875 = vmatmul.mubr.msk.bf16.gmra.mrb[8].mxu0 %vm498_vm1, %v3135_v26  ;;  %v3171_v26 = vsel %vm3073_vm5, %v3161_v53, %v3170_v57  ;;  %v5418_v53 = vld [vmem:[#allocation5 + $0x90] sm:$0xff]  }
 0x131   : > { %4878 = vmatprep.mubr.msk.bf16.mxu0 %vm498_vm1, %v3144_v37  ;;  %v3184_v41 = vrot.slane %v3182_v8, 2  ;;  %v5417_v37 = vld [vmem:[#allocation5 + $0x88] sm:$0xff]   ;;  %v3180_v50 = vsel %vm3073_vm5, %v3170_v57, %v3179_v5  ;;  %v3214_v57 = vrot.slane %v3212_v19, 3  ;;  %v3206_v8 = vor.u32 %v3205_v48, %v3202_v9  ;;  %v3535_v19 = vld [vmem:[%s5726_s3 + $0x10] sm:$0x8] }
 0x136   : > { %4679 = vmatmul.mubr.msk.bf16.gmra.mrb[32].mxu1 %vm498_vm1, %v1017_v51  ;;  %v3196_v51 = vrot.slane %v3194_v14, 3 }
 0x137   : > { %4690 = vmatprep.mubr.msk.bf16.mxu1 %vm498_vm1, %v1450_v36  ;;  %v1458_v36 = vsel %vm980_vm4, %v1455_v15, %v1457_v27  ;;  %v3230_v15 = vshll.u32 %v6207_v33, 16 }
 0x138   : > { %4879 = vmatmul.mubr.msk.bf16.gmra.mrb[12].mxu0 %vm498_vm1, %v3153_v49  ;;  %v3197_v24 = vor.u32 %v3196_v51, %v3193_v21  ;;  %v1459_v49 = vrot.slane %v5419_v34, 1  ;;  %v6342_v21 = vld [vmem:[%s5726_s3 + $0xa0] ss:$0 sps:$4 sm:$0x77]   ;;  %v5424_v34 = vld [vmem:[%s5726_s3 + $0x58] sm:$0xff]  }
 0x139   : > { %4882 = vmatprep.mubr.msk.bf16.mxu0 %vm498_vm1, %v3162_v60  ;;  %v1461_v60 = vrot.slane %v5420_v4, 1  ;;  %v1469_v4 = vrot.slane %v5984_v45, 1 }
 0x13b   : > { %v1462_v52 = vsel %vm980_vm4, %v1459_v49, %v1461_v60 }
 0x13e   : > { %4691 = vmatmul.mubr.msk.bf16.vlgmr.msra.gmra.mrb[0].mxu1 %vm498_vm1, %v1452_v54  ;;  %v3211_v54 = vrot.slane %v3209_v11, 2 }
 0x13f   : > { %4694 = vmatprep.mubr.msk.bf16.mxu1 %vm498_vm1, %v1454_v46  ;;  %4950 = vmatpush3.bf16.msra.mxu1 %v6194_v42  ;;  %v3188_v42 = vor.u32 %v3187_v22, %v3184_v41  ;;  %v1460_v46 = vsel %vm980_vm4, %v1457_v27, %v1459_v49  ;;  %v3207_v22 = vsel %vm3073_vm5, %v3197_v24, %v3206_v8  ;;  %v3223_v27 = vrot.slane %v3221_v23, 3 }
 0x140   : > { %4947 = vmatprep.subr.bf16.mxu1 %v5417_v37  ;;  %4883 = vmatmul.mubr.msk.bf16.gmra.mrb[16].mxu0 %vm498_vm1, %v3171_v26  ;;  %v3215_v14 = vor.u32 %v3214_v57, %v3211_v54  ;;  %v5422_v26 = vld [vmem:[%s5726_s3 + $0x48] sm:$0xff]   ;;  %v1467_v49 = vrot.slane %v5424_v34, 1  ;;  %v1898_v34 = vshrl.u32 %v5996_v10, 16 }
 0x141   : > { %4886 = vmatprep.mubr.msk.bf16.mxu0 %vm498_vm1, %v3180_v50  ;;  %v3189_v62 = vsel %vm3073_vm5, %v3179_v5, %v3188_v42  ;;  %v3198_v6 = vsel %vm3073_vm5, %v3188_v42, %v3197_v24  ;;  %v3218_v5 = vshrl.u32 %v6203_v58, 16  ;;  %v1463_v41 = vrot.slane %v5422_v26, 1 }
 0x142   : > { %v3216_v51 = vsel %vm3073_vm5, %v3206_v8, %v3215_v14  ;;  %v3232_v42 = vrot.slane %v3230_v15, 3  ;;  %v3239_v24 = vshll.u32 %v6342_v21, 16  ;;  %v1470_v57 = vsel %vm980_vm4, %v1467_v49, %v1469_v4 }
 0x143   : > { %4951 = vmatpush3.bf16.msra.mxu1 %v5417_v37  ;;  %v3220_v31 = vrot.slane %v3218_v5, 2  ;;  %v5423_v37 = vld [vmem:[%s5726_s3 + $0x50] sm:$0xff]   ;;  %v3550_v8 = vrot.slane %v6060_v16, 3  ;;  %v1473_v5 = vrot.slane %v6002_v55, 1  ;;  %v3552_v16 = vrot.slane %v6073_v30, 3 }
 0x144   : > { %4948 = vmatprep.subr.bf16.mxu1 %v5418_v53  ;;  %v1465_v50 = vrot.slane %v5423_v37, 1  ;;  %v3241_v48 = vrot.slane %v3239_v24, 3  ;;  %v3554_v15 = vrot.slane %v6077_v39, 3  ;;  %v1475_v26 = vrot.slane %v6014_v47, 1 }
 0x145   : > { %v3224_v20 = vor.u32 %v3223_v27, %v3220_v31  ;;  %v3556_v39 = vrot.slane %v6089_v38, 3  ;;  %v3558_v37 = vrot.slane %v6093_v43, 3 }
 0x146   : > { %4695 = vmatmul.mubr.msk.bf16.gmra.mrb[4].mxu1 %vm498_vm1, %v1456_v7  ;;  %v3229_v7 = vrot.slane %v3227_v18, 2  ;;  %v1466_v29 = vsel %vm980_vm4, %v1463_v41, %v1465_v50  ;;  %v3555_v31 = vsel %vm3548_vm6, %v3552_v16, %v3554_v15  ;;  %v1476_v30 = vsel %vm980_vm4, %v1473_v5, %v1475_v26 }
 0x147   : > { %4698 = vmatprep.mubr.msk.bf16.mxu1 %vm498_vm1, %v1458_v36  ;;  %4952 = vmatpush3.bf16.msra.mxu1 %v5418_v53  ;;  %v1464_v36 = vsel %vm980_vm4, %v1461_v60, %v1463_v41  ;;  %v3236_v53 = vshrl.u32 %v6342_v21, 16  ;;  %v3553_v41 = vsel %vm3548_vm6, %v3550_v8, %v3552_v16  ;;  %v3559_v38 = vsel %vm3548_vm6, %v3556_v39, %v3558_v37 }
 0x148   : > { %4949 = vmatprep.subr.bf16.mxu1 %v5421_v59  ;;  %4887 = vmatmul.mubr.msk.bf16.gmra.mrb[20].mxu0 %vm498_vm1, %v3189_v62  ;;  %v3233_v11 = vor.u32 %v3232_v42, %v3229_v7  ;;  %v3225_v62 = vsel %vm3073_vm5, %v3215_v14, %v3224_v20  ;;  %v1481_v7 = vrot.slane %v6037_v3, 1  ;;  %v1889_v42 = vshrl.u32 %v5984_v45, 16 }
 0x149   : > { %4890 = vmatprep.mubr.msk.bf16.mxu0 %vm498_vm1, %v3198_v6  ;;  %v3238_v9 = vrot.slane %v3236_v53, 2  ;;  %v1468_v6 = vsel %vm980_vm4, %v1465_v50, %v1467_v49  ;;  %v1479_v50 = vrot.slane %v6033_v0, 1  ;;  %v1901_v49 = vshll.u32 %v5996_v10, 16 }
 0x14a   : > { %v3234_v60 = vsel %vm3073_vm5, %v3224_v20, %v3233_v11  ;;  %v5405_v20 = vld [vmem:[%s5726_s3 + $0x98] ss:$0 sps:$4 sm:$0x11]   ;;  %v1891_v24 = vrot.slane %v1889_v42, 1 }
 0x14b   : > { %4953 = vmatpush3.bf16.msra.mxu1 %v5421_v59  ;;  %v4326_v59 = vcombine.low %v3535_v19, %v6047_v17  ;;  %v3242_v54 = vor.u32 %v3241_v48, %v3238_v9  ;;  %v1482_v53 = vsel %vm980_vm4, %v1479_v50, %v1481_v7  ;;  %v3562_v19 = vrot.slane %v6110_v35, 3 }
 0x14c   : > { %v1910_v48 = vshll.u32 %v6002_v55, 16 }
 0x14d   : > { %v3243_v17 = vsel %vm3073_vm5, %v3233_v11, %v3242_v54 }
 0x14e   : > { %4699 = vmatmul.mubr.msk.bf16.gmra.mrb[8].mxu1 %vm498_vm1, %v1460_v46  ;;  %v3549_v46 = vrot.slane %v4326_v59, 3  ;;  %v1903_v59 = vrot.slane %v1901_v49, 2 }
 0x14f   : > { %4702 = vmatprep.mubr.msk.bf16.mxu1 %vm498_vm1, %v1462_v52  ;;  %v1471_v52 = vrot.slane %v5996_v10, 1 }
 0x150   : > { %4891 = vmatmul.mubr.msk.bf16.gmra.mrb[24].mxu0 %vm498_vm1, %v3207_v22  ;;  %v3551_v23 = vsel %vm3548_vm6, %v3549_v46, %v3550_v8  ;;  %v1477_v22 = vrot.slane %v6020_v63, 1  ;;  %v3566_v46 = vrot.slane %v6131_v61, 3  ;;  %v1916_v8 = vshrl.u32 %v6014_v47, 16 }
 0x151   : > { %4894 = vmatprep.mubr.msk.bf16.mxu0 %vm498_vm1, %v3216_v51  ;;  %v1472_v14 = vsel %vm980_vm4, %v1469_v4, %v1471_v52  ;;  %v1474_v18 = vsel %vm980_vm4, %v1471_v52, %v1473_v5  ;;  %v3557_v51 = vsel %vm3548_vm6, %v3554_v15, %v3556_v39  ;;  %v1919_v52 = vshll.u32 %v6014_v47, 16 }
 0x152   : > { %v1478_v27 = vsel %vm980_vm4, %v1475_v26, %v1477_v22  ;;  %v1480_v43 = vsel %vm980_vm4, %v1477_v22, %v1479_v50  ;;  %v1934_v22 = vshrl.u32 %v6033_v0, 16 }
 0x153   : > { %v1921_v16 = vrot.slane %v1919_v52, 2 }
 0x154   : > { %v1936_v50 = vrot.slane %v1934_v22, 1 }
 0x156   : > { %4703 = vmatmul.mubr.msk.bf16.gmra.mrb[12].mxu1 %vm498_vm1, %v1464_v36  ;;  %v1892_v36 = vshll.u32 %v5984_v45, 16  ;;  %v1483_v45 = vrot.slane %v5405_v20, 1  ;;  %v1955_v20 = vshll.u32 %v6053_v12, 16 }
 0x157   : > { %4706 = vmatprep.mubr.msk.bf16.mxu1 %vm498_vm1, %v1466_v29  ;;  %v3560_v29 = vrot.slane %v6106_v28, 3  ;;  %v1907_v28 = vshrl.u32 %v6002_v55, 16 }
 0x158   : > { %4895 = vmatmul.mubr.msk.bf16.gmra.mrb[28].mxu0 %vm498_vm1, %v3225_v62  ;;  %v1894_v11 = vrot.slane %v1892_v36, 2  ;;  %v1484_v35 = vsel %vm980_vm4, %v1481_v7, %v1483_v45  ;;  %v3572_v7 = vrot.slane %v6164_v56, 3 }
 0x159   : > { %4898 = vmatprep.mubr.msk.bf16.mxu0 %vm498_vm1, %v3234_v60  ;;  %v3561_v62 = vsel %vm3548_vm6, %v3558_v37, %v3560_v29  ;;  %v3563_v4 = vsel %vm3548_vm6, %v3560_v29, %v3562_v19  ;;  %v1900_v60 = vrot.slane %v1898_v34, 1  ;;  %v1909_v54 = vrot.slane %v1907_v28, 1 }
 0x15a   : > { %v1895_v9 = vor.u32 %v1894_v11, %v1891_v24  ;;  %v3578_v34 = vrot.slane %v6187_v32, 3  ;;  %v3582_v28 = vrot.slane %v6207_v33, 3 }
 0x15b   : > { %v1904_v55 = vor.u32 %v1903_v59, %v1900_v60 }
 0x15c   : > { %v1896_v10 = vsel %vm1789_vm2, %v5902_v13, %v1895_v9  ;;  %v1928_v13 = vshll.u32 %v6020_v63, 16 }
 0x15d   : > { %v1905_v61 = vsel %vm1789_vm2, %v1895_v9, %v1904_v55 }
 0x15e   : > { %4707 = vmatmul.mubr.msk.bf16.gmra.mrb[16].mxu1 %vm498_vm1, %v1468_v6  ;;  %v3564_v6 = vrot.slane %v6126_v1, 3  ;;  %v1925_v1 = vshrl.u32 %v6020_v63, 16  ;;  %v1930_v26 = vrot.slane %v1928_v13, 2 }
 0x15f   : > { %4710 = vmatprep.mubr.msk.bf16.mxu1 %vm498_vm1, %v1470_v57  ;;  %v1912_v57 = vrot.slane %v1910_v48, 2 }
 0x160   : > { %4899 = vmatmul.mubr.msk.bf16.gmra.mrb[32].mxu0 %vm498_vm1, %v3243_v17  ;;  %v3565_v17 = vsel %vm3548_vm6, %v3562_v19, %v3564_v6  ;;  %v1927_v15 = vrot.slane %v1925_v1, 1  ;;  %v3576_v19 = vrot.slane %v6182_v25, 3  ;;  %v3580_v25 = vrot.slane %v6203_v58, 3 }
 0x161   : > { %4910 = vmatprep.mubr.msk.bf16.mxu0 %vm498_vm1, %v3551_v23  ;;  %v1913_v5 = vor.u32 %v1912_v57, %v1909_v54  ;;  %v3567_v23 = vsel %vm3548_vm6, %v3564_v6, %v3566_v46 }
 0x162   : > { %v1931_v39 = vor.u32 %v1930_v26, %v1927_v15  ;;  %v3581_v32 = vsel %vm3548_vm6, %v3578_v34, %v3580_v25  ;;  %v3583_v48 = vsel %vm3548_vm6, %v3580_v25, %v3582_v28 }
 0x163   : > { %v1914_v47 = vsel %vm1789_vm2, %v1904_v55, %v1913_v5 }
 0x166   : > { %4711 = vmatmul.mubr.msk.bf16.gmra.mrb[20].mxu1 %vm498_vm1, %v1472_v14  ;;  %v1918_v14 = vrot.slane %v1916_v8, 1 }
 0x167   : > { %4714 = vmatprep.mubr.msk.bf16.mxu1 %vm498_vm1, %v1474_v18  ;;  %v3568_v18 = vrot.slane %v6145_v40, 3  ;;  %v1943_v40 = vshrl.u32 %v6037_v3, 16 }
 0x168   : > { %4911 = vmatmul.mubr.msk.bf16.vlgmr.msra.gmra.mrb[0].mxu0 %vm498_vm1, %v3553_v41  ;;  %v3570_v41 = vrot.slane %v6150_v44, 3  ;;  %v1922_v63 = vor.u32 %v1921_v16, %v1918_v14 }
 0x169   : > { %4914 = vmatprep.mubr.msk.bf16.mxu0 %vm498_vm1, %v3555_v31  ;;  %v1937_v31 = vshll.u32 %v6033_v0, 16  ;;  %v1945_v42 = vrot.slane %v1943_v40, 1 }
 0x16a   : > { %v3571_v37 = vsel %vm3548_vm6, %v3568_v18, %v3570_v41  ;;  %v1923_v44 = vsel %vm1789_vm2, %v1913_v5, %v1922_v63  ;;  %v1932_v0 = vsel %vm1789_vm2, %v1922_v63, %v1931_v39  ;;  %v3573_v29 = vsel %vm3548_vm6, %v3570_v41, %v3572_v7 }
 0x16e   : > { %4715 = vmatmul.mubr.msk.bf16.gmra.mrb[24].mxu1 %vm498_vm1, %v1476_v30  ;;  %v3569_v30 = vsel %vm3548_vm6, %v3566_v46, %v3568_v18 }
 0x16f   : > { %4718 = vmatprep.mubr.msk.bf16.mxu1 %vm498_vm1, %v1478_v27  ;;  %v1946_v27 = vshll.u32 %v6037_v3, 16 }
 0x170   : > { %4915 = vmatmul.mubr.msk.bf16.gmra.mrb[4].mxu0 %vm498_vm1, %v3557_v51  ;;  %v1939_v51 = vrot.slane %v1937_v31, 2 }
 0x171   : > { %4918 = vmatprep.mubr.msk.bf16.mxu0 %vm498_vm1, %v3559_v38  ;;  %v1948_v36 = vrot.slane %v1946_v27, 2  ;;  %v3574_v38 = vrot.slane %v6169_v2, 3  ;;  %v1957_v2 = vrot.slane %v1955_v20, 2 }
 0x172   : > { %v1940_v3 = vor.u32 %v1939_v51, %v1936_v50 }
 0x173   : > { %v3575_v56 = vsel %vm3548_vm6, %v3572_v7, %v3574_v38  ;;  %v3577_v49 = vsel %vm3548_vm6, %v3574_v38, %v3576_v19 }
 0x174   : > { %v1941_v24 = vsel %vm1789_vm2, %v1931_v39, %v1940_v3 }
 0x176   : > { %4719 = vmatmul.mubr.msk.bf16.gmra.mrb[28].mxu1 %vm498_vm1, %v1480_v43  ;;  %v1952_v43 = vshrl.u32 %v6053_v12, 16 }
 0x177   : > { %4722 = vmatprep.mubr.msk.bf16.mxu1 %vm498_vm1, %v1482_v53  ;;  %v1949_v53 = vor.u32 %v1948_v36, %v1945_v42 }
 0x178   : > { %4919 = vmatmul.mubr.msk.bf16.gmra.mrb[8].mxu0 %vm498_vm1, %v3561_v62  ;;  %v1954_v11 = vrot.slane %v1952_v43, 1  ;;  %v3579_v62 = vsel %vm3548_vm6, %v3576_v19, %v3578_v34 }
 0x179   : > { %4922 = vmatprep.mubr.msk.bf16.mxu0 %vm498_vm1, %v3563_v4  ;;  %v1950_v45 = vsel %vm1789_vm2, %v1940_v3, %v1949_v53  ;;  %v3584_v4 = vrot.slane %v6342_v21, 3 }
 0x17a   : > { %v1958_v12 = vor.u32 %v1957_v2, %v1954_v11 }
 0x17c   : > { %v1959_v9 = vsel %vm1789_vm2, %v1949_v53, %v1958_v12 }
 0x17e   : > { %4723 = vmatmul.mubr.msk.bf16.gmra.mrb[32].mxu1 %vm498_vm1, %v1484_v35  ;;  %v3585_v35 = vsel %vm3548_vm6, %v3582_v28, %v3584_v4 }
 0x17f   : > { %4754 = vmatprep.mubr.msk.bf16.mxu1 %vm498_vm1, %v1896_v10 }
 0x180   : > { %4923 = vmatmul.mubr.msk.bf16.gmra.mrb[12].mxu0 %vm498_vm1, %v3565_v17 }
 0x181   : > { %4926 = vmatprep.mubr.msk.bf16.mxu0 %vm498_vm1, %v3567_v23 }
 0x186   : > { %4755 = vmatmul.mubr.msk.bf16.vlgmr.msra.gmra.mrb[20].mxu1 %vm498_vm1, %v1905_v61 }
 0x187   : > { %4758 = vmatprep.mubr.msk.bf16.mxu1 %vm498_vm1, %v1914_v47 }
 0x188   : > { %4927 = vmatmul.mubr.msk.bf16.gmra.mrb[16].mxu0 %vm498_vm1, %v3569_v30 }
 0x189   : > { %4930 = vmatprep.mubr.msk.bf16.mxu0 %vm498_vm1, %v3571_v37 }
 0x18e   : > { %4759 = vmatmul.mubr.msk.bf16.gmra.mrb[24].mxu1 %vm498_vm1, %v1923_v44 }
 0x18f   : > { %4762 = vmatprep.mubr.msk.bf16.mxu1 %vm498_vm1, %v1932_v0 }
 0x190   : > { %4931 = vmatmul.mubr.msk.bf16.gmra.mrb[20].mxu0 %vm498_vm1, %v3573_v29 }
 0x191   : > { %4934 = vmatprep.mubr.msk.bf16.mxu0 %vm498_vm1, %v3575_v56 }
 0x196   : > { %4763 = vmatmul.mubr.msk.bf16.gmra.mrb[28].mxu1 %vm498_vm1, %v1941_v24 }
 0x197   : > { %4766 = vmatprep.mubr.msk.bf16.mxu1 %vm498_vm1, %v1950_v45 }
 0x198   : > { %4935 = vmatmul.mubr.msk.bf16.gmra.mrb[24].mxu0 %vm498_vm1, %v3577_v49 }
 0x199   : > { %4938 = vmatprep.mubr.msk.bf16.mxu0 %vm498_vm1, %v3579_v62 }
 0x19e   : > { %4767 = vmatmul.mubr.msk.bf16.gmra.mrb[32].mxu1 %vm498_vm1, %v1959_v9 }
 0x1a0   : > { %4939 = vmatmul.mubr.msk.bf16.gmra.mrb[28].mxu0 %vm498_vm1, %v3581_v32 }
 0x1a1   : > { %4942 = vmatprep.mubr.msk.bf16.mxu0 %vm498_vm1, %v3583_v48 }
 0x1a8   : > { %4943 = vmatmul.mubr.msk.bf16.gmra.mrb[32].mxu0 %vm498_vm1, %v3585_v35 }
 0x211   : > { %v4692_v60 = vpop.f32.mrb[0].mxu1 }
 0x212   : > { %v1597_v58 = vpop.f32.mrb[1].mxu1 }
 0x213   : > { %v4693_v59 = vpop.f32.mrb[2].mxu1 }
 0x214   : > { %v1600_v33 = vpop.f32.mrb[3].mxu1 }
 0x219   : > { %v4696_v6 = vpop.f32.mrb[4].mxu1 }
 0x21a   : > { %v1613_v10 = vpop.f32.mrb[5].mxu1 }
 0x21b   : > { %v4697_v54 = vpop.f32.mrb[6].mxu1 }
 0x21c   : > { %v1616_v57 = vpop.f32.mrb[7].mxu1 }
 0x221   : > { %v4700_v46 = vpop.f32.mrb[8].mxu1 }
 0x222   : > { %v1629_v55 = vpop.f32.mrb[9].mxu1 }
 0x223   : > { %v4701_v8 = vpop.f32.mrb[10].mxu1 }
 0x224   : > { %v1632_v52 = vpop.f32.mrb[11].mxu1 }
 0x229   : > { %v6475_v17 = vpop.f32.mrb[12].mxu1 }
 0x22a   : > { %v6477_v21 = vpop.f32.mrb[13].mxu1 }
 0x22b   : > { %v6479_v5 = vpop.f32.mrb[14].mxu1 }
 0x22c   : > { %v6481_v1 = vpop.f32.mrb[15].mxu1 }
 0x231   : > { %v6483_v13 = vpop.f32.mrb[16].mxu1 }
 0x232   : > { %v6485_v23 = vpop.f32.mrb[17].mxu1 }
 0x233   : > { %v6487_v61 = vpop.f32.mrb[18].mxu1 }
 0x234   : > { %v6489_v14 = vpop.f32.mrb[19].mxu1 }
 0x23b   : > { %v4912_v16 = vpop.f32.mrb[0].mxu0 }
 0x23c   : > { %v4954_v18 = vadd.f32 %v4912_v16, %v4692_v60  ;;  %v3698_v47 = vpop.f32.mrb[1].mxu0 }
 0x23d   : > { %v4955_v15 = vadd.f32 %v3698_v47, %v1597_v58  ;;  %v4913_v26 = vpop.f32.mrb[2].mxu0 }
 0x23e   : > { %v3879_v41 = vmax.f32 %v4954_v18, 0.0  ;;  %v4956_v63 = vadd.f32 %v4913_v26, %v4693_v59  ;;  %v3701_v22 = vpop.f32.mrb[3].mxu0 }
 0x23f   : > { %v3877_v31 = vmax.f32 %v4955_v15, 0.0  ;;  %v4957_v30 = vadd.f32 %v3701_v22, %v1600_v33 }
 0x240   : > { %v3915_v39 = vmin.f32 %v3879_v41, 6.0  ;;  %v3880_v40 = vmax.f32 %v4956_v63, 0.0 }
 0x241   : > { %v3913_v27 = vmin.f32 %v3877_v31, 6.0  ;;  %v3878_v37 = vmax.f32 %v4957_v30, 0.0 }
 0x242   : > { %3951 = vst.msk [vmem:[%s6492_s17 + $0x10] sm:$0xff] %vm498_vm1, %v3915_v39  ;;  %v3916_v44 = vmin.f32 %v3880_v40, 6.0 }
 0x243   : > { %3949 = vst.msk [vmem:[%s6492_s17] sm:$0xff] %vm498_vm1, %v3913_v27  ;;  %v3914_v50 = vmin.f32 %v3878_v37, 6.0  ;;  %v4916_v51 = vpop.f32.mrb[4].mxu0 }
 0x244   : > { %3952 = vst.msk [vmem:[%s6492_s17 + $0x18] sm:$0xff] %vm498_vm1, %v3916_v44  ;;  %v4958_v7 = vadd.f32 %v4916_v51, %v4696_v6  ;;  %v3714_v0 = vpop.f32.mrb[5].mxu0 }
 0x245   : > { %3950 = vst.msk [vmem:[%s6492_s17 + $0x8] sm:$0xff] %vm498_vm1, %v3914_v50  ;;  %v4959_v42 = vadd.f32 %v3714_v0, %v1613_v10  ;;  %v4917_v36 = vpop.f32.mrb[6].mxu0 }
 0x246   : > { %v3883_v38 = vmax.f32 %v4958_v7, 0.0  ;;  %v4960_v3 = vadd.f32 %v4917_v36, %v4697_v54  ;;  %v3717_v43 = vpop.f32.mrb[7].mxu0 }
 0x247   : > { %v3881_v20 = vmax.f32 %v4959_v42, 0.0  ;;  %v4961_v29 = vadd.f32 %v3717_v43, %v1616_v57 }
 0x248   : > { %v3919_v53 = vmin.f32 %v3883_v38, 6.0  ;;  %v3884_v56 = vmax.f32 %v4960_v3, 0.0 }
 0x249   : > { %v3917_v24 = vmin.f32 %v3881_v20, 6.0  ;;  %v3882_v11 = vmax.f32 %v4961_v29, 0.0 }
 0x24a   : > { %3955 = vst.msk [vmem:[%s6492_s17 + $0x30] sm:$0xff] %vm498_vm1, %v3919_v53  ;;  %v3920_v2 = vmin.f32 %v3884_v56, 6.0 }
 0x24b   : > { %3953 = vst.msk [vmem:[%s6492_s17 + $0x20] sm:$0xff] %vm498_vm1, %v3917_v24  ;;  %v3918_v19 = vmin.f32 %v3882_v11, 6.0  ;;  %v4920_v45 = vpop.f32.mrb[8].mxu0 }
 0x24c   : > { %3956 = vst.msk [vmem:[%s6492_s17 + $0x38] sm:$0xff] %vm498_vm1, %v3920_v2  ;;  %v4962_v34 = vadd.f32 %v4920_v45, %v4700_v46  ;;  %v3730_v12 = vpop.f32.mrb[9].mxu0 }
 0x24d   : > { %3954 = vst.msk [vmem:[%s6492_s17 + $0x28] sm:$0xff] %vm498_vm1, %v3918_v19  ;;  %v4963_v49 = vadd.f32 %v3730_v12, %v1629_v55  ;;  %v4921_v62 = vpop.f32.mrb[10].mxu0 }
 0x24e   : > { %v3887_v9 = vmax.f32 %v4962_v34, 0.0  ;;  %v4964_v25 = vadd.f32 %v4921_v62, %v4701_v8  ;;  %v3733_v28 = vpop.f32.mrb[11].mxu0 }
 0x24f   : > { %v3885_v32 = vmax.f32 %v4963_v49, 0.0  ;;  %v4965_v48 = vadd.f32 %v3733_v28, %v1632_v52 }
 0x250   : > { %v3923_v4 = vmin.f32 %v3887_v9, 6.0  ;;  %v3888_v35 = vmax.f32 %v4964_v25, 0.0 }
 0x251   : > { %v3921_v60 = vmin.f32 %v3885_v32, 6.0  ;;  %v3886_v58 = vmax.f32 %v4965_v48, 0.0 }
 0x252   : > { %3959 = vst.msk [vmem:[%s6492_s17 + $0x50] sm:$0xff] %vm498_vm1, %v3923_v4  ;;  %v3924_v59 = vmin.f32 %v3888_v35, 6.0 }
 0x253   : > { %3957 = vst.msk [vmem:[%s6492_s17 + $0x40] sm:$0xff] %vm498_vm1, %v3921_v60  ;;  %v3922_v33 = vmin.f32 %v3886_v58, 6.0  ;;  %v4924_v6 = vpop.f32.mrb[12].mxu0 }
 0x254   : > { %3960 = vst.msk [vmem:[%s6492_s17 + $0x58] sm:$0xff] %vm498_vm1, %v3924_v59  ;;  %v4966_v10 = vadd.f32 %v4924_v6, %v6475_v17  ;;  %v3746_v54 = vpop.f32.mrb[13].mxu0 }
 0x255   : > { %3958 = vst.msk [vmem:[%s6492_s17 + $0x48] sm:$0xff] %vm498_vm1, %v3922_v33  ;;  %v4967_v57 = vadd.f32 %v3746_v54, %v6477_v21  ;;  %v4925_v46 = vpop.f32.mrb[14].mxu0 }
 0x256   : > { %v3891_v55 = vmax.f32 %v4966_v10, 0.0  ;;  %v4968_v8 = vadd.f32 %v4925_v46, %v6479_v5  ;;  %v3749_v52 = vpop.f32.mrb[15].mxu0 }
 0x257   : > { %v3889_v18 = vmax.f32 %v4967_v57, 0.0  ;;  %v4969_v47 = vadd.f32 %v3749_v52, %v6481_v1 }
 0x258   : > { %v3927_v17 = vmin.f32 %v3891_v55, 6.0  ;;  %v3892_v26 = vmax.f32 %v4968_v8, 0.0 }
 0x259   : > { %v4756_v16 = vpop.f32.mrb[20].mxu1  ;;  %v3925_v63 = vmin.f32 %v3889_v18, 6.0  ;;  %v3890_v22 = vmax.f32 %v4969_v47, 0.0 }
 0x25a   : > { %v2152_v15 = vpop.f32.mrb[21].mxu1  ;;  %3963 = vst.msk [vmem:[%s6492_s17 + $0x70] sm:$0xff] %vm498_vm1, %v3927_v17  ;;  %v3928_v21 = vmin.f32 %v3892_v26, 6.0 }
 0x25b   : > { %v4757_v41 = vpop.f32.mrb[22].mxu1  ;;  %3961 = vst.msk [vmem:[%s6492_s17 + $0x60] sm:$0xff] %vm498_vm1, %v3925_v63  ;;  %v3926_v5 = vmin.f32 %v3890_v22, 6.0  ;;  %v4928_v30 = vpop.f32.mrb[16].mxu0 }
 0x25c   : > { %v2155_v31 = vpop.f32.mrb[23].mxu1  ;;  %3964 = vst.msk [vmem:[%s6492_s17 + $0x78] sm:$0xff] %vm498_vm1, %v3928_v21  ;;  %v4970_v39 = vadd.f32 %v4928_v30, %v6483_v13  ;;  %v3762_v1 = vpop.f32.mrb[17].mxu0 }
 0x25d   : > { %3962 = vst.msk [vmem:[%s6492_s17 + $0x68] sm:$0xff] %vm498_vm1, %v3926_v5  ;;  %v4971_v40 = vadd.f32 %v3762_v1, %v6485_v23  ;;  %v4929_v27 = vpop.f32.mrb[18].mxu0 }
 0x25e   : > { %v3895_v37 = vmax.f32 %v4970_v39, 0.0  ;;  %v4972_v44 = vadd.f32 %v4929_v27, %v6487_v61  ;;  %v3765_v50 = vpop.f32.mrb[19].mxu0 }
 0x25f   : > { %v3893_v7 = vmax.f32 %v4971_v40, 0.0  ;;  %v4973_v0 = vadd.f32 %v3765_v50, %v6489_v14 }
 0x260   : > { %v3931_v13 = vmin.f32 %v3895_v37, 6.0  ;;  %v3896_v36 = vmax.f32 %v4972_v44, 0.0 }
 0x261   : > { %v4760_v51 = vpop.f32.mrb[24].mxu1  ;;  %v3929_v3 = vmin.f32 %v3893_v7, 6.0  ;;  %v3894_v43 = vmax.f32 %v4973_v0, 0.0 }
 0x262   : > { %v2168_v42 = vpop.f32.mrb[25].mxu1  ;;  %3967 = vst.msk [vmem:[%s6492_s17 + $0x90] sm:$0xff] %vm498_vm1, %v3931_v13  ;;  %v3932_v23 = vmin.f32 %v3896_v36, 6.0 }
 0x263   : > { %v4761_v38 = vpop.f32.mrb[26].mxu1  ;;  %3965 = vst.msk [vmem:[%s6492_s17 + $0x80] sm:$0xff] %vm498_vm1, %v3929_v3  ;;  %v3930_v61 = vmin.f32 %v3894_v43, 6.0  ;;  %v4932_v29 = vpop.f32.mrb[20].mxu0 }
 0x264   : > { %v2171_v20 = vpop.f32.mrb[27].mxu1  ;;  %3968 = vst.msk [vmem:[%s6492_s17 + $0x98] sm:$0xff] %vm498_vm1, %v3932_v23  ;;  %v4974_v53 = vadd.f32 %v4932_v29, %v4756_v16  ;;  %v3778_v56 = vpop.f32.mrb[21].mxu0 }
 0x265   : > { %3966 = vst.msk [vmem:[%s6492_s17 + $0x88] sm:$0xff] %vm498_vm1, %v3930_v61  ;;  %v4975_v14 = vadd.f32 %v3778_v56, %v2152_v15  ;;  %v4933_v24 = vpop.f32.mrb[22].mxu0 }
 0x266   : > { %v3899_v11 = vmax.f32 %v4974_v53, 0.0  ;;  %v4976_v2 = vadd.f32 %v4933_v24, %v4757_v41  ;;  %v3781_v19 = vpop.f32.mrb[23].mxu0 }
 0x267   : > { %v3897_v34 = vmax.f32 %v4975_v14, 0.0  ;;  %v4977_v12 = vadd.f32 %v3781_v19, %v2155_v31 }
 0x268   : > { %v3935_v62 = vmin.f32 %v3899_v11, 6.0  ;;  %v3900_v9 = vmax.f32 %v4976_v2, 0.0 }
 0x269   : > { %v4764_v45 = vpop.f32.mrb[28].mxu1  ;;  %v3933_v28 = vmin.f32 %v3897_v34, 6.0  ;;  %v3898_v32 = vmax.f32 %v4977_v12, 0.0 }
 0x26a   : > { %v2184_v49 = vpop.f32.mrb[29].mxu1  ;;  %3971 = vst.msk [vmem:[%s6492_s17 + $0xb0] sm:$0xff] %vm498_vm1, %v3935_v62  ;;  %v3936_v4 = vmin.f32 %v3900_v9, 6.0 }
 0x26b   : > { %v4765_v25 = vpop.f32.mrb[30].mxu1  ;;  %3969 = vst.msk [vmem:[%s6492_s17 + $0xa0] sm:$0xff] %vm498_vm1, %v3933_v28  ;;  %v3934_v35 = vmin.f32 %v3898_v32, 6.0  ;;  %v4936_v60 = vpop.f32.mrb[24].mxu0 }
 0x26c   : > { %v2187_v48 = vpop.f32.mrb[31].mxu1  ;;  %3972 = vst.msk [vmem:[%s6492_s17 + $0xb8] sm:$0xff] %vm498_vm1, %v3936_v4  ;;  %v4978_v58 = vadd.f32 %v4936_v60, %v4760_v51  ;;  %v3794_v59 = vpop.f32.mrb[25].mxu0 }
 0x26d   : > { %3970 = vst.msk [vmem:[%s6492_s17 + $0xa8] sm:$0xff] %vm498_vm1, %v3934_v35  ;;  %v4979_v33 = vadd.f32 %v3794_v59, %v2168_v42  ;;  %v4937_v6 = vpop.f32.mrb[26].mxu0 }
 0x26e   : > { %v3903_v10 = vmax.f32 %v4978_v58, 0.0  ;;  %v4980_v54 = vadd.f32 %v4937_v6, %v4761_v38  ;;  %v3797_v57 = vpop.f32.mrb[27].mxu0 }
 0x26f   : > { %v3901_v55 = vmax.f32 %v4979_v33, 0.0  ;;  %v4981_v8 = vadd.f32 %v3797_v57, %v2171_v20 }
 0x270   : > { %v3939_v16 = vmin.f32 %v3903_v10, 6.0  ;;  %v3904_v18 = vmax.f32 %v4980_v54, 0.0 }
 0x271   : > { %v4768_v46 = vpop.f32.mrb[32].mxu1  ;;  %v3937_v15 = vmin.f32 %v3901_v55, 6.0  ;;  %v3902_v17 = vmax.f32 %v4981_v8, 0.0 }
 0x272   : > { %v2200_v52 = vpop.f32.mrb[33].mxu1  ;;  %3975 = vst.msk [vmem:[%s6492_s17 + $0xd0] sm:$0xff] %vm498_vm1, %v3939_v16  ;;  %v3940_v41 = vmin.f32 %v3904_v18, 6.0 }
 0x273   : > { %v4769_v47 = vpop.f32.mrb[34].mxu1  ;;  %3973 = vst.msk [vmem:[%s6492_s17 + $0xc0] sm:$0xff] %vm498_vm1, %v3937_v15  ;;  %v3938_v63 = vmin.f32 %v3902_v17, 6.0  ;;  %v4940_v22 = vpop.f32.mrb[28].mxu0 }
 0x274   : > { %v2203_v26 = vpop.f32.mrb[35].mxu1  ;;  %3976 = vst.msk [vmem:[%s6492_s17 + $0xd8] sm:$0xff] %vm498_vm1, %v3940_v41  ;;  %v4982_v31 = vadd.f32 %v4940_v22, %v4764_v45  ;;  %v3810_v21 = vpop.f32.mrb[29].mxu0 }
 0x275   : > { %3974 = vst.msk [vmem:[%s6492_s17 + $0xc8] sm:$0xff] %vm498_vm1, %v3938_v63  ;;  %v4983_v5 = vadd.f32 %v3810_v21, %v2184_v49  ;;  %v4941_v30 = vpop.f32.mrb[30].mxu0 }
 0x276   : > { %v3907_v39 = vmax.f32 %v4982_v31, 0.0  ;;  %v4984_v1 = vadd.f32 %v4941_v30, %v4765_v25  ;;  %v3813_v40 = vpop.f32.mrb[31].mxu0 }
 0x277   : > { %v3905_v27 = vmax.f32 %v4983_v5, 0.0  ;;  %v4985_v37 = vadd.f32 %v3813_v40, %v2187_v48 }
 0x278   : > { %v3943_v44 = vmin.f32 %v3907_v39, 6.0  ;;  %v3908_v50 = vmax.f32 %v4984_v1, 0.0 }
 0x279   : > { %v3941_v51 = vmin.f32 %v3905_v27, 6.0  ;;  %v3906_v7 = vmax.f32 %v4985_v37, 0.0 }
 0x27a   : > { %3979 = vst.msk [vmem:[%s6492_s17 + $0xf0] sm:$0xff] %vm498_vm1, %v3943_v44  ;;  %v3944_v0 = vmin.f32 %v3908_v50, 6.0 }
 0x27b   : > { %3977 = vst.msk [vmem:[%s6492_s17 + $0xe0] sm:$0xff] %vm498_vm1, %v3941_v51  ;;  %v3942_v42 = vmin.f32 %v3906_v7, 6.0  ;;  %v4944_v13 = vpop.f32.mrb[32].mxu0 }
 0x27c   : > { %3980 = vst.msk [vmem:[%s6492_s17 + $0xf8] sm:$0xff] %vm498_vm1, %v3944_v0  ;;  %v4986_v36 = vadd.f32 %v4944_v13, %v4768_v46  ;;  %v3826_v38 = vpop.f32.mrb[33].mxu0 }
 0x27d   : > { %3978 = vst.msk [vmem:[%s6492_s17 + $0xe8] sm:$0xff] %vm498_vm1, %v3942_v42  ;;  %v4987_v3 = vadd.f32 %v3826_v38, %v2200_v52  ;;  %v4945_v43 = vpop.f32.mrb[34].mxu0 }
 0x27e   : > { %v3911_v20 = vmax.f32 %v4986_v36, 0.0  ;;  %v4988_v23 = vadd.f32 %v4945_v43, %v4769_v47  ;;  %v3829_v61 = vpop.f32.mrb[35].mxu0 }
 0x27f   : > { %v3909_v29 = vmax.f32 %v4987_v3, 0.0  ;;  %v4989_v53 = vadd.f32 %v3829_v61, %v2203_v26 }
 0x280   : > { %v3947_v56 = vmin.f32 %v3911_v20, 6.0  ;;  %v3912_v14 = vmax.f32 %v4988_v23, 0.0 }
 0x281   : > { %v3945_v24 = vmin.f32 %v3909_v29, 6.0  ;;  %v3910_v11 = vmax.f32 %v4989_v53, 0.0 }
 0x282   : > { %3983 = vst.msk [vmem:[%s6492_s17 + $0x110] sm:$0xff] %vm498_vm1, %v3947_v56  ;;  %v3948_v2 = vmin.f32 %v3912_v14, 6.0 }
 0x283   : > { %3981 = vst.msk [vmem:[%s6492_s17 + $0x100] sm:$0xff] %vm498_vm1, %v3945_v24  ;;  %v3946_v19 = vmin.f32 %v3910_v11, 6.0 }
 0x284   : > { %3984 = vst.msk [vmem:[%s6492_s17 + $0x118] sm:$0xff] %vm498_vm1, %v3948_v2 }
 0x285   : > { %3982 = vst.msk [vmem:[%s6492_s17 + $0x108] sm:$0xff] %vm498_vm1, %v3946_v19 }
 0x286   : > { %5496 = shalt.err (!%p5493_p7)
}
 0x287   : > { %s5497_s18 = scalar_lea.hbm %s6573_s27, 4608  ;;  %s5501_s23 = scalar_lea.hbm %s6627_s2, 9216 }
 0x288   : > { %p5498_p9 = scmp.ne.s32.totalorder %s6573_s27, %s5497_s18  ;;  %p5502_p5 = scmp.lt.u32.totalorder %s6573_s27, %s6627_s2 }
 0x289   : > { %p5503_p13 = scmp.lt.u32.totalorder %s5501_s23, %s5497_s18  ;;  %p5505_p4 = scmp.lt.u32.totalorder %s5497_s18, %s6573_s27 }
 0x28a   : > { %p5499_p1 = pnand %p5498_p9, %p5671_p12 }
 0x28b   : > { %p5504_p2 = por %p5503_p13, %p5502_p5 }
 0x28c   : > { %p5500_p0 = pneg %p5499_p1 }
 0x28d   : > { %p5506_p6 = por %p5505_p4, %p5504_p2 }
 0x28f   : > { %p5507_p8 = pnand %p5506_p6, %p5500_p0 }
 0x291   : > { %5510 = shalt.err (!%p5507_p8)
}
 0x292   : > { %s5560_s3 = smov 128   ;;  %s5561_s15 = smov 8  }
 0x293   : > { %5253 = dma.vmem_to_hbm [thread:$0]  (%p5671_p12), %s6575_s5, 4608, %s6573_s27, %s3986_s13, %s5560_s3, %s5560_s3, %s5561_s15  }
 0x294 PF: > { %s4014_s17 = sand.u32 1, %s5541_s9   ;;  %p6642_p10 = scmp.ne.s32.totalorder %s6632_s16, 0 }
 0x295   : > { %p6643_p11 = scmp.ge.s32.totalorder %s5553_s12, 2  ;;  %s4015_s4 = scalar_lea.sflag [#allocation4], %s4014_s17 }
 0x297   : > { %p5264_p3 = pnand %p6643_p11, %p6642_p10 }
 0x299   : > { %5536 = dma.done.wait (!%p5264_p3), %s4015_s4, 4608  }
 0x29a   : > { %5538 = vsyncadd (!%p5264_p3), %s4015_s4, 4294962688  ;;  %p16_p7 = scmp.ge.s32.totalorder %s5633_s21, 4   ;;  %s6644_s9 = smov %s5545_s10 }
 0x29b   : > { %s6645_s10 = smov %s5549_s11  ;;  %s6646_s11 = smov %s5667_s8 }
 0x29c   : > { %s6647_s12 = smov %s5633_s21  ;;  %18 = sbr.rel (!%p16_p7) target bundleno = 6 (0x6), region = 85 }
 0x2a3   :  { %4020 = vsyncpa [#allocation3], 1 }
 0x2a4   :  { %4022 = vsyncpa [#allocation3 + $0x1], 1 }
 0x2a5   :  { %4023 = vsyncpa [#allocation6], 1 }
 0x2a6   :  { %4024 = vsyncpa [#allocation4], 1 }
 0x2a7   :  { %4026 = vsyncpa [#allocation4 + $0x1], 1 }

// kernel: inception_v2_base.8
= control target key start
LH: loop header
LB: loop body
LE: loop exit
PB: predicated region body
PF: predicated region fallthrough
CT: control target
= control target key end

     0   :  { %7 = vsyncpa [#allocation3], 0  ;;  %s6873_s0 = inlined_call_operand.hbm [shape: bf16[2,342,96], index: 0, kind: input, shape index: {}]   ;;  %s6874_s1 = inlined_call_operand.hbm [shape: bf16[9,96,96], index: 1, kind: input, shape index: {}]   ;;  %s6875_s2 = inlined_call_operand.hbm [shape: f32[2,288,96], index: 2, kind: output, shape index: {}]  }
   0x1   :  { %9 = vsyncpa [#allocation3 + $0x1], 0 }
   0x2   :  { %10 = vsyncpa [#allocation6], 0 }
   0x3   :  { %11 = vsyncpa [#allocation4], 0 }
   0x4   :  { %13 = vsyncpa [#allocation4 + $0x1], 0  ;;  %s5826_s9 = smov 0   ;;  %s5828_s10 = smov 0  }
   0x5   :  { %s5830_s11 = smov 0   ;;  %s5832_s12 = smov 0  }
   0x6 LB: > { %s5847_s13 = sadd.s32 4294967295, %s5802_s12   ;;  %s4226_s14 = sadd.s32 4294967294, %s5802_s12   ;;  %s5802_s12 = sphi %s5832_s12, %s6895_s12   ;;  %s5798_s11 = sphi %s5830_s11, %s6894_s11   ;;  %s5794_s10 = sphi %s5828_s10, %s6893_s10   ;;  %s5790_s9 = sphi %s5826_s9, %s6892_s9  }
   0x7   : > { %p39_p0 = scmp.ne.s32.totalorder %s5794_s10, %s5790_s9  ;;  %p6876_p1 = scmp.eq.s32.totalorder %s5847_s13, 0 }
   0x8   : > { %p90_p3 = scmp.eq.s32.totalorder %s4226_s14, 1  ;;  %p4227_p5 = scmp.ge.s32.totalorder %s5802_s12, 1 }
   0x9   : > { %p5856_p4 = por %p6876_p1, %p39_p0  ;;  %p97_p7 = scmp.lt.s32.totalorder %s5802_s12, 3 }
   0xa   : > { %p5861_p6 = por %p90_p3, %p39_p0  ;;  %s5804_s18 = smov [#allocation5]  }
   0xb   : > { %s6879_s15 = scalar_select %p5856_p4, 1, 0 }
   0xc   : > { %s6880_s16 = scalar_select %p5861_p6, 1, 0 }
   0xd   : > { %p5866_p8 = pnand %p4227_p5, %p97_p7  ;;  %s109_s19 = sshll.u32 %s5804_s18, 4  ;;  %s5870_s19 = int_to_ptr.vmem [resolvable:$true] %s109_s19 }
   0xe   : > { %s5882_s21 = sadd.s32 1, %s5802_s12   ;;  %s26_s22 = sadd.s32 1, %s5798_s11 }
   0xf   : > { %s6881_s17 = scalar_select %p5866_p8, 1, 0 }
  0x10   : > { %p5475_p9 = pneg %p5866_p8  ;;  %s23_s23 = ssub.s32 %s5802_s12, %s5882_s21 }
  0x11   : > { %s5674_s26 = scalar_lea.hbm %s6874_s1, 6912 }
  0x12   : > { %p5877_p11 = pnand %p5475_p9, %p6876_p1  ;;  %p5675_p12 = scmp.ne.s32.totalorder %s6874_s1, %s5674_s26 }
  0x13   : > { %p5681_p5 = scmp.lt.u32.totalorder %s5674_s26, %s6874_s1 }
  0x14   : > { %p5676_p13 = pneg %p5877_p11 }
  0x16   : > { %p5677_p0 = pnand %p5676_p13, %p5675_p12 }
  0x18   : > { %p5678_p3 = pneg %p5677_p0 }
  0x1a   : > { %p5683_p7 = pnand %p5681_p5, %p5678_p3 }
  0x1c   : > { %5686 = shalt.err (!%p5683_p7)
}
  0x1d   : > { %s5687_s3 = scalar_lea.vmem %s5870_s19, 6912  ;;  %p5695_p2 = scmp.lt.s32.totalorder %s5870_s19, %s5870_s19 }
  0x1e   : > { %p5688_p9 = scmp.ne.s32.totalorder %s5870_s19, %s5687_s3  ;;  %p5696_p6 = scmp.lt.s32.totalorder %s5687_s3, %s5687_s3 }
  0x20   : > { %p5690_p10 = pnand %p5688_p9, %p5676_p13  ;;  %p5697_p4 = por %p5696_p6, %p5695_p2 }
  0x22   : > { %p5691_p1 = pneg %p5690_p10 }
  0x24   : > { %p5698_p8 = pnand %p5697_p4, %p5691_p1 }
  0x26   : > { %5701 = shalt.err (!%p5698_p8)
}
  0x27   : > { %s5805_s4 = smov 64   ;;  %s5806_s5 = smov 4  }
  0x28   : > { %5478 = dma.hbm_to_vmem [thread:$0]  (!%p5877_p11), %s6874_s1, 6912, %s5870_s19, [#allocation6], %s5805_s4, %s5805_s4, %s5806_s5  }
  0x29   : > { %p24_p1 = scmp.eq.s32.totalorder %s23_s23, 0  ;;  %p33_p2 = scmp.ne.s32.totalorder %s5798_s11, %s5794_s10 }
  0x2a   : > { %p34_p4 = scmp.eq.s32.totalorder %s5802_s12, 0  ;;  %p5488_p6 = scmp.lt.s32.totalorder %s5802_s12, 2 }
  0x2b   : > { %s5916_s8 = scalar_select %p24_p1, %s5798_s11, %s26_s22  }
  0x2c   : > { %p35_p8 = por %p34_p4, %p33_p2  ;;  %p6883_p10 = scmp.eq.s32.totalorder %s5847_s13, 1 }
  0x2d   : > { %s123_s18 = sand.u32 1, %s5798_s11   ;;  %s5463_s20 = smul.u32 2752, %s5802_s12 }
  0x2e   : > { %p5920_p12 = por %p6883_p10, %p33_p2  ;;  %s5462_s24 = smul.u32 172, %s123_s18 }
  0x2f   : > { %p5926_p13 = pnand %p5488_p6, %p35_p8  ;;  %s5933_s22 = scalar_lea.hbm %s6873_s0, %s5463_s20 }
  0x30   : > { %s127_s26 = scalar_lea.vmem [#allocation2], %s5462_s24  ;;  %s5937_s28 = scalar_lea.sflag [#allocation3], %s123_s18 }
  0x31   : > { %s134_s27 = sshll.u32 %s127_s26, 4  ;;  %s5702_s29 = scalar_lea.hbm %s5933_s22, 2752  ;;  %s5935_s27 = int_to_ptr.vmem [resolvable:$true] %s134_s27 }
  0x32   : > { %p5703_p11 = scmp.ne.s32.totalorder %s5933_s22, %s5702_s29  ;;  %p5704_p0 = pneg %p5926_p13 }
  0x33   : > { %s5707_s6 = scalar_lea.hbm %s6873_s0, 5504  ;;  %p5708_p7 = scmp.lt.u32.totalorder %s5933_s22, %s6873_s0 }
  0x34   : > { %p5705_p3 = pnand %p5704_p0, %p5703_p11  ;;  %p5709_p9 = scmp.lt.u32.totalorder %s5707_s6, %s5702_s29 }
  0x35   : > { %p5711_p2 = scmp.lt.u32.totalorder %s5702_s29, %s5933_s22 }
  0x36   : > { %p5706_p5 = pneg %p5705_p3  ;;  %p5710_p1 = por %p5709_p9, %p5708_p7 }
  0x38   : > { %p5712_p4 = por %p5711_p2, %p5710_p1 }
  0x3a   : > { %p5713_p6 = pnand %p5712_p4, %p5706_p5 }
  0x3c   : > { %5716 = shalt.err (!%p5713_p6)
}
  0x3d   : > { %s5717_s18 = scalar_lea.vmem %s5935_s27, 2752  ;;  %s5807_s24 = smov [#allocation2]  }
  0x3e   : > { %p5718_p8 = scmp.ne.s32.totalorder %s5935_s27, %s5717_s18  ;;  %s5722_s19 = sshll.u32 %s5807_s24, 4  ;;  %s5723_s19 = int_to_ptr.vmem [resolvable:$false] %s5722_s19 }
  0x3f   : > { %s5724_s23 = scalar_lea.vmem %s5723_s19, 5504  ;;  %p5725_p3 = scmp.lt.s32.totalorder %s5935_s27, %s5723_s19 }
  0x40   : > { %p5720_p10 = pnand %p5718_p8, %p5704_p0  ;;  %p5726_p7 = scmp.lt.s32.totalorder %s5724_s23, %s5717_s18 }
  0x42   : > { %p5721_p11 = pneg %p5720_p10  ;;  %p5727_p9 = por %p5726_p7, %p5725_p3 }
  0x44   : > { %p5728_p1 = pnand %p5727_p9, %p5721_p11 }
  0x46   : > { %5731 = shalt.err (!%p5728_p1)
}
  0x47   : > { %5482 = dma.hbm_to_vmem [thread:$0]  (!%p5926_p13), %s5933_s22, 2752, %s5935_s27, %s5937_s28, %s5805_s4, %s5805_s4, %s5806_s5  }
  0x48   : > { %p6886_p0 = scmp.ne.s32.totalorder %s6881_s17, 0 }
  0x49   : > { %s5971_s26 = sand.u32 (!%p6886_p0), 1, %s5794_s10   ;;  %p6887_p5 = scmp.ne.s32.totalorder (!%p6886_p0), %s6879_s15, 0 }
  0x4a   : > { %146 = sbr.rel (%p6886_p0) target bundleno = 666 (0x29a), region = 28  ;;  %s149_s30 = scalar_lea.sflag (!%p6886_p0), [#allocation3], %s5971_s26 }
  0x4b   : > { %s5464_s29 = smul.u32 (!%p6886_p0), 172, %s5971_s26 }
  0x4d   : > { %s5975_s3 = scalar_lea.vmem (!%p6886_p0), [#allocation2], %s5464_s29 }
  0x51   : > { %5777 = dma.done.wait (%p6887_p5), %s149_s30, 2752  }
  0x52   : > { %5779 = vsyncadd (%p6887_p5), %s149_s30, 4294964544  ;;  %p6888_p13 = scmp.eq.s32.totalorder %s5847_s13, 0 }
  0x54   : > { %5781 = dma.done.wait (%p6888_p13), [#allocation6], 6912   ;;  %p6889_p2 = pmov %p6888_p13 }
  0x55   : > { %v5528_v0 = vld [vmem:[#allocation5 + $0x30] sm:$0xff]   ;;  %v5529_v1 = vld [vmem:[#allocation5 + $0xc0] sm:$0xff]   ;;  %v5530_v2 = vld [vmem:[#allocation5 + $0x38] sm:$0xff]   ;;  %vm333_vm0 = vsmask.f32 7424  ;;  %vm518_vm1 = vcmask 785408  }
  0x56   : > { %5783 = vsyncadd (%p6889_p2), [#allocation6], 4294960384  ;;  %4730 = vmatprep.subr.bf16.mxu1 %v5528_v0  ;;  %4922 = vmatprep.subr.bf16.mxu0 %v5529_v1  ;;  %v5531_v3 = vld [vmem:[#allocation5 + $0xc8] sm:$0xff]   ;;  %v5532_v4 = vld [vmem:[#allocation5 + $0x40] sm:$0xff]   ;;  %vm1857_vm2 = vsmask.f32 6400 }
  0x57   : > { %4731 = vmatpush3.bf16.msra.mxu1 %v5528_v0  ;;  %4923 = vmatpush3.bf16.msra.mxu0 %v5529_v1  ;;  %v5533_v5 = vld [vmem:[#allocation5 + $0xd0] sm:$0xff]   ;;  %v5534_v6 = vld [vmem:[#allocation5 + $0x48] sm:$0xff]   ;;  %v5535_v7 = vld [vmem:[#allocation5 + $0xd8] sm:$0xff]   ;;  %vm2348_vm3 = vcmask 1045504   ;;  %vm1016_vm4 = vcmask 1046528   ;;  %vm3680_vm6 = vcmask 1044480  }
  0x58   : > { %4732 = vmatprep.subr.bf16.mxu1 %v5530_v2  ;;  %4924 = vmatprep.subr.bf16.mxu0 %v5531_v3  ;;  %v5536_v8 = vld [vmem:[#allocation5 + $0x50] sm:$0xff]   ;;  %v5537_v9 = vld [vmem:[#allocation5 + $0xe0] sm:$0xff]   ;;  %v179_v11 = vld [vmem:[%s5975_s3 + $0x4] sm:$0xf]  ;;  %vm3189_vm5 = vsmask.f32 5376 }
  0x59   : > { %v178_v10 = vld [vmem:[%s5975_s3] sm:$0xf]  ;;  %v5990_v13 = vld [vmem:[%s5975_s3 + $0x8] sm:$0xff]   ;;  %v6001_v22 = vld [vmem:[%s5975_s3 + $0x10] sm:$0xff]   ;;  %s5465_s15 = smul.u32 288, %s5971_s26  ;;  %s5808_s6 = smov [#allocation7]  }
  0x5a   : > { %v5987_v12 = vcombine.low %v178_v10, %v179_v11  ;;  %v1357_v14 = vld [vmem:[%s5975_s3 + $0x8] sm:$0xe]  ;;  %v5994_v16 = vld [vmem:[%s5975_s3 + $0xc] sm:$0xf]  ;;  %v5539_v17 = vld [vmem:[#allocation5 + $0xe8] sm:$0xff]   ;;  %v342_v20 = vshll.u32 %v5990_v13, 16 }
  0x5b   : > { %4733 = vmatpush3.bf16.msra.mxu1 %v5530_v2  ;;  %4925 = vmatpush3.bf16.msra.mxu0 %v5531_v3  ;;  %v5538_v15 = vld [vmem:[#allocation5 + $0x58] sm:$0xff]   ;;  %v346_v21 = vshrl.u32 %v5990_v13, 16  ;;  %v6007_v24 = vcombine.low %v1357_v14, %v5994_v16  ;;  %v1867_v27 = vshrl.u32 %v6001_v22, 16  ;;  %v1870_v28 = vshll.u32 %v6001_v22, 16  ;;  %v6015_v32 = vld [vmem:[%s5975_s3 + $0x18] sm:$0xff]   ;;  %s6740_s17 = scalar_lea.vmem [#allocation7], %s5465_s15 }
  0x5c   : > { %4734 = vmatprep.subr.bf16.mxu1 %v5532_v4  ;;  %4926 = vmatprep.subr.bf16.mxu0 %v5533_v5  ;;  %v335_v18 = vshrl.u32 %v5987_v12, 16  ;;  %v337_v19 = vshll.u32 %v5987_v12, 16  ;;  %v6004_v23 = vld [vmem:[%s5975_s3 + $0x10] sm:$0xff]   ;;  %v344_v26 = vrot.slane %v342_v20, 1  ;;  %v5546_v37 = vld [vmem:[#allocation5 + $0xf0] sm:$0xff]   ;;  %v1876_v42 = vshrl.u32 %v6015_v32, 16 }
  0x5d   : > { %v1859_v29 = vshrl.u32 %v6007_v24, 16  ;;  %v1862_v30 = vshll.u32 %v6007_v24, 16  ;;  %v350_v31 = vshll.u32 %v6004_v23, 16  ;;  %v1869_v35 = vrot.slane %v1867_v27, 1  ;;  %v6018_v38 = vld [vmem:[%s5975_s3 + $0x18] sm:$0xff]   ;;  %v6027_v50 = vld [vmem:[%s5975_s3 + $0x20] sm:$0xff]  }
  0x5e   : > { %v339_v25 = vrot.slane %v337_v19, 1  ;;  %v348_v34 = vor.u32 %v346_v21, %v344_v26  ;;  %v1872_v36 = vrot.slane %v1870_v28, 2  ;;  %v1879_v45 = vshll.u32 %v6015_v32, 16  ;;  %v6031_v54 = vld [vmem:[%s5975_s3 + $0x20] sm:$0xff]   ;;  %v5551_v60 = vld [vmem:[#allocation5] sm:$0xff]   ;;  %s5466_s4 = smul.u32 4608, %s5847_s13 }
  0x5f   : > { %4735 = vmatpush3.bf16.msra.mxu1 %v5532_v4  ;;  %4927 = vmatpush3.bf16.msra.mxu0 %v5533_v5  ;;  %v1861_v39 = vrot.slane %v1859_v29, 1  ;;  %v1864_v40 = vrot.slane %v1862_v30, 2  ;;  %v352_v41 = vrot.slane %v350_v31, 1  ;;  %v354_v46 = vshrl.u32 %v6004_v23, 16  ;;  %v5549_v59 = vld [vmem:[#allocation5 + $0xf8] sm:$0xff]   ;;  %v6067_v30 = vld [vmem:[%s5975_s3 + $0x38] sm:$0xff]  }
  0x60   : > { %4736 = vmatprep.subr.bf16.mxu1 %v5534_v6  ;;  %4928 = vmatprep.subr.bf16.mxu0 %v5535_v7  ;;  %v340_v33 = vor.u32 %v339_v25, %v335_v18  ;;  %v1873_v44 = vor.u32 %v1872_v36, %v1869_v35  ;;  %v1878_v48 = vrot.slane %v1876_v42, 1  ;;  %v358_v49 = vshll.u32 %v6018_v38, 16  ;;  %v6051_v14 = vld [vmem:[%s5975_s3 + $0x28] sm:$0xff]   ;;  %v6063_v28 = vld [vmem:[%s5975_s3 + $0x30] sm:$0xff]   ;;  %s4143_s5 = sshll.u32 %s6740_s17, 4  ;;  %s6821_s27 = scalar_lea.hbm %s6875_s2, %s5466_s4  ;;  %s6823_s5 = int_to_ptr.vmem [resolvable:$true] %s4143_s5 }
  0x61   : > { %v1865_v47 = vor.u32 %v1864_v40, %v1861_v39  ;;  %v353_v51 = vsel %vm333_vm0, %v348_v34, %v352_v41  ;;  %v1881_v52 = vrot.slane %v1879_v45, 2  ;;  %v356_v53 = vor.u32 %v354_v46, %v352_v41  ;;  %s4130_s13 = scalar_lea.sflag [#allocation4], %s5971_s26  ;;  %s5732_s28 = scalar_lea.vmem %s6823_s5, 4608 }
  0x62   : > { %v345_v43 = vsel %vm333_vm0, %v340_v33, %v344_v26  ;;  %v360_v56 = vrot.slane %v358_v49, 1  ;;  %v1885_v57 = vshrl.u32 %v6027_v50, 16  ;;  %v1888_v58 = vshll.u32 %v6027_v50, 16  ;;  %v5559_v49 = vld [vmem:[#allocation5 + $0x108] sm:$0xff]   ;;  %p5733_p4 = scmp.ne.s32.totalorder %s6823_s5, %s5732_s28  ;;  %s5736_s7 = sshll.u32 %s5808_s6, 4  ;;  %s5737_s7 = int_to_ptr.vmem [resolvable:$false] %s5736_s7 }
  0x63   : > { %4737 = vmatpush3.bf16.msra.mxu1 %v5534_v6  ;;  %4929 = vmatpush3.bf16.msra.mxu0 %v5535_v7  ;;  %v1874_v55 = vsel %vm1857_vm2, %v1865_v47, %v1873_v44  ;;  %v1882_v61 = vor.u32 %v1881_v52, %v1878_v48  ;;  %v362_v62 = vshrl.u32 %v6018_v38, 16  ;;  %v366_v63 = vshll.u32 %v6031_v54, 16  ;;  %v6044_v6 = vld [vmem:[%s5975_s3 + $0x28] sm:$0xff]   ;;  %s5738_s20 = scalar_lea.vmem %s5737_s7, 9216  ;;  %p5739_p10 = scmp.lt.s32.totalorder %s6823_s5, %s5737_s7 }
  0x64   : > { %4738 = vmatprep.subr.bf16.mxu1 %v5536_v8  ;;  %4930 = vmatprep.subr.bf16.mxu0 %v5537_v9  ;;  %v361_v0 = vsel %vm333_vm0, %v356_v53, %v360_v56  ;;  %v1887_v1 = vrot.slane %v1885_v57, 1  ;;  %v1890_v2 = vrot.slane %v1888_v58, 2  ;;  %v1894_v10 = vshrl.u32 %v6044_v6, 16  ;;  %p5734_p6 = pnand %p5733_p4, %p5920_p12  ;;  %p5740_p11 = scmp.lt.s32.totalorder %s5738_s20, %s5732_s28 }
  0x65   : > { %4742 = vmatprep.mubr.msk.bf16.mxu1 %vm518_vm1, %v345_v43  ;;  %4934 = vmatprep.mubr.msk.bf16.mxu0 %vm518_vm1, %v1874_v55  ;;  %v1883_v3 = vsel %vm1857_vm2, %v1873_v44, %v1882_v61  ;;  %v364_v4 = vor.u32 %v362_v62, %v360_v56  ;;  %v368_v5 = vrot.slane %v366_v63, 1  ;;  %v1897_v11 = vshll.u32 %v6044_v6, 16  ;;  %v5558_v43 = vld [vmem:[#allocation5 + $0x8] sm:$0xff]   ;;  %v6094_v62 = vld [vmem:[%s5975_s3 + $0x48] sm:$0xff]  }
  0x66   : > { %v1891_v7 = vor.u32 %v1890_v2, %v1887_v1  ;;  %v1896_v20 = vrot.slane %v1894_v10, 1  ;;  %v374_v25 = vshll.u32 %v6051_v14, 16  ;;  %v378_v29 = vshrl.u32 %v6051_v14, 16  ;;  %v6083_v55 = vld [vmem:[%s5975_s3 + $0x40] sm:$0xff]   ;;  %v6104_v10 = vld [vmem:[%s5975_s3 + $0x48] sm:$0xff]   ;;  %p5735_p8 = pneg %p5734_p6  ;;  %p5741_p3 = por %p5740_p11, %p5739_p10 }
  0x67   : > { %4739 = vmatpush3.bf16.msra.mxu1 %v5536_v8  ;;  %4931 = vmatpush3.bf16.msra.mxu0 %v5537_v9  ;;  %v5553_v8 = vld [vmem:[#allocation5 + $0x100] sm:$0xff]   ;;  %v370_v9 = vshrl.u32 %v6031_v54, 16  ;;  %v369_v18 = vsel %vm333_vm0, %v364_v4, %v368_v5  ;;  %v1899_v21 = vrot.slane %v1897_v11, 2  ;;  %v382_v36 = vshll.u32 %v6063_v28, 16 }
  0x68   : > { %4740 = vmatprep.subr.bf16.mxu1 %v5538_v15  ;;  %4932 = vmatprep.subr.bf16.mxu0 %v5539_v17  ;;  %v376_v33 = vrot.slane %v374_v25, 1  ;;  %v1915_v39 = vshll.u32 %v6067_v30, 16  ;;  %v386_v44 = vshrl.u32 %v6063_v28, 16  ;;  %v2350_v56 = vrot.slane %v6001_v22, 2  ;;  %p5742_p7 = pnand %p5741_p3, %p5735_p8 }
  0x69   : > { %v372_v19 = vor.u32 %v370_v9, %v368_v5  ;;  %v1900_v31 = vor.u32 %v1899_v21, %v1896_v20  ;;  %v384_v46 = vrot.slane %v382_v36, 1  ;;  %v1924_v1 = vshll.u32 %v6083_v55, 16  ;;  %v5564_v9 = vld [vmem:[#allocation5 + $0x110] sm:$0xff]  }
  0x6a   : > { %v380_v42 = vor.u32 %v378_v29, %v376_v33  ;;  %v1917_v48 = vrot.slane %v1915_v39, 2  ;;  %v1930_v4 = vshrl.u32 %v6094_v62, 16  ;;  %v1933_v5 = vshll.u32 %v6094_v62, 16 }
  0x6b   : > { %4741 = vmatpush3.bf16.msra.mxu1 %v5538_v15  ;;  %4933 = vmatpush3.bf16.msra.mxu0 %v5539_v17  ;;  %v6054_v15 = vld [vmem:[%s5975_s3 + $0x30] sm:$0xff]   ;;  %v1892_v17 = vsel %vm1857_vm2, %v1882_v61, %v1891_v7  ;;  %v1901_v40 = vsel %vm1857_vm2, %v1891_v7, %v1900_v31  ;;  %v377_v41 = vsel %vm333_vm0, %v372_v19, %v376_v33 }
  0x6c   : > { %4970 = vmatprep.subr.bf16.mxu0 %v5546_v37  ;;  %4778 = vmatprep.subr.bf16.mxu1 %v5551_v60  ;;  %v1903_v26 = vshrl.u32 %v6054_v15, 16  ;;  %v1906_v27 = vshll.u32 %v6054_v15, 16  ;;  %v385_v57 = vsel %vm333_vm0, %v380_v42, %v384_v46  ;;  %v388_v58 = vor.u32 %v386_v44, %v384_v46  ;;  %v6126_v44 = vld [vmem:[%s5975_s3 + $0x58] sm:$0xff]  }
  0x6d   : > { %v1932_v19 = vrot.slane %v1930_v4, 1  ;;  %v1935_v21 = vrot.slane %v1933_v5, 2 }
  0x6e   : > { %4743 = vmatmul.mubr.msk.bf16.vlgmr.msra.gmra.mrb[0].mxu1 %vm518_vm1, %v353_v51  ;;  %4935 = vmatmul.mubr.msk.bf16.vlgmr.msra.gmra.mrb[0].mxu0 %vm518_vm1, %v1883_v3  ;;  %v1905_v34 = vrot.slane %v1903_v26, 1  ;;  %v1908_v35 = vrot.slane %v1906_v27, 2  ;;  %v6079_v51 = vld [vmem:[%s5975_s3 + $0x38] sm:$0xff]   ;;  %v406_v26 = vshll.u32 %v6104_v10, 16  ;;  %v6112_v27 = vld [vmem:[%s5975_s3 + $0x50] sm:$0xff]  }
  0x6f   : > { %4746 = vmatprep.mubr.msk.bf16.mxu1 %vm518_vm1, %v361_v0  ;;  %4779 = vmatpush3.bf16.msra.mxu1 %v5551_v60  ;;  %v6090_v60 = vld [vmem:[%s5975_s3 + $0x40] sm:$0xff]   ;;  %v394_v61 = vshrl.u32 %v6079_v51, 16  ;;  %v1921_v0 = vshrl.u32 %v6083_v55, 16  ;;  %v1942_v39 = vshll.u32 %v6112_v27, 16 }
  0x70   : > { %4971 = vmatpush3.bf16.msra.mxu0 %v5546_v37  ;;  %4938 = vmatprep.mubr.msk.bf16.mxu0 %vm518_vm1, %v1892_v17  ;;  %v1912_v37 = vshrl.u32 %v6067_v30, 16  ;;  %v1909_v45 = vor.u32 %v1908_v35, %v1905_v34  ;;  %v398_v3 = vshll.u32 %v6090_v60, 16  ;;  %v402_v25 = vshrl.u32 %v6090_v60, 16  ;;  %v6116_v35 = vld [vmem:[%s5975_s3 + $0x50] sm:$0xff]  }
  0x71   : > { %4972 = vmatprep.subr.bf16.mxu0 %v5549_v59  ;;  %4780 = vmatprep.subr.bf16.mxu1 %v5558_v43  ;;  %v1923_v7 = vrot.slane %v1921_v0, 1  ;;  %v408_v34 = vrot.slane %v406_v26, 1  ;;  %v2331_v0 = vld [vmem:[%s5975_s3 + $0x8] sm:$0xc] }
  0x72   : > { %v1914_v47 = vrot.slane %v1912_v37, 1  ;;  %v1910_v52 = vsel %vm1857_vm2, %v1900_v31, %v1909_v45  ;;  %v1936_v31 = vor.u32 %v1935_v21, %v1932_v19  ;;  %v1939_v37 = vshrl.u32 %v6112_v27, 16  ;;  %v5575_v21 = vld [vmem:[#allocation5 + $0x18] sm:$0xff]  }
  0x73   : > { %4781 = vmatpush3.bf16.msra.mxu1 %v5558_v43  ;;  %v414_v43 = vshll.u32 %v6116_v35, 16  ;;  %v6153_v26 = vld [vmem:[%s5975_s3 + $0x68] sm:$0xff]  }
  0x74   : > { %4973 = vmatpush3.bf16.msra.mxu0 %v5549_v59  ;;  %v1918_v53 = vor.u32 %v1917_v48, %v1914_v47  ;;  %v390_v59 = vshll.u32 %v6079_v51, 16  ;;  %v1941_v46 = vrot.slane %v1939_v37, 1  ;;  %v1944_v47 = vrot.slane %v1942_v39, 2  ;;  %v5570_v48 = vld [vmem:[#allocation5 + $0x118] sm:$0xff]  }
  0x75   : > { %4974 = vmatprep.subr.bf16.mxu0 %v5553_v8 }
  0x76   : > { %4747 = vmatmul.mubr.msk.bf16.gmra.mrb[4].mxu1 %vm518_vm1, %v369_v18  ;;  %4939 = vmatmul.mubr.msk.bf16.gmra.mrb[4].mxu0 %vm518_vm1, %v1901_v40  ;;  %v1919_v63 = vsel %vm1857_vm2, %v1909_v45, %v1918_v53  ;;  %v392_v2 = vrot.slane %v390_v59, 1  ;;  %v400_v18 = vrot.slane %v398_v3, 1  ;;  %v410_v40 = vshrl.u32 %v6104_v10, 16 }
  0x77   : > { %4750 = vmatprep.mubr.msk.bf16.mxu1 %vm518_vm1, %v377_v41  ;;  %4942 = vmatprep.mubr.msk.bf16.mxu0 %vm518_vm1, %v1910_v52  ;;  %v5568_v41 = vld [vmem:[#allocation5 + $0x10] sm:$0xff]   ;;  %v416_v52 = vrot.slane %v414_v43, 1  ;;  %v1945_v59 = vor.u32 %v1944_v47, %v1941_v46  ;;  %v2354_v43 = vrot.slane %v6027_v50, 2  ;;  %v5581_v46 = vld [vmem:[#allocation5 + $0x20] sm:$0xff]  }
  0x78   : > { %4975 = vmatpush3.bf16.msra.mxu0 %v5553_v8  ;;  %v1926_v8 = vrot.slane %v1924_v1, 2  ;;  %v393_v11 = vsel %vm333_vm0, %v388_v58, %v392_v2  ;;  %v396_v17 = vor.u32 %v394_v61, %v392_v2  ;;  %v404_v33 = vor.u32 %v402_v25, %v400_v18  ;;  %4782 = vmatprep.subr.bf16.mxu1 %v5568_v41  ;;  %v6140_v1 = vld [vmem:[%s5975_s3 + $0x60] sm:$0xff]  }
  0x79   : > { %4976 = vmatprep.subr.bf16.mxu0 %v5559_v49  ;;  %v418_v58 = vshrl.u32 %v6116_v35, 16  ;;  %v412_v61 = vor.u32 %v410_v40, %v408_v34  ;;  %4783 = vmatpush3.bf16.msra.mxu1 %v5568_v41  ;;  %v1946_v5 = vsel %vm1857_vm2, %v1936_v31, %v1945_v59  ;;  %v6169_v41 = vld [vmem:[%s5975_s3 + $0x78] sm:$0xff]  }
  0x7a   : > { %v1927_v20 = vor.u32 %v1926_v8, %v1923_v7  ;;  %v401_v36 = vsel %vm333_vm0, %v396_v17, %v400_v18  ;;  %v409_v42 = vsel %vm333_vm0, %v404_v33, %v408_v34  ;;  %v4393_v8 = vcombine.low %v2331_v0, %v5994_v16  ;;  %v5574_v18 = vld [vmem:[#allocation5 + $0x120] sm:$0xff]   ;;  %4784 = vmatprep.subr.bf16.mxu1 %v5575_v21 }
  0x7b   : > { %v420_v4 = vor.u32 %v418_v58, %v416_v52  ;;  %v430_v17 = vshll.u32 %v6140_v1, 16  ;;  %v417_v19 = vsel %vm333_vm0, %v412_v61, %v416_v52  ;;  %v434_v16 = vshrl.u32 %v6140_v1, 16  ;;  %v6186_v61 = vld [vmem:[%s5975_s3 + $0x80] sm:$0xff]  }
  0x7c   : > { %4977 = vmatpush3.bf16.msra.mxu0 %v5559_v49  ;;  %v1928_v29 = vsel %vm1857_vm2, %v1918_v53, %v1927_v20  ;;  %v1937_v45 = vsel %vm1857_vm2, %v1927_v20, %v1936_v31  ;;  %v6130_v49 = vld [vmem:[%s5975_s3 + $0x58] sm:$0xff]   ;;  %v1948_v53 = vshrl.u32 %v6126_v44, 16  ;;  %v2349_v20 = vrot.slane %v4393_v8, 2 }
  0x7d   : > { %4978 = vmatprep.subr.bf16.mxu0 %v5564_v9  ;;  %v432_v31 = vrot.slane %v430_v17, 1  ;;  %v438_v34 = vshll.u32 %v6153_v26, 16  ;;  %4785 = vmatpush3.bf16.msra.mxu1 %v5575_v21  ;;  %v2356_v0 = vrot.slane %v6044_v6, 2  ;;  %v6197_v8 = vld [vmem:[#allocation5 + $0x60] sm:$0xff]  }
  0x7e   : > { %4751 = vmatmul.mubr.msk.bf16.gmra.mrb[8].mxu1 %vm518_vm1, %v385_v57  ;;  %4943 = vmatmul.mubr.msk.bf16.gmra.mrb[8].mxu0 %vm518_vm1, %v1919_v63  ;;  %v1951_v57 = vshll.u32 %v6126_v44, 16  ;;  %v422_v63 = vshll.u32 %v6130_v49, 16  ;;  %v1950_v2 = vrot.slane %v1948_v53, 1  ;;  %v2351_v33 = vsel %vm2348_vm3, %v2349_v20, %v2350_v56  ;;  %v6207_v20 = vld [vmem:[%s5975_s3 + $0x90] ss:$0 sps:$4 sm:$0x11]  }
  0x7f   : > { %4754 = vmatprep.mubr.msk.bf16.mxu1 %vm518_vm1, %v393_v11  ;;  %4946 = vmatprep.mubr.msk.bf16.mxu0 %vm518_vm1, %v1928_v29  ;;  %v436_v39 = vor.u32 %v434_v16, %v432_v31  ;;  %v440_v40 = vrot.slane %v438_v34, 1  ;;  %v5586_v16 = vld [vmem:[#allocation5 + $0x138] sm:$0xff]   ;;  %v2360_v34 = vrot.slane %v6067_v30, 2 }
  0x80   : > { %4979 = vmatpush3.bf16.msra.mxu0 %v5564_v9  ;;  %v1953_v3 = vrot.slane %v1951_v57, 2  ;;  %v424_v7 = vrot.slane %v422_v63, 1  ;;  %v426_v9 = vshrl.u32 %v6130_v49, 16  ;;  %v454_v57 = vshll.u32 %v6169_v41, 16  ;;  %4786 = vmatprep.subr.bf16.mxu1 %v5581_v46 }
  0x81   : > { %4980 = vmatprep.subr.bf16.mxu0 %v5570_v48  ;;  %v441_v52 = vsel %vm333_vm0, %v436_v39, %v440_v40  ;;  %4787 = vmatpush3.bf16.msra.mxu1 %v5581_v46  ;;  %v5592_v39 = vld [vmem:[#allocation5 + $0x140] sm:$0xff]  }
  0x82   : > { %v6147_v11 = vor.u32 %v1953_v3, %v1950_v2  ;;  %v425_v25 = vsel %vm333_vm0, %v420_v4, %v424_v7  ;;  %v428_v37 = vor.u32 %v426_v9, %v424_v7  ;;  %v5585_v2 = vld [vmem:[#allocation5 + $0x28] sm:$0xff]   ;;  %v456_v3 = vrot.slane %v454_v57, 1  ;;  %v6228_v57 = vld [vmem:[#allocation5 + $0x150] sm:$0xff]  }
  0x83   : > { %v2358_v4 = vrot.slane %v6054_v15, 2  ;;  %v462_v7 = vshll.u32 %v6186_v61, 16  ;;  %4788 = vmatprep.subr.bf16.mxu1 %v5585_v2  ;;  %v458_v9 = vshrl.u32 %v6169_v41, 16  ;;  %v2357_v15 = vsel %vm2348_vm3, %v2354_v43, %v2356_v0 }
  0x84   : > { %4981 = vmatpush3.bf16.msra.mxu0 %v5570_v48  ;;  %v1955_v29 = vsel %vm1857_vm2, %v1945_v59, %v6147_v11  ;;  %v433_v47 = vsel %vm333_vm0, %v428_v37, %v432_v31  ;;  %v442_v48 = vshrl.u32 %v6153_v26, 16  ;;  %v5578_v59 = vld [vmem:[#allocation5 + $0x128] sm:$0xff]   ;;  %v2362_v37 = vrot.slane %v6083_v55, 2 }
  0x85   : > { %5018 = vmatprep.subr.bf16.mxu0 %v5574_v18  ;;  %4789 = vmatpush3.bf16.msra.mxu1 %v5585_v2  ;;  %v2359_v21 = vsel %vm2348_vm3, %v2356_v0, %v2358_v4  ;;  %v2361_v46 = vsel %vm2348_vm3, %v2358_v4, %v2360_v34  ;;  %v6246_v2 = vld [vmem:[%s5975_s3 + $0x68] sm:$0xff]  }
  0x86   : > { %4755 = vmatmul.mubr.msk.bf16.gmra.mrb[12].mxu1 %vm518_vm1, %v401_v36  ;;  %4947 = vmatmul.mubr.msk.bf16.gmra.mrb[12].mxu0 %vm518_vm1, %v1937_v45  ;;  %v6164_v36 = vld [vmem:[%s5975_s3 + $0x70] sm:$0xff]   ;;  %v444_v63 = vor.u32 %v442_v48, %v440_v40  ;;  %v2363_v30 = vsel %vm2348_vm3, %v2360_v34, %v2362_v37 }
  0x87   : > { %4758 = vmatprep.mubr.msk.bf16.mxu1 %vm518_vm1, %v409_v42  ;;  %4950 = vmatprep.mubr.msk.bf16.mxu0 %vm518_vm1, %v1946_v5  ;;  %v2352_v42 = vrot.slane %v6015_v32, 2  ;;  %v446_v45 = vshll.u32 %v6164_v36, 16  ;;  %v450_v53 = vshrl.u32 %v6164_v36, 16  ;;  %v5584_v5 = vld [vmem:[#allocation5 + $0x130] sm:$0xff]   ;;  %v5604_v4 = vld [vmem:[#allocation5 + $0x78] sm:$0xff]  }
  0x88   : > { %4826 = vmatprep.subr.bf16.mxu1 %v6197_v8 }
  0x89   : > { %v2353_v32 = vsel %vm2348_vm3, %v2350_v56, %v2352_v42  ;;  %v2355_v50 = vsel %vm2348_vm3, %v2352_v42, %v2354_v43  ;;  %v448_v58 = vrot.slane %v446_v45, 1  ;;  %v6192_v56 = vld [vmem:[%s5975_s3 + $0x88] sm:$0xff]   ;;  %v478_v43 = vshll.u32 %v6207_v20, 16 }
  0x8a   : > { %v474_v42 = vshrl.u32 %v6192_v56, 16 }
  0x8b   : > { %v452_v22 = vor.u32 %v450_v53, %v448_v58  ;;  %v449_v6 = vsel %vm333_vm0, %v444_v63, %v448_v58  ;;  %v480_v48 = vrot.slane %v478_v43, 1  ;;  %v2366_v53 = vrot.slane %v6112_v27, 2  ;;  %v5593_v63 = vld [vmem:[#allocation5 + $0x68] sm:$0xff]  }
  0x8c   : > { %v6322_v43 = vld [vmem:[%s5975_s3 + $0x20] sm:$0xff]  }
  0x8d   : > { %v457_v17 = vsel %vm333_vm0, %v452_v22, %v456_v3 }
  0x8e   : > { %4759 = vmatmul.mubr.msk.bf16.gmra.mrb[16].mxu1 %vm518_vm1, %v417_v19  ;;  %4951 = vmatmul.mubr.msk.bf16.gmra.mrb[16].mxu0 %vm518_vm1, %v1955_v29  ;;  %v470_v19 = vshll.u32 %v6192_v56, 16  ;;  %v460_v29 = vor.u32 %v458_v9, %v456_v3  ;;  %v2372_v3 = vrot.slane %v6246_v2, 2 }
  0x8f   : > { %4762 = vmatprep.mubr.msk.bf16.mxu1 %vm518_vm1, %v425_v25  ;;  %4982 = vmatprep.mubr.msk.bf16.mxu0 %vm518_vm1, %v2351_v33  ;;  %v464_v25 = vrot.slane %v462_v7, 1  ;;  %v6263_v7 = vld [vmem:[%s5975_s3 + $0x78] sm:$0xff]  }
  0x90   : > { %v472_v33 = vrot.slane %v470_v19, 1  ;;  %v2376_v9 = vrot.slane %v6263_v7, 2 }
  0x91   : > { %v465_v40 = vsel %vm333_vm0, %v460_v29, %v464_v25  ;;  %v6297_v29 = vld [vmem:[%s5975_s3 + $0x14] sm:$0xf] }
  0x92   : > { %v476_v55 = vor.u32 %v474_v42, %v472_v33 }
  0x96   : > { %4763 = vmatmul.mubr.msk.bf16.gmra.mrb[20].mxu1 %vm518_vm1, %v433_v47  ;;  %4983 = vmatmul.mubr.msk.bf16.vlgmr.msra.gmra.mrb[0].mxu0 %vm518_vm1, %v2353_v32  ;;  %v5596_v47 = vld [vmem:[#allocation5 + $0x148] sm:$0xff]   ;;  %v481_v32 = vsel %vm333_vm0, %v476_v55, %v480_v48 }
  0x97   : > { %4766 = vmatprep.mubr.msk.bf16.mxu1 %vm518_vm1, %v441_v52  ;;  %5019 = vmatpush3.bf16.msra.mxu0 %v5574_v18  ;;  %v466_v18 = vshrl.u32 %v6186_v61, 16  ;;  %v2364_v52 = vrot.slane %v6094_v62, 2  ;;  %v2368_v62 = vrot.slane %v6126_v44, 2  ;;  %v5598_v44 = vld [vmem:[#allocation5 + $0x70] sm:$0xff]   ;;  %v6338_v55 = vld [vmem:[%s5975_s3 + $0x30] sm:$0xff]  }
  0x98   : > { %4986 = vmatprep.mubr.msk.bf16.mxu0 %vm518_vm1, %v2355_v50  ;;  %5020 = vmatprep.subr.bf16.mxu0 %v5578_v59 }
  0x99   : > { %v468_v31 = vor.u32 %v466_v18, %v464_v25  ;;  %v2365_v50 = vsel %vm2348_vm3, %v2362_v37, %v2364_v52  ;;  %v2367_v58 = vsel %vm2348_vm3, %v2364_v52, %v2366_v53  ;;  %v2369_v0 = vsel %vm2348_vm3, %v2366_v53, %v2368_v62  ;;  %v6311_v37 = vld [vmem:[%s5975_s3 + $0x18] sm:$0xff]   ;;  %v5607_v52 = vld [vmem:[#allocation5 + $0x158] sm:$0xff]  }
  0x9a   : > { %v6344_v53 = vld [vmem:[%s5975_s3 + $0x38] sm:$0xff]  }
  0x9b   : > { %5021 = vmatpush3.bf16.msra.mxu0 %v5578_v59  ;;  %v473_v45 = vsel %vm333_vm0, %v468_v31, %v472_v33  ;;  %v6235_v59 = vld [vmem:[%s5975_s3 + $0x60] sm:$0xff]   ;;  %v6300_v31 = vld [vmem:[%s5975_s3 + $0x98] ss:$0 sps:$4 sm:$0x33]  }
  0x9c   : > { %5022 = vmatprep.subr.bf16.mxu0 %v5584_v5  ;;  %v2370_v27 = vrot.slane %v6235_v59, 2 }
  0x9e   : > { %4767 = vmatmul.mubr.msk.bf16.gmra.mrb[24].mxu1 %vm518_vm1, %v449_v6  ;;  %4987 = vmatmul.mubr.msk.bf16.gmra.mrb[4].mxu0 %vm518_vm1, %v2357_v15  ;;  %v2371_v22 = vsel %vm2348_vm3, %v2368_v62, %v2370_v27  ;;  %v5609_v6 = vld [vmem:[#allocation5 + $0x80] sm:$0xff]  }
  0x9f   : > { %4770 = vmatprep.mubr.msk.bf16.mxu1 %vm518_vm1, %v457_v17  ;;  %4990 = vmatprep.mubr.msk.bf16.mxu0 %vm518_vm1, %v2359_v21  ;;  %v6285_v15 = vld [vmem:[%s5975_s3 + $0x90] sm:$0xff]   ;;  %v6290_v21 = vld [vmem:[#allocation5 + $0x90] sm:$0xff]  }
  0xa0   : > { %5023 = vmatpush3.bf16.msra.mxu0 %v5584_v5  ;;  %v2373_v5 = vsel %vm2348_vm3, %v2370_v27, %v2372_v3  ;;  %v6355_v27 = vld [vmem:[%s5975_s3 + $0x40] sm:$0xff]  }
  0xa1   : > { %5024 = vmatprep.subr.bf16.mxu0 %v5586_v16 }
  0xa4   : > { %5025 = vmatpush3.bf16.msra.mxu0 %v5586_v16  ;;  %v2689_v16 = vld [vmem:[%s5975_s3 + $0x10] sm:$0xc] }
  0xa5   : > { %5026 = vmatprep.subr.bf16.mxu0 %v5592_v39  ;;  %v6308_v34 = vcombine.low %v2689_v16, %v6297_v29 }
  0xa6   : > { %4771 = vmatmul.mubr.msk.bf16.gmra.mrb[28].mxu1 %vm518_vm1, %v465_v40  ;;  %4991 = vmatmul.mubr.msk.bf16.gmra.mrb[8].mxu0 %vm518_vm1, %v2361_v46  ;;  %v2835_v46 = vrot.slane %v6322_v43, 2 }
  0xa7   : > { %4774 = vmatprep.mubr.msk.bf16.mxu1 %vm518_vm1, %v473_v45  ;;  %4994 = vmatprep.mubr.msk.bf16.mxu0 %vm518_vm1, %v2363_v30  ;;  %v2832_v40 = vrot.slane %v6308_v34, 2  ;;  %v6328_v45 = vld [vmem:[%s5975_s3 + $0x28] sm:$0xff]  }
  0xa8   : > { %5027 = vmatpush3.bf16.msra.mxu0 %v5592_v39  ;;  %v2384_v39 = vrot.slane %v6300_v31, 2  ;;  %v2837_v30 = vrot.slane %v6328_v45, 2 }
  0xa9   : > { %5028 = vmatprep.subr.bf16.mxu0 %v5596_v47 }
  0xaa   : > { %v2838_v48 = vsel %vm2348_vm3, %v2835_v46, %v2837_v30 }
  0xac   : > { %5029 = vmatpush3.bf16.msra.mxu0 %v5596_v47 }
  0xad   : > { %5066 = vmatprep.subr.bf16.mxu0 %v6228_v57 }
  0xae   : > { %4775 = vmatmul.mubr.msk.bf16.gmra.mrb[32].mxu1 %vm518_vm1, %v481_v32  ;;  %4995 = vmatmul.mubr.msk.bf16.gmra.mrb[12].mxu0 %vm518_vm1, %v2365_v50  ;;  %v2839_v32 = vrot.slane %v6338_v55, 2  ;;  %v2841_v50 = vrot.slane %v6344_v53, 2 }
  0xaf   : > { %4790 = vmatprep.mubr.msk.bf16.mxu1 %vm518_vm1, %v5987_v12  ;;  %4998 = vmatprep.mubr.msk.bf16.mxu0 %vm518_vm1, %v2367_v58  ;;  %v6252_v12 = vld [vmem:[%s5975_s3 + $0x70] sm:$0xff]  }
  0xb0   : > { %v5613_v58 = vld [vmem:[#allocation5 + $0x160] sm:$0xff]   ;;  %v2840_v62 = vsel %vm2348_vm3, %v2837_v30, %v2839_v32 }
  0xb1   : > { %v5647_v30 = vld [vmem:[%s5975_s3 + $0x18] sm:$0xff]  }
  0xb6   : > { %4791 = vmatmul.mubr.msk.bf16.vlgmr.msra.gmra.mrb[0].mxu1 %vm518_vm1, %v5990_v13  ;;  %4999 = vmatmul.mubr.msk.bf16.gmra.mrb[16].mxu0 %vm518_vm1, %v2369_v0  ;;  %v2374_v13 = vrot.slane %v6252_v12, 2  ;;  %v5618_v0 = vld [vmem:[#allocation5 + $0x168] sm:$0xff]  }
  0xb7   : > { %4794 = vmatprep.mubr.msk.bf16.mxu1 %vm518_vm1, %v6004_v23  ;;  %4827 = vmatpush3.bf16.msra.mxu1 %v6197_v8  ;;  %v6269_v8 = vld [vmem:[%s5975_s3 + $0x80] sm:$0xff]  }
  0xb8   : > { %4828 = vmatprep.subr.bf16.mxu1 %v5593_v63  ;;  %5002 = vmatprep.mubr.msk.bf16.mxu0 %vm518_vm1, %v2371_v22  ;;  %v2375_v23 = vsel %vm2348_vm3, %v2372_v3, %v2374_v13  ;;  %v2378_v17 = vrot.slane %v6269_v8, 2  ;;  %v2377_v18 = vsel %vm2348_vm3, %v2374_v13, %v2376_v9  ;;  %v2843_v22 = vrot.slane %v6355_v27, 2  ;;  %v5624_v13 = vld [vmem:[#allocation5 + $0x170] sm:$0xff]  }
  0xba   : > { %v2379_v19 = vsel %vm2348_vm3, %v2376_v9, %v2378_v17 }
  0xbb   : > { %4829 = vmatpush3.bf16.msra.mxu1 %v5593_v63  ;;  %v6361_v63 = vld [vmem:[%s5975_s3 + $0x48] sm:$0xff]  }
  0xbc   : > { %4830 = vmatprep.subr.bf16.mxu1 %v5598_v44  ;;  %v2845_v3 = vrot.slane %v6361_v63, 2 }
  0xbe   : > { %4795 = vmatmul.mubr.msk.bf16.gmra.mrb[4].mxu1 %vm518_vm1, %v6018_v38  ;;  %5003 = vmatmul.mubr.msk.bf16.gmra.mrb[20].mxu0 %vm518_vm1, %v2373_v5  ;;  %v5614_v38 = vld [vmem:[#allocation5 + $0x88] sm:$0xff]   ;;  %v2846_v9 = vsel %vm2348_vm3, %v2843_v22, %v2845_v3 }
  0xbf   : > { %4798 = vmatprep.mubr.msk.bf16.mxu1 %vm518_vm1, %v6031_v54  ;;  %4831 = vmatpush3.bf16.msra.mxu1 %v5598_v44  ;;  %v6279_v54 = vld [vmem:[%s5975_s3 + $0x88] sm:$0xff]   ;;  %v999_v44 = vld [vmem:[%s5975_s3] sm:$0xe] }
  0xc0   : > { %4832 = vmatprep.subr.bf16.mxu1 %v5604_v4  ;;  %5006 = vmatprep.mubr.msk.bf16.mxu0 %vm518_vm1, %v2375_v23  ;;  %v2380_v25 = vrot.slane %v6279_v54, 2  ;;  %v2844_v23 = vsel %vm2348_vm3, %v2841_v50, %v2843_v22  ;;  %v6418_v22 = vld [vmem:[%s5975_s3 + $0x78] sm:$0xff]  }
  0xc3   : > { %4833 = vmatpush3.bf16.msra.mxu1 %v5604_v4  ;;  %v5644_v4 = vld [vmem:[%s5975_s3 + $0x4] sm:$0xf] }
  0xc4   : > { %4834 = vmatprep.subr.bf16.mxu1 %v5609_v6  ;;  %v4300_v5 = vcombine.low %v999_v44, %v5644_v4  ;;  %v5648_v44 = vld [vmem:[%s5975_s3 + $0x20] sm:$0xff]  }
  0xc6   : > { %4799 = vmatmul.mubr.msk.bf16.gmra.mrb[8].mxu1 %vm518_vm1, %v6051_v14  ;;  %5007 = vmatmul.mubr.msk.bf16.gmra.mrb[24].mxu0 %vm518_vm1, %v2377_v18  ;;  %v2382_v14 = vrot.slane %v6285_v15, 2  ;;  %v1017_v18 = vrot.slane %v4300_v5, 1  ;;  %v5630_v5 = vld [vmem:[#allocation5 + $0xa0] sm:$0xff]  }
  0xc7   : > { %4802 = vmatprep.mubr.msk.bf16.mxu1 %vm518_vm1, %v6063_v28  ;;  %4835 = vmatpush3.bf16.msra.mxu1 %v5609_v6  ;;  %v2381_v28 = vsel %vm2348_vm3, %v2378_v17, %v2380_v25  ;;  %v6373_v6 = vld [vmem:[%s5975_s3 + $0x50] sm:$0xff]   ;;  %v6379_v17 = vld [vmem:[%s5975_s3 + $0x58] sm:$0xff]  }
  0xc8   : > { %4836 = vmatprep.subr.bf16.mxu1 %v5614_v38  ;;  %5010 = vmatprep.mubr.msk.bf16.mxu0 %vm518_vm1, %v2379_v19  ;;  %v2383_v33 = vsel %vm2348_vm3, %v2380_v25, %v2382_v14  ;;  %v2385_v42 = vsel %vm2348_vm3, %v2382_v14, %v2384_v39  ;;  %v5645_v19 = vld [vmem:[%s5975_s3 + $0x8] sm:$0xff]   ;;  %v2847_v14 = vrot.slane %v6373_v6, 2  ;;  %v2849_v16 = vrot.slane %v6379_v17, 2 }
  0xc9   : > { %v1018_v25 = vrot.slane %v5645_v19, 1 }
  0xca   : > { %v2848_v39 = vsel %vm2348_vm3, %v2845_v3, %v2847_v14  ;;  %v1024_v3 = vrot.slane %v5648_v44, 1  ;;  %v5652_v44 = vld [vmem:[%s5975_s3 + $0x40] sm:$0xff]  }
  0xcb   : > { %4837 = vmatpush3.bf16.msra.mxu1 %v5614_v38  ;;  %v5628_v38 = vld [vmem:[#allocation5 + $0x178] sm:$0xff]  }
  0xcc   : > { %4874 = vmatprep.subr.bf16.mxu1 %v6290_v21 }
  0xce   : > { %4803 = vmatmul.mubr.msk.bf16.gmra.mrb[12].mxu1 %vm518_vm1, %v6079_v51  ;;  %5011 = vmatmul.mubr.msk.bf16.gmra.mrb[28].mxu0 %vm518_vm1, %v2381_v28  ;;  %v2833_v51 = vrot.slane %v6311_v37, 2  ;;  %v6388_v28 = vld [vmem:[#allocation5 + $0x180] sm:$0xff]  }
  0xcf   : > { %4806 = vmatprep.mubr.msk.bf16.mxu1 %vm518_vm1, %v6090_v60  ;;  %5014 = vmatprep.mubr.msk.bf16.mxu0 %vm518_vm1, %v2383_v33  ;;  %v1019_v33 = vsel %vm1016_vm4, %v1017_v18, %v1018_v25  ;;  %v5633_v18 = vld [vmem:[#allocation5 + $0xa8] sm:$0xff]  }
  0xd0   : > { %v2834_v60 = vsel %vm2348_vm3, %v2832_v40, %v2833_v51  ;;  %v2836_v47 = vsel %vm2348_vm3, %v2833_v51, %v2835_v46  ;;  %v6393_v40 = vld [vmem:[%s5975_s3 + $0x60] sm:$0xff]   ;;  %v2850_v51 = vsel %vm2348_vm3, %v2847_v14, %v2849_v16 }
  0xd6   : > { %4807 = vmatmul.mubr.msk.bf16.gmra.mrb[16].mxu1 %vm518_vm1, %v6104_v10  ;;  %5015 = vmatmul.mubr.msk.bf16.gmra.mrb[32].mxu0 %vm518_vm1, %v2385_v42  ;;  %v6399_v42 = vld [vmem:[%s5975_s3 + $0x68] sm:$0xff]  }
  0xd7   : > { %4810 = vmatprep.mubr.msk.bf16.mxu1 %vm518_vm1, %v6116_v35  ;;  %5030 = vmatprep.mubr.msk.bf16.mxu0 %vm518_vm1, %v2834_v60  ;;  %v5646_v60 = vld [vmem:[%s5975_s3 + $0x10] sm:$0xff]  }
  0xd8   : > { %v1020_v46 = vrot.slane %v5646_v60, 1 }
  0xde   : > { %4811 = vmatmul.mubr.msk.bf16.gmra.mrb[20].mxu1 %vm518_vm1, %v6130_v49  ;;  %5031 = vmatmul.mubr.msk.bf16.vlgmr.msra.gmra.mrb[0].mxu0 %vm518_vm1, %v2836_v47  ;;  %v1022_v47 = vrot.slane %v5647_v30, 1 }
  0xdf   : > { %4814 = vmatprep.mubr.msk.bf16.mxu1 %vm518_vm1, %v6140_v1  ;;  %5067 = vmatpush3.bf16.msra.mxu0 %v6228_v57  ;;  %v2842_v57 = vsel %vm2348_vm3, %v2839_v32, %v2841_v50  ;;  %v1021_v32 = vsel %vm1016_vm4, %v1018_v25, %v1020_v46  ;;  %v6432_v25 = vld [vmem:[%s5975_s3 + $0x80] sm:$0xff]  }
  0xe0   : > { %5034 = vmatprep.mubr.msk.bf16.mxu0 %vm518_vm1, %v2838_v48  ;;  %5068 = vmatprep.subr.bf16.mxu0 %v5607_v52  ;;  %v2851_v48 = vrot.slane %v6393_v40, 2  ;;  %v1023_v50 = vsel %vm1016_vm4, %v1020_v46, %v1022_v47  ;;  %v5635_v46 = vld [vmem:[#allocation5 + $0xb0] sm:$0xff]   ;;  %v2859_v30 = vrot.slane %v6432_v25, 2 }
  0xe3   : > { %5069 = vmatpush3.bf16.msra.mxu0 %v5607_v52  ;;  %v2853_v52 = vrot.slane %v6399_v42, 2 }
  0xe4   : > { %5070 = vmatprep.subr.bf16.mxu0 %v5613_v58 }
  0xe6   : > { %4815 = vmatmul.mubr.msk.bf16.gmra.mrb[24].mxu1 %vm518_vm1, %v6153_v26  ;;  %5035 = vmatmul.mubr.msk.bf16.gmra.mrb[4].mxu0 %vm518_vm1, %v2840_v62  ;;  %v2852_v62 = vsel %vm2348_vm3, %v2849_v16, %v2851_v48  ;;  %v6437_v16 = vld [vmem:[%s5975_s3 + $0x88] sm:$0xff]  }
  0xe7   : > { %4818 = vmatprep.mubr.msk.bf16.mxu1 %vm518_vm1, %v6164_v36  ;;  %5038 = vmatprep.mubr.msk.bf16.mxu0 %vm518_vm1, %v2842_v57  ;;  %v6413_v57 = vld [vmem:[%s5975_s3 + $0x70] sm:$0xff]  }
  0xe8   : > { %5071 = vmatpush3.bf16.msra.mxu0 %v5613_v58  ;;  %v5625_v58 = vld [vmem:[#allocation5 + $0x98] sm:$0xff]  }
  0xe9   : > { %5072 = vmatprep.subr.bf16.mxu0 %v5618_v0 }
  0xec   : > { %5073 = vmatpush3.bf16.msra.mxu0 %v5618_v0  ;;  %v2854_v0 = vsel %vm2348_vm3, %v2851_v48, %v2853_v52 }
  0xed   : > { %5074 = vmatprep.subr.bf16.mxu0 %v5624_v13 }
  0xee   : > { %4819 = vmatmul.mubr.msk.bf16.gmra.mrb[28].mxu1 %vm518_vm1, %v6169_v41  ;;  %5039 = vmatmul.mubr.msk.bf16.gmra.mrb[8].mxu0 %vm518_vm1, %v2844_v23  ;;  %v2855_v23 = vrot.slane %v6413_v57, 2 }
  0xef   : > { %4822 = vmatprep.mubr.msk.bf16.mxu1 %vm518_vm1, %v6186_v61  ;;  %5042 = vmatprep.mubr.msk.bf16.mxu0 %vm518_vm1, %v2846_v9  ;;  %v2857_v9 = vrot.slane %v6418_v22, 2 }
  0xf0   : > { %5075 = vmatpush3.bf16.msra.mxu0 %v5624_v13  ;;  %v5649_v13 = vld [vmem:[%s5975_s3 + $0x28] sm:$0xff]   ;;  %v2856_v19 = vsel %vm2348_vm3, %v2853_v52, %v2855_v23 }
  0xf1   : > { %5076 = vmatprep.subr.bf16.mxu0 %v5628_v38  ;;  %v1026_v4 = vrot.slane %v5649_v13, 1  ;;  %v2858_v14 = vsel %vm2348_vm3, %v2855_v23, %v2857_v9  ;;  %v1034_v13 = vrot.slane %v6104_v10, 1 }
  0xf4   : > { %5077 = vmatpush3.bf16.msra.mxu0 %v5628_v38  ;;  %v1025_v38 = vsel %vm1016_vm4, %v1022_v47, %v1024_v3  ;;  %v2861_v47 = vrot.slane %v6437_v16, 2 }
  0xf5   : > { %5114 = vmatprep.subr.bf16.mxu0 %v6388_v28 }
  0xf6   : > { %4823 = vmatmul.mubr.msk.bf16.gmra.mrb[32].mxu1 %vm518_vm1, %v6192_v56  ;;  %5043 = vmatmul.mubr.msk.bf16.gmra.mrb[12].mxu0 %vm518_vm1, %v2848_v39 }
  0xf7   : > { %4838 = vmatprep.mubr.msk.bf16.mxu1 %vm518_vm1, %v1019_v33  ;;  %5046 = vmatprep.mubr.msk.bf16.mxu0 %vm518_vm1, %v2850_v51  ;;  %v5650_v33 = vld [vmem:[%s5975_s3 + $0x30] sm:$0xff]   ;;  %v5651_v51 = vld [vmem:[%s5975_s3 + $0x38] sm:$0xff]  }
  0xf8   : > { %v1028_v39 = vrot.slane %v5650_v33, 1  ;;  %v1030_v60 = vrot.slane %v5651_v51, 1  ;;  %v5631_v33 = vld [vmem:[%s5975_s3 + $0xa0] ss:$0 sps:$4 sm:$0x33]  }
  0xfa   : > { %v1029_v48 = vsel %vm1016_vm4, %v1026_v4, %v1028_v39  ;;  %v1031_v52 = vsel %vm1016_vm4, %v1028_v39, %v1030_v60 }
  0xfe   : > { %4839 = vmatmul.mubr.msk.bf16.vlgmr.msra.gmra.mrb[0].mxu1 %vm518_vm1, %v1021_v32  ;;  %5047 = vmatmul.mubr.msk.bf16.gmra.mrb[16].mxu0 %vm518_vm1, %v2852_v62  ;;  %v5637_v32 = vld [vmem:[#allocation5 + $0xb8] sm:$0xff]   ;;  %v2862_v62 = vsel %vm2348_vm3, %v2859_v30, %v2861_v47 }
  0xff   : > { %4842 = vmatprep.mubr.msk.bf16.mxu1 %vm518_vm1, %v1023_v50  ;;  %4875 = vmatpush3.bf16.msra.mxu1 %v6290_v21  ;;  %v1027_v21 = vsel %vm1016_vm4, %v1024_v3, %v1026_v4  ;;  %v2860_v50 = vsel %vm2348_vm3, %v2857_v9, %v2859_v30  ;;  %v1032_v3 = vrot.slane %v5652_v44, 1  ;;  %v3194_v9 = vshll.u32 %v6308_v34, 16 }
 0x100   : > { %4876 = vmatprep.subr.bf16.mxu1 %v5625_v58  ;;  %5050 = vmatprep.mubr.msk.bf16.mxu0 %vm518_vm1, %v2854_v0  ;;  %v6455_v0 = vld [vmem:[%s5975_s3 + $0x98] sm:$0xff]   ;;  %v3217_v44 = vshrl.u32 %v6328_v45, 16 }
 0x101   : > { %v2865_v23 = vrot.slane %v6455_v0, 2  ;;  %v1035_v10 = vsel %vm1016_vm4, %v1032_v3, %v1034_v13  ;;  %v3196_v51 = vrot.slane %v3194_v9, 3 }
 0x103   : > { %4877 = vmatpush3.bf16.msra.mxu1 %v5625_v58  ;;  %v6450_v58 = vld [vmem:[%s5975_s3 + $0x90] sm:$0xff]  }
 0x104   : > { %4878 = vmatprep.subr.bf16.mxu1 %v5630_v5  ;;  %v2863_v4 = vrot.slane %v6450_v58, 2 }
 0x106   : > { %4843 = vmatmul.mubr.msk.bf16.gmra.mrb[4].mxu1 %vm518_vm1, %v1025_v38  ;;  %5051 = vmatmul.mubr.msk.bf16.gmra.mrb[20].mxu0 %vm518_vm1, %v2856_v19  ;;  %v3199_v38 = vshrl.u32 %v6311_v37, 16  ;;  %v6470_v19 = vld [vmem:[#allocation5 + $0xc0] sm:$0xff]  }
 0x107   : > { %4846 = vmatprep.mubr.msk.bf16.mxu1 %vm518_vm1, %v1027_v21  ;;  %4879 = vmatpush3.bf16.msra.mxu1 %v5630_v5  ;;  %v3191_v5 = vshrl.u32 %v6308_v34, 16  ;;  %v3202_v21 = vshll.u32 %v6311_v37, 16  ;;  %v2866_v34 = vsel %vm2348_vm3, %v2863_v4, %v2865_v23 }
 0x108   : > { %4880 = vmatprep.subr.bf16.mxu1 %v5633_v18  ;;  %5054 = vmatprep.mubr.msk.bf16.mxu0 %vm518_vm1, %v2858_v14  ;;  %v2864_v14 = vsel %vm2348_vm3, %v2861_v47, %v2863_v4  ;;  %v2867_v47 = vrot.slane %v5631_v33, 2  ;;  %v3229_v33 = vshll.u32 %v6338_v55, 16 }
 0x109   : > { %v3193_v39 = vrot.slane %v3191_v5, 2  ;;  %v3204_v30 = vrot.slane %v3202_v21, 3  ;;  %v3219_v21 = vrot.slane %v3217_v44, 2  ;;  %v1044_v44 = vrot.slane %v6164_v36, 1  ;;  %v5636_v36 = vld [vmem:[#allocation5 + $0x190] sm:$0xff]  }
 0x10b   : > { %4881 = vmatpush3.bf16.msra.mxu1 %v5633_v18  ;;  %v1033_v18 = vsel %vm1016_vm4, %v1030_v60, %v1032_v3  ;;  %v1036_v60 = vrot.slane %v6116_v35, 1  ;;  %v3220_v3 = vshll.u32 %v6328_v45, 16 }
 0x10c   : > { %4882 = vmatprep.subr.bf16.mxu1 %v5635_v46 }
 0x10d   : > { %v1037_v4 = vsel %vm1016_vm4, %v1034_v13, %v1036_v60  ;;  %v1042_v13 = vrot.slane %v6153_v26, 1  ;;  %v3231_v26 = vrot.slane %v3229_v33, 3  ;;  %v1048_v33 = vrot.slane %v6186_v61, 1 }
 0x10e   : > { %4847 = vmatmul.mubr.msk.bf16.gmra.mrb[8].mxu1 %vm518_vm1, %v1029_v48  ;;  %5055 = vmatmul.mubr.msk.bf16.gmra.mrb[24].mxu0 %vm518_vm1, %v2860_v50  ;;  %v1038_v48 = vrot.slane %v6130_v49, 1  ;;  %v3197_v50 = vor.u32 %v3196_v51, %v3193_v39  ;;  %v2868_v49 = vsel %vm2348_vm3, %v2865_v23, %v2867_v47  ;;  %v3226_v23 = vshrl.u32 %v6338_v55, 16 }
 0x10f   : > { %4850 = vmatprep.mubr.msk.bf16.mxu1 %vm518_vm1, %v1031_v52  ;;  %4883 = vmatpush3.bf16.msra.mxu1 %v5635_v46  ;;  %v3201_v46 = vrot.slane %v3199_v38, 2  ;;  %v3208_v52 = vshrl.u32 %v6322_v43, 16  ;;  %v3238_v51 = vshll.u32 %v6344_v53, 16 }
 0x110   : > { %4884 = vmatprep.subr.bf16.mxu1 %v5637_v32  ;;  %5058 = vmatprep.mubr.msk.bf16.mxu0 %vm518_vm1, %v2862_v62  ;;  %v1039_v35 = vsel %vm1016_vm4, %v1036_v60, %v1038_v48  ;;  %v3228_v60 = vrot.slane %v3226_v23, 2  ;;  %v5638_v23 = vld [vmem:[#allocation5 + $0x198] sm:$0xff]  }
 0x111   : > { %v3205_v62 = vor.u32 %v3204_v30, %v3201_v46  ;;  %v3210_v5 = vrot.slane %v3208_v52, 2  ;;  %v5634_v52 = vld [vmem:[#allocation5 + $0x188] sm:$0xff]  }
 0x113   : > { %4885 = vmatpush3.bf16.msra.mxu1 %v5637_v32  ;;  %v3211_v32 = vshll.u32 %v6322_v43, 16  ;;  %v3206_v38 = vsel %vm3189_vm5, %v3197_v50, %v3205_v62  ;;  %v3240_v50 = vrot.slane %v3238_v51, 3  ;;  %v3265_v51 = vshll.u32 %v6373_v6, 16 }
 0x114   : > { %5162 = vmatprep.subr.bf16.mxu1 %v6470_v19 }
 0x115   : > { %v3213_v9 = vrot.slane %v3211_v32, 3 }
 0x116   : > { %4851 = vmatmul.mubr.msk.bf16.gmra.mrb[12].mxu1 %vm518_vm1, %v1033_v18  ;;  %5059 = vmatmul.mubr.msk.bf16.gmra.mrb[28].mxu0 %vm518_vm1, %v2864_v14  ;;  %v3222_v18 = vrot.slane %v3220_v3, 3  ;;  %v3244_v3 = vshrl.u32 %v6355_v27, 16 }
 0x117   : > { %4854 = vmatprep.mubr.msk.bf16.mxu1 %vm518_vm1, %v1035_v10  ;;  %5062 = vmatprep.mubr.msk.bf16.mxu0 %vm518_vm1, %v2866_v34  ;;  %v1040_v10 = vrot.slane %v6140_v1, 1  ;;  %v3214_v14 = vor.u32 %v3213_v9, %v3210_v5  ;;  %v3235_v34 = vshrl.u32 %v6344_v53, 16  ;;  %v3256_v5 = vshll.u32 %v6361_v63, 16 }
 0x118   : > { %v3223_v39 = vor.u32 %v3222_v18, %v3219_v21  ;;  %v1045_v9 = vsel %vm1016_vm4, %v1042_v13, %v1044_v44 }
 0x119   : > { %v1041_v46 = vsel %vm1016_vm4, %v1038_v48, %v1040_v10  ;;  %v1043_v1 = vsel %vm1016_vm4, %v1040_v10, %v1042_v13  ;;  %v3215_v30 = vsel %vm3189_vm5, %v3205_v62, %v3214_v14  ;;  %v3237_v32 = vrot.slane %v3235_v34, 2 }
 0x11a   : > { %v3224_v47 = vsel %vm3189_vm5, %v3214_v14, %v3223_v39  ;;  %v1046_v48 = vrot.slane %v6169_v41, 1  ;;  %v3232_v62 = vor.u32 %v3231_v26, %v3228_v60  ;;  %v3258_v14 = vrot.slane %v3256_v5, 3  ;;  %v5639_v60 = vld [vmem:[#allocation5 + $0x1a0] sm:$0xff]  }
 0x11b   : > { %v1050_v13 = vrot.slane %v6192_v56, 1  ;;  %v3262_v34 = vshrl.u32 %v6373_v6, 16  ;;  %v3280_v5 = vshrl.u32 %v6393_v40, 16 }
 0x11c   : > { %v1047_v41 = vsel %vm1016_vm4, %v1044_v44, %v1046_v48  ;;  %v1049_v61 = vsel %vm1016_vm4, %v1046_v48, %v1048_v33  ;;  %v1052_v48 = vrot.slane %v6207_v20, 1  ;;  %v3292_v20 = vshll.u32 %v6399_v42, 16 }
 0x11d   : > { %v1051_v56 = vsel %vm1016_vm4, %v1048_v33, %v1050_v13  ;;  %v5655_v33 = vld [vmem:[%s5975_s3 + $0x18] sm:$0xff]  }
 0x11e   : > { %4855 = vmatmul.mubr.msk.bf16.gmra.mrb[16].mxu1 %vm518_vm1, %v1037_v4  ;;  %5063 = vmatmul.mubr.msk.bf16.gmra.mrb[32].mxu0 %vm518_vm1, %v2868_v49  ;;  %v3247_v4 = vshll.u32 %v6355_v27, 16  ;;  %v3253_v49 = vshrl.u32 %v6361_v63, 16 }
 0x11f   : > { %4858 = vmatprep.mubr.msk.bf16.mxu1 %vm518_vm1, %v1039_v35  ;;  %5078 = vmatprep.mubr.msk.bf16.mxu0 %vm518_vm1, %v3206_v38  ;;  %v3241_v35 = vor.u32 %v3240_v50, %v3237_v32  ;;  %v3246_v38 = vrot.slane %v3244_v3, 2  ;;  %v1500_v3 = vrot.slane %v6007_v24, 1  ;;  %v1053_v24 = vsel %vm1016_vm4, %v1050_v13, %v1052_v48  ;;  %v5656_v13 = vld [vmem:[%s5975_s3 + $0x20] sm:$0xff]   ;;  %v5657_v48 = vld [vmem:[%s5975_s3 + $0x28] sm:$0xff]  }
 0x120   : > { %v3249_v21 = vrot.slane %v3247_v4, 3  ;;  %v3255_v10 = vrot.slane %v3253_v49, 2  ;;  %v5654_v4 = vld [vmem:[%s5975_s3 + $0x10] sm:$0xff]  }
 0x121   : > { %v3242_v18 = vsel %vm3189_vm5, %v3232_v62, %v3241_v35 }
 0x126   : > { %4859 = vmatmul.mubr.msk.bf16.gmra.mrb[20].mxu1 %vm518_vm1, %v1041_v46  ;;  %5079 = vmatmul.mubr.msk.bf16.vlgmr.msra.gmra.mrb[0].mxu0 %vm518_vm1, %v3215_v30  ;;  %v3259_v46 = vor.u32 %v3258_v14, %v3255_v10  ;;  %v3274_v30 = vshll.u32 %v6379_v17, 16 }
 0x127   : > { %4862 = vmatprep.mubr.msk.bf16.mxu1 %vm518_vm1, %v1043_v1  ;;  %5115 = vmatpush3.bf16.msra.mxu0 %v6388_v28  ;;  %v3233_v28 = vsel %vm3189_vm5, %v3223_v39, %v3232_v62  ;;  %v3250_v39 = vor.u32 %v3249_v21, %v3246_v38  ;;  %v3271_v1 = vshrl.u32 %v6379_v17, 16  ;;  %v5640_v62 = vld [vmem:[#allocation5 + $0x1a8] sm:$0xff]   ;;  %v3282_v21 = vrot.slane %v3280_v5, 2 }
 0x128   : > { %5082 = vmatprep.mubr.msk.bf16.mxu0 %vm518_vm1, %v3224_v47  ;;  %5116 = vmatprep.subr.bf16.mxu0 %v5634_v52  ;;  %v3264_v47 = vrot.slane %v3262_v34, 2  ;;  %v3276_v44 = vrot.slane %v3274_v30, 3  ;;  %v1505_v34 = vrot.slane %v5656_v13, 1 }
 0x129   : > { %v3251_v26 = vsel %vm3189_vm5, %v3241_v35, %v3250_v39  ;;  %v3260_v32 = vsel %vm3189_vm5, %v3250_v39, %v3259_v46  ;;  %v3273_v50 = vrot.slane %v3271_v1, 2  ;;  %v1501_v35 = vrot.slane %v5654_v4, 1  ;;  %v5658_v4 = vld [vmem:[%s5975_s3 + $0x30] sm:$0xff]  }
 0x12a   : > { %v1503_v39 = vrot.slane %v5655_v33, 1  ;;  %v3301_v1 = vshll.u32 %v6413_v57, 16 }
 0x12b   : > { %5117 = vmatpush3.bf16.msra.mxu0 %v5634_v52  ;;  %v3267_v52 = vrot.slane %v3265_v51, 3 }
 0x12c   : > { %5118 = vmatprep.subr.bf16.mxu0 %v5636_v36 }
 0x12d   : > { %v3268_v49 = vor.u32 %v3267_v52, %v3264_v47 }
 0x12e   : > { %4863 = vmatmul.mubr.msk.bf16.gmra.mrb[24].mxu1 %vm518_vm1, %v1045_v9  ;;  %5083 = vmatmul.mubr.msk.bf16.gmra.mrb[4].mxu0 %vm518_vm1, %v3233_v28  ;;  %v3277_v9 = vor.u32 %v3276_v44, %v3273_v50  ;;  %v1502_v28 = vsel %vm1016_vm4, %v1500_v3, %v1501_v35  ;;  %v1507_v3 = vrot.slane %v5657_v48, 1  ;;  %v6591_v48 = vld [vmem:[%s5975_s3 + $0xa0] ss:$0 sps:$4 sm:$0x77]  }
 0x12f   : > { %4866 = vmatprep.mubr.msk.bf16.mxu1 %vm518_vm1, %v1047_v41  ;;  %5086 = vmatprep.mubr.msk.bf16.mxu0 %vm518_vm1, %v3242_v18  ;;  %v3289_v41 = vshrl.u32 %v6399_v42, 16  ;;  %v3269_v38 = vsel %vm3189_vm5, %v3259_v46, %v3268_v49  ;;  %v3298_v46 = vshrl.u32 %v6413_v57, 16 }
 0x130   : > { %5119 = vmatpush3.bf16.msra.mxu0 %v5636_v36  ;;  %v3283_v36 = vshll.u32 %v6393_v40, 16  ;;  %v3278_v10 = vsel %vm3189_vm5, %v3268_v49, %v3277_v9  ;;  %v5659_v49 = vld [vmem:[#allocation5 + $0xc8] sm:$0xff]  }
 0x131   : > { %5120 = vmatprep.subr.bf16.mxu0 %v5638_v23  ;;  %v3291_v14 = vrot.slane %v3289_v41, 2  ;;  %v3300_v52 = vrot.slane %v3298_v46, 2  ;;  %v5663_v46 = vld [vmem:[#allocation5 + $0xd8] sm:$0xff]  }
 0x132   : > { %v3285_v18 = vrot.slane %v3283_v36, 3  ;;  %v3316_v36 = vshrl.u32 %v6432_v25, 16 }
 0x134   : > { %5121 = vmatpush3.bf16.msra.mxu0 %v5638_v23  ;;  %v3294_v23 = vrot.slane %v3292_v20, 3  ;;  %v3286_v51 = vor.u32 %v3285_v18, %v3282_v21  ;;  %v3325_v20 = vshrl.u32 %v6437_v16, 16  ;;  %v3318_v18 = vrot.slane %v3316_v36, 2  ;;  %v5666_v36 = vld [vmem:[%s5975_s3 + $0x50] sm:$0xff]  }
 0x135   : > { %5122 = vmatprep.subr.bf16.mxu0 %v5639_v60 }
 0x136   : > { %4867 = vmatmul.mubr.msk.bf16.gmra.mrb[28].mxu1 %vm518_vm1, %v1049_v61  ;;  %5087 = vmatmul.mubr.msk.bf16.gmra.mrb[8].mxu0 %vm518_vm1, %v3251_v26  ;;  %v3295_v30 = vor.u32 %v3294_v23, %v3291_v14  ;;  %v3310_v61 = vshll.u32 %v6418_v22, 16  ;;  %v1506_v26 = vsel %vm1016_vm4, %v1503_v39, %v1505_v34  ;;  %v3287_v47 = vsel %vm3189_vm5, %v3277_v9, %v3286_v51 }
 0x137   : > { %4870 = vmatprep.mubr.msk.bf16.mxu1 %vm518_vm1, %v1051_v56  ;;  %5090 = vmatprep.mubr.msk.bf16.mxu0 %vm518_vm1, %v3260_v32  ;;  %v1504_v56 = vsel %vm1016_vm4, %v1501_v35, %v1503_v39  ;;  %v3303_v32 = vrot.slane %v3301_v1, 3  ;;  %v1509_v35 = vrot.slane %v5658_v4, 1  ;;  %v3319_v9 = vshll.u32 %v6432_v25, 16  ;;  %v5661_v39 = vld [vmem:[%s5975_s3 + $0x38] sm:$0xff]  }
 0x138   : > { %5123 = vmatpush3.bf16.msra.mxu0 %v5639_v60  ;;  %v3307_v60 = vshrl.u32 %v6418_v22, 16  ;;  %v3296_v50 = vsel %vm3189_vm5, %v3286_v51, %v3295_v30  ;;  %v3327_v23 = vrot.slane %v3325_v20, 2  ;;  %v1511_v13 = vrot.slane %v5661_v39, 1 }
 0x139   : > { %5124 = vmatprep.subr.bf16.mxu0 %v5640_v62  ;;  %v3304_v5 = vor.u32 %v3303_v32, %v3300_v52  ;;  %v5664_v32 = vld [vmem:[#allocation5 + $0xe0] sm:$0xff]  }
 0x13a   : > { %v3309_v44 = vrot.slane %v3307_v60, 2  ;;  %v3337_v60 = vshll.u32 %v6450_v58, 16 }
 0x13b   : > { %v3305_v21 = vsel %vm3189_vm5, %v3295_v30, %v3304_v5  ;;  %v3334_v30 = vshrl.u32 %v6450_v58, 16 }
 0x13c   : > { %5125 = vmatpush3.bf16.msra.mxu0 %v5640_v62  ;;  %v3312_v62 = vrot.slane %v3310_v61, 3 }
 0x13e   : > { %4871 = vmatmul.mubr.msk.bf16.gmra.mrb[32].mxu1 %vm518_vm1, %v1053_v24  ;;  %5091 = vmatmul.mubr.msk.bf16.gmra.mrb[12].mxu0 %vm518_vm1, %v3269_v38  ;;  %v3313_v41 = vor.u32 %v3312_v62, %v3309_v44  ;;  %v3328_v24 = vshll.u32 %v6437_v16, 16  ;;  %v5660_v38 = vld [vmem:[#allocation5 + $0xd0] sm:$0xff]   ;;  %v3336_v44 = vrot.slane %v3334_v30, 2  ;;  %v3339_v62 = vrot.slane %v3337_v60, 3 }
 0x13f   : > { %4886 = vmatprep.mubr.msk.bf16.mxu1 %vm518_vm1, %v1502_v28  ;;  %5094 = vmatprep.mubr.msk.bf16.mxu0 %vm518_vm1, %v3278_v10  ;;  %v1510_v28 = vsel %vm1016_vm4, %v1507_v3, %v1509_v35  ;;  %v3321_v10 = vrot.slane %v3319_v9, 3  ;;  %v1517_v9 = vrot.slane %v5666_v36, 1  ;;  %v3682_v30 = vrot.slane %v6311_v37, 3 }
 0x140   : > { %v3314_v14 = vsel %vm3189_vm5, %v3304_v5, %v3313_v41  ;;  %v3330_v33 = vrot.slane %v3328_v24, 3  ;;  %v3340_v20 = vor.u32 %v3339_v62, %v3336_v44  ;;  %v3352_v24 = vshrl.u32 %v6591_v48, 16 }
 0x141   : > { %v3322_v1 = vor.u32 %v3321_v10, %v3318_v18  ;;  %v3684_v37 = vrot.slane %v6322_v43, 3  ;;  %v1529_v43 = vrot.slane %v6269_v8, 1  ;;  %v3690_v44 = vrot.slane %v6344_v53, 3  ;;  %v5669_v53 = vld [vmem:[%s5975_s3 + $0x60] sm:$0xff]  }
 0x142   : > { %v3331_v61 = vor.u32 %v3330_v33, %v3327_v23  ;;  %v1531_v8 = vrot.slane %v6279_v54, 1  ;;  %v3694_v36 = vrot.slane %v6361_v63, 3 }
 0x144   : > { %v3341_v10 = vsel %vm3189_vm5, %v3331_v61, %v3340_v20 }
 0x146   : > { %4887 = vmatmul.mubr.msk.bf16.vlgmr.msra.gmra.mrb[0].mxu1 %vm518_vm1, %v1504_v56  ;;  %5095 = vmatmul.mubr.msk.bf16.gmra.mrb[16].mxu0 %vm518_vm1, %v3287_v47  ;;  %v3343_v56 = vshrl.u32 %v6455_v0, 16  ;;  %v1512_v47 = vsel %vm1016_vm4, %v1509_v35, %v1511_v13  ;;  %v5665_v35 = vld [vmem:[%s5975_s3 + $0x48] sm:$0xff]  }
 0x147   : > { %4890 = vmatprep.mubr.msk.bf16.mxu1 %vm518_vm1, %v1506_v26  ;;  %5168 = vmatpush3.bf16.msra.mxu1 %v6470_v19  ;;  %v1508_v19 = vsel %vm1016_vm4, %v1505_v34, %v1507_v3  ;;  %v5662_v34 = vld [vmem:[%s5975_s3 + $0x40] sm:$0xff]   ;;  %v3346_v26 = vshll.u32 %v6455_v0, 16  ;;  %v3332_v3 = vsel %vm3189_vm5, %v3322_v1, %v3331_v61  ;;  %v1515_v5 = vrot.slane %v5665_v35, 1 }
 0x148   : > { %5163 = vmatprep.subr.bf16.mxu1 %v5659_v49  ;;  %5098 = vmatprep.mubr.msk.bf16.mxu0 %vm518_vm1, %v3296_v50  ;;  %v1513_v51 = vrot.slane %v5662_v34, 1  ;;  %v3323_v50 = vsel %vm3189_vm5, %v3313_v41, %v3322_v1  ;;  %v3345_v4 = vrot.slane %v3343_v56, 2  ;;  %v5667_v41 = vld [vmem:[#allocation5 + $0xe8] sm:$0xff]   ;;  %v1960_v35 = vshll.u32 %v5669_v53, 16 }
 0x149   : > { %v1518_v18 = vsel %vm1016_vm4, %v1515_v5, %v1517_v9 }
 0x14a   : > { %v1514_v52 = vsel %vm1016_vm4, %v1511_v13, %v1513_v51  ;;  %v5668_v13 = vld [vmem:[%s5975_s3 + $0x58] sm:$0xff]  }
 0x14b   : > { %5169 = vmatpush3.bf16.msra.mxu1 %v5659_v49  ;;  %v3348_v49 = vrot.slane %v3346_v26, 3  ;;  %v1519_v34 = vrot.slane %v5668_v13, 1  ;;  %v1525_v26 = vrot.slane %v6252_v12, 1  ;;  %v1527_v12 = vrot.slane %v6263_v7, 1 }
 0x14c   : > { %5164 = vmatprep.subr.bf16.mxu1 %v5660_v38  ;;  %v3698_v13 = vrot.slane %v6379_v17, 3  ;;  %v5672_v17 = vld [vmem:[%s5975_s3 + $0x78] sm:$0xff]  }
 0x14d   : > { %v1520_v60 = vsel %vm1016_vm4, %v1517_v9, %v1519_v34  ;;  %v1528_v62 = vsel %vm1016_vm4, %v1525_v26, %v1527_v12  ;;  %v1532_v9 = vsel %vm1016_vm4, %v1529_v43, %v1531_v8 }
 0x14e   : > { %4891 = vmatmul.mubr.msk.bf16.gmra.mrb[4].mxu1 %vm518_vm1, %v1508_v19  ;;  %5099 = vmatmul.mubr.msk.bf16.gmra.mrb[20].mxu0 %vm518_vm1, %v3305_v21  ;;  %v3355_v19 = vshll.u32 %v6591_v48, 16  ;;  %v3663_v21 = vld [vmem:[%s5975_s3 + $0x10] sm:$0x8] }
 0x14f   : > { %4894 = vmatprep.mubr.msk.bf16.mxu1 %vm518_vm1, %v1510_v28  ;;  %5170 = vmatpush3.bf16.msra.mxu1 %v5660_v38  ;;  %v3349_v28 = vor.u32 %v3348_v49, %v3345_v4  ;;  %v1516_v38 = vsel %vm1016_vm4, %v1513_v51, %v1515_v5  ;;  %v4486_v39 = vcombine.low %v3663_v21, %v6297_v29  ;;  %v1521_v51 = vrot.slane %v6235_v59, 1 }
 0x150   : > { %5165 = vmatprep.subr.bf16.mxu1 %v5663_v46  ;;  %5102 = vmatprep.mubr.msk.bf16.mxu0 %vm518_vm1, %v3314_v14  ;;  %v3354_v14 = vrot.slane %v3352_v24, 2  ;;  %v3357_v23 = vrot.slane %v3355_v19, 3  ;;  %v1523_v59 = vrot.slane %v6246_v2, 1  ;;  %v1957_v49 = vshrl.u32 %v5669_v53, 16 }
 0x151   : > { %v3350_v33 = vsel %vm3189_vm5, %v3340_v20, %v3349_v28  ;;  %v3681_v1 = vrot.slane %v4486_v39, 3  ;;  %v1522_v61 = vsel %vm1016_vm4, %v1519_v34, %v1521_v51  ;;  %v3692_v5 = vrot.slane %v6355_v27, 3  ;;  %v5670_v27 = vld [vmem:[%s5975_s3 + $0x68] sm:$0xff]  }
 0x152   : > { %v1959_v24 = vrot.slane %v1957_v49, 1  ;;  %v1962_v19 = vrot.slane %v1960_v35, 2  ;;  %v1969_v63 = vshll.u32 %v5670_v27, 16  ;;  %v3696_v39 = vrot.slane %v6373_v6, 3 }
 0x153   : > { %5171 = vmatpush3.bf16.msra.mxu1 %v5663_v46  ;;  %v3358_v46 = vor.u32 %v3357_v23, %v3354_v14  ;;  %v3683_v56 = vsel %vm3680_vm6, %v3681_v1, %v3682_v30  ;;  %v5671_v14 = vld [vmem:[%s5975_s3 + $0x70] sm:$0xff]   ;;  %v3704_v53 = vrot.slane %v6413_v57, 3  ;;  %v3706_v49 = vrot.slane %v6418_v22, 3 }
 0x154   : > { %5166 = vmatprep.subr.bf16.mxu1 %v5664_v32  ;;  %v1975_v23 = vshrl.u32 %v5671_v14, 16  ;;  %v2020_v57 = vshrl.u32 %v6300_v31, 16  ;;  %v2023_v22 = vshll.u32 %v6300_v31, 16 }
 0x155   : > { %v3359_v29 = vsel %vm3189_vm5, %v3349_v28, %v3358_v46  ;;  %v3693_v28 = vsel %vm3680_vm6, %v3690_v44, %v3692_v5  ;;  %v1971_v46 = vrot.slane %v1969_v63, 2 }
 0x156   : > { %4895 = vmatmul.mubr.msk.bf16.gmra.mrb[8].mxu1 %vm518_vm1, %v1512_v47  ;;  %5103 = vmatmul.mubr.msk.bf16.gmra.mrb[24].mxu0 %vm518_vm1, %v3323_v50  ;;  %v3686_v47 = vrot.slane %v6328_v45, 3  ;;  %v3685_v50 = vsel %vm3680_vm6, %v3682_v30, %v3684_v37  ;;  %v3688_v45 = vrot.slane %v6338_v55, 3  ;;  %v1533_v55 = vrot.slane %v6285_v15, 1 }
 0x157   : > { %4898 = vmatprep.mubr.msk.bf16.mxu1 %vm518_vm1, %v1514_v52  ;;  %5172 = vmatpush3.bf16.msra.mxu1 %v5664_v32  ;;  %v1524_v52 = vsel %vm1016_vm4, %v1521_v51, %v1523_v59  ;;  %v1526_v32 = vsel %vm1016_vm4, %v1523_v59, %v1525_v26  ;;  %v1977_v30 = vrot.slane %v1975_v23, 1  ;;  %v1987_v59 = vshll.u32 %v5672_v17, 16 }
 0x158   : > { %5167 = vmatprep.subr.bf16.mxu1 %v5667_v41  ;;  %5106 = vmatprep.mubr.msk.bf16.mxu0 %vm518_vm1, %v3332_v3  ;;  %v3687_v2 = vsel %vm3680_vm6, %v3684_v37, %v3686_v47  ;;  %v1530_v3 = vsel %vm1016_vm4, %v1527_v12, %v1529_v43  ;;  %v3689_v4 = vsel %vm3680_vm6, %v3686_v47, %v3688_v45  ;;  %v5673_v37 = vld [vmem:[%s5975_s3 + $0x80] sm:$0xff]  }
 0x159   : > { %v3691_v7 = vsel %vm3680_vm6, %v3688_v45, %v3690_v44  ;;  %v1534_v20 = vsel %vm1016_vm4, %v1531_v8, %v1533_v55  ;;  %v1993_v47 = vshrl.u32 %v5673_v37, 16  ;;  %v1989_v12 = vrot.slane %v1987_v59, 2 }
 0x15a   : > { %v2011_v8 = vshrl.u32 %v6285_v15, 16 }
 0x15b   : > { %5173 = vmatpush3.bf16.msra.mxu1 %v5667_v41  ;;  %v5643_v41 = vld [vmem:[%s5975_s3 + $0x98] ss:$0 sps:$4 sm:$0x11]   ;;  %v1995_v45 = vrot.slane %v1993_v47, 1 }
 0x15c   : > { %v1535_v21 = vrot.slane %v5643_v41, 1 }
 0x15e   : > { %4899 = vmatmul.mubr.msk.bf16.gmra.mrb[12].mxu1 %vm518_vm1, %v1516_v38  ;;  %5107 = vmatmul.mubr.msk.bf16.gmra.mrb[28].mxu0 %vm518_vm1, %v3341_v10  ;;  %v3695_v38 = vsel %vm3680_vm6, %v3692_v5, %v3694_v36  ;;  %v1963_v10 = vor.u32 %v1962_v19, %v1959_v24  ;;  %v1536_v34 = vsel %vm1016_vm4, %v1533_v55, %v1535_v21  ;;  %v2014_v55 = vshll.u32 %v6285_v15, 16 }
 0x15f   : > { %4902 = vmatprep.mubr.msk.bf16.mxu1 %vm518_vm1, %v1518_v18  ;;  %5110 = vmatprep.mubr.msk.bf16.mxu0 %vm518_vm1, %v3350_v33  ;;  %v1966_v18 = vshrl.u32 %v5670_v27, 16  ;;  %v1978_v33 = vshll.u32 %v5671_v14, 16  ;;  %v3707_v15 = vsel %vm3680_vm6, %v3704_v53, %v3706_v49  ;;  %v2022_v27 = vrot.slane %v2020_v57, 1 }
 0x160   : > { %v1964_v1 = vsel %vm1857_vm2, %v6147_v11, %v1963_v10  ;;  %v1996_v11 = vshll.u32 %v5673_v37, 16  ;;  %v2016_v41 = vrot.slane %v2014_v55, 2 }
 0x161   : > { %v1968_v51 = vrot.slane %v1966_v18, 1  ;;  %v2025_v18 = vrot.slane %v2023_v22, 2 }
 0x162   : > { %v1998_v44 = vrot.slane %v1996_v11, 2 }
 0x163   : > { %v1972_v6 = vor.u32 %v1971_v46, %v1968_v51  ;;  %v2026_v14 = vor.u32 %v2025_v18, %v2022_v27 }
 0x166   : > { %4903 = vmatmul.mubr.msk.bf16.gmra.mrb[16].mxu1 %vm518_vm1, %v1520_v60  ;;  %5111 = vmatmul.mubr.msk.bf16.gmra.mrb[32].mxu0 %vm518_vm1, %v3359_v29  ;;  %v1980_v60 = vrot.slane %v1978_v33, 2  ;;  %v3699_v29 = vsel %vm3680_vm6, %v3696_v39, %v3698_v13 }
 0x167   : > { %4906 = vmatprep.mubr.msk.bf16.mxu1 %vm518_vm1, %v1522_v61  ;;  %5126 = vmatprep.mubr.msk.bf16.mxu0 %vm518_vm1, %v3683_v56  ;;  %v3697_v61 = vsel %vm3680_vm6, %v3694_v36, %v3696_v39  ;;  %v1984_v56 = vshrl.u32 %v5672_v17, 16 }
 0x168   : > { %v1981_v26 = vor.u32 %v1980_v60, %v1977_v30 }
 0x16a   : > { %v1982_v43 = vsel %vm1857_vm2, %v1972_v6, %v1981_v26 }
 0x16e   : > { %4907 = vmatmul.mubr.msk.bf16.gmra.mrb[20].mxu1 %vm518_vm1, %v1524_v52  ;;  %5127 = vmatmul.mubr.msk.bf16.vlgmr.msra.gmra.mrb[0].mxu0 %vm518_vm1, %v3685_v50  ;;  %v3700_v52 = vrot.slane %v6393_v40, 3  ;;  %v1973_v50 = vsel %vm1857_vm2, %v1963_v10, %v1972_v6  ;;  %v2002_v40 = vshrl.u32 %v6279_v54, 16 }
 0x16f   : > { %4910 = vmatprep.mubr.msk.bf16.mxu1 %vm518_vm1, %v1526_v32  ;;  %5130 = vmatprep.mubr.msk.bf16.mxu0 %vm518_vm1, %v3687_v2  ;;  %v3702_v32 = vrot.slane %v6399_v42, 3  ;;  %v1986_v2 = vrot.slane %v1984_v56, 1  ;;  %v2005_v42 = vshll.u32 %v6279_v54, 16  ;;  %v2013_v54 = vrot.slane %v2011_v8, 1 }
 0x170   : > { %v2004_v5 = vrot.slane %v2002_v40, 1 }
 0x171   : > { %v2007_v36 = vrot.slane %v2005_v42, 2  ;;  %v2017_v19 = vor.u32 %v2016_v41, %v2013_v54 }
 0x173   : > { %v2008_v24 = vor.u32 %v2007_v36, %v2004_v5  ;;  %v2027_v23 = vsel %vm1857_vm2, %v2017_v19, %v2026_v14 }
 0x175   : > { %v2018_v63 = vsel %vm1857_vm2, %v2008_v24, %v2017_v19 }
 0x176   : > { %4911 = vmatmul.mubr.msk.bf16.gmra.mrb[24].mxu1 %vm518_vm1, %v1528_v62  ;;  %5131 = vmatmul.mubr.msk.bf16.gmra.mrb[4].mxu0 %vm518_vm1, %v3689_v4  ;;  %v3701_v62 = vsel %vm3680_vm6, %v3698_v13, %v3700_v52  ;;  %v1990_v4 = vor.u32 %v1989_v12, %v1986_v2  ;;  %v3716_v13 = vrot.slane %v6591_v48, 3 }
 0x177   : > { %4914 = vmatprep.mubr.msk.bf16.mxu1 %vm518_vm1, %v1530_v3  ;;  %5134 = vmatprep.mubr.msk.bf16.mxu0 %vm518_vm1, %v3691_v7  ;;  %v3703_v3 = vsel %vm3680_vm6, %v3700_v52, %v3702_v32  ;;  %v1999_v7 = vor.u32 %v1998_v44, %v1995_v45 }
 0x178   : > { %v1991_v35 = vsel %vm1857_vm2, %v1981_v26, %v1990_v4 }
 0x179   : > { %v2009_v21 = vsel %vm1857_vm2, %v1999_v7, %v2008_v24 }
 0x17e   : > { %4915 = vmatmul.mubr.msk.bf16.gmra.mrb[28].mxu1 %vm518_vm1, %v1532_v9  ;;  %5135 = vmatmul.mubr.msk.bf16.gmra.mrb[8].mxu0 %vm518_vm1, %v3693_v28  ;;  %v2000_v9 = vsel %vm1857_vm2, %v1990_v4, %v1999_v7  ;;  %v3708_v28 = vrot.slane %v6432_v25, 3  ;;  %v3712_v25 = vrot.slane %v6450_v58, 3 }
 0x17f   : > { %4918 = vmatprep.mubr.msk.bf16.mxu1 %vm518_vm1, %v1534_v20  ;;  %5138 = vmatprep.mubr.msk.bf16.mxu0 %vm518_vm1, %v3695_v38  ;;  %v3705_v20 = vsel %vm3680_vm6, %v3702_v32, %v3704_v53  ;;  %v3710_v38 = vrot.slane %v6437_v16, 3  ;;  %v3714_v16 = vrot.slane %v6455_v0, 3 }
 0x180   : > { %v3709_v10 = vsel %vm3680_vm6, %v3706_v49, %v3708_v28 }
 0x181   : > { %v3711_v31 = vsel %vm3680_vm6, %v3708_v28, %v3710_v38  ;;  %v3713_v33 = vsel %vm3680_vm6, %v3710_v38, %v3712_v25  ;;  %v3715_v39 = vsel %vm3680_vm6, %v3712_v25, %v3714_v16 }
 0x186   : > { %4919 = vmatmul.mubr.msk.bf16.gmra.mrb[32].mxu1 %vm518_vm1, %v1536_v34  ;;  %5139 = vmatmul.mubr.msk.bf16.gmra.mrb[12].mxu0 %vm518_vm1, %v3697_v61  ;;  %v3717_v34 = vsel %vm3680_vm6, %v3714_v16, %v3716_v13 }
 0x187   : > { %4954 = vmatprep.mubr.msk.bf16.mxu1 %vm518_vm1, %v1964_v1  ;;  %5142 = vmatprep.mubr.msk.bf16.mxu0 %vm518_vm1, %v3699_v29 }
 0x18e   : > { %4955 = vmatmul.mubr.msk.bf16.vlgmr.msra.gmra.mrb[20].mxu1 %vm518_vm1, %v1973_v50  ;;  %5143 = vmatmul.mubr.msk.bf16.gmra.mrb[16].mxu0 %vm518_vm1, %v3701_v62 }
 0x18f   : > { %4958 = vmatprep.mubr.msk.bf16.mxu1 %vm518_vm1, %v1982_v43  ;;  %5146 = vmatprep.mubr.msk.bf16.mxu0 %vm518_vm1, %v3703_v3 }
 0x196   : > { %4959 = vmatmul.mubr.msk.bf16.gmra.mrb[24].mxu1 %vm518_vm1, %v1991_v35  ;;  %5147 = vmatmul.mubr.msk.bf16.gmra.mrb[20].mxu0 %vm518_vm1, %v3705_v20 }
 0x197   : > { %4962 = vmatprep.mubr.msk.bf16.mxu1 %vm518_vm1, %v2000_v9  ;;  %5150 = vmatprep.mubr.msk.bf16.mxu0 %vm518_vm1, %v3707_v15 }
 0x19e   : > { %4963 = vmatmul.mubr.msk.bf16.gmra.mrb[28].mxu1 %vm518_vm1, %v2009_v21  ;;  %5151 = vmatmul.mubr.msk.bf16.gmra.mrb[24].mxu0 %vm518_vm1, %v3709_v10 }
 0x19f   : > { %4966 = vmatprep.mubr.msk.bf16.mxu1 %vm518_vm1, %v2018_v63  ;;  %5154 = vmatprep.mubr.msk.bf16.mxu0 %vm518_vm1, %v3711_v31 }
 0x1a6   : > { %4967 = vmatmul.mubr.msk.bf16.gmra.mrb[32].mxu1 %vm518_vm1, %v2027_v23  ;;  %5155 = vmatmul.mubr.msk.bf16.gmra.mrb[28].mxu0 %vm518_vm1, %v3713_v33 }
 0x1a7   : > { %5158 = vmatprep.mubr.msk.bf16.mxu0 %vm518_vm1, %v3715_v39 }
 0x1ae   : > { %5159 = vmatmul.mubr.msk.bf16.gmra.mrb[32].mxu0 %vm518_vm1, %v3717_v34 }
 0x219   : > { %v4888_v58 = vpop.f32.mrb[0].mxu1 }
 0x21a   : > { %v1661_v0 = vpop.f32.mrb[1].mxu1 }
 0x21b   : > { %v4889_v51 = vpop.f32.mrb[2].mxu1 }
 0x21c   : > { %v1664_v46 = vpop.f32.mrb[3].mxu1 }
 0x221   : > { %v4892_v1 = vpop.f32.mrb[4].mxu1 }
 0x222   : > { %v1677_v30 = vpop.f32.mrb[5].mxu1 }
 0x223   : > { %v4893_v60 = vpop.f32.mrb[6].mxu1 }
 0x224   : > { %v1680_v61 = vpop.f32.mrb[7].mxu1 }
 0x229   : > { %v4896_v29 = vpop.f32.mrb[8].mxu1 }
 0x22a   : > { %v1693_v6 = vpop.f32.mrb[9].mxu1 }
 0x22b   : > { %v4897_v17 = vpop.f32.mrb[10].mxu1 }
 0x22c   : > { %v1696_v56 = vpop.f32.mrb[11].mxu1 }
 0x231   : > { %v6723_v59 = vpop.f32.mrb[12].mxu1 }
 0x232   : > { %v6725_v48 = vpop.f32.mrb[13].mxu1 }
 0x233   : > { %v6727_v26 = vpop.f32.mrb[14].mxu1 }
 0x234   : > { %v6729_v37 = vpop.f32.mrb[15].mxu1 }
 0x239   : > { %v6731_v47 = vpop.f32.mrb[16].mxu1 }
 0x23a   : > { %v6733_v11 = vpop.f32.mrb[17].mxu1 }
 0x23b   : > { %v6735_v52 = vpop.f32.mrb[18].mxu1 }
 0x23c   : > { %v6737_v32 = vpop.f32.mrb[19].mxu1 }
 0x241   : > { %v5128_v50 = vpop.f32.mrb[0].mxu0 }
 0x242   : > { %v5174_v2 = vadd.f32 %v5128_v50, %v4888_v58  ;;  %v3842_v12 = vpop.f32.mrb[1].mxu0 }
 0x243   : > { %v5175_v43 = vadd.f32 %v3842_v12, %v1661_v0  ;;  %v5129_v45 = vpop.f32.mrb[2].mxu0 }
 0x244   : > { %v4023_v44 = vmax.f32 %v5174_v2, 0.0  ;;  %v5176_v62 = vadd.f32 %v5129_v45, %v4889_v51  ;;  %v3845_v3 = vpop.f32.mrb[3].mxu0 }
 0x245   : > { %v4021_v4 = vmax.f32 %v5175_v43, 0.0  ;;  %v5177_v40 = vadd.f32 %v3845_v3, %v1664_v46 }
 0x246   : > { %v4059_v42 = vmin.f32 %v4023_v44, 6.0  ;;  %v4024_v7 = vmax.f32 %v5176_v62, 0.0 }
 0x247   : > { %v4057_v8 = vmin.f32 %v4021_v4, 6.0  ;;  %v4022_v55 = vmax.f32 %v5177_v40, 0.0 }
 0x248   : > { %4095 = vst.msk [vmem:[%s6740_s17 + $0x10] sm:$0xff] %vm518_vm1, %v4059_v42  ;;  %v4060_v53 = vmin.f32 %v4024_v7, 6.0 }
 0x249   : > { %4093 = vst.msk [vmem:[%s6740_s17] sm:$0xff] %vm518_vm1, %v4057_v8  ;;  %v4058_v49 = vmin.f32 %v4022_v55, 6.0  ;;  %v5132_v35 = vpop.f32.mrb[4].mxu0 }
 0x24a   : > { %4096 = vst.msk [vmem:[%s6740_s17 + $0x18] sm:$0xff] %vm518_vm1, %v4060_v53  ;;  %v5178_v5 = vadd.f32 %v5132_v35, %v4892_v1  ;;  %v3858_v36 = vpop.f32.mrb[5].mxu0 }
 0x24b   : > { %4094 = vst.msk [vmem:[%s6740_s17 + $0x8] sm:$0xff] %vm518_vm1, %v4058_v49  ;;  %v5179_v9 = vadd.f32 %v3858_v36, %v1677_v30  ;;  %v5133_v54 = vpop.f32.mrb[6].mxu0 }
 0x24c   : > { %v4027_v41 = vmax.f32 %v5178_v5, 0.0  ;;  %v5180_v20 = vadd.f32 %v5133_v54, %v4893_v60  ;;  %v3861_v15 = vpop.f32.mrb[7].mxu0 }
 0x24d   : > { %v4025_v24 = vmax.f32 %v5179_v9, 0.0  ;;  %v5181_v57 = vadd.f32 %v3861_v15, %v1680_v61 }
 0x24e   : > { %v4063_v22 = vmin.f32 %v4027_v41, 6.0  ;;  %v4028_v19 = vmax.f32 %v5180_v20, 0.0 }
 0x24f   : > { %v4061_v28 = vmin.f32 %v4025_v24, 6.0  ;;  %v4026_v38 = vmax.f32 %v5181_v57, 0.0 }
 0x250   : > { %4099 = vst.msk [vmem:[%s6740_s17 + $0x30] sm:$0xff] %vm518_vm1, %v4063_v22  ;;  %v4064_v21 = vmin.f32 %v4028_v19, 6.0 }
 0x251   : > { %4097 = vst.msk [vmem:[%s6740_s17 + $0x20] sm:$0xff] %vm518_vm1, %v4061_v28  ;;  %v4062_v27 = vmin.f32 %v4026_v38, 6.0  ;;  %v5136_v18 = vpop.f32.mrb[8].mxu0 }
 0x252   : > { %4100 = vst.msk [vmem:[%s6740_s17 + $0x38] sm:$0xff] %vm518_vm1, %v4064_v21  ;;  %v5182_v63 = vadd.f32 %v5136_v18, %v4896_v29  ;;  %v3874_v10 = vpop.f32.mrb[9].mxu0 }
 0x253   : > { %4098 = vst.msk [vmem:[%s6740_s17 + $0x28] sm:$0xff] %vm518_vm1, %v4062_v27  ;;  %v5183_v31 = vadd.f32 %v3874_v10, %v1693_v6  ;;  %v5137_v14 = vpop.f32.mrb[10].mxu0 }
 0x254   : > { %v4031_v25 = vmax.f32 %v5182_v63, 0.0  ;;  %v5184_v16 = vadd.f32 %v5137_v14, %v4897_v17  ;;  %v3877_v23 = vpop.f32.mrb[11].mxu0 }
 0x255   : > { %v4029_v33 = vmax.f32 %v5183_v31, 0.0  ;;  %v5185_v39 = vadd.f32 %v3877_v23, %v1696_v56 }
 0x256   : > { %v4067_v13 = vmin.f32 %v4031_v25, 6.0  ;;  %v4032_v34 = vmax.f32 %v5184_v16, 0.0 }
 0x257   : > { %v4065_v58 = vmin.f32 %v4029_v33, 6.0  ;;  %v4030_v0 = vmax.f32 %v5185_v39, 0.0 }
 0x258   : > { %4103 = vst.msk [vmem:[%s6740_s17 + $0x50] sm:$0xff] %vm518_vm1, %v4067_v13  ;;  %v4068_v51 = vmin.f32 %v4032_v34, 6.0 }
 0x259   : > { %4101 = vst.msk [vmem:[%s6740_s17 + $0x40] sm:$0xff] %vm518_vm1, %v4065_v58  ;;  %v4066_v46 = vmin.f32 %v4030_v0, 6.0  ;;  %v5140_v1 = vpop.f32.mrb[12].mxu0 }
 0x25a   : > { %4104 = vst.msk [vmem:[%s6740_s17 + $0x58] sm:$0xff] %vm518_vm1, %v4068_v51  ;;  %v5186_v30 = vadd.f32 %v5140_v1, %v6723_v59  ;;  %v3890_v60 = vpop.f32.mrb[13].mxu0 }
 0x25b   : > { %4102 = vst.msk [vmem:[%s6740_s17 + $0x48] sm:$0xff] %vm518_vm1, %v4066_v46  ;;  %v5187_v61 = vadd.f32 %v3890_v60, %v6725_v48  ;;  %v5141_v29 = vpop.f32.mrb[14].mxu0 }
 0x25c   : > { %v4035_v6 = vmax.f32 %v5186_v30, 0.0  ;;  %v5188_v17 = vadd.f32 %v5141_v29, %v6727_v26  ;;  %v3893_v56 = vpop.f32.mrb[15].mxu0 }
 0x25d   : > { %v4033_v50 = vmax.f32 %v5187_v61, 0.0  ;;  %v5189_v2 = vadd.f32 %v3893_v56, %v6729_v37 }
 0x25e   : > { %v4071_v12 = vmin.f32 %v4035_v6, 6.0  ;;  %v4036_v43 = vmax.f32 %v5188_v17, 0.0 }
 0x25f   : > { %v4069_v45 = vmin.f32 %v4033_v50, 6.0  ;;  %v4034_v59 = vmax.f32 %v5189_v2, 0.0 }
 0x260   : > { %4107 = vst.msk [vmem:[%s6740_s17 + $0x70] sm:$0xff] %vm518_vm1, %v4071_v12  ;;  %v4072_v62 = vmin.f32 %v4036_v43, 6.0 }
 0x261   : > { %v4956_v44 = vpop.f32.mrb[20].mxu1  ;;  %4105 = vst.msk [vmem:[%s6740_s17 + $0x60] sm:$0xff] %vm518_vm1, %v4069_v45  ;;  %v4070_v48 = vmin.f32 %v4034_v59, 6.0  ;;  %v5144_v4 = vpop.f32.mrb[16].mxu0 }
 0x262   : > { %v2232_v3 = vpop.f32.mrb[21].mxu1  ;;  %4108 = vst.msk [vmem:[%s6740_s17 + $0x78] sm:$0xff] %vm518_vm1, %v4072_v62  ;;  %v5190_v40 = vadd.f32 %v5144_v4, %v6731_v47  ;;  %v3906_v37 = vpop.f32.mrb[17].mxu0 }
 0x263   : > { %v4957_v26 = vpop.f32.mrb[22].mxu1  ;;  %4106 = vst.msk [vmem:[%s6740_s17 + $0x68] sm:$0xff] %vm518_vm1, %v4070_v48  ;;  %v5191_v7 = vadd.f32 %v3906_v37, %v6733_v11  ;;  %v5145_v8 = vpop.f32.mrb[18].mxu0 }
 0x264   : > { %v2235_v42 = vpop.f32.mrb[23].mxu1  ;;  %v4039_v55 = vmax.f32 %v5190_v40, 0.0  ;;  %v5192_v53 = vadd.f32 %v5145_v8, %v6735_v52  ;;  %v3909_v49 = vpop.f32.mrb[19].mxu0 }
 0x265   : > { %v4037_v35 = vmax.f32 %v5191_v7, 0.0  ;;  %v5193_v5 = vadd.f32 %v3909_v49, %v6737_v32 }
 0x266   : > { %v4075_v36 = vmin.f32 %v4039_v55, 6.0  ;;  %v4040_v47 = vmax.f32 %v5192_v53, 0.0 }
 0x267   : > { %v4073_v9 = vmin.f32 %v4037_v35, 6.0  ;;  %v4038_v54 = vmax.f32 %v5193_v5, 0.0 }
 0x268   : > { %4111 = vst.msk [vmem:[%s6740_s17 + $0x90] sm:$0xff] %vm518_vm1, %v4075_v36  ;;  %v4076_v20 = vmin.f32 %v4040_v47, 6.0 }
 0x269   : > { %v4960_v41 = vpop.f32.mrb[24].mxu1  ;;  %4109 = vst.msk [vmem:[%s6740_s17 + $0x80] sm:$0xff] %vm518_vm1, %v4073_v9  ;;  %v4074_v11 = vmin.f32 %v4038_v54, 6.0  ;;  %v5148_v24 = vpop.f32.mrb[20].mxu0 }
 0x26a   : > { %v2248_v15 = vpop.f32.mrb[25].mxu1  ;;  %4112 = vst.msk [vmem:[%s6740_s17 + $0x98] sm:$0xff] %vm518_vm1, %v4076_v20  ;;  %v5194_v57 = vadd.f32 %v5148_v24, %v4956_v44  ;;  %v3922_v32 = vpop.f32.mrb[21].mxu0 }
 0x26b   : > { %v4961_v52 = vpop.f32.mrb[26].mxu1  ;;  %4110 = vst.msk [vmem:[%s6740_s17 + $0x88] sm:$0xff] %vm518_vm1, %v4074_v11  ;;  %v5195_v19 = vadd.f32 %v3922_v32, %v2232_v3  ;;  %v5149_v28 = vpop.f32.mrb[22].mxu0 }
 0x26c   : > { %v2251_v22 = vpop.f32.mrb[27].mxu1  ;;  %v4043_v38 = vmax.f32 %v5194_v57, 0.0  ;;  %v5196_v21 = vadd.f32 %v5149_v28, %v4957_v26  ;;  %v3925_v27 = vpop.f32.mrb[23].mxu0 }
 0x26d   : > { %v4041_v18 = vmax.f32 %v5195_v19, 0.0  ;;  %v5197_v63 = vadd.f32 %v3925_v27, %v2235_v42 }
 0x26e   : > { %v4079_v10 = vmin.f32 %v4043_v38, 6.0  ;;  %v4044_v31 = vmax.f32 %v5196_v21, 0.0 }
 0x26f   : > { %v4077_v14 = vmin.f32 %v4041_v18, 6.0  ;;  %v4042_v25 = vmax.f32 %v5197_v63, 0.0 }
 0x270   : > { %4115 = vst.msk [vmem:[%s6740_s17 + $0xb0] sm:$0xff] %vm518_vm1, %v4079_v10  ;;  %v4080_v23 = vmin.f32 %v4044_v31, 6.0 }
 0x271   : > { %v4964_v16 = vpop.f32.mrb[28].mxu1  ;;  %4113 = vst.msk [vmem:[%s6740_s17 + $0xa0] sm:$0xff] %vm518_vm1, %v4077_v14  ;;  %v4078_v39 = vmin.f32 %v4042_v25, 6.0  ;;  %v5152_v13 = vpop.f32.mrb[24].mxu0 }
 0x272   : > { %v2264_v33 = vpop.f32.mrb[29].mxu1  ;;  %4116 = vst.msk [vmem:[%s6740_s17 + $0xb8] sm:$0xff] %vm518_vm1, %v4080_v23  ;;  %v5198_v58 = vadd.f32 %v5152_v13, %v4960_v41  ;;  %v3938_v0 = vpop.f32.mrb[25].mxu0 }
 0x273   : > { %v4965_v34 = vpop.f32.mrb[30].mxu1  ;;  %4114 = vst.msk [vmem:[%s6740_s17 + $0xa8] sm:$0xff] %vm518_vm1, %v4078_v39  ;;  %v5199_v46 = vadd.f32 %v3938_v0, %v2248_v15  ;;  %v5153_v1 = vpop.f32.mrb[26].mxu0 }
 0x274   : > { %v2267_v51 = vpop.f32.mrb[31].mxu1  ;;  %v4047_v30 = vmax.f32 %v5198_v58, 0.0  ;;  %v5200_v60 = vadd.f32 %v5153_v1, %v4961_v52  ;;  %v3941_v61 = vpop.f32.mrb[27].mxu0 }
 0x275   : > { %v4045_v29 = vmax.f32 %v5199_v46, 0.0  ;;  %v5201_v6 = vadd.f32 %v3941_v61, %v2251_v22 }
 0x276   : > { %v4083_v17 = vmin.f32 %v4047_v30, 6.0  ;;  %v4048_v56 = vmax.f32 %v5200_v60, 0.0 }
 0x277   : > { %v4081_v50 = vmin.f32 %v4045_v29, 6.0  ;;  %v4046_v2 = vmax.f32 %v5201_v6, 0.0 }
 0x278   : > { %4119 = vst.msk [vmem:[%s6740_s17 + $0xd0] sm:$0xff] %vm518_vm1, %v4083_v17  ;;  %v4084_v43 = vmin.f32 %v4048_v56, 6.0 }
 0x279   : > { %v4968_v12 = vpop.f32.mrb[32].mxu1  ;;  %4117 = vst.msk [vmem:[%s6740_s17 + $0xc0] sm:$0xff] %vm518_vm1, %v4081_v50  ;;  %v4082_v59 = vmin.f32 %v4046_v2, 6.0  ;;  %v5156_v44 = vpop.f32.mrb[28].mxu0 }
 0x27a   : > { %v2280_v45 = vpop.f32.mrb[33].mxu1  ;;  %4120 = vst.msk [vmem:[%s6740_s17 + $0xd8] sm:$0xff] %vm518_vm1, %v4084_v43  ;;  %v5202_v3 = vadd.f32 %v5156_v44, %v4964_v16  ;;  %v3954_v48 = vpop.f32.mrb[29].mxu0 }
 0x27b   : > { %v4969_v62 = vpop.f32.mrb[34].mxu1  ;;  %4118 = vst.msk [vmem:[%s6740_s17 + $0xc8] sm:$0xff] %vm518_vm1, %v4082_v59  ;;  %v5203_v26 = vadd.f32 %v3954_v48, %v2264_v33  ;;  %v5157_v40 = vpop.f32.mrb[30].mxu0 }
 0x27c   : > { %v2283_v4 = vpop.f32.mrb[35].mxu1  ;;  %v4051_v37 = vmax.f32 %v5202_v3, 0.0  ;;  %v5204_v42 = vadd.f32 %v5157_v40, %v4965_v34  ;;  %v3957_v7 = vpop.f32.mrb[31].mxu0 }
 0x27d   : > { %v4049_v8 = vmax.f32 %v5203_v26, 0.0  ;;  %v5205_v55 = vadd.f32 %v3957_v7, %v2267_v51 }
 0x27e   : > { %v4087_v53 = vmin.f32 %v4051_v37, 6.0  ;;  %v4052_v49 = vmax.f32 %v5204_v42, 0.0 }
 0x27f   : > { %v4085_v35 = vmin.f32 %v4049_v8, 6.0  ;;  %v4050_v5 = vmax.f32 %v5205_v55, 0.0 }
 0x280   : > { %4123 = vst.msk [vmem:[%s6740_s17 + $0xf0] sm:$0xff] %vm518_vm1, %v4087_v53  ;;  %v4088_v36 = vmin.f32 %v4052_v49, 6.0 }
 0x281   : > { %4121 = vst.msk [vmem:[%s6740_s17 + $0xe0] sm:$0xff] %vm518_vm1, %v4085_v35  ;;  %v4086_v47 = vmin.f32 %v4050_v5, 6.0  ;;  %v5160_v9 = vpop.f32.mrb[32].mxu0 }
 0x282   : > { %4124 = vst.msk [vmem:[%s6740_s17 + $0xf8] sm:$0xff] %vm518_vm1, %v4088_v36  ;;  %v5206_v54 = vadd.f32 %v5160_v9, %v4968_v12  ;;  %v3970_v41 = vpop.f32.mrb[33].mxu0 }
 0x283   : > { %4122 = vst.msk [vmem:[%s6740_s17 + $0xe8] sm:$0xff] %vm518_vm1, %v4086_v47  ;;  %v5207_v20 = vadd.f32 %v3970_v41, %v2280_v45  ;;  %v5161_v15 = vpop.f32.mrb[34].mxu0 }
 0x284   : > { %v4055_v11 = vmax.f32 %v5206_v54, 0.0  ;;  %v5208_v24 = vadd.f32 %v5161_v15, %v4969_v62  ;;  %v3973_v52 = vpop.f32.mrb[35].mxu0 }
 0x285   : > { %v4053_v57 = vmax.f32 %v5207_v20, 0.0  ;;  %v5209_v32 = vadd.f32 %v3973_v52, %v2283_v4 }
 0x286   : > { %v4091_v22 = vmin.f32 %v4055_v11, 6.0  ;;  %v4056_v19 = vmax.f32 %v5208_v24, 0.0 }
 0x287   : > { %v4089_v28 = vmin.f32 %v4053_v57, 6.0  ;;  %v4054_v38 = vmax.f32 %v5209_v32, 0.0 }
 0x288   : > { %4127 = vst.msk [vmem:[%s6740_s17 + $0x110] sm:$0xff] %vm518_vm1, %v4091_v22  ;;  %v4092_v21 = vmin.f32 %v4056_v19, 6.0 }
 0x289   : > { %4125 = vst.msk [vmem:[%s6740_s17 + $0x100] sm:$0xff] %vm518_vm1, %v4089_v28  ;;  %v4090_v27 = vmin.f32 %v4054_v38, 6.0 }
 0x28a   : > { %4128 = vst.msk [vmem:[%s6740_s17 + $0x118] sm:$0xff] %vm518_vm1, %v4092_v21 }
 0x28b   : > { %4126 = vst.msk [vmem:[%s6740_s17 + $0x108] sm:$0xff] %vm518_vm1, %v4090_v27 }
 0x28c   : > { %5745 = shalt.err (!%p5742_p7)
}
 0x28d   : > { %s5746_s18 = scalar_lea.hbm %s6821_s27, 4608  ;;  %s5750_s23 = scalar_lea.hbm %s6875_s2, 9216 }
 0x28e   : > { %p5747_p9 = scmp.ne.s32.totalorder %s6821_s27, %s5746_s18  ;;  %p5751_p5 = scmp.lt.u32.totalorder %s6821_s27, %s6875_s2 }
 0x28f   : > { %p5752_p13 = scmp.lt.u32.totalorder %s5750_s23, %s5746_s18  ;;  %p5754_p4 = scmp.lt.u32.totalorder %s5746_s18, %s6821_s27 }
 0x290   : > { %p5748_p1 = pnand %p5747_p9, %p5920_p12 }
 0x291   : > { %p5753_p2 = por %p5752_p13, %p5751_p5 }
 0x292   : > { %p5749_p0 = pneg %p5748_p1 }
 0x293   : > { %p5755_p6 = por %p5754_p4, %p5753_p2 }
 0x295   : > { %p5756_p8 = pnand %p5755_p6, %p5749_p0 }
 0x297   : > { %5759 = shalt.err (!%p5756_p8)
}
 0x298   : > { %s5809_s3 = smov 128   ;;  %s5810_s15 = smov 8  }
 0x299   : > { %5473 = dma.vmem_to_hbm [thread:$0]  (%p5920_p12), %s6823_s5, 4608, %s6821_s27, %s4130_s13, %s5809_s3, %s5809_s3, %s5810_s15  }
 0x29a PF: > { %s4158_s17 = sand.u32 1, %s5790_s9   ;;  %p6890_p10 = scmp.ne.s32.totalorder %s6880_s16, 0 }
 0x29b   : > { %p6891_p11 = scmp.ge.s32.totalorder %s5802_s12, 2  ;;  %s4159_s4 = scalar_lea.sflag [#allocation4], %s4158_s17 }
 0x29d   : > { %p5484_p3 = pnand %p6891_p11, %p6890_p10 }
 0x29f   : > { %5785 = dma.done.wait (!%p5484_p3), %s4159_s4, 4608  }
 0x2a0   : > { %5787 = vsyncadd (!%p5484_p3), %s4159_s4, 4294962688  ;;  %p16_p7 = scmp.ge.s32.totalorder %s5882_s21, 4   ;;  %s6892_s9 = smov %s5794_s10 }
 0x2a1   : > { %s6893_s10 = smov %s5798_s11  ;;  %s6894_s11 = smov %s5916_s8 }
 0x2a2   : > { %s6895_s12 = smov %s5882_s21  ;;  %18 = sbr.rel (!%p16_p7) target bundleno = 6 (0x6), region = 85 }
 0x2a9   :  { %4164 = vsyncpa [#allocation3], 1 }
 0x2aa   :  { %4166 = vsyncpa [#allocation3 + $0x1], 1 }
 0x2ab   :  { %4167 = vsyncpa [#allocation6], 1 }
 0x2ac   :  { %4168 = vsyncpa [#allocation4], 1 }
 0x2ad   :  { %4170 = vsyncpa [#allocation4 + $0x1], 1 }

</bundles_post_ra>
